<compile_context>
chip_gen: v7x
topology: tpu7x:2x2x1
jax: 0.10.0
libtpu: 0.0.40
codegen_flags: <defaults>
</compile_context>

<pallas_src>
import jax
import jax.numpy as jnp
import numpy as np
from jax.experimental import pallas as pl
from jax.experimental.pallas import tpu as pltpu

BN_EPS = 1e-5
NUM_SUPPORTS = 2  # number of graph supports (adjacency matrices)


# --------------------------------- kernel ---------------------------------
def _encoder_kernel(x_ref, shift_ref, adjbig_ref,
                    wgate_ref, bgate_ref, wsm_ref, bsm_ref, wprop_ref,
                    gamma_ref, beta_ref,
                    out_ref, skip_ref):
    """Whole Encoder (all layers + skip accumulation) in one VMEM-resident call."""
    M, C = x_ref.shape                      # M = B*N*T rows ordered (b, n, t)
    L = wgate_ref.shape[0]                  # number of encoder layers
    Cs = wsm_ref.shape[-1] - C              # skip channels
    K = adjbig_ref.shape[0] // M            # number of graph supports

    adjbig = adjbig_ref[...]                # (K*M, M) bf16 block-diag supports
    x2 = x_ref[...]                         # (M, C) f32 current activation
    skip_acc = jnp.zeros((M, Cs), jnp.float32)

    for depth in range(L):                  # static unroll over layers
        x_bf = x2.astype(jnp.bfloat16)

        # ---- dilated causal time shift: exact 0/1 block-diag matmul (MXU) ----
        xs_bf = jnp.dot(shift_ref[depth], x_bf,
                        preferred_element_type=jnp.float32).astype(jnp.bfloat16)

        # ---- gated temporal conv: filter & gate fused into one (C, 2C) weight ----
        wg = wgate_ref[depth]               # (2C, 2C): rows [wf1|wg1 ; wf2|wg2]
        fg = (jnp.dot(x_bf, wg[:C], preferred_element_type=jnp.float32)
              + jnp.dot(xs_bf, wg[C:], preferred_element_type=jnp.float32)
              + bgate_ref[depth])           # (M, 2C) f32
        gate = pl.reciprocal(1.0 + jnp.exp(-fg[:, C:]), approx=True)  # sigmoid (EUP)
        h2 = jnp.tanh(fg[:, :C]) * gate     # (M, C) f32
        h_bf = h2.astype(jnp.bfloat16)

        # ---- skip (1x1) and wm0 channel mix fused into one (C, Cs + C) weight ----
        sm = (jnp.dot(h_bf, wsm_ref[depth], preferred_element_type=jnp.float32)
              + bsm_ref[depth])             # (M, Cs + C) f32
        skip_acc = skip_acc + sm[:, :Cs]
        mix = sm[:, Cs:]

        # ---- graph conv: node mixing for all K supports in one MXU matmul ----
        pk_all = jnp.dot(adjbig, h_bf, preferred_element_type=jnp.float32)  # (K*M, C)
        wp = wprop_ref[depth]               # (K*C, C): [wm1 ; wm2]
        for k in range(K):
            pk_k = pk_all[k * M:(k + 1) * M].astype(jnp.bfloat16)
            mix = mix + jnp.dot(pk_k, wp[k * C:(k + 1) * C],
                                preferred_element_type=jnp.float32)

        # ---- residual + BatchNorm2d (training-mode batch stats, single pass) ----
        y = x2 + mix
        mean = jnp.mean(y, axis=0, keepdims=True)
        var = jnp.maximum(jnp.mean(y * y, axis=0, keepdims=True) - mean * mean, 0.0)
        x2 = (y - mean) * jax.lax.rsqrt(var + BN_EPS) * gamma_ref[depth] + beta_ref[depth]

    out_ref[...] = x2.astype(out_ref.dtype)
    skip_ref[...] = skip_acc.astype(skip_ref.dtype)


# --------------------------------- wrapper ---------------------------------
def pallas_encoder(x, adjs, layer_params):
    """x: (B, N, T, C) f32, adjs: (K, N, N) f32 -> (out, skip) like Encoder.forward."""
    B, Nn, T, C = x.shape
    K = adjs.shape[0]
    L = len(layer_params)
    Cs = layer_params[0]["ws"].shape[1]
    M = B * Nn * T
    bf = jnp.bfloat16

    # ---- pack per-layer weights (cheap XLA ops, fused/folded by the compiler) ----
    wgate = jnp.stack([
        jnp.concatenate([jnp.concatenate([p["wf1"], p["wg1"]], axis=1),
                         jnp.concatenate([p["wf2"], p["wg2"]], axis=1)], axis=0)
        for p in layer_params]).astype(bf)                               # (L, 2C, 2C)
    bgate = jnp.stack([jnp.concatenate([p["bf"], p["bg"]], axis=1)
                       for p in layer_params])                           # (L, 1, 2C)
    wsm = jnp.stack([jnp.concatenate([p["ws"], p["wm0"]], axis=1)
                     for p in layer_params]).astype(bf)                  # (L, C, Cs+C)
    bsm = jnp.stack([jnp.concatenate([p["bs"], p["bm"]], axis=1)
                     for p in layer_params])                             # (L, 1, Cs+C)
    wprop = jnp.stack([jnp.concatenate([p["wm1"], p["wm2"]], axis=0)
                       for p in layer_params]).astype(bf)                # (L, 2C, C)
    gamma = jnp.stack([p["gamma"] for p in layer_params])                # (L, 1, C)
    beta = jnp.stack([p["beta"] for p in layer_params])                  # (L, 1, C)

    # ---- structural 0/1 matrices (shape-only -> constant-folded; adjs -> tiny kron) ----
    blk = jnp.arange(M) // T                 # (b, n) block id per row
    tt = jnp.arange(M) % T                   # time index per row
    shift_mats = jnp.stack([
        ((blk[:, None] == blk[None, :]) & (tt[:, None] == tt[None, :] + 2 ** depth))
        .astype(bf) for depth in range(L)])  # (L, M, M): xs[i] = x[i - d] within block
    eye_b = jnp.eye(B, dtype=adjs.dtype)
    eye_t = jnp.eye(T, dtype=adjs.dtype)
    adjbig = jnp.concatenate(
        [jnp.kron(jnp.kron(eye_b, adjs[k].T), eye_t) for k in range(K)],
        axis=0).astype(bf)                   # (K*M, M): prop[b,w,t] = sum_v A[v,w] h[b,v,t]

    vmem = pl.BlockSpec(memory_space=pltpu.MemorySpace.VMEM)
    out2, skip2 = pl.pallas_call(
        _encoder_kernel,
        out_shape=(jax.ShapeDtypeStruct((M, C), x.dtype),
                   jax.ShapeDtypeStruct((M, Cs), x.dtype)),
        in_specs=[vmem] * 10,
        out_specs=(vmem, vmem),
        # TODO(synk): at production sizes, tile (B, N) on a 'parallel' grid axis
        # (v7x dual TensorCore, 64 MiB VMEM budget) and replace the O(M^2)
        # shift/support matrices with in-kernel rolls; the training-mode
        # BatchNorm batch statistics would then need a cross-tile reduction.
    )(x.reshape(M, C), shift_mats, adjbig,
      wgate, bgate, wsm, bsm, wprop, gamma, beta)

    return out2.reshape(B, Nn, T, C), skip2.reshape(B, Nn, T, Cs)


# ----------------------- pure-JAX reference (for checking) -----------------------
def _bf16_round(a):
    return a.astype(jnp.bfloat16).astype(jnp.float32)


def _mm4(a, w):
    # Mimic the kernel precision policy (bf16 operands, f32 accumulation) while
    # emitting a plain f32 x f32 dot -> runs on any backend (the eager XLA:CPU
    # DotThunk rejects bf16 x bf16 = f32, which is what broke the previous run).
    return jnp.einsum("bntc,cd->bntd", _bf16_round(a), _bf16_round(w))


def _ref_layer(x, adjs, p, dilation):
    B, Nn, T, C = x.shape
    xs = jnp.pad(x, ((0, 0), (0, 0), (dilation, 0), (0, 0)))[:, :, :T, :]
    f = _mm4(x, p["wf1"]) + _mm4(xs, p["wf2"]) + p["bf"]
    g = _mm4(x, p["wg1"]) + _mm4(xs, p["wg2"]) + p["bg"]
    h = jnp.tanh(f) * jax.nn.sigmoid(g)
    skip = _mm4(h, p["ws"]) + p["bs"]
    mix = _mm4(h, p["wm0"])
    for k, w in enumerate((p["wm1"], p["wm2"])):
        pk = jnp.einsum("bvtc,vw->bwtc", _bf16_round(h), _bf16_round(adjs[k]))
        mix = mix + _mm4(pk, w)
    mix = mix + p["bm"]
    y = x + mix
    mean = jnp.mean(y, axis=(0, 1, 2), keepdims=True)
    var = jnp.mean((y - mean) ** 2, axis=(0, 1, 2), keepdims=True)
    y = (y - mean) * jax.lax.rsqrt(var + BN_EPS) * p["gamma"] + p["beta"]
    return y, skip


def ref_encoder(x, adjs, layer_params):
    skip = 0.0
    for depth, p in enumerate(layer_params):
        x, s = _ref_layer(x, adjs, p, dilation=2 ** depth)
        skip = skip + s
    return x, skip


# ----------------------- deterministic parameter construction --------------------
def make_params(key, C, Cs, num_layers):
    k_shared, k_tmp = jax.random.split(key)
    sc = 1.0 / np.sqrt(C)
    kg = jax.random.split(k_shared, 4)
    # spatial_conv / batch_norm are deepcopies of one template -> identical
    # initial values across layers.
    shared = dict(
        wm0=jax.random.normal(kg[0], (C, C), jnp.float32) * sc,
        wm1=jax.random.normal(kg[1], (C, C), jnp.float32) * sc,
        wm2=jax.random.normal(kg[2], (C, C), jnp.float32) * sc,
        bm=jax.random.normal(kg[3], (1, C), jnp.float32) * 0.1,
        gamma=jnp.ones((1, C), jnp.float32),
        beta=jnp.zeros((1, C), jnp.float32),
    )
    layers = []
    for depth in range(num_layers):
        kd = jax.random.split(jax.random.fold_in(k_tmp, depth), 8)
        p = dict(shared)
        p.update(
            wf1=jax.random.normal(kd[0], (C, C), jnp.float32) * sc,
            wf2=jax.random.normal(kd[1], (C, C), jnp.float32) * sc,
            bf=jax.random.normal(kd[2], (1, C), jnp.float32) * 0.1,
            wg1=jax.random.normal(kd[3], (C, C), jnp.float32) * sc,
            wg2=jax.random.normal(kd[4], (C, C), jnp.float32) * sc,
            bg=jax.random.normal(kd[5], (1, C), jnp.float32) * 0.1,
            ws=jax.random.normal(kd[6], (C, Cs), jnp.float32) * sc,
            bs=jax.random.normal(kd[7], (1, Cs), jnp.float32) * 0.1,
        )
        layers.append(p)
    return layers


if __name__ == "__main__":
    B, Nn, T, C, Cs, num_layers = 2, 8, 16, 32, 32, 3

    key = jax.random.PRNGKey(0)
    kx, ka, kp = jax.random.split(key, 3)
    x = jax.random.normal(kx, (B, Nn, T, C), jnp.float32)
    # K row-stochastic graph supports
    adjs = jax.nn.softmax(jax.random.normal(ka, (NUM_SUPPORTS, Nn, Nn), jnp.float32), axis=-1)
    params = make_params(kp, C, Cs, num_layers)

    run = jax.jit(pallas_encoder)
    out, skip = jax.block_until_ready(run(x, adjs, params))

    ref_out, ref_skip = jax.jit(ref_encoder)(x, adjs, params)
    ref_out = np.asarray(jax.block_until_ready(ref_out))
    ref_skip = np.asarray(jax.block_until_ready(ref_skip))

    np.testing.assert_allclose(np.asarray(out), ref_out, rtol=2e-2, atol=2e-2)
    np.testing.assert_allclose(np.asarray(skip), ref_skip, rtol=2e-2, atol=2e-2)
    assert np.all(np.isfinite(np.asarray(out))) and np.all(np.isfinite(np.asarray(skip)))

    print("KERNEL_OK")
</pallas_src>

<mosaic_0001>
module attributes {stable_mosaic.version = 11 : i64} {
  func.func @_encoder_kernel(%arg0: memref<256x32xf32, #tpu.memory_space<vmem>>, %arg1: memref<3x256x256xbf16, #tpu.memory_space<vmem>>, %arg2: memref<512x256xbf16, #tpu.memory_space<vmem>>, %arg3: memref<3x64x64xbf16, #tpu.memory_space<vmem>>, %arg4: memref<3x1x64xf32, #tpu.memory_space<vmem>>, %arg5: memref<3x32x64xbf16, #tpu.memory_space<vmem>>, %arg6: memref<3x1x64xf32, #tpu.memory_space<vmem>>, %arg7: memref<3x64x32xbf16, #tpu.memory_space<vmem>>, %arg8: memref<3x1x32xf32, #tpu.memory_space<vmem>>, %arg9: memref<3x1x32xf32, #tpu.memory_space<vmem>>, %arg10: memref<256x32xf32, #tpu.memory_space<vmem>>, %arg11: memref<256x32xf32, #tpu.memory_space<vmem>>) attributes {dimension_semantics = [], scalar_prefetch = 0 : i64, scratch_operands = 0 : i64, tpu.core_type = #tpu.core_type<tc>} {
    %c0 = arith.constant 0 : index
    %c0_0 = arith.constant 0 : index
    %0 = vector.load %arg2[%c0, %c0_0] : memref<512x256xbf16, #tpu.memory_space<vmem>>, vector<512x256xbf16>
    %c0_1 = arith.constant 0 : index
    %c0_2 = arith.constant 0 : index
    %1 = vector.load %arg0[%c0_1, %c0_2] : memref<256x32xf32, #tpu.memory_space<vmem>>, vector<256x32xf32>
    %cst = arith.constant 0.000000e+00 : f32
    %2 = vector.broadcast %cst : f32 to vector<256x32xf32>
    %3 = arith.truncf %1 : vector<256x32xf32> to vector<256x32xbf16>
    %c0_3 = arith.constant 0 : index
    %c0_4 = arith.constant 0 : index
    %c0_5 = arith.constant 0 : index
    %4 = vector.load %arg1[%c0_3, %c0_4, %c0_5] : memref<3x256x256xbf16, #tpu.memory_space<vmem>>, vector<1x256x256xbf16>
    %5 = vector.shape_cast %4 : vector<1x256x256xbf16> to vector<256x256xbf16>
    %cst_6 = arith.constant dense<0.000000e+00> : vector<256x32xf32>
    %6 = tpu.matmul %5, %3, %cst_6 {dimension_numbers = #tpu.dot_dimension_numbers<[1], [0], [0], [1], [0, 0, 1, 1], [], []>} : vector<256x256xbf16>, vector<256x32xbf16>, vector<256x32xf32> -> vector<256x32xf32>
    %7 = arith.truncf %6 : vector<256x32xf32> to vector<256x32xbf16>
    %c0_7 = arith.constant 0 : index
    %c0_8 = arith.constant 0 : index
    %c0_9 = arith.constant 0 : index
    %8 = vector.load %arg3[%c0_7, %c0_8, %c0_9] : memref<3x64x64xbf16, #tpu.memory_space<vmem>>, vector<1x64x64xbf16>
    %9 = vector.shape_cast %8 : vector<1x64x64xbf16> to vector<64x64xbf16>
    %10 = vector.extract_strided_slice %9 {offsets = [0, 0], sizes = [32, 64], strides = [1, 1]} : vector<64x64xbf16> to vector<32x64xbf16>
    %cst_10 = arith.constant dense<0.000000e+00> : vector<256x64xf32>
    %11 = tpu.matmul %3, %10, %cst_10 {dimension_numbers = #tpu.dot_dimension_numbers<[1], [0], [0], [1], [0, 0, 1, 1], [], []>} : vector<256x32xbf16>, vector<32x64xbf16>, vector<256x64xf32> -> vector<256x64xf32>
    %12 = vector.extract_strided_slice %9 {offsets = [32, 0], sizes = [32, 64], strides = [1, 1]} : vector<64x64xbf16> to vector<32x64xbf16>
    %cst_11 = arith.constant dense<0.000000e+00> : vector<256x64xf32>
    %13 = tpu.matmul %7, %12, %cst_11 {dimension_numbers = #tpu.dot_dimension_numbers<[1], [0], [0], [1], [0, 0, 1, 1], [], []>} : vector<256x32xbf16>, vector<32x64xbf16>, vector<256x64xf32> -> vector<256x64xf32>
    %14 = arith.addf %11, %13 : vector<256x64xf32>
    %c0_12 = arith.constant 0 : index
    %c0_13 = arith.constant 0 : index
    %c0_14 = arith.constant 0 : index
    %15 = vector.load %arg4[%c0_12, %c0_13, %c0_14] : memref<3x1x64xf32, #tpu.memory_space<vmem>>, vector<1x1x64xf32>
    %16 = vector.shape_cast %15 : vector<1x1x64xf32> to vector<1x64xf32>
    %17 = vector.broadcast %16 : vector<1x64xf32> to vector<256x64xf32>
    %18 = arith.addf %14, %17 : vector<256x64xf32>
    %19 = vector.extract_strided_slice %18 {offsets = [0, 32], sizes = [256, 32], strides = [1, 1]} : vector<256x64xf32> to vector<256x32xf32>
    %cst_15 = arith.constant 0.000000e+00 : f32
    %20 = vector.broadcast %cst_15 : f32 to vector<256x32xf32>
    %21 = arith.subf %20, %19 : vector<256x32xf32>
    %22 = math.exp %21 : vector<256x32xf32>
    %cst_16 = arith.constant 1.000000e+00 : f32
    %23 = vector.broadcast %cst_16 : f32 to vector<256x32xf32>
    %24 = arith.addf %23, %22 : vector<256x32xf32>
    %25 = tpu.reciprocal %24 {approx = true} : vector<256x32xf32> -> vector<256x32xf32>
    %26 = vector.extract_strided_slice %18 {offsets = [0, 0], sizes = [256, 32], strides = [1, 1]} : vector<256x64xf32> to vector<256x32xf32>
    %27 = math.tanh %26 : vector<256x32xf32>
    %28 = arith.mulf %27, %25 : vector<256x32xf32>
    %29 = arith.truncf %28 : vector<256x32xf32> to vector<256x32xbf16>
    %c0_17 = arith.constant 0 : index
    %c0_18 = arith.constant 0 : index
    %c0_19 = arith.constant 0 : index
    %30 = vector.load %arg5[%c0_17, %c0_18, %c0_19] : memref<3x32x64xbf16, #tpu.memory_space<vmem>>, vector<1x32x64xbf16>
    %31 = vector.shape_cast %30 : vector<1x32x64xbf16> to vector<32x64xbf16>
    %cst_20 = arith.constant dense<0.000000e+00> : vector<256x64xf32>
    %32 = tpu.matmul %29, %31, %cst_20 {dimension_numbers = #tpu.dot_dimension_numbers<[1], [0], [0], [1], [0, 0, 1, 1], [], []>} : vector<256x32xbf16>, vector<32x64xbf16>, vector<256x64xf32> -> vector<256x64xf32>
    %c0_21 = arith.constant 0 : index
    %c0_22 = arith.constant 0 : index
    %c0_23 = arith.constant 0 : index
    %33 = vector.load %arg6[%c0_21, %c0_22, %c0_23] : memref<3x1x64xf32, #tpu.memory_space<vmem>>, vector<1x1x64xf32>
    %34 = vector.shape_cast %33 : vector<1x1x64xf32> to vector<1x64xf32>
    %35 = vector.broadcast %34 : vector<1x64xf32> to vector<256x64xf32>
    %36 = arith.addf %32, %35 : vector<256x64xf32>
    %37 = vector.extract_strided_slice %36 {offsets = [0, 0], sizes = [256, 32], strides = [1, 1]} : vector<256x64xf32> to vector<256x32xf32>
    %38 = arith.addf %2, %37 : vector<256x32xf32>
    %39 = vector.extract_strided_slice %36 {offsets = [0, 32], sizes = [256, 32], strides = [1, 1]} : vector<256x64xf32> to vector<256x32xf32>
    %cst_24 = arith.constant dense<0.000000e+00> : vector<512x32xf32>
    %40 = tpu.matmul %0, %29, %cst_24 {dimension_numbers = #tpu.dot_dimension_numbers<[1], [0], [0], [1], [0, 0, 1, 1], [], []>} : vector<512x256xbf16>, vector<256x32xbf16>, vector<512x32xf32> -> vector<512x32xf32>
    %c0_25 = arith.constant 0 : index
    %c0_26 = arith.constant 0 : index
    %c0_27 = arith.constant 0 : index
    %41 = vector.load %arg7[%c0_25, %c0_26, %c0_27] : memref<3x64x32xbf16, #tpu.memory_space<vmem>>, vector<1x64x32xbf16>
    %42 = vector.shape_cast %41 : vector<1x64x32xbf16> to vector<64x32xbf16>
    %43 = vector.extract_strided_slice %40 {offsets = [0, 0], sizes = [256, 32], strides = [1, 1]} : vector<512x32xf32> to vector<256x32xf32>
    %44 = arith.truncf %43 : vector<256x32xf32> to vector<256x32xbf16>
    %45 = vector.extract_strided_slice %42 {offsets = [0, 0], sizes = [32, 32], strides = [1, 1]} : vector<64x32xbf16> to vector<32x32xbf16>
    %cst_28 = arith.constant dense<0.000000e+00> : vector<256x32xf32>
    %46 = tpu.matmul %44, %45, %cst_28 {dimension_numbers = #tpu.dot_dimension_numbers<[1], [0], [0], [1], [0, 0, 1, 1], [], []>} : vector<256x32xbf16>, vector<32x32xbf16>, vector<256x32xf32> -> vector<256x32xf32>
    %47 = arith.addf %39, %46 : vector<256x32xf32>
    %48 = vector.extract_strided_slice %40 {offsets = [256, 0], sizes = [256, 32], strides = [1, 1]} : vector<512x32xf32> to vector<256x32xf32>
    %49 = arith.truncf %48 : vector<256x32xf32> to vector<256x32xbf16>
    %50 = vector.extract_strided_slice %42 {offsets = [32, 0], sizes = [32, 32], strides = [1, 1]} : vector<64x32xbf16> to vector<32x32xbf16>
    %cst_29 = arith.constant dense<0.000000e+00> : vector<256x32xf32>
    %51 = tpu.matmul %49, %50, %cst_29 {dimension_numbers = #tpu.dot_dimension_numbers<[1], [0], [0], [1], [0, 0, 1, 1], [], []>} : vector<256x32xbf16>, vector<32x32xbf16>, vector<256x32xf32> -> vector<256x32xf32>
    %52 = arith.addf %47, %51 : vector<256x32xf32>
    %53 = arith.addf %1, %52 : vector<256x32xf32>
    %cst_30 = arith.constant dense<0.000000e+00> : vector<32xf32>
    %54 = vector.multi_reduction <add>, %53, %cst_30 [0] : vector<256x32xf32> to vector<32xf32>
    %55 = vector.shape_cast %54 : vector<32xf32> to vector<1x32xf32>
    %cst_31 = arith.constant 2.560000e+02 : f32
    %56 = vector.broadcast %cst_31 : f32 to vector<1x32xf32>
    %57 = arith.divf %55, %56 : vector<1x32xf32>
    %58 = arith.mulf %53, %53 : vector<256x32xf32>
    %cst_32 = arith.constant dense<0.000000e+00> : vector<32xf32>
    %59 = vector.multi_reduction <add>, %58, %cst_32 [0] : vector<256x32xf32> to vector<32xf32>
    %60 = vector.shape_cast %59 : vector<32xf32> to vector<1x32xf32>
    %cst_33 = arith.constant 2.560000e+02 : f32
    %61 = vector.broadcast %cst_33 : f32 to vector<1x32xf32>
    %62 = arith.divf %60, %61 : vector<1x32xf32>
    %63 = arith.mulf %57, %57 : vector<1x32xf32>
    %64 = arith.subf %62, %63 : vector<1x32xf32>
    %cst_34 = arith.constant 0.000000e+00 : f32
    %65 = vector.broadcast %cst_34 : f32 to vector<1x32xf32>
    %66 = arith.maximumf %64, %65 : vector<1x32xf32>
    %67 = vector.broadcast %57 : vector<1x32xf32> to vector<256x32xf32>
    %68 = arith.subf %53, %67 : vector<256x32xf32>
    %cst_35 = arith.constant 9.99999974E-6 : f32
    %69 = vector.broadcast %cst_35 : f32 to vector<1x32xf32>
    %70 = arith.addf %66, %69 : vector<1x32xf32>
    %71 = math.rsqrt %70 : vector<1x32xf32>
    %72 = vector.broadcast %71 : vector<1x32xf32> to vector<256x32xf32>
    %73 = arith.mulf %68, %72 : vector<256x32xf32>
    %c0_36 = arith.constant 0 : index
    %c0_37 = arith.constant 0 : index
    %c0_38 = arith.constant 0 : index
    %74 = vector.load %arg8[%c0_36, %c0_37, %c0_38] : memref<3x1x32xf32, #tpu.memory_space<vmem>>, vector<1x1x32xf32>
    %75 = vector.shape_cast %74 : vector<1x1x32xf32> to vector<1x32xf32>
    %76 = vector.broadcast %75 : vector<1x32xf32> to vector<256x32xf32>
    %77 = arith.mulf %73, %76 : vector<256x32xf32>
    %c0_39 = arith.constant 0 : index
    %c0_40 = arith.constant 0 : index
    %c0_41 = arith.constant 0 : index
    %78 = vector.load %arg9[%c0_39, %c0_40, %c0_41] : memref<3x1x32xf32, #tpu.memory_space<vmem>>, vector<1x1x32xf32>
    %79 = vector.shape_cast %78 : vector<1x1x32xf32> to vector<1x32xf32>
    %80 = vector.broadcast %79 : vector<1x32xf32> to vector<256x32xf32>
    %81 = arith.addf %77, %80 : vector<256x32xf32>
    %82 = arith.truncf %81 : vector<256x32xf32> to vector<256x32xbf16>
    %c1 = arith.constant 1 : index
    %c0_42 = arith.constant 0 : index
    %c0_43 = arith.constant 0 : index
    %83 = vector.load %arg1[%c1, %c0_42, %c0_43] : memref<3x256x256xbf16, #tpu.memory_space<vmem>>, vector<1x256x256xbf16>
    %84 = vector.shape_cast %83 : vector<1x256x256xbf16> to vector<256x256xbf16>
    %cst_44 = arith.constant dense<0.000000e+00> : vector<256x32xf32>
    %85 = tpu.matmul %84, %82, %cst_44 {dimension_numbers = #tpu.dot_dimension_numbers<[1], [0], [0], [1], [0, 0, 1, 1], [], []>} : vector<256x256xbf16>, vector<256x32xbf16>, vector<256x32xf32> -> vector<256x32xf32>
    %86 = arith.truncf %85 : vector<256x32xf32> to vector<256x32xbf16>
    %c1_45 = arith.constant 1 : index
    %c0_46 = arith.constant 0 : index
    %c0_47 = arith.constant 0 : index
    %87 = vector.load %arg3[%c1_45, %c0_46, %c0_47] : memref<3x64x64xbf16, #tpu.memory_space<vmem>>, vector<1x64x64xbf16>
    %88 = vector.shape_cast %87 : vector<1x64x64xbf16> to vector<64x64xbf16>
    %89 = vector.extract_strided_slice %88 {offsets = [0, 0], sizes = [32, 64], strides = [1, 1]} : vector<64x64xbf16> to vector<32x64xbf16>
    %cst_48 = arith.constant dense<0.000000e+00> : vector<256x64xf32>
    %90 = tpu.matmul %82, %89, %cst_48 {dimension_numbers = #tpu.dot_dimension_numbers<[1], [0], [0], [1], [0, 0, 1, 1], [], []>} : vector<256x32xbf16>, vector<32x64xbf16>, vector<256x64xf32> -> vector<256x64xf32>
    %91 = vector.extract_strided_slice %88 {offsets = [32, 0], sizes = [32, 64], strides = [1, 1]} : vector<64x64xbf16> to vector<32x64xbf16>
    %cst_49 = arith.constant dense<0.000000e+00> : vector<256x64xf32>
    %92 = tpu.matmul %86, %91, %cst_49 {dimension_numbers = #tpu.dot_dimension_numbers<[1], [0], [0], [1], [0, 0, 1, 1], [], []>} : vector<256x32xbf16>, vector<32x64xbf16>, vector<256x64xf32> -> vector<256x64xf32>
    %93 = arith.addf %90, %92 : vector<256x64xf32>
    %c1_50 = arith.constant 1 : index
    %c0_51 = arith.constant 0 : index
    %c0_52 = arith.constant 0 : index
    %94 = vector.load %arg4[%c1_50, %c0_51, %c0_52] : memref<3x1x64xf32, #tpu.memory_space<vmem>>, vector<1x1x64xf32>
    %95 = vector.shape_cast %94 : vector<1x1x64xf32> to vector<1x64xf32>
    %96 = vector.broadcast %95 : vector<1x64xf32> to vector<256x64xf32>
    %97 = arith.addf %93, %96 : vector<256x64xf32>
    %98 = vector.extract_strided_slice %97 {offsets = [0, 32], sizes = [256, 32], strides = [1, 1]} : vector<256x64xf32> to vector<256x32xf32>
    %cst_53 = arith.constant 0.000000e+00 : f32
    %99 = vector.broadcast %cst_53 : f32 to vector<256x32xf32>
    %100 = arith.subf %99, %98 : vector<256x32xf32>
    %101 = math.exp %100 : vector<256x32xf32>
    %cst_54 = arith.constant 1.000000e+00 : f32
    %102 = vector.broadcast %cst_54 : f32 to vector<256x32xf32>
    %103 = arith.addf %102, %101 : vector<256x32xf32>
    %104 = tpu.reciprocal %103 {approx = true} : vector<256x32xf32> -> vector<256x32xf32>
    %105 = vector.extract_strided_slice %97 {offsets = [0, 0], sizes = [256, 32], strides = [1, 1]} : vector<256x64xf32> to vector<256x32xf32>
    %106 = math.tanh %105 : vector<256x32xf32>
    %107 = arith.mulf %106, %104 : vector<256x32xf32>
    %108 = arith.truncf %107 : vector<256x32xf32> to vector<256x32xbf16>
    %c1_55 = arith.constant 1 : index
    %c0_56 = arith.constant 0 : index
    %c0_57 = arith.constant 0 : index
    %109 = vector.load %arg5[%c1_55, %c0_56, %c0_57] : memref<3x32x64xbf16, #tpu.memory_space<vmem>>, vector<1x32x64xbf16>
    %110 = vector.shape_cast %109 : vector<1x32x64xbf16> to vector<32x64xbf16>
    %cst_58 = arith.constant dense<0.000000e+00> : vector<256x64xf32>
    %111 = tpu.matmul %108, %110, %cst_58 {dimension_numbers = #tpu.dot_dimension_numbers<[1], [0], [0], [1], [0, 0, 1, 1], [], []>} : vector<256x32xbf16>, vector<32x64xbf16>, vector<256x64xf32> -> vector<256x64xf32>
    %c1_59 = arith.constant 1 : index
    %c0_60 = arith.constant 0 : index
    %c0_61 = arith.constant 0 : index
    %112 = vector.load %arg6[%c1_59, %c0_60, %c0_61] : memref<3x1x64xf32, #tpu.memory_space<vmem>>, vector<1x1x64xf32>
    %113 = vector.shape_cast %112 : vector<1x1x64xf32> to vector<1x64xf32>
    %114 = vector.broadcast %113 : vector<1x64xf32> to vector<256x64xf32>
    %115 = arith.addf %111, %114 : vector<256x64xf32>
    %116 = vector.extract_strided_slice %115 {offsets = [0, 0], sizes = [256, 32], strides = [1, 1]} : vector<256x64xf32> to vector<256x32xf32>
    %117 = arith.addf %38, %116 : vector<256x32xf32>
    %118 = vector.extract_strided_slice %115 {offsets = [0, 32], sizes = [256, 32], strides = [1, 1]} : vector<256x64xf32> to vector<256x32xf32>
    %cst_62 = arith.constant dense<0.000000e+00> : vector<512x32xf32>
    %119 = tpu.matmul %0, %108, %cst_62 {dimension_numbers = #tpu.dot_dimension_numbers<[1], [0], [0], [1], [0, 0, 1, 1], [], []>} : vector<512x256xbf16>, vector<256x32xbf16>, vector<512x32xf32> -> vector<512x32xf32>
    %c1_63 = arith.constant 1 : index
    %c0_64 = arith.constant 0 : index
    %c0_65 = arith.constant 0 : index
    %120 = vector.load %arg7[%c1_63, %c0_64, %c0_65] : memref<3x64x32xbf16, #tpu.memory_space<vmem>>, vector<1x64x32xbf16>
    %121 = vector.shape_cast %120 : vector<1x64x32xbf16> to vector<64x32xbf16>
    %122 = vector.extract_strided_slice %119 {offsets = [0, 0], sizes = [256, 32], strides = [1, 1]} : vector<512x32xf32> to vector<256x32xf32>
    %123 = arith.truncf %122 : vector<256x32xf32> to vector<256x32xbf16>
    %124 = vector.extract_strided_slice %121 {offsets = [0, 0], sizes = [32, 32], strides = [1, 1]} : vector<64x32xbf16> to vector<32x32xbf16>
    %cst_66 = arith.constant dense<0.000000e+00> : vector<256x32xf32>
    %125 = tpu.matmul %123, %124, %cst_66 {dimension_numbers = #tpu.dot_dimension_numbers<[1], [0], [0], [1], [0, 0, 1, 1], [], []>} : vector<256x32xbf16>, vector<32x32xbf16>, vector<256x32xf32> -> vector<256x32xf32>
    %126 = arith.addf %118, %125 : vector<256x32xf32>
    %127 = vector.extract_strided_slice %119 {offsets = [256, 0], sizes = [256, 32], strides = [1, 1]} : vector<512x32xf32> to vector<256x32xf32>
    %128 = arith.truncf %127 : vector<256x32xf32> to vector<256x32xbf16>
    %129 = vector.extract_strided_slice %121 {offsets = [32, 0], sizes = [32, 32], strides = [1, 1]} : vector<64x32xbf16> to vector<32x32xbf16>
    %cst_67 = arith.constant dense<0.000000e+00> : vector<256x32xf32>
    %130 = tpu.matmul %128, %129, %cst_67 {dimension_numbers = #tpu.dot_dimension_numbers<[1], [0], [0], [1], [0, 0, 1, 1], [], []>} : vector<256x32xbf16>, vector<32x32xbf16>, vector<256x32xf32> -> vector<256x32xf32>
    %131 = arith.addf %126, %130 : vector<256x32xf32>
    %132 = arith.addf %81, %131 : vector<256x32xf32>
    %cst_68 = arith.constant dense<0.000000e+00> : vector<32xf32>
    %133 = vector.multi_reduction <add>, %132, %cst_68 [0] : vector<256x32xf32> to vector<32xf32>
    %134 = vector.shape_cast %133 : vector<32xf32> to vector<1x32xf32>
    %cst_69 = arith.constant 2.560000e+02 : f32
    %135 = vector.broadcast %cst_69 : f32 to vector<1x32xf32>
    %136 = arith.divf %134, %135 : vector<1x32xf32>
    %137 = arith.mulf %132, %132 : vector<256x32xf32>
    %cst_70 = arith.constant dense<0.000000e+00> : vector<32xf32>
    %138 = vector.multi_reduction <add>, %137, %cst_70 [0] : vector<256x32xf32> to vector<32xf32>
    %139 = vector.shape_cast %138 : vector<32xf32> to vector<1x32xf32>
    %cst_71 = arith.constant 2.560000e+02 : f32
    %140 = vector.broadcast %cst_71 : f32 to vector<1x32xf32>
    %141 = arith.divf %139, %140 : vector<1x32xf32>
    %142 = arith.mulf %136, %136 : vector<1x32xf32>
    %143 = arith.subf %141, %142 : vector<1x32xf32>
    %cst_72 = arith.constant 0.000000e+00 : f32
    %144 = vector.broadcast %cst_72 : f32 to vector<1x32xf32>
    %145 = arith.maximumf %143, %144 : vector<1x32xf32>
    %146 = vector.broadcast %136 : vector<1x32xf32> to vector<256x32xf32>
    %147 = arith.subf %132, %146 : vector<256x32xf32>
    %cst_73 = arith.constant 9.99999974E-6 : f32
    %148 = vector.broadcast %cst_73 : f32 to vector<1x32xf32>
    %149 = arith.addf %145, %148 : vector<1x32xf32>
    %150 = math.rsqrt %149 : vector<1x32xf32>
    %151 = vector.broadcast %150 : vector<1x32xf32> to vector<256x32xf32>
    %152 = arith.mulf %147, %151 : vector<256x32xf32>
    %c1_74 = arith.constant 1 : index
    %c0_75 = arith.constant 0 : index
    %c0_76 = arith.constant 0 : index
    %153 = vector.load %arg8[%c1_74, %c0_75, %c0_76] : memref<3x1x32xf32, #tpu.memory_space<vmem>>, vector<1x1x32xf32>
    %154 = vector.shape_cast %153 : vector<1x1x32xf32> to vector<1x32xf32>
    %155 = vector.broadcast %154 : vector<1x32xf32> to vector<256x32xf32>
    %156 = arith.mulf %152, %155 : vector<256x32xf32>
    %c1_77 = arith.constant 1 : index
    %c0_78 = arith.constant 0 : index
    %c0_79 = arith.constant 0 : index
    %157 = vector.load %arg9[%c1_77, %c0_78, %c0_79] : memref<3x1x32xf32, #tpu.memory_space<vmem>>, vector<1x1x32xf32>
    %158 = vector.shape_cast %157 : vector<1x1x32xf32> to vector<1x32xf32>
    %159 = vector.broadcast %158 : vector<1x32xf32> to vector<256x32xf32>
    %160 = arith.addf %156, %159 : vector<256x32xf32>
    %161 = arith.truncf %160 : vector<256x32xf32> to vector<256x32xbf16>
    %c2 = arith.constant 2 : index
    %c0_80 = arith.constant 0 : index
    %c0_81 = arith.constant 0 : index
    %162 = vector.load %arg1[%c2, %c0_80, %c0_81] : memref<3x256x256xbf16, #tpu.memory_space<vmem>>, vector<1x256x256xbf16>
    %163 = vector.shape_cast %162 : vector<1x256x256xbf16> to vector<256x256xbf16>
    %cst_82 = arith.constant dense<0.000000e+00> : vector<256x32xf32>
    %164 = tpu.matmul %163, %161, %cst_82 {dimension_numbers = #tpu.dot_dimension_numbers<[1], [0], [0], [1], [0, 0, 1, 1], [], []>} : vector<256x256xbf16>, vector<256x32xbf16>, vector<256x32xf32> -> vector<256x32xf32>
    %165 = arith.truncf %164 : vector<256x32xf32> to vector<256x32xbf16>
    %c2_83 = arith.constant 2 : index
    %c0_84 = arith.constant 0 : index
    %c0_85 = arith.constant 0 : index
    %166 = vector.load %arg3[%c2_83, %c0_84, %c0_85] : memref<3x64x64xbf16, #tpu.memory_space<vmem>>, vector<1x64x64xbf16>
    %167 = vector.shape_cast %166 : vector<1x64x64xbf16> to vector<64x64xbf16>
    %168 = vector.extract_strided_slice %167 {offsets = [0, 0], sizes = [32, 64], strides = [1, 1]} : vector<64x64xbf16> to vector<32x64xbf16>
    %cst_86 = arith.constant dense<0.000000e+00> : vector<256x64xf32>
    %169 = tpu.matmul %161, %168, %cst_86 {dimension_numbers = #tpu.dot_dimension_numbers<[1], [0], [0], [1], [0, 0, 1, 1], [], []>} : vector<256x32xbf16>, vector<32x64xbf16>, vector<256x64xf32> -> vector<256x64xf32>
    %170 = vector.extract_strided_slice %167 {offsets = [32, 0], sizes = [32, 64], strides = [1, 1]} : vector<64x64xbf16> to vector<32x64xbf16>
    %cst_87 = arith.constant dense<0.000000e+00> : vector<256x64xf32>
    %171 = tpu.matmul %165, %170, %cst_87 {dimension_numbers = #tpu.dot_dimension_numbers<[1], [0], [0], [1], [0, 0, 1, 1], [], []>} : vector<256x32xbf16>, vector<32x64xbf16>, vector<256x64xf32> -> vector<256x64xf32>
    %172 = arith.addf %169, %171 : vector<256x64xf32>
    %c2_88 = arith.constant 2 : index
    %c0_89 = arith.constant 0 : index
    %c0_90 = arith.constant 0 : index
    %173 = vector.load %arg4[%c2_88, %c0_89, %c0_90] : memref<3x1x64xf32, #tpu.memory_space<vmem>>, vector<1x1x64xf32>
    %174 = vector.shape_cast %173 : vector<1x1x64xf32> to vector<1x64xf32>
    %175 = vector.broadcast %174 : vector<1x64xf32> to vector<256x64xf32>
    %176 = arith.addf %172, %175 : vector<256x64xf32>
    %177 = vector.extract_strided_slice %176 {offsets = [0, 32], sizes = [256, 32], strides = [1, 1]} : vector<256x64xf32> to vector<256x32xf32>
    %cst_91 = arith.constant 0.000000e+00 : f32
    %178 = vector.broadcast %cst_91 : f32 to vector<256x32xf32>
    %179 = arith.subf %178, %177 : vector<256x32xf32>
    %180 = math.exp %179 : vector<256x32xf32>
    %cst_92 = arith.constant 1.000000e+00 : f32
    %181 = vector.broadcast %cst_92 : f32 to vector<256x32xf32>
    %182 = arith.addf %181, %180 : vector<256x32xf32>
    %183 = tpu.reciprocal %182 {approx = true} : vector<256x32xf32> -> vector<256x32xf32>
    %184 = vector.extract_strided_slice %176 {offsets = [0, 0], sizes = [256, 32], strides = [1, 1]} : vector<256x64xf32> to vector<256x32xf32>
    %185 = math.tanh %184 : vector<256x32xf32>
    %186 = arith.mulf %185, %183 : vector<256x32xf32>
    %187 = arith.truncf %186 : vector<256x32xf32> to vector<256x32xbf16>
    %c2_93 = arith.constant 2 : index
    %c0_94 = arith.constant 0 : index
    %c0_95 = arith.constant 0 : index
    %188 = vector.load %arg5[%c2_93, %c0_94, %c0_95] : memref<3x32x64xbf16, #tpu.memory_space<vmem>>, vector<1x32x64xbf16>
    %189 = vector.shape_cast %188 : vector<1x32x64xbf16> to vector<32x64xbf16>
    %cst_96 = arith.constant dense<0.000000e+00> : vector<256x64xf32>
    %190 = tpu.matmul %187, %189, %cst_96 {dimension_numbers = #tpu.dot_dimension_numbers<[1], [0], [0], [1], [0, 0, 1, 1], [], []>} : vector<256x32xbf16>, vector<32x64xbf16>, vector<256x64xf32> -> vector<256x64xf32>
    %c2_97 = arith.constant 2 : index
    %c0_98 = arith.constant 0 : index
    %c0_99 = arith.constant 0 : index
    %191 = vector.load %arg6[%c2_97, %c0_98, %c0_99] : memref<3x1x64xf32, #tpu.memory_space<vmem>>, vector<1x1x64xf32>
    %192 = vector.shape_cast %191 : vector<1x1x64xf32> to vector<1x64xf32>
    %193 = vector.broadcast %192 : vector<1x64xf32> to vector<256x64xf32>
    %194 = arith.addf %190, %193 : vector<256x64xf32>
    %195 = vector.extract_strided_slice %194 {offsets = [0, 0], sizes = [256, 32], strides = [1, 1]} : vector<256x64xf32> to vector<256x32xf32>
    %196 = arith.addf %117, %195 : vector<256x32xf32>
    %197 = vector.extract_strided_slice %194 {offsets = [0, 32], sizes = [256, 32], strides = [1, 1]} : vector<256x64xf32> to vector<256x32xf32>
    %cst_100 = arith.constant dense<0.000000e+00> : vector<512x32xf32>
    %198 = tpu.matmul %0, %187, %cst_100 {dimension_numbers = #tpu.dot_dimension_numbers<[1], [0], [0], [1], [0, 0, 1, 1], [], []>} : vector<512x256xbf16>, vector<256x32xbf16>, vector<512x32xf32> -> vector<512x32xf32>
    %c2_101 = arith.constant 2 : index
    %c0_102 = arith.constant 0 : index
    %c0_103 = arith.constant 0 : index
    %199 = vector.load %arg7[%c2_101, %c0_102, %c0_103] : memref<3x64x32xbf16, #tpu.memory_space<vmem>>, vector<1x64x32xbf16>
    %200 = vector.shape_cast %199 : vector<1x64x32xbf16> to vector<64x32xbf16>
    %201 = vector.extract_strided_slice %198 {offsets = [0, 0], sizes = [256, 32], strides = [1, 1]} : vector<512x32xf32> to vector<256x32xf32>
    %202 = arith.truncf %201 : vector<256x32xf32> to vector<256x32xbf16>
    %203 = vector.extract_strided_slice %200 {offsets = [0, 0], sizes = [32, 32], strides = [1, 1]} : vector<64x32xbf16> to vector<32x32xbf16>
    %cst_104 = arith.constant dense<0.000000e+00> : vector<256x32xf32>
    %204 = tpu.matmul %202, %203, %cst_104 {dimension_numbers = #tpu.dot_dimension_numbers<[1], [0], [0], [1], [0, 0, 1, 1], [], []>} : vector<256x32xbf16>, vector<32x32xbf16>, vector<256x32xf32> -> vector<256x32xf32>
    %205 = arith.addf %197, %204 : vector<256x32xf32>
    %206 = vector.extract_strided_slice %198 {offsets = [256, 0], sizes = [256, 32], strides = [1, 1]} : vector<512x32xf32> to vector<256x32xf32>
    %207 = arith.truncf %206 : vector<256x32xf32> to vector<256x32xbf16>
    %208 = vector.extract_strided_slice %200 {offsets = [32, 0], sizes = [32, 32], strides = [1, 1]} : vector<64x32xbf16> to vector<32x32xbf16>
    %cst_105 = arith.constant dense<0.000000e+00> : vector<256x32xf32>
    %209 = tpu.matmul %207, %208, %cst_105 {dimension_numbers = #tpu.dot_dimension_numbers<[1], [0], [0], [1], [0, 0, 1, 1], [], []>} : vector<256x32xbf16>, vector<32x32xbf16>, vector<256x32xf32> -> vector<256x32xf32>
    %210 = arith.addf %205, %209 : vector<256x32xf32>
    %211 = arith.addf %160, %210 : vector<256x32xf32>
    %cst_106 = arith.constant dense<0.000000e+00> : vector<32xf32>
    %212 = vector.multi_reduction <add>, %211, %cst_106 [0] : vector<256x32xf32> to vector<32xf32>
    %213 = vector.shape_cast %212 : vector<32xf32> to vector<1x32xf32>
    %cst_107 = arith.constant 2.560000e+02 : f32
    %214 = vector.broadcast %cst_107 : f32 to vector<1x32xf32>
    %215 = arith.divf %213, %214 : vector<1x32xf32>
    %216 = arith.mulf %211, %211 : vector<256x32xf32>
    %cst_108 = arith.constant dense<0.000000e+00> : vector<32xf32>
    %217 = vector.multi_reduction <add>, %216, %cst_108 [0] : vector<256x32xf32> to vector<32xf32>
    %218 = vector.shape_cast %217 : vector<32xf32> to vector<1x32xf32>
    %cst_109 = arith.constant 2.560000e+02 : f32
    %219 = vector.broadcast %cst_109 : f32 to vector<1x32xf32>
    %220 = arith.divf %218, %219 : vector<1x32xf32>
    %221 = arith.mulf %215, %215 : vector<1x32xf32>
    %222 = arith.subf %220, %221 : vector<1x32xf32>
    %cst_110 = arith.constant 0.000000e+00 : f32
    %223 = vector.broadcast %cst_110 : f32 to vector<1x32xf32>
    %224 = arith.maximumf %222, %223 : vector<1x32xf32>
    %225 = vector.broadcast %215 : vector<1x32xf32> to vector<256x32xf32>
    %226 = arith.subf %211, %225 : vector<256x32xf32>
    %cst_111 = arith.constant 9.99999974E-6 : f32
    %227 = vector.broadcast %cst_111 : f32 to vector<1x32xf32>
    %228 = arith.addf %224, %227 : vector<1x32xf32>
    %229 = math.rsqrt %228 : vector<1x32xf32>
    %230 = vector.broadcast %229 : vector<1x32xf32> to vector<256x32xf32>
    %231 = arith.mulf %226, %230 : vector<256x32xf32>
    %c2_112 = arith.constant 2 : index
    %c0_113 = arith.constant 0 : index
    %c0_114 = arith.constant 0 : index
    %232 = vector.load %arg8[%c2_112, %c0_113, %c0_114] : memref<3x1x32xf32, #tpu.memory_space<vmem>>, vector<1x1x32xf32>
    %233 = vector.shape_cast %232 : vector<1x1x32xf32> to vector<1x32xf32>
    %234 = vector.broadcast %233 : vector<1x32xf32> to vector<256x32xf32>
    %235 = arith.mulf %231, %234 : vector<256x32xf32>
    %c2_115 = arith.constant 2 : index
    %c0_116 = arith.constant 0 : index
    %c0_117 = arith.constant 0 : index
    %236 = vector.load %arg9[%c2_115, %c0_116, %c0_117] : memref<3x1x32xf32, #tpu.memory_space<vmem>>, vector<1x1x32xf32>
    %237 = vector.shape_cast %236 : vector<1x1x32xf32> to vector<1x32xf32>
    %238 = vector.broadcast %237 : vector<1x32xf32> to vector<256x32xf32>
    %239 = arith.addf %235, %238 : vector<256x32xf32>
    %c0_118 = arith.constant 0 : index
    %c0_119 = arith.constant 0 : index
    %240 = vector.load %arg10[%c0_118, %c0_119] : memref<256x32xf32, #tpu.memory_space<vmem>>, vector<256x32xf32>
    tpu.vector_store %arg10[%c0_118, %c0_119], %239 {strides = array<i32>} : memref<256x32xf32, #tpu.memory_space<vmem>>, vector<256x32xf32>,
    %c0_120 = arith.constant 0 : index
    %c0_121 = arith.constant 0 : index
    %241 = vector.load %arg11[%c0_120, %c0_121] : memref<256x32xf32, #tpu.memory_space<vmem>>, vector<256x32xf32>
    tpu.vector_store %arg11[%c0_120, %c0_121], %196 {strides = array<i32>} : memref<256x32xf32, #tpu.memory_space<vmem>>, vector<256x32xf32>,
    return
  }
}

</mosaic_0001>

<bundles_post_ra>
// kernel: pallas_encoder.1
= control target key start
LH: loop header
LB: loop body
LE: loop exit
PB: predicated region body
PF: predicated region fallthrough
CT: control target
= control target key end

     0   :  { %17 = vsyncpa [#allocation3], 0  ;;  %s17718_s0 = inlined_call_operand.vmem [shape: f32[256,32], index: 0, kind: input, shape index: {}]   ;;  %s17719_s1 = inlined_call_operand.vmem [shape: bf16[3,256,256], index: 1, kind: input, shape index: {}]   ;;  %s17720_s2 = inlined_call_operand.vmem [shape: bf16[512,256], index: 2, kind: input, shape index: {}]   ;;  %s17721_s3 = inlined_call_operand.vmem [shape: bf16[3,64,64], index: 3, kind: input, shape index: {}]   ;;  %s17722_s4 = inlined_call_operand.vmem [shape: f32[3,1,64], index: 4, kind: input, shape index: {}]   ;;  %s17723_s5 = inlined_call_operand.vmem [shape: bf16[3,32,64], index: 5, kind: input, shape index: {}]   ;;  %s17724_s6 = inlined_call_operand.vmem [shape: f32[3,1,64], index: 6, kind: input, shape index: {}]   ;;  %s17725_s7 = inlined_call_operand.vmem [shape: bf16[3,64,32], index: 7, kind: input, shape index: {}]   ;;  %s17726_s8 = inlined_call_operand.vmem [shape: f32[3,1,32], index: 8, kind: input, shape index: {}]   ;;  %s17727_s9 = inlined_call_operand.vmem [shape: f32[3,1,32], index: 9, kind: input, shape index: {}]   ;;  %s17728_s10 = inlined_call_operand.hbm [shape: f32[256,32], index: 10, kind: output, shape index: {0}]   ;;  %s17729_s11 = inlined_call_operand.hbm [shape: f32[256,32], index: 11, kind: output, shape index: {1}]  }
   0x1   :  { %v120_v0 = vld [vmem:[%s17718_s0 + $0x80] sm:$0xff]  ;;  %v121_v1 = vld [vmem:[%s17718_s0 + $0x88] sm:$0xff]  ;;  %v122_v5 = vld [vmem:[%s17718_s0 + $0x90] sm:$0xff] }
   0x2   :  { %v104_v2 = vld [vmem:[%s17718_s0] sm:$0xff]  ;;  %v12769_v3 = vpack.c.bf16 %v121_v1, %v120_v0  ;;  %v105_v4 = vld [vmem:[%s17718_s0 + $0x8] sm:$0xff]  ;;  %v123_v6 = vld [vmem:[%s17718_s0 + $0x98] sm:$0xff] }
   0x3   :  { %v12780_v7 = vpack.c.bf16 %v105_v4, %v104_v2  ;;  %v12782_v8 = vpack.c.bf16 %v123_v6, %v122_v5  ;;  %v106_v9 = vld [vmem:[%s17718_s0 + $0x10] sm:$0xff]  ;;  %v107_v10 = vld [vmem:[%s17718_s0 + $0x18] sm:$0xff]  ;;  %v124_v11 = vld [vmem:[%s17718_s0 + $0xa0] sm:$0xff] }
   0x4   :  { %10352 = vmatprep.subr.bf16.mxu0 %v12769_v3  ;;  %v125_v12 = vld [vmem:[%s17718_s0 + $0xa8] sm:$0xff]  ;;  %v12798_v13 = vpack.c.bf16 %v107_v10, %v106_v9  ;;  %v108_v15 = vld [vmem:[%s17718_s0 + $0x20] sm:$0xff]  ;;  %v126_v17 = vld [vmem:[%s17718_s0 + $0xb0] sm:$0xff] }
   0x5   :  { %10353 = vmatpush3.bf16.msra.mxu0 %v12780_v7  ;;  %v12801_v14 = vpack.c.bf16 %v125_v12, %v124_v11  ;;  %v109_v16 = vld [vmem:[%s17718_s0 + $0x28] sm:$0xff]  ;;  %v127_v18 = vld [vmem:[%s17718_s0 + $0xb8] sm:$0xff]  ;;  %v110_v21 = vld [vmem:[%s17718_s0 + $0x30] sm:$0xff] }
   0x6   :  { %10354 = vmatprep.subr.bf16.mxu0 %v12782_v8  ;;  %v12816_v19 = vpack.c.bf16 %v109_v16, %v108_v15  ;;  %v12819_v20 = vpack.c.bf16 %v127_v18, %v126_v17  ;;  %v111_v22 = vld [vmem:[%s17718_s0 + $0x38] sm:$0xff]  ;;  %v128_v23 = vld [vmem:[%s17718_s0 + $0xc0] sm:$0xff]  ;;  %v129_v24 = vld [vmem:[%s17718_s0 + $0xc8] sm:$0xff] }
   0x7   :  { %v11635_v25 = vld [vmem:[%s17719_s1 + $0x4] ss:$8 sps:$4 sm:$0xff]   ;;  %v12837_v26 = vpack.c.bf16 %v111_v22, %v110_v21  ;;  %v12843_v28 = vpack.c.bf16 %v129_v24, %v128_v23  ;;  %v130_v30 = vld [vmem:[%s17718_s0 + $0xd0] sm:$0xff]  ;;  %v131_v31 = vld [vmem:[%s17718_s0 + $0xd8] sm:$0xff] }
   0x8   :  { %v112_v27 = vld [vmem:[%s17718_s0 + $0x40] sm:$0xff]  ;;  %v113_v29 = vld [vmem:[%s17718_s0 + $0x48] sm:$0xff]  ;;  %376 = vmatprep.mubr.bf16.mxu0 %v11635_v25  ;;  %v114_v33 = vld [vmem:[%s17718_s0 + $0x50] sm:$0xff]  ;;  %v12861_v34 = vpack.c.bf16 %v131_v31, %v130_v30 }
   0x9   :  { %10355 = vmatpush3.bf16.msra.mxu0 %v12798_v13  ;;  %v12855_v32 = vpack.c.bf16 %v113_v29, %v112_v27  ;;  %v115_v35 = vld [vmem:[%s17718_s0 + $0x58] sm:$0xff]  ;;  %v132_v36 = vld [vmem:[%s17718_s0 + $0xe0] sm:$0xff]  ;;  %v133_v37 = vld [vmem:[%s17718_s0 + $0xe8] sm:$0xff] }
   0xa   :  { %10356 = vmatprep.subr.bf16.mxu0 %v12801_v14  ;;  %v12873_v38 = vpack.c.bf16 %v115_v35, %v114_v33  ;;  %v116_v39 = vld [vmem:[%s17718_s0 + $0x60] sm:$0xff]  ;;  %v12879_v40 = vpack.c.bf16 %v133_v37, %v132_v36  ;;  %v117_v41 = vld [vmem:[%s17718_s0 + $0x68] sm:$0xff]  ;;  %v134_v42 = vld [vmem:[%s17718_s0 + $0xf0] sm:$0xff] }
   0xb   :  { %v135_v43 = vld [vmem:[%s17718_s0 + $0xf8] sm:$0xff]  ;;  %v12891_v44 = vpack.c.bf16 %v117_v41, %v116_v39  ;;  %v118_v45 = vld [vmem:[%s17718_s0 + $0x70] sm:$0xff]  ;;  %v11633_v49 = vld [vmem:[%s17719_s1] ss:$8 sps:$4 sm:$0xff]  }
   0xc   :  { %v12897_v46 = vpack.c.bf16 %v135_v43, %v134_v42  ;;  %v119_v47 = vld [vmem:[%s17718_s0 + $0x78] sm:$0xff]  ;;  %v11639_v52 = vld [vmem:[%s17719_s1 + $0x24] ss:$8 sps:$4 sm:$0xff]   ;;  %v11641_v53 = vld [vmem:[%s17719_s1 + $0x20] ss:$8 sps:$4 sm:$0xff]  }
   0xd   :  { %10357 = vmatpush3.bf16.msra.mxu0 %v12816_v19  ;;  %v12903_v48 = vpack.c.bf16 %v119_v47, %v118_v45  ;;  %v11636_v50 = vld [vmem:[%s17719_s1 + $0x14] ss:$8 sps:$4 sm:$0xff]   ;;  %v11638_v51 = vld [vmem:[%s17719_s1 + $0x10] ss:$8 sps:$4 sm:$0xff]   ;;  %v11645_v56 = vld [vmem:[%s17719_s1 + $0x44] ss:$8 sps:$4 sm:$0xff]  }
   0xe   :  { %10358 = vmatprep.subr.bf16.mxu0 %v12819_v20  ;;  %v11642_v54 = vld [vmem:[%s17719_s1 + $0x34] ss:$8 sps:$4 sm:$0xff]   ;;  %v11644_v55 = vld [vmem:[%s17719_s1 + $0x30] ss:$8 sps:$4 sm:$0xff]   ;;  %v11647_v57 = vld [vmem:[%s17719_s1 + $0x40] ss:$8 sps:$4 sm:$0xff]  }
   0xf   :  { %v11648_v58 = vld [vmem:[%s17719_s1 + $0x54] ss:$8 sps:$4 sm:$0xff]   ;;  %v11650_v59 = vld [vmem:[%s17719_s1 + $0x50] ss:$8 sps:$4 sm:$0xff]   ;;  %v11651_v60 = vld [vmem:[%s17719_s1 + $0x64] ss:$8 sps:$4 sm:$0xff]  }
  0x10   :  { %v11653_v61 = vld [vmem:[%s17719_s1 + $0x60] ss:$8 sps:$4 sm:$0xff]   ;;  %v11654_v62 = vld [vmem:[%s17719_s1 + $0x74] ss:$8 sps:$4 sm:$0xff]   ;;  %v11656_v63 = vld [vmem:[%s17719_s1 + $0x70] ss:$8 sps:$4 sm:$0xff]  }
  0x11   :  { %10359 = vmatpush3.bf16.msra.mxu0 %v12837_v26  ;;  %v11657_v0 = vld [vmem:[%s17719_s1 + $0x84] ss:$8 sps:$4 sm:$0xff]  }
  0x12   :  { %10360 = vmatprep.subr.bf16.mxu0 %v12843_v28 }
  0x15   :  { %10361 = vmatpush3.bf16.msra.mxu0 %v12855_v32 }
  0x16   :  { %10362 = vmatprep.subr.bf16.mxu0 %v12861_v34 }
  0x19   :  { %10363 = vmatpush3.bf16.msra.mxu0 %v12873_v38 }
  0x1a   :  { %10364 = vmatprep.subr.bf16.mxu0 %v12879_v40 }
  0x1d   :  { %10365 = vmatpush3.bf16.msra.mxu0 %v12891_v44 }
  0x1e   :  { %10366 = vmatprep.subr.bf16.mxu0 %v12897_v46 }
  0x21   :  { %10367 = vmatpush3.bf16.msra.mxu0 %v12903_v48 }
  0x24   :  { %377 = vmatmul.mubr.bf16.vlgmr.msra.gmra.mrb[0].mxu0 %v11633_v49 }
  0x25   :  { %384 = vmatprep.mubr.bf16.mxu0 %v11636_v50 }
  0x2c   :  { %385 = vmatmul.mubr.bf16.gmra.mrb[4].mxu0 %v11638_v51 }
  0x2d   :  { %392 = vmatprep.mubr.bf16.mxu0 %v11639_v52 }
  0x34   :  { %393 = vmatmul.mubr.bf16.gmra.mrb[8].mxu0 %v11641_v53 }
  0x35   :  { %400 = vmatprep.mubr.bf16.mxu0 %v11642_v54 }
  0x3c   :  { %401 = vmatmul.mubr.bf16.gmra.mrb[12].mxu0 %v11644_v55 }
  0x3d   :  { %408 = vmatprep.mubr.bf16.mxu0 %v11645_v56 }
  0x44   :  { %409 = vmatmul.mubr.bf16.gmra.mrb[16].mxu0 %v11647_v57 }
  0x45   :  { %416 = vmatprep.mubr.bf16.mxu0 %v11648_v58 }
  0x4c   :  { %417 = vmatmul.mubr.bf16.gmra.mrb[20].mxu0 %v11650_v59 }
  0x4d   :  { %424 = vmatprep.mubr.bf16.mxu0 %v11651_v60 }
  0x54   :  { %425 = vmatmul.mubr.bf16.gmra.mrb[24].mxu0 %v11653_v61 }
  0x55   :  { %432 = vmatprep.mubr.bf16.mxu0 %v11654_v62 }
  0x5c   :  { %433 = vmatmul.mubr.bf16.gmra.mrb[28].mxu0 %v11656_v63 }
  0x5d   :  { %440 = vmatprep.mubr.bf16.mxu0 %v11657_v0 }
  0x5e   :  { %18 = vsyncpa [#allocation5], 0  ;;  %v11659_v1 = vld [vmem:[%s17719_s1 + $0x80] ss:$8 sps:$4 sm:$0xff]   ;;  %v11660_v2 = vld [vmem:[%s17719_s1 + $0x94] ss:$8 sps:$4 sm:$0xff]  }
  0x5f   :  { %v11662_v4 = vld [vmem:[%s17719_s1 + $0x90] ss:$8 sps:$4 sm:$0xff]   ;;  %v11663_v5 = vld [vmem:[%s17719_s1 + $0xa4] ss:$8 sps:$4 sm:$0xff]   ;;  %v11665_v6 = vld [vmem:[%s17719_s1 + $0xa0] ss:$8 sps:$4 sm:$0xff]  }
  0x60   :  { %v11666_v9 = vld [vmem:[%s17719_s1 + $0xb4] ss:$8 sps:$4 sm:$0xff]   ;;  %v11668_v10 = vld [vmem:[%s17719_s1 + $0xb0] ss:$8 sps:$4 sm:$0xff]   ;;  %v11669_v11 = vld [vmem:[%s17719_s1 + $0xc4] ss:$8 sps:$4 sm:$0xff]  }
  0x61   :  { %v11681_v12 = vld [vmem:[%s17721_s3 + $0x10] sm:$0xff]   ;;  %v11671_v15 = vld [vmem:[%s17719_s1 + $0xc0] ss:$8 sps:$4 sm:$0xff]   ;;  %v11682_v17 = vld [vmem:[%s17721_s3 + $0x18] sm:$0xff]   ;;  %vm541_vm0 = vcmask 261120   ;;  %s12694_s26 = smov 96  }
  0x62   :  { %10958 = vmatprep.subr.bf16.mxu1 %v11681_v12  ;;  %v11672_v16 = vld [vmem:[%s17719_s1 + $0xd4] ss:$8 sps:$4 sm:$0xff]   ;;  %v11674_v18 = vld [vmem:[%s17719_s1 + $0xd0] ss:$8 sps:$4 sm:$0xff]   ;;  %v11675_v21 = vld [vmem:[%s17719_s1 + $0xe4] ss:$8 sps:$4 sm:$0xff]  }
  0x63   :  { %10959 = vmatpush3.bf16.msra.mxu1 %v11681_v12  ;;  %v11677_v22 = vld [vmem:[%s17719_s1 + $0xe0] ss:$8 sps:$4 sm:$0xff]   ;;  %v11678_v23 = vld [vmem:[%s17719_s1 + $0xf4] ss:$8 sps:$4 sm:$0xff]   ;;  %v11680_v24 = vld [vmem:[%s17719_s1 + $0xf0] ss:$8 sps:$4 sm:$0xff]  }
  0x64   :  { %441 = vmatmul.mubr.bf16.gmra.mrb[32].mxu0 %v11659_v1  ;;  %10960 = vmatprep.subr.bf16.mxu1 %v11682_v17  ;;  %v11683_v25 = vld [vmem:[%s17721_s3] sm:$0xff]   ;;  %v11684_v49 = vld [vmem:[%s17721_s3 + $0x8] sm:$0xff]   ;;  %s12695_s18 = smov 32  }
  0x65   :  { %448 = vmatprep.mubr.bf16.mxu0 %v11660_v2 }
  0x67   :  { %10961 = vmatpush3.bf16.msra.mxu1 %v11682_v17 }
  0x68   :  { %10994 = vmatprep.subr.bf16.mxu1 %v11683_v25 }
  0x6c   :  { %449 = vmatmul.mubr.bf16.gmra.mrb[36].mxu0 %v11662_v4 }
  0x6d   :  { %456 = vmatprep.mubr.bf16.mxu0 %v11663_v5 }
  0x74   :  { %457 = vmatmul.mubr.bf16.gmra.mrb[40].mxu0 %v11665_v6 }
  0x75   :  { %464 = vmatprep.mubr.bf16.mxu0 %v11666_v9 }
  0x7c   :  { %465 = vmatmul.mubr.bf16.gmra.mrb[44].mxu0 %v11668_v10 }
  0x7d   :  { %472 = vmatprep.mubr.bf16.mxu0 %v11669_v11 }
  0x84   :  { %473 = vmatmul.mubr.bf16.gmra.mrb[48].mxu0 %v11671_v15 }
  0x85   :  { %480 = vmatprep.mubr.bf16.mxu0 %v11672_v16 }
  0x8c   :  { %481 = vmatmul.mubr.bf16.gmra.mrb[52].mxu0 %v11674_v18 }
  0x8d   :  { %488 = vmatprep.mubr.bf16.mxu0 %v11675_v21 }
  0x94   :  { %489 = vmatmul.mubr.bf16.gmra.mrb[56].mxu0 %v11677_v22 }
  0x95   :  { %496 = vmatprep.mubr.bf16.mxu0 %v11678_v23 }
  0x9c   :  { %497 = vmatmul.mubr.bf16.gmra.mrb[60].mxu0 %v11680_v24 }
  0xf7   :  { %v10368_v27 = vpop.f32.mrb[0].mxu0 }
  0xf8   :  { %v10369_v29 = vpop.f32.mrb[1].mxu0 }
  0xf9   :  { %v10371_v30 = vpop.f32.mrb[2].mxu0  ;;  %v10370_v31 = vadd.f32 %v10369_v29, %v10368_v27 }
  0xfa   :  { %v10372_v33 = vpop.f32.mrb[3].mxu0 }
  0xfb   :  { %v10373_v35 = vadd.f32 %v10372_v33, %v10371_v30 }
  0xfd   :  { %v505_v36 = vpack.c.bf16 %v10373_v35, %v10370_v31 }
  0xff   :  { %v10374_v37 = vpop.f32.mrb[4].mxu0  ;;  %10962 = vmatprep.mubr.msk.bf16.mxu1 %vm541_vm0, %v505_v36 }
 0x100   :  { %v10375_v39 = vpop.f32.mrb[5].mxu0 }
 0x101   :  { %v10376_v41 = vadd.f32 %v10375_v39, %v10374_v37  ;;  %v10377_v42 = vpop.f32.mrb[6].mxu0 }
 0x102   :  { %v10378_v43 = vpop.f32.mrb[7].mxu0 }
 0x103   :  { %v10379_v45 = vadd.f32 %v10378_v43, %v10377_v42 }
 0x105   :  { %v506_v47 = vpack.c.bf16 %v10379_v45, %v10376_v41 }
 0x107   :  { %v10380_v50 = vpop.f32.mrb[8].mxu0  ;;  %10963 = vmatmul.mubr.msk.bf16.vlgmr.msra.gmra.mrb[0].mxu1 %vm541_vm0, %v506_v47 }
 0x108   :  { %v10381_v51 = vpop.f32.mrb[9].mxu0  ;;  %10995 = vmatpush3.bf16.msra.mxu1 %v11683_v25 }
 0x109   :  { %v10382_v52 = vadd.f32 %v10381_v51, %v10380_v50  ;;  %v10383_v53 = vpop.f32.mrb[10].mxu0  ;;  %10996 = vmatprep.subr.bf16.mxu1 %v11684_v49 }
 0x10a   :  { %v10384_v54 = vpop.f32.mrb[11].mxu0 }
 0x10b   :  { %v10385_v55 = vadd.f32 %v10384_v54, %v10383_v53 }
 0x10c   :  { %10997 = vmatpush3.bf16.msra.mxu1 %v11684_v49 }
 0x10d   :  { %v507_v56 = vpack.c.bf16 %v10385_v55, %v10382_v52 }
 0x10f   :  { %v10386_v57 = vpop.f32.mrb[12].mxu0  ;;  %10966 = vmatprep.mubr.msk.bf16.mxu1 %vm541_vm0, %v507_v56 }
 0x110   :  { %v10387_v58 = vpop.f32.mrb[13].mxu0 }
 0x111   :  { %v10388_v59 = vadd.f32 %v10387_v58, %v10386_v57  ;;  %v10389_v60 = vpop.f32.mrb[14].mxu0 }
 0x112   :  { %v10390_v61 = vpop.f32.mrb[15].mxu0 }
 0x113   :  { %v10391_v62 = vadd.f32 %v10390_v61, %v10389_v60 }
 0x115   :  { %v508_v63 = vpack.c.bf16 %v10391_v62, %v10388_v59 }
 0x117   :  { %v10392_v0 = vpop.f32.mrb[16].mxu0  ;;  %10967 = vmatmul.mubr.msk.bf16.gmra.mrb[4].mxu1 %vm541_vm0, %v508_v63 }
 0x118   :  { %v10393_v1 = vpop.f32.mrb[17].mxu0 }
 0x119   :  { %v10394_v2 = vadd.f32 %v10393_v1, %v10392_v0  ;;  %v10395_v4 = vpop.f32.mrb[18].mxu0 }
 0x11a   :  { %v10396_v5 = vpop.f32.mrb[19].mxu0 }
 0x11b   :  { %v10397_v6 = vadd.f32 %v10396_v5, %v10395_v4 }
 0x11d   :  { %v509_v9 = vpack.c.bf16 %v10397_v6, %v10394_v2 }
 0x11f   :  { %v10398_v10 = vpop.f32.mrb[20].mxu0  ;;  %10970 = vmatprep.mubr.msk.bf16.mxu1 %vm541_vm0, %v509_v9 }
 0x120   :  { %v10399_v11 = vpop.f32.mrb[21].mxu0 }
 0x121   :  { %v10400_v12 = vadd.f32 %v10399_v11, %v10398_v10  ;;  %v10401_v15 = vpop.f32.mrb[22].mxu0 }
 0x122   :  { %v10402_v16 = vpop.f32.mrb[23].mxu0 }
 0x123   :  { %v10403_v17 = vadd.f32 %v10402_v16, %v10401_v15 }
 0x125   :  { %v510_v18 = vpack.c.bf16 %v10403_v17, %v10400_v12 }
 0x127   :  { %v10404_v21 = vpop.f32.mrb[24].mxu0  ;;  %10971 = vmatmul.mubr.msk.bf16.gmra.mrb[8].mxu1 %vm541_vm0, %v510_v18 }
 0x128   :  { %v10405_v22 = vpop.f32.mrb[25].mxu0 }
 0x129   :  { %v10406_v23 = vadd.f32 %v10405_v22, %v10404_v21  ;;  %v10407_v24 = vpop.f32.mrb[26].mxu0 }
 0x12a   :  { %v10408_v25 = vpop.f32.mrb[27].mxu0 }
 0x12b   :  { %v10409_v27 = vadd.f32 %v10408_v25, %v10407_v24 }
 0x12d   :  { %v511_v29 = vpack.c.bf16 %v10409_v27, %v10406_v23 }
 0x12f   :  { %v10410_v30 = vpop.f32.mrb[28].mxu0  ;;  %10974 = vmatprep.mubr.msk.bf16.mxu1 %vm541_vm0, %v511_v29 }
 0x130   :  { %v10411_v31 = vpop.f32.mrb[29].mxu0 }
 0x131   :  { %v10412_v33 = vadd.f32 %v10411_v31, %v10410_v30  ;;  %v10413_v35 = vpop.f32.mrb[30].mxu0 }
 0x132   :  { %v10414_v36 = vpop.f32.mrb[31].mxu0 }
 0x133   :  { %v10415_v37 = vadd.f32 %v10414_v36, %v10413_v35 }
 0x135   :  { %v512_v39 = vpack.c.bf16 %v10415_v37, %v10412_v33 }
 0x137   :  { %v10416_v41 = vpop.f32.mrb[32].mxu0  ;;  %10975 = vmatmul.mubr.msk.bf16.gmra.mrb[12].mxu1 %vm541_vm0, %v512_v39 }
 0x138   :  { %v10417_v42 = vpop.f32.mrb[33].mxu0 }
 0x139   :  { %v10418_v43 = vadd.f32 %v10417_v42, %v10416_v41  ;;  %v10419_v45 = vpop.f32.mrb[34].mxu0 }
 0x13a   :  { %v10420_v47 = vpop.f32.mrb[35].mxu0 }
 0x13b   :  { %v10421_v49 = vadd.f32 %v10420_v47, %v10419_v45 }
 0x13d   :  { %v513_v50 = vpack.c.bf16 %v10421_v49, %v10418_v43 }
 0x13f   :  { %v10422_v51 = vpop.f32.mrb[36].mxu0  ;;  %10978 = vmatprep.mubr.msk.bf16.mxu1 %vm541_vm0, %v513_v50 }
 0x140   :  { %v10423_v52 = vpop.f32.mrb[37].mxu0 }
 0x141   :  { %v10424_v53 = vadd.f32 %v10423_v52, %v10422_v51  ;;  %v10425_v54 = vpop.f32.mrb[38].mxu0 }
 0x142   :  { %v10426_v55 = vpop.f32.mrb[39].mxu0 }
 0x143   :  { %v10427_v56 = vadd.f32 %v10426_v55, %v10425_v54 }
 0x145   :  { %v514_v57 = vpack.c.bf16 %v10427_v56, %v10424_v53 }
 0x147   :  { %v10428_v58 = vpop.f32.mrb[40].mxu0  ;;  %10979 = vmatmul.mubr.msk.bf16.gmra.mrb[16].mxu1 %vm541_vm0, %v514_v57 }
 0x148   :  { %v10429_v59 = vpop.f32.mrb[41].mxu0 }
 0x149   :  { %v10430_v60 = vadd.f32 %v10429_v59, %v10428_v58  ;;  %v10431_v61 = vpop.f32.mrb[42].mxu0 }
 0x14a   :  { %v10432_v62 = vpop.f32.mrb[43].mxu0 }
 0x14b   :  { %v10433_v63 = vadd.f32 %v10432_v62, %v10431_v61 }
 0x14d   :  { %v515_v0 = vpack.c.bf16 %v10433_v63, %v10430_v60 }
 0x14f   :  { %v10434_v1 = vpop.f32.mrb[44].mxu0  ;;  %10982 = vmatprep.mubr.msk.bf16.mxu1 %vm541_vm0, %v515_v0 }
 0x150   :  { %v10435_v2 = vpop.f32.mrb[45].mxu0 }
 0x151   :  { %v10436_v4 = vadd.f32 %v10435_v2, %v10434_v1  ;;  %v10437_v5 = vpop.f32.mrb[46].mxu0 }
 0x152   :  { %v10438_v6 = vpop.f32.mrb[47].mxu0 }
 0x153   :  { %v10439_v9 = vadd.f32 %v10438_v6, %v10437_v5 }
 0x155   :  { %v516_v10 = vpack.c.bf16 %v10439_v9, %v10436_v4 }
 0x157   :  { %v10440_v11 = vpop.f32.mrb[48].mxu0  ;;  %10983 = vmatmul.mubr.msk.bf16.gmra.mrb[20].mxu1 %vm541_vm0, %v516_v10 }
 0x158   :  { %v10441_v12 = vpop.f32.mrb[49].mxu0 }
 0x159   :  { %v10442_v15 = vadd.f32 %v10441_v12, %v10440_v11  ;;  %v10443_v16 = vpop.f32.mrb[50].mxu0 }
 0x15a   :  { %v10444_v17 = vpop.f32.mrb[51].mxu0 }
 0x15b   :  { %v10445_v18 = vadd.f32 %v10444_v17, %v10443_v16 }
 0x15d   :  { %v517_v21 = vpack.c.bf16 %v10445_v18, %v10442_v15 }
 0x15f   :  { %v10446_v22 = vpop.f32.mrb[52].mxu0  ;;  %10986 = vmatprep.mubr.msk.bf16.mxu1 %vm541_vm0, %v517_v21 }
 0x160   :  { %v10447_v23 = vpop.f32.mrb[53].mxu0 }
 0x161   :  { %v10448_v24 = vadd.f32 %v10447_v23, %v10446_v22  ;;  %v10449_v25 = vpop.f32.mrb[54].mxu0 }
 0x162   :  { %v10450_v27 = vpop.f32.mrb[55].mxu0 }
 0x163   :  { %v10451_v29 = vadd.f32 %v10450_v27, %v10449_v25  ;;  %v11685_v25 = vld [vmem:[%s17723_s5] sm:$0xff]  }
 0x164   :  { %11030 = vmatprep.subr.bf16.mxu1 %v11685_v25 }
 0x165   :  { %v518_v30 = vpack.c.bf16 %v10451_v29, %v10448_v24 }
 0x167   :  { %v10452_v31 = vpop.f32.mrb[56].mxu0  ;;  %10987 = vmatmul.mubr.msk.bf16.gmra.mrb[24].mxu1 %vm541_vm0, %v518_v30 }
 0x168   :  { %v10453_v33 = vpop.f32.mrb[57].mxu0 }
 0x169   :  { %v10454_v35 = vadd.f32 %v10453_v33, %v10452_v31  ;;  %v10455_v36 = vpop.f32.mrb[58].mxu0 }
 0x16a   :  { %v10456_v37 = vpop.f32.mrb[59].mxu0 }
 0x16b   :  { %v10457_v39 = vadd.f32 %v10456_v37, %v10455_v36 }
 0x16d   :  { %v519_v41 = vpack.c.bf16 %v10457_v39, %v10454_v35 }
 0x16f   :  { %v10458_v42 = vpop.f32.mrb[60].mxu0  ;;  %10990 = vmatprep.mubr.msk.bf16.mxu1 %vm541_vm0, %v519_v41 }
 0x170   :  { %v10459_v43 = vpop.f32.mrb[61].mxu0 }
 0x171   :  { %v10460_v45 = vadd.f32 %v10459_v43, %v10458_v42  ;;  %v10461_v47 = vpop.f32.mrb[62].mxu0 }
 0x172   :  { %v10462_v49 = vpop.f32.mrb[63].mxu0 }
 0x173   :  { %v10463_v50 = vadd.f32 %v10462_v49, %v10461_v47  ;;  %v11686_v47 = vld [vmem:[%s17723_s5 + $0x8] sm:$0xff]  }
 0x175   :  { %v520_v51 = vpack.c.bf16 %v10463_v50, %v10460_v45 }
 0x177   :  { %10991 = vmatmul.mubr.msk.bf16.gmra.mrb[28].mxu1 %vm541_vm0, %v520_v51 }
 0x178   :  { %10998 = vmatprep.mubr.msk.bf16.mxu1 %vm541_vm0, %v12780_v7 }
 0x17f   :  { %10999 = vmatmul.mubr.msk.bf16.vlgmr.msra.gmra.mrb[0].mxu1 %vm541_vm0, %v12798_v13 }
 0x180   :  { %11002 = vmatprep.mubr.msk.bf16.mxu1 %vm541_vm0, %v12816_v19  ;;  %11031 = vmatpush3.bf16.msra.mxu1 %v11685_v25 }
 0x181   :  { %11032 = vmatprep.subr.bf16.mxu1 %v11686_v47 }
 0x184   :  { %11033 = vmatpush3.bf16.msra.mxu1 %v11686_v47 }
 0x187   :  { %11003 = vmatmul.mubr.msk.bf16.gmra.mrb[4].mxu1 %vm541_vm0, %v12837_v26 }
 0x188   :  { %11006 = vmatprep.mubr.msk.bf16.mxu1 %vm541_vm0, %v12855_v32 }
 0x18f   :  { %11007 = vmatmul.mubr.msk.bf16.gmra.mrb[8].mxu1 %vm541_vm0, %v12873_v38 }
 0x190   :  { %11010 = vmatprep.mubr.msk.bf16.mxu1 %vm541_vm0, %v12891_v44 }
 0x197   :  { %11011 = vmatmul.mubr.msk.bf16.gmra.mrb[12].mxu1 %vm541_vm0, %v12903_v48 }
 0x198   :  { %11014 = vmatprep.mubr.msk.bf16.mxu1 %vm541_vm0, %v12769_v3  ;;  %v13063_v3 = vld [vmem:[%s17722_s4] ss:$0 sm:$0xff] }
 0x19f   :  { %11015 = vmatmul.mubr.msk.bf16.gmra.mrb[16].mxu1 %vm541_vm0, %v12782_v8 }
 0x1a0   :  { %11018 = vmatprep.mubr.msk.bf16.mxu1 %vm541_vm0, %v12801_v14 }
 0x1a7   :  { %11019 = vmatmul.mubr.msk.bf16.gmra.mrb[20].mxu1 %vm541_vm0, %v12819_v20 }
 0x1a8   :  { %11022 = vmatprep.mubr.msk.bf16.mxu1 %vm541_vm0, %v12843_v28 }
 0x1af   :  { %11023 = vmatmul.mubr.msk.bf16.gmra.mrb[24].mxu1 %vm541_vm0, %v12861_v34 }
 0x1b0   :  { %11026 = vmatprep.mubr.msk.bf16.mxu1 %vm541_vm0, %v12879_v40 }
 0x1b7   :  { %11027 = vmatmul.mubr.msk.bf16.gmra.mrb[28].mxu1 %vm541_vm0, %v12897_v46 }
 0x252   :  { %v11000_v7 = vpop.f32.mrb[0].mxu1 }
 0x253   :  { %v13066_v8 = vadd.f32 %v11000_v7, %v13063_v3  ;;  %v845_v13 = vpop.f32.mrb[1].mxu1  ;;  %v17730_v7 = vmov 0  }
 0x254   :  { %v13069_v14 = vadd.f32 %v13063_v3, %v845_v13  ;;  %v11001_v19 = vpop.f32.mrb[2].mxu1  ;;  %1963 = vmatprep.subr.bf16.mxu0 %v17730_v7  ;;  %11498 = vmatprep.subr.bf16.mxu1 %v17730_v7 }
 0x255   :  { %v1013_v20 = vsub.f32 0.0, %v13066_v8  ;;  %v13073_v26 = vadd.f32 %v11001_v19, %v13063_v3  ;;  %v848_v28 = vpop.f32.mrb[3].mxu1 }
 0x256   :  { %v1011_v32 = vsub.f32 0.0, %v13069_v14  ;;  %v13077_v34 = vadd.f32 %v13063_v3, %v848_v28 }
 0x257   :  { %v1047_v38 = vmul.f32 1.442695, %v1013_v20  ;;  %v1014_v40 = vsub.f32 0.0, %v13073_v26 }
 0x258   :  { %v1043_v44 = vmul.f32 1.442695, %v1011_v32  ;;  %v1012_v46 = vsub.f32 0.0, %v13077_v34 }
 0x259   :  { %11903 = vpow2.f32 %v1047_v38  ;;  %v1049_v48 = vmul.f32 1.442695, %v1014_v40 }
 0x25a   :  { %11905 = vpow2.f32 %v1043_v44  ;;  %v1045_v52 = vmul.f32 1.442695, %v1012_v46  ;;  %v11004_v53 = vpop.f32.mrb[4].mxu1 }
 0x25b   :  { %11907 = vpow2.f32 %v1049_v48  ;;  %v13082_v54 = vadd.f32 %v11004_v53, %v13063_v3  ;;  %v861_v55 = vpop.f32.mrb[5].mxu1 }
 0x25c   :  { %11909 = vpow2.f32 %v1045_v52  ;;  %v13085_v56 = vadd.f32 %v13063_v3, %v861_v55  ;;  %v11005_v57 = vpop.f32.mrb[6].mxu1 }
 0x25d   :  { %v1017_v58 = vsub.f32 0.0, %v13082_v54  ;;  %v13089_v59 = vadd.f32 %v11005_v57, %v13063_v3  ;;  %v864_v60 = vpop.f32.mrb[7].mxu1 }
 0x25e   :  { %v1015_v61 = vsub.f32 0.0, %v13085_v56  ;;  %v13093_v62 = vadd.f32 %v13063_v3, %v864_v60 }
 0x25f   :  { %v1055_v63 = vmul.f32 1.442695, %v1017_v58  ;;  %v1018_v0 = vsub.f32 0.0, %v13089_v59 }
 0x260   :  { %v1051_v1 = vmul.f32 1.442695, %v1015_v61  ;;  %v1016_v2 = vsub.f32 0.0, %v13093_v62 }
 0x261   :  { %11911 = vpow2.f32 %v1055_v63  ;;  %v1057_v4 = vmul.f32 1.442695, %v1018_v0 }
 0x262   :  { %11913 = vpow2.f32 %v1051_v1  ;;  %v1053_v5 = vmul.f32 1.442695, %v1016_v2  ;;  %v11008_v6 = vpop.f32.mrb[8].mxu1 }
 0x263   :  { %v11904_v9 = vpop.eup %11903  ;;  %11915 = vpow2.f32 %v1057_v4  ;;  %v13098_v10 = vadd.f32 %v11008_v6, %v13063_v3  ;;  %v877_v11 = vpop.f32.mrb[9].mxu1 }
 0x264   :  { %v11906_v12 = vpop.eup %11905  ;;  %v1109_v15 = vadd.f32 1.0, %v11904_v9  ;;  %11917 = vpow2.f32 %v1053_v5  ;;  %v13101_v16 = vadd.f32 %v13063_v3, %v877_v11  ;;  %v11009_v17 = vpop.f32.mrb[10].mxu1 }
 0x265   :  { %v11908_v18 = vpop.eup %11907  ;;  %v1107_v21 = vadd.f32 1.0, %v11906_v12  ;;  %v1021_v22 = vsub.f32 0.0, %v13098_v10  ;;  %v13105_v23 = vadd.f32 %v11009_v17, %v13063_v3  ;;  %v880_v24 = vpop.f32.mrb[11].mxu1 }
 0x266   :  { %v11910_v27 = vpop.eup %11909  ;;  %11919 = vrcp.f32 %v1109_v15  ;;  %v1110_v29 = vadd.f32 1.0, %v11908_v18  ;;  %v1019_v30 = vsub.f32 0.0, %v13101_v16  ;;  %v13112_v35 = vadd.f32 %v13063_v3, %v880_v24 }
 0x267   :  { %11921 = vrcp.f32 %v1107_v21  ;;  %v1108_v31 = vadd.f32 1.0, %v11910_v27  ;;  %v1063_v33 = vmul.f32 1.442695, %v1021_v22  ;;  %v1022_v37 = vsub.f32 0.0, %v13105_v23 }
 0x268   :  { %11923 = vrcp.f32 %v1110_v29  ;;  %v1059_v36 = vmul.f32 1.442695, %v1019_v30  ;;  %v1020_v42 = vsub.f32 0.0, %v13112_v35 }
 0x269   :  { %11925 = vrcp.f32 %v1108_v31  ;;  %v1065_v50 = vmul.f32 1.442695, %v1022_v37 }
 0x26a   :  { %11927 = vpow2.f32 %v1063_v33  ;;  %v11012_v39 = vpop.f32.mrb[12].mxu1  ;;  %v1061_v44 = vmul.f32 1.442695, %v1020_v42 }
 0x26b   :  { %v11912_v41 = vpop.eup %11911  ;;  %11929 = vpow2.f32 %v1059_v36  ;;  %v13117_v43 = vadd.f32 %v11012_v39, %v13063_v3  ;;  %v893_v45 = vpop.f32.mrb[13].mxu1 }
 0x26c   :  { %v11914_v49 = vpop.eup %11913  ;;  %v11013_v51 = vpop.f32.mrb[14].mxu1  ;;  %v13124_v20 = vadd.f32 %v13063_v3, %v893_v45  ;;  %v1113_v38 = vadd.f32 1.0, %v11912_v41 }
 0x26d   :  { %v11916_v13 = vpop.eup %11915  ;;  %v1111_v19 = vadd.f32 1.0, %v11914_v49  ;;  %v896_v28 = vpop.f32.mrb[15].mxu1  ;;  %v1025_v46 = vsub.f32 0.0, %v13117_v43  ;;  %v13130_v57 = vadd.f32 %v11013_v51, %v13063_v3 }
 0x26e   :  { %v11918_v32 = vpop.eup %11917  ;;  %v1114_v53 = vadd.f32 1.0, %v11916_v13  ;;  %v1023_v55 = vsub.f32 0.0, %v13124_v20  ;;  %v13134_v60 = vadd.f32 %v13063_v3, %v896_v28 }
 0x26f   :  { %11931 = vrcp.f32 %v1111_v19  ;;  %v1112_v40 = vadd.f32 1.0, %v11918_v32  ;;  %v1071_v0 = vmul.f32 1.442695, %v1025_v46  ;;  %v1026_v9 = vsub.f32 0.0, %v13130_v57 }
 0x270   :  { %v11920_v48 = vpop.eup %11919  ;;  %11933 = vpow2.f32 %v1065_v50  ;;  %v1067_v6 = vmul.f32 1.442695, %v1023_v55  ;;  %v1024_v15 = vsub.f32 0.0, %v13134_v60 }
 0x271   :  { %v11922_v52 = vpop.eup %11921  ;;  %11935 = vrcp.f32 %v1112_v40  ;;  %1239 = vrot.lane.b32.xlu1 %v11920_v48, %s12694_s26  ;;  %v1073_v24 = vmul.f32 1.442695, %v1026_v9 }
 0x272   :  { %v11924_v58 = vpop.eup %11923  ;;  %11937 = vrcp.f32 %v1113_v38  ;;  %1235 = vrot.lane.b32.xlu0 %v11922_v52, %s12694_s26  ;;  %v11016_v61 = vpop.f32.mrb[16].mxu1  ;;  %v1069_v27 = vmul.f32 1.442695, %v1024_v15 }
 0x273   :  { %v11926_v63 = vpop.eup %11925  ;;  %11939 = vpow2.f32 %v1061_v44  ;;  %v909_v1 = vpop.f32.mrb[17].mxu1  ;;  %v13142_v17 = vadd.f32 %v11016_v61, %v13063_v3 }
 0x274   :  { %v11928_v2 = vpop.eup %11927  ;;  %v11017_v4 = vpop.f32.mrb[18].mxu1  ;;  %11941 = vrcp.f32 %v1114_v53  ;;  %v13145_v21 = vadd.f32 %v13063_v3, %v909_v1 }
 0x275   :  { %v11930_v5 = vpop.eup %11929  ;;  %1241 = vrot.lane.b32.xlu1 %v11924_v58, %s12694_s26  ;;  %v912_v11 = vpop.f32.mrb[19].mxu1  ;;  %11943 = vpow2.f32 %v1071_v0  ;;  %v1117_v18 = vadd.f32 1.0, %v11928_v2  ;;  %v1029_v31 = vsub.f32 0.0, %v13142_v17  ;;  %v13152_v42 = vadd.f32 %v11017_v4, %v13063_v3 }
 0x276   :  { %v1115_v12 = vadd.f32 1.0, %v11930_v5  ;;  %1237 = vrot.lane.b32.xlu0 %v11926_v63, %s12694_s26  ;;  %v1027_v37 = vsub.f32 0.0, %v13145_v21  ;;  %v13158_v51 = vadd.f32 %v13063_v3, %v912_v11 }
 0x277   :  { %v1079_v19 = vmul.f32 1.442695, %v1029_v31  ;;  %v1030_v38 = vsub.f32 0.0, %v13152_v42 }
 0x278   :  { %11945 = vrcp.f32 %v1115_v12  ;;  %v1075_v28 = vmul.f32 1.442695, %v1027_v37  ;;  %v1028_v44 = vsub.f32 0.0, %v13158_v51 }
 0x279   :  { %v11932_v22 = vpop.eup %11931  ;;  %11947 = vpow2.f32 %v1067_v6  ;;  %v1081_v2 = vmul.f32 1.442695, %v1030_v38 }
 0x27a   :  { %v11934_v25 = vpop.eup %11933  ;;  %1243 = vrot.lane.b32.xlu0 %v11932_v22, %s12694_s26  ;;  %v11020_v29 = vpop.f32.mrb[20].mxu1  ;;  %11949 = vrcp.f32 %v1117_v18  ;;  %v1077_v9 = vmul.f32 1.442695, %v1028_v44 }
 0x27b   :  { %v11936_v30 = vpop.eup %11935  ;;  %v925_v33 = vpop.f32.mrb[21].mxu1  ;;  %11951 = vpow2.f32 %v1073_v24  ;;  %v1118_v49 = vadd.f32 1.0, %v11934_v25  ;;  %v13165_v52 = vadd.f32 %v11020_v29, %v13063_v3 }
 0x27c   :  { %v11938_v36 = vpop.eup %11937  ;;  %1245 = vrot.lane.b32.xlu1 %v11936_v30, %s12694_s26  ;;  %v11021_v39 = vpop.f32.mrb[22].mxu1  ;;  %11953 = vpow2.f32 %v1069_v27  ;;  %v13168_v53 = vadd.f32 %v13063_v3, %v925_v33 }
 0x27d   :  { %v11940_v41 = vpop.eup %11939  ;;  %v13155_v45 = vadd.f32 %v11021_v39, %v13063_v3  ;;  %v928_v47 = vpop.f32.mrb[23].mxu1  ;;  %v1033_v15 = vsub.f32 0.0, %v13165_v52 }
 0x27e   :  { %v1116_v50 = vadd.f32 1.0, %v11940_v41  ;;  %1247 = vrot.lane.b32.xlu0 %v11938_v36, %s12694_s26  ;;  %v11942_v13 = vpop.eup %11941  ;;  %v1031_v22 = vsub.f32 0.0, %v13168_v53  ;;  %v13187_v29 = vadd.f32 %v13063_v3, %v928_v47 }
 0x27f   :  { %v11944_v32 = vpop.eup %11943  ;;  %v1087_v31 = vmul.f32 1.442695, %v1033_v15 }
 0x280   :  { %11955 = vrcp.f32 %v1116_v50  ;;  %1249 = vrot.lane.b32.xlu1 %v11942_v13, %s12694_s26  ;;  %v1121_v61 = vadd.f32 1.0, %v11944_v32  ;;  %v1083_v39 = vmul.f32 1.442695, %v1031_v22  ;;  %v1034_v13 = vsub.f32 0.0, %v13155_v45 }
 0x281   :  { %11957 = vrcp.f32 %v1118_v49  ;;  %v1032_v32 = vsub.f32 0.0, %v13187_v29 }
 0x282   :  { %v11946_v40 = vpop.eup %11945  ;;  %v11024_v46 = vpop.f32.mrb[24].mxu1  ;;  %11959 = vpow2.f32 %v1079_v19 }
 0x283   :  { %v11948_v48 = vpop.eup %11947  ;;  %1251 = vrot.lane.b32.xlu0 %v11946_v40, %s12694_s26  ;;  %v13172_v55 = vadd.f32 %v11024_v46, %v13063_v3  ;;  %v941_v58 = vpop.f32.mrb[25].mxu1  ;;  %11961 = vpow2.f32 %v1075_v28 }
 0x284   :  { %v1119_v63 = vadd.f32 1.0, %v11948_v48  ;;  %v13175_v0 = vadd.f32 %v13063_v3, %v941_v58  ;;  %v11025_v1 = vpop.f32.mrb[26].mxu1  ;;  %v11950_v6 = vpop.eup %11949  ;;  %v1089_v48 = vmul.f32 1.442695, %v1034_v13 }
 0x285   :  { %v13178_v4 = vadd.f32 %v11025_v1, %v13063_v3  ;;  %v944_v5 = vpop.f32.mrb[27].mxu1  ;;  %v11952_v12 = vpop.eup %11951  ;;  %v1037_v1 = vsub.f32 0.0, %v13172_v55 }
 0x286   :  { %11963 = vrcp.f32 %v1119_v63  ;;  %v13181_v11 = vadd.f32 %v13063_v3, %v944_v5  ;;  %v11954_v18 = vpop.eup %11953  ;;  %v1122_v27 = vadd.f32 1.0, %v11952_v12 }
 0x287   :  { %1255 = vrot.lane.b32.xlu0 %v11950_v6, %s12694_s26  ;;  %11965 = vrcp.f32 %v1121_v61  ;;  %v1120_v24 = vadd.f32 1.0, %v11954_v18  ;;  %v1085_v61 = vmul.f32 1.442695, %v1032_v32  ;;  %v1095_v12 = vmul.f32 1.442695, %v1037_v1 }
 0x288   :  { %11967 = vpow2.f32 %v1081_v2 }
 0x289   :  { %11969 = vpow2.f32 %v1077_v9 }
 0x28a   :  { %v11956_v25 = vpop.eup %11955  ;;  %v11028_v30 = vpop.f32.mrb[28].mxu1  ;;  %11971 = vrcp.f32 %v1120_v24  ;;  %v1038_v24 = vsub.f32 0.0, %v13178_v4 }
 0x28b   :  { %1253 = vrot.lane.b32.xlu1 %v11956_v25, %s12694_s26  ;;  %v13191_v33 = vadd.f32 %v11028_v30, %v13063_v3  ;;  %v957_v36 = vpop.f32.mrb[29].mxu1  ;;  %v11958_v37 = vpop.eup %11957  ;;  %11973 = vrcp.f32 %v1122_v27  ;;  %v1036_v27 = vsub.f32 0.0, %v13181_v11 }
 0x28c   :  { %v13194_v41 = vadd.f32 %v13063_v3, %v957_v36  ;;  %v11029_v49 = vpop.f32.mrb[30].mxu1  ;;  %v11960_v50 = vpop.eup %11959  ;;  %11975 = vpow2.f32 %v1087_v31 }
 0x28d   :  { %v13198_v47 = vadd.f32 %v11029_v49, %v13063_v3  ;;  %v960_v19 = vpop.f32.mrb[31].mxu1  ;;  %v11962_v28 = vpop.eup %11961  ;;  %v1125_v46 = vadd.f32 1.0, %v11960_v50  ;;  %11977 = vpow2.f32 %v1083_v39  ;;  %v1093_v49 = vmul.f32 1.442695, %v1036_v27 }
 0x28e   :  { %v13202_v38 = vadd.f32 %v13063_v3, %v960_v19  ;;  %v1123_v40 = vadd.f32 1.0, %v11962_v28  ;;  %v1035_v3 = vsub.f32 0.0, %v13175_v0  ;;  %v1041_v13 = vsub.f32 0.0, %v13191_v33 }
 0x28f   :  { %1257 = vrot.lane.b32.xlu1 %v11958_v37, %s12694_s26  ;;  %v1097_v37 = vmul.f32 1.442695, %v1038_v24  ;;  %v1039_v28 = vsub.f32 0.0, %v13194_v41 }
 0x290   :  { %v11964_v44 = vpop.eup %11963  ;;  %11979 = vrcp.f32 %v1123_v40  ;;  %v1091_v18 = vmul.f32 1.442695, %v1035_v3 }
 0x291   :  { %1259 = vrot.lane.b32.xlu0 %v11964_v44, %s12694_s26  ;;  %v11966_v58 = vpop.eup %11965  ;;  %11981 = vrcp.f32 %v1125_v46  ;;  %v1103_v46 = vmul.f32 1.442695, %v1041_v13 }
 0x292   :  { %v11968_v63 = vpop.eup %11967  ;;  %11983 = vpow2.f32 %v1089_v48 }
 0x293   :  { %v11970_v2 = vpop.eup %11969  ;;  %v1126_v9 = vadd.f32 1.0, %v11968_v63  ;;  %11985 = vpow2.f32 %v1085_v61  ;;  %v1042_v63 = vsub.f32 0.0, %v13198_v47 }
 0x294   :  { %v11972_v5 = vpop.eup %11971  ;;  %v1124_v6 = vadd.f32 1.0, %v11970_v2  ;;  %v1040_v2 = vsub.f32 0.0, %v13202_v38 }
 0x295   :  { %1263 = vrot.lane.b32.xlu0 %v11966_v58, %s12694_s26  ;;  %1261 = vrot.lane.b32.xlu1 %v11972_v5, %s12694_s26  ;;  %v11974_v15 = vpop.eup %11973  ;;  %v1099_v58 = vmul.f32 1.442695, %v1039_v28 }
 0x296   :  { %11987 = vrcp.f32 %v1124_v6  ;;  %v11976_v22 = vpop.eup %11975 }
 0x297   :  { %v11978_v25 = vpop.eup %11977  ;;  %11989 = vrcp.f32 %v1126_v9  ;;  %v1129_v36 = vadd.f32 1.0, %v11976_v22  ;;  %v1105_v9 = vmul.f32 1.442695, %v1042_v63 }
 0x298   :  { %v1127_v31 = vadd.f32 1.0, %v11978_v25  ;;  %11991 = vpow2.f32 %v1095_v12 }
 0x299   :  { %1265 = vrot.lane.b32.xlu1 %v11974_v15, %s12694_s26  ;;  %11993 = vpow2.f32 %v1091_v18  ;;  %v1101_v15 = vmul.f32 1.442695, %v1040_v2 }
 0x29a   :  { %v11980_v30 = vpop.eup %11979  ;;  %11995 = vrcp.f32 %v1127_v31 }
 0x29b   :  { %1267 = vrot.lane.b32.xlu0 %v11980_v30, %s12694_s26  ;;  %v11982_v39 = vpop.eup %11981  ;;  %11997 = vrcp.f32 %v1129_v36 }
 0x29c   :  { %v11984_v50 = vpop.eup %11983  ;;  %11999 = vpow2.f32 %v1097_v37 }
 0x29d   :  { %v11986_v19 = vpop.eup %11985  ;;  %v1130_v44 = vadd.f32 1.0, %v11984_v50  ;;  %12001 = vpow2.f32 %v1093_v49 }
 0x29e   :  { %v1128_v40 = vadd.f32 1.0, %v11986_v19 }
 0x29f   :  { %1271 = vrot.lane.b32.xlu0 %v11982_v39, %s12694_s26 }
 0x2a0   :  { %v11988_v32 = vpop.eup %11987  ;;  %12003 = vrcp.f32 %v1128_v40 }
 0x2a1   :  { %1269 = vrot.lane.b32.xlu1 %v11988_v32, %s12694_s26  ;;  %v11990_v48 = vpop.eup %11989  ;;  %12005 = vrcp.f32 %v1130_v44 }
 0x2a2   :  { %v11992_v61 = vpop.eup %11991  ;;  %12007 = vpow2.f32 %v1103_v46 }
 0x2a3   :  { %v11994_v1 = vpop.eup %11993  ;;  %v1133_v6 = vadd.f32 1.0, %v11992_v61  ;;  %12009 = vpow2.f32 %v1099_v58 }
 0x2a4   :  { %v11996_v3 = vpop.eup %11995  ;;  %v1131_v5 = vadd.f32 1.0, %v11994_v1 }
 0x2a5   :  { %1273 = vrot.lane.b32.xlu1 %v11990_v48, %s12694_s26  ;;  %1275 = vrot.lane.b32.xlu0 %v11996_v3, %s12694_s26  ;;  %v11998_v12 = vpop.eup %11997  ;;  %v11689_v48 = vld [vmem:[%s17720_s2 + $0x4] ss:$8 sps:$4 sm:$0xff]  }
 0x2a6   :  { %12011 = vrcp.f32 %v1131_v5  ;;  %v12000_v18 = vpop.eup %11999  ;;  %1995 = vmatprep.mubr.bf16.mxu0 %v11689_v48 }
 0x2a7   :  { %v12002_v22 = vpop.eup %12001  ;;  %12013 = vrcp.f32 %v1133_v6  ;;  %v1134_v27 = vadd.f32 1.0, %v12000_v18 }
 0x2a8   :  { %v1132_v25 = vadd.f32 1.0, %v12002_v22  ;;  %12015 = vpow2.f32 %v1105_v9 }
 0x2a9   :  { %1279 = vrot.lane.b32.xlu0 %v11998_v12, %s12694_s26  ;;  %12017 = vpow2.f32 %v1101_v15 }
 0x2aa   :  { %v12004_v24 = vpop.eup %12003  ;;  %12019 = vrcp.f32 %v1132_v25 }
 0x2ab   :  { %1277 = vrot.lane.b32.xlu1 %v12004_v24, %s12694_s26  ;;  %v12006_v30 = vpop.eup %12005  ;;  %12021 = vrcp.f32 %v1134_v27 }
 0x2ac   :  { %v12008_v31 = vpop.eup %12007 }
 0x2ad   :  { %v12010_v36 = vpop.eup %12009  ;;  %v1137_v49 = vadd.f32 1.0, %v12008_v31 }
 0x2ae   :  { %v1135_v39 = vadd.f32 1.0, %v12010_v36 }
 0x2af   :  { %1281 = vrot.lane.b32.xlu1 %v12006_v30, %s12694_s26 }
 0x2b0   :  { %v12012_v37 = vpop.eup %12011  ;;  %12023 = vrcp.f32 %v1135_v39 }
 0x2b1   :  { %1283 = vrot.lane.b32.xlu0 %v12012_v37, %s12694_s26  ;;  %v12014_v50 = vpop.eup %12013  ;;  %12025 = vrcp.f32 %v1137_v49 }
 0x2b2   :  { %v12016_v13 = vpop.eup %12015 }
 0x2b3   :  { %v12018_v19 = vpop.eup %12017  ;;  %v1138_v40 = vadd.f32 1.0, %v12016_v13 }
 0x2b4   :  { %v12020_v28 = vpop.eup %12019  ;;  %v1136_v32 = vadd.f32 1.0, %v12018_v19 }
 0x2b5   :  { %1287 = vrot.lane.b32.xlu0 %v12014_v50, %s12694_s26  ;;  %1285 = vrot.lane.b32.xlu1 %v12020_v28, %s12694_s26  ;;  %v12022_v44 = vpop.eup %12021 }
 0x2b6   :  { %12027 = vrcp.f32 %v1136_v32 }
 0x2b7   :  { %12029 = vrcp.f32 %v1138_v40 }
 0x2b8   :  { %12031 = vtanh.f32 %v13066_v8 }
 0x2b9   :  { %1289 = vrot.lane.b32.xlu1 %v12022_v44, %s12694_s26  ;;  %12033 = vtanh.f32 %v13069_v14 }
 0x2ba   :  { %v12024_v46 = vpop.eup %12023  ;;  %12035 = vtanh.f32 %v13073_v26 }
 0x2bb   :  { %1291 = vrot.lane.b32.xlu0 %v12024_v46, %s12694_s26  ;;  %v12026_v58 = vpop.eup %12025  ;;  %12037 = vtanh.f32 %v13077_v34 }
 0x2bc   :  { %12039 = vtanh.f32 %v13085_v56 }
 0x2bd   :  { %12041 = vtanh.f32 %v13093_v62 }
 0x2be   :  { %12043 = vtanh.f32 %v13082_v54 }
 0x2bf   :  { %1295 = vrot.lane.b32.xlu0 %v12026_v58, %s12694_s26  ;;  %12045 = vtanh.f32 %v13089_v59 }
 0x2c0   :  { %v12028_v61 = vpop.eup %12027  ;;  %12047 = vtanh.f32 %v13101_v16 }
 0x2c1   :  { %1293 = vrot.lane.b32.xlu1 %v12028_v61, %s12694_s26  ;;  %v12030_v63 = vpop.eup %12029  ;;  %12049 = vtanh.f32 %v13112_v35 }
 0x2c2   :  { %v12032_v3 = vpop.eup %12031  ;;  %12051 = vtanh.f32 %v13098_v10 }
 0x2c3   :  { %v12034_v5 = vpop.eup %12033  ;;  %12053 = vtanh.f32 %v13105_v23 }
 0x2c4   :  { %v12036_v6 = vpop.eup %12035  ;;  %12055 = vtanh.f32 %v13124_v20 }
 0x2c5   :  { %1297 = vrot.lane.b32.xlu1 %v12030_v63, %s12694_s26  ;;  %v12038_v12 = vpop.eup %12037  ;;  %12057 = vtanh.f32 %v13134_v60 }
 0x2c6   :  { %v12040_v24 = vpop.eup %12039  ;;  %12059 = vtanh.f32 %v13117_v43 }
 0x2c7   :  { %v12042_v62 = vpop.eup %12041  ;;  %12061 = vtanh.f32 %v13130_v57 }
 0x2c8   :  { %v12044_v30 = vpop.eup %12043  ;;  %12063 = vtanh.f32 %v13145_v21 }
 0x2c9   :  { %v12046_v36 = vpop.eup %12045  ;;  %12065 = vtanh.f32 %v13158_v51 }
 0x2ca   :  { %v12048_v35 = vpop.eup %12047  ;;  %12067 = vtanh.f32 %v13142_v17 }
 0x2cb   :  { %v12050_v13 = vpop.eup %12049  ;;  %12069 = vtanh.f32 %v13152_v42 }
 0x2cc   :  { %v12052_v32 = vpop.eup %12051  ;;  %12071 = vtanh.f32 %v13168_v53 }
 0x2cd   :  { %v12054_v44 = vpop.eup %12053  ;;  %12073 = vtanh.f32 %v13187_v29 }
 0x2ce   :  { %v12056_v61 = vpop.eup %12055  ;;  %12075 = vtanh.f32 %v13165_v52 }
 0x2cf   :  { %v12058_v43 = vpop.eup %12057  ;;  %12077 = vtanh.f32 %v13155_v45 }
 0x2d0   :  { %12079 = vtanh.f32 %v13175_v0 }
 0x2d1   :  { %12081 = vtanh.f32 %v13181_v11 }
 0x2d2   :  { %12083 = vtanh.f32 %v13172_v55 }
 0x2d3   :  { %12085 = vtanh.f32 %v13178_v4 }
 0x2d4   :  { %12087 = vtanh.f32 %v13194_v41 }
 0x2d5   :  { %12089 = vtanh.f32 %v13202_v38 }
 0x2e3   :  { %v1240_v1 = vpop.permute.xlu1 %1239 }
 0x2e4   :  { %v1236_v2 = vpop.permute.xlu0 %1235  ;;  %v1333_v8 = vmul.f32 %v12032_v3, %v1240_v1  ;;  %v12060_v3 = vpop.eup %12059  ;;  %12091 = vtanh.f32 %v13191_v33 }
 0x2e5   :  { %v1331_v15 = vmul.f32 %v12034_v5, %v1236_v2 }
 0x2e7   :  { %v1242_v9 = vpop.permute.xlu1 %1241 }
 0x2e8   :  { %v1334_v14 = vmul.f32 %v12036_v6, %v1242_v9  ;;  %v1238_v26 = vpop.permute.xlu0 %1237  ;;  %v12062_v6 = vpop.eup %12061  ;;  %12093 = vtanh.f32 %v13198_v47 }
 0x2e9   :  { %v1332_v34 = vmul.f32 %v12038_v12, %v1238_v26  ;;  %v12064_v17 = vpop.eup %12063 }
 0x2ea   :  { %v1364_v18 = vpack.c.bf16 %v1334_v14, %v1333_v8  ;;  %v12066_v14 = vpop.eup %12065 }
 0x2eb   :  { %v1363_v56 = vpack.c.bf16 %v1332_v34, %v1331_v15 }
 0x2ec   :  { %v1244_v22 = vpop.permute.xlu0 %1243 }
 0x2ed   :  { %11034 = vmatprep.mubr.msk.bf16.mxu1 %vm541_vm0, %v1363_v56  ;;  %1964 = vmatpush1.bf16.msra.mxu0 %v1363_v56  ;;  %v1335_v25 = vmul.f32 %v12040_v24, %v1244_v22 }
 0x2ee   :  { %11035 = vmatmul.mubr.msk.bf16.vlgmr.msra.gmra.mrb[32].mxu1 %vm541_vm0, %v1364_v18  ;;  %v1246_v54 = vpop.permute.xlu1 %1245  ;;  %1965 = vmatprep.subr.bf16.mxu0 %v17730_v7 }
 0x2ef   :  { %11514 = vmatpush1.bf16.msra.mxu1 %v1363_v56  ;;  %v1336_v59 = vmul.f32 %v12042_v62, %v1246_v54 }
 0x2f0   :  { %v1248_v27 = vpop.permute.xlu0 %1247  ;;  %11499 = vmatprep.subr.bf16.mxu1 %v17730_v7 }
 0x2f1   :  { %v1365_v31 = vpack.c.bf16 %v1336_v59, %v1335_v25  ;;  %1966 = vmatpush1.bf16.msra.mxu0 %v1364_v18  ;;  %v1337_v39 = vmul.f32 %v12044_v30, %v1248_v27 }
 0x2f2   :  { %v1250_v37 = vpop.permute.xlu1 %1249  ;;  %1967 = vmatprep.subr.bf16.mxu0 %v17730_v7 }
 0x2f3   :  { %11515 = vmatpush1.bf16.msra.mxu1 %v1364_v18  ;;  %v1338_v49 = vmul.f32 %v12046_v36, %v1250_v37  ;;  %11038 = vmatprep.mubr.msk.bf16.mxu1 %vm541_vm0, %v1365_v31  ;;  %v12068_v18 = vpop.eup %12067 }
 0x2f4   :  { %11500 = vmatprep.subr.bf16.mxu1 %v17730_v7  ;;  %v12070_v22 = vpop.eup %12069 }
 0x2f5   :  { %v1366_v50 = vpack.c.bf16 %v1338_v49, %v1337_v39  ;;  %1968 = vmatpush1.bf16.msra.mxu0 %v1365_v31  ;;  %v1252_v16 = vpop.permute.xlu0 %1251  ;;  %v12072_v52 = vpop.eup %12071 }
 0x2f6   :  { %1969 = vmatprep.subr.bf16.mxu0 %v17730_v7  ;;  %v1339_v23 = vmul.f32 %v12048_v35, %v1252_v16  ;;  %v12074_v25 = vpop.eup %12073 }
 0x2f7   :  { %11516 = vmatpush1.bf16.msra.mxu1 %v1365_v31  ;;  %v12076_v31 = vpop.eup %12075 }
 0x2f8   :  { %11039 = vmatmul.mubr.msk.bf16.gmra.mrb[36].mxu1 %vm541_vm0, %v1366_v50  ;;  %11501 = vmatprep.subr.bf16.mxu1 %v17730_v7  ;;  %v12078_v37 = vpop.eup %12077 }
 0x2f9   :  { %1970 = vmatpush1.bf16.msra.mxu0 %v1366_v50  ;;  %v1256_v28 = vpop.permute.xlu0 %1255  ;;  %v12080_v55 = vpop.eup %12079 }
 0x2fa   :  { %1971 = vmatprep.subr.bf16.mxu0 %v17730_v7  ;;  %v1341_v48 = vmul.f32 %v12052_v32, %v1256_v28  ;;  %v12082_v16 = vpop.eup %12081 }
 0x2fb   :  { %11517 = vmatpush1.bf16.msra.mxu1 %v1366_v50 }
 0x2fc   :  { %11502 = vmatprep.subr.bf16.mxu1 %v17730_v7 }
 0x2fd   :  { %v1254_v10 = vpop.permute.xlu1 %1253 }
 0x2fe   :  { %v1340_v19 = vmul.f32 %v12050_v13, %v1254_v10 }
 0x300   :  { %v1367_v40 = vpack.c.bf16 %v1340_v19, %v1339_v23  ;;  %v12084_v23 = vpop.eup %12083 }
 0x301   :  { %v1258_v46 = vpop.permute.xlu1 %1257  ;;  %v12086_v28 = vpop.eup %12085 }
 0x302   :  { %v1342_v58 = vmul.f32 %v12054_v44, %v1258_v46  ;;  %11042 = vmatprep.mubr.msk.bf16.mxu1 %vm541_vm0, %v1367_v40  ;;  %1972 = vmatpush1.bf16.msra.mxu0 %v1367_v40  ;;  %v12088_v33 = vpop.eup %12087 }
 0x303   :  { %11518 = vmatpush1.bf16.msra.mxu1 %v1367_v40  ;;  %1973 = vmatprep.subr.bf16.mxu0 %v17730_v7  ;;  %v1260_v60 = vpop.permute.xlu0 %1259  ;;  %v12090_v46 = vpop.eup %12089 }
 0x304   :  { %v1368_v20 = vpack.c.bf16 %v1342_v58, %v1341_v48  ;;  %11503 = vmatprep.subr.bf16.mxu1 %v17730_v7  ;;  %v1343_v63 = vmul.f32 %v12056_v61, %v1260_v60  ;;  %v12092_v60 = vpop.eup %12091 }
 0x306   :  { %11043 = vmatmul.mubr.msk.bf16.gmra.mrb[40].mxu1 %vm541_vm0, %v1368_v20  ;;  %1974 = vmatpush1.bf16.msra.mxu0 %v1368_v20 }
 0x307   :  { %11519 = vmatpush1.bf16.msra.mxu1 %v1368_v20  ;;  %1975 = vmatprep.subr.bf16.mxu0 %v17730_v7  ;;  %v1262_v57 = vpop.permute.xlu1 %1261  ;;  %v1264_v2 = vpop.permute.xlu0 %1263 }
 0x308   :  { %11504 = vmatprep.subr.bf16.mxu1 %v17730_v7  ;;  %v1344_v1 = vmul.f32 %v12058_v43, %v1262_v57  ;;  %v1345_v12 = vmul.f32 %v12060_v3, %v1264_v2  ;;  %v12094_v43 = vpop.eup %12093  ;;  %v11687_v3 = vld [vmem:[%s17720_s2] ss:$8 sps:$4 sm:$0xff]  }
 0x30a   :  { %v1369_v5 = vpack.c.bf16 %v1344_v1, %v1343_v63 }
 0x30b   :  { %v1266_v9 = vpop.permute.xlu1 %1265 }
 0x30c   :  { %v1346_v8 = vmul.f32 %v12062_v6, %v1266_v9  ;;  %11046 = vmatprep.mubr.msk.bf16.mxu1 %vm541_vm0, %v1369_v5  ;;  %1976 = vmatpush1.bf16.msra.mxu0 %v1369_v5  ;;  %v11692_v6 = vld [vmem:[%s17720_s2 + $0x10] ss:$8 sps:$4 sm:$0xff]   ;;  %v11693_v9 = vld [vmem:[%s17720_s2 + $0x24] ss:$8 sps:$4 sm:$0xff]  }
 0x30d   :  { %11520 = vmatpush1.bf16.msra.mxu1 %v1369_v5  ;;  %1977 = vmatprep.subr.bf16.mxu0 %v17730_v7  ;;  %v1268_v51 = vpop.permute.xlu0 %1267  ;;  %v11690_v5 = vld [vmem:[%s17720_s2 + $0x14] ss:$8 sps:$4 sm:$0xff]  }
 0x30e   :  { %v1370_v21 = vpack.c.bf16 %v1346_v8, %v1345_v12  ;;  %11505 = vmatprep.subr.bf16.mxu1 %v17730_v7  ;;  %v1347_v42 = vmul.f32 %v12064_v17, %v1268_v51  ;;  %v11695_v12 = vld [vmem:[%s17720_s2 + $0x20] ss:$8 sps:$4 sm:$0xff]   ;;  %v11696_v8 = vld [vmem:[%s17720_s2 + $0x34] ss:$8 sps:$4 sm:$0xff]   ;;  %v11699_v51 = vld [vmem:[%s17720_s2 + $0x44] ss:$8 sps:$4 sm:$0xff]  }
 0x30f   :  { %v11701_v17 = vld [vmem:[%s17720_s2 + $0x40] ss:$8 sps:$4 sm:$0xff]  }
 0x310   :  { %11047 = vmatmul.mubr.msk.bf16.gmra.mrb[44].mxu1 %vm541_vm0, %v1370_v21  ;;  %1978 = vmatpush1.bf16.msra.mxu0 %v1370_v21 }
 0x311   :  { %11521 = vmatpush1.bf16.msra.mxu1 %v1370_v21  ;;  %1979 = vmatprep.subr.bf16.mxu0 %v17730_v7  ;;  %v1272_v34 = vpop.permute.xlu0 %1271  ;;  %v11698_v21 = vld [vmem:[%s17720_s2 + $0x30] ss:$8 sps:$4 sm:$0xff]  }
 0x312   :  { %11506 = vmatprep.subr.bf16.mxu1 %v17730_v7  ;;  %v1349_v62 = vmul.f32 %v12068_v18, %v1272_v34  ;;  %v11708_v34 = vld [vmem:[%s17720_s2 + $0x74] ss:$8 sps:$4 sm:$0xff]   ;;  %v11758_v18 = vld [vmem:[%s17720_s2 + $0x1b0] ss:$8 sps:$4 sm:$0xff]  }
 0x313   :  { %v1270_v26 = vpop.permute.xlu1 %1269 }
 0x314   :  { %v1348_v15 = vmul.f32 %v12066_v14, %v1270_v26  ;;  %v11702_v14 = vld [vmem:[%s17720_s2 + $0x54] ss:$8 sps:$4 sm:$0xff]   ;;  %v11704_v26 = vld [vmem:[%s17720_s2 + $0x50] ss:$8 sps:$4 sm:$0xff]  }
 0x316   :  { %v1371_v56 = vpack.c.bf16 %v1348_v15, %v1347_v42  ;;  %v11705_v42 = vld [vmem:[%s17720_s2 + $0x64] ss:$8 sps:$4 sm:$0xff]   ;;  %v11707_v15 = vld [vmem:[%s17720_s2 + $0x60] ss:$8 sps:$4 sm:$0xff]  }
 0x317   :  { %v1274_v24 = vpop.permute.xlu1 %1273  ;;  %v1276_v29 = vpop.permute.xlu0 %1275 }
 0x318   :  { %v1350_v54 = vmul.f32 %v12070_v22, %v1274_v24  ;;  %11050 = vmatprep.mubr.msk.bf16.mxu1 %vm541_vm0, %v1371_v56  ;;  %1980 = vmatpush1.bf16.msra.mxu0 %v1371_v56  ;;  %v1351_v45 = vmul.f32 %v12072_v52, %v1276_v29  ;;  %v11710_v22 = vld [vmem:[%s17720_s2 + $0x70] ss:$8 sps:$4 sm:$0xff]   ;;  %v11711_v24 = vld [vmem:[%s17720_s2 + $0x84] ss:$8 sps:$4 sm:$0xff]   ;;  %v11767_v29 = vld [vmem:[%s17720_s2 + $0x1c0] ss:$8 sps:$4 sm:$0xff]  }
 0x319   :  { %11522 = vmatpush1.bf16.msra.mxu1 %v1371_v56  ;;  %1981 = vmatprep.subr.bf16.mxu0 %v17730_v7  ;;  %v11760_v56 = vld [vmem:[%s17720_s2 + $0x1b4] ss:$8 sps:$4 sm:$0xff]   ;;  %v11716_v52 = vld [vmem:[%s17720_s2 + $0x90] ss:$8 sps:$4 sm:$0xff]  }
 0x31a   :  { %v1372_v53 = vpack.c.bf16 %v1350_v54, %v1349_v62  ;;  %11507 = vmatprep.subr.bf16.mxu1 %v17730_v7  ;;  %v11764_v62 = vld [vmem:[%s17720_s2 + $0x1c4] ss:$8 sps:$4 sm:$0xff]   ;;  %v11713_v54 = vld [vmem:[%s17720_s2 + $0x80] ss:$8 sps:$4 sm:$0xff]  }
 0x31b   :  { %v1280_v30 = vpop.permute.xlu0 %1279 }
 0x31c   :  { %11051 = vmatmul.mubr.msk.bf16.gmra.mrb[48].mxu1 %vm541_vm0, %v1372_v53  ;;  %1982 = vmatpush1.bf16.msra.mxu0 %v1372_v53  ;;  %v1353_v49 = vmul.f32 %v12076_v31, %v1280_v30  ;;  %v11720_v30 = vld [vmem:[%s17720_s2 + $0xb4] ss:$8 sps:$4 sm:$0xff]   ;;  %v11776_v31 = vld [vmem:[%s17720_s2 + $0x1e4] ss:$8 sps:$4 sm:$0xff]  }
 0x31d   :  { %11523 = vmatpush1.bf16.msra.mxu1 %v1372_v53  ;;  %1983 = vmatprep.subr.bf16.mxu0 %v17730_v7  ;;  %v1278_v59 = vpop.permute.xlu1 %1277  ;;  %v11714_v53 = vld [vmem:[%s17720_s2 + $0x94] ss:$8 sps:$4 sm:$0xff]  }
 0x31e   :  { %11508 = vmatprep.subr.bf16.mxu1 %v17730_v7  ;;  %v1352_v27 = vmul.f32 %v12074_v25, %v1278_v59  ;;  %v11717_v25 = vld [vmem:[%s17720_s2 + $0xa4] ss:$8 sps:$4 sm:$0xff]   ;;  %v11770_v59 = vld [vmem:[%s17720_s2 + $0x1d4] ss:$8 sps:$4 sm:$0xff]  }
 0x320   :  { %v1373_v36 = vpack.c.bf16 %v1352_v27, %v1351_v45  ;;  %v11773_v45 = vld [vmem:[%s17720_s2 + $0x1d0] ss:$8 sps:$4 sm:$0xff]   ;;  %v11719_v27 = vld [vmem:[%s17720_s2 + $0xa0] ss:$8 sps:$4 sm:$0xff]  }
 0x321   :  { %v1282_v39 = vpop.permute.xlu1 %1281 }
 0x322   :  { %v1354_v50 = vmul.f32 %v12078_v37, %v1282_v39  ;;  %11054 = vmatprep.mubr.msk.bf16.mxu1 %vm541_vm0, %v1373_v36  ;;  %1984 = vmatpush1.bf16.msra.mxu0 %v1373_v36  ;;  %v11722_v37 = vld [vmem:[%s17720_s2 + $0xb0] ss:$8 sps:$4 sm:$0xff]   ;;  %v11780_v39 = vld [vmem:[%s17720_s2 + $0x1f4] ss:$8 sps:$4 sm:$0xff]  }
 0x323   :  { %11524 = vmatpush1.bf16.msra.mxu1 %v1373_v36  ;;  %1985 = vmatprep.subr.bf16.mxu0 %v17730_v7  ;;  %v1284_v11 = vpop.permute.xlu0 %1283  ;;  %v11779_v36 = vld [vmem:[%s17720_s2 + $0x1e0] ss:$8 sps:$4 sm:$0xff]  }
 0x324   :  { %v1374_v0 = vpack.c.bf16 %v1354_v50, %v1353_v49  ;;  %11509 = vmatprep.subr.bf16.mxu1 %v17730_v7  ;;  %v1355_v4 = vmul.f32 %v12080_v55, %v1284_v11  ;;  %v11783_v49 = vld [vmem:[%s17725_s7] sm:$0xff]   ;;  %v11784_v55 = vld [vmem:[%s17725_s7 + $0x8] sm:$0xff]  }
 0x325   :  { %v11723_v50 = vld [vmem:[%s17720_s2 + $0xc4] ss:$8 sps:$4 sm:$0xff]   ;;  %v11725_v11 = vld [vmem:[%s17720_s2 + $0xc0] ss:$8 sps:$4 sm:$0xff]  }
 0x326   :  { %11055 = vmatmul.mubr.msk.bf16.gmra.mrb[52].mxu1 %vm541_vm0, %v1374_v0  ;;  %1986 = vmatpush1.bf16.msra.mxu0 %v1374_v0 }
 0x327   :  { %11525 = vmatpush1.bf16.msra.mxu1 %v1374_v0  ;;  %1987 = vmatprep.subr.bf16.mxu0 %v17730_v7  ;;  %v1286_v35 = vpop.permute.xlu1 %1285  ;;  %v1288_v10 = vpop.permute.xlu0 %1287  ;;  %v11782_v0 = vld [vmem:[%s17720_s2 + $0x1f0] ss:$8 sps:$4 sm:$0xff]  }
 0x328   :  { %11510 = vmatprep.subr.bf16.mxu1 %v17730_v7  ;;  %v1356_v13 = vmul.f32 %v12082_v16, %v1286_v35  ;;  %v1357_v40 = vmul.f32 %v12084_v23, %v1288_v10  ;;  %v11726_v16 = vld [vmem:[%s17720_s2 + $0xd4] ss:$8 sps:$4 sm:$0xff]   ;;  %v11728_v35 = vld [vmem:[%s17720_s2 + $0xd0] ss:$8 sps:$4 sm:$0xff]  }
 0x329   :  { %v11732_v10 = vld [vmem:[%s17720_s2 + $0xf4] ss:$8 sps:$4 sm:$0xff]   ;;  %v11734_v23 = vld [vmem:[%s17720_s2 + $0xf0] ss:$8 sps:$4 sm:$0xff]  }
 0x32a   :  { %v1375_v19 = vpack.c.bf16 %v1356_v13, %v1355_v4  ;;  %v11729_v4 = vld [vmem:[%s17720_s2 + $0xe4] ss:$8 sps:$4 sm:$0xff]   ;;  %v11731_v13 = vld [vmem:[%s17720_s2 + $0xe0] ss:$8 sps:$4 sm:$0xff]  }
 0x32b   :  { %v1290_v32 = vpop.permute.xlu1 %1289 }
 0x32c   :  { %v1358_v44 = vmul.f32 %v12086_v28, %v1290_v32  ;;  %11058 = vmatprep.mubr.msk.bf16.mxu1 %vm541_vm0, %v1375_v19  ;;  %1988 = vmatpush1.bf16.msra.mxu0 %v1375_v19  ;;  %v11737_v28 = vld [vmem:[%s17720_s2 + $0x100] ss:$8 sps:$4 sm:$0xff]   ;;  %v11738_v32 = vld [vmem:[%s17720_s2 + $0x114] ss:$8 sps:$4 sm:$0xff]  }
 0x32d   :  { %11526 = vmatpush1.bf16.msra.mxu1 %v1375_v19  ;;  %1989 = vmatprep.subr.bf16.mxu0 %v17730_v7  ;;  %v1292_v38 = vpop.permute.xlu0 %1291  ;;  %v11735_v19 = vld [vmem:[%s17720_s2 + $0x104] ss:$8 sps:$4 sm:$0xff]  }
 0x32e   :  { %v1376_v41 = vpack.c.bf16 %v1358_v44, %v1357_v40  ;;  %11511 = vmatprep.subr.bf16.mxu1 %v17730_v7  ;;  %v1359_v58 = vmul.f32 %v12088_v33, %v1292_v38  ;;  %v11740_v33 = vld [vmem:[%s17720_s2 + $0x110] ss:$8 sps:$4 sm:$0xff]  }
 0x330   :  { %11059 = vmatmul.mubr.msk.bf16.gmra.mrb[56].mxu1 %vm541_vm0, %v1376_v41  ;;  %1990 = vmatpush1.bf16.msra.mxu0 %v1376_v41 }
 0x331   :  { %11527 = vmatpush1.bf16.msra.mxu1 %v1376_v41  ;;  %1991 = vmatprep.subr.bf16.mxu0 %v17730_v7  ;;  %v1296_v20 = vpop.permute.xlu0 %1295 }
 0x332   :  { %11512 = vmatprep.subr.bf16.mxu1 %v17730_v7  ;;  %v1361_v63 = vmul.f32 %v12092_v60, %v1296_v20  ;;  %v11743_v60 = vld [vmem:[%s17720_s2 + $0x120] ss:$8 sps:$4 sm:$0xff]  }
 0x333   :  { %v1294_v48 = vpop.permute.xlu1 %1293 }
 0x334   :  { %v1360_v47 = vmul.f32 %v12090_v46, %v1294_v48  ;;  %v11741_v46 = vld [vmem:[%s17720_s2 + $0x124] ss:$8 sps:$4 sm:$0xff]  }
 0x336   :  { %v1377_v61 = vpack.c.bf16 %v1360_v47, %v1359_v58 }
 0x337   :  { %v1298_v57 = vpop.permute.xlu1 %1297 }
 0x338   :  { %v1362_v1 = vmul.f32 %v12094_v43, %v1298_v57  ;;  %11062 = vmatprep.mubr.msk.bf16.mxu1 %vm541_vm0, %v1377_v61  ;;  %1992 = vmatpush1.bf16.msra.mxu0 %v1377_v61  ;;  %v11746_v43 = vld [vmem:[%s17720_s2 + $0x130] ss:$8 sps:$4 sm:$0xff]   ;;  %v11747_v57 = vld [vmem:[%s17720_s2 + $0x144] ss:$8 sps:$4 sm:$0xff]  }
 0x339   :  { %11528 = vmatpush1.bf16.msra.mxu1 %v1377_v61  ;;  %1993 = vmatprep.subr.bf16.mxu0 %v17730_v7  ;;  %v11744_v61 = vld [vmem:[%s17720_s2 + $0x134] ss:$8 sps:$4 sm:$0xff]  }
 0x33a   :  { %v1378_v2 = vpack.c.bf16 %v1362_v1, %v1361_v63  ;;  %11513 = vmatprep.subr.bf16.mxu1 %v17730_v7 }
 0x33c   :  { %11063 = vmatmul.mubr.msk.bf16.gmra.mrb[60].mxu1 %vm541_vm0, %v1378_v2  ;;  %1994 = vmatpush1.bf16.msra.mxu0 %v1378_v2 }
 0x33d   :  { %11529 = vmatpush1.bf16.msra.mxu1 %v1378_v2  ;;  %2211 = vmatprep.mubr.bf16.mxu1 %v11760_v56  ;;  %v11761_v56 = vld [vmem:[%s17720_s2 + $0x170] ss:$8 sps:$4 sm:$0xff]  }
 0x33e   :  { %11066 = vmatprep.subr.bf16.mxu1 %v11783_v49 }
 0x33f   :  { %1996 = vmatmul.mubr.bf16.vlgmr.msra.gmra.mrb[64].mxu0 %v11687_v3 }
 0x340   :  { %2003 = vmatprep.mubr.bf16.mxu0 %v11690_v5  ;;  %v11749_v5 = vld [vmem:[%s17720_s2 + $0x140] ss:$8 sps:$4 sm:$0xff]  }
 0x344   :  { %2212 = vmatmul.mubr.bf16.vlgmr.msra.gmra.mrb[64].mxu1 %v11758_v18 }
 0x345   :  { %2219 = vmatprep.mubr.bf16.mxu1 %v11764_v62  ;;  %11067 = vmatpush3.bf16.msra.mxu1 %v11783_v49 }
 0x346   :  { %11068 = vmatprep.subr.bf16.mxu1 %v11784_v55 }
 0x347   :  { %2004 = vmatmul.mubr.bf16.gmra.mrb[68].mxu0 %v11692_v6  ;;  %v11750_v6 = vld [vmem:[%s17720_s2 + $0x154] ss:$8 sps:$4 sm:$0xff]  }
 0x348   :  { %2011 = vmatprep.mubr.bf16.mxu0 %v11693_v9 }
 0x349   :  { %11069 = vmatpush3.bf16.msra.mxu1 %v11784_v55  ;;  %v11785_v55 = vld [vmem:[%s17725_s7 + $0x10] sm:$0xff]  }
 0x34a   :  { %11102 = vmatprep.subr.bf16.mxu1 %v11785_v55 }
 0x34c   :  { %2220 = vmatmul.mubr.bf16.gmra.mrb[68].mxu1 %v11767_v29  ;;  %v11766_v29 = vld [vmem:[%s17720_s2 + $0x180] ss:$8 sps:$4 sm:$0xff]  }
 0x34d   :  { %2227 = vmatprep.mubr.bf16.mxu1 %v11770_v59  ;;  %v11772_v59 = vld [vmem:[%s17720_s2 + $0x190] ss:$8 sps:$4 sm:$0xff]  }
 0x34f   :  { %2012 = vmatmul.mubr.bf16.gmra.mrb[72].mxu0 %v11695_v12 }
 0x350   :  { %2019 = vmatprep.mubr.bf16.mxu0 %v11696_v8 }
 0x354   :  { %2228 = vmatmul.mubr.bf16.gmra.mrb[72].mxu1 %v11773_v45 }
 0x355   :  { %2235 = vmatprep.mubr.bf16.mxu1 %v11776_v31 }
 0x357   :  { %2020 = vmatmul.mubr.bf16.gmra.mrb[76].mxu0 %v11698_v21 }
 0x358   :  { %2027 = vmatprep.mubr.bf16.mxu0 %v11699_v51  ;;  %v11752_v51 = vld [vmem:[%s17720_s2 + $0x150] ss:$8 sps:$4 sm:$0xff]  }
 0x35c   :  { %2236 = vmatmul.mubr.bf16.gmra.mrb[76].mxu1 %v11779_v36  ;;  %v11778_v36 = vld [vmem:[%s17720_s2 + $0x1a0] ss:$8 sps:$4 sm:$0xff]  }
 0x35d   :  { %2243 = vmatprep.mubr.bf16.mxu1 %v11780_v39 }
 0x35f   :  { %2028 = vmatmul.mubr.bf16.gmra.mrb[80].mxu0 %v11701_v17  ;;  %v11753_v17 = vld [vmem:[%s17720_s2 + $0x164] ss:$8 sps:$4 sm:$0xff]  }
 0x360   :  { %2035 = vmatprep.mubr.bf16.mxu0 %v11702_v14  ;;  %v11755_v14 = vld [vmem:[%s17720_s2 + $0x160] ss:$8 sps:$4 sm:$0xff]  }
 0x364   :  { %2244 = vmatmul.mubr.bf16.gmra.mrb[80].mxu1 %v11782_v0 }
 0x367   :  { %2036 = vmatmul.mubr.bf16.gmra.mrb[84].mxu0 %v11704_v26 }
 0x368   :  { %2043 = vmatprep.mubr.bf16.mxu0 %v11705_v42 }
 0x36f   :  { %2044 = vmatmul.mubr.bf16.gmra.mrb[88].mxu0 %v11707_v15  ;;  %v11756_v15 = vld [vmem:[%s17720_s2 + $0x174] ss:$8 sps:$4 sm:$0xff]  }
 0x370   :  { %2051 = vmatprep.mubr.bf16.mxu0 %v11708_v34 }
 0x377   :  { %2052 = vmatmul.mubr.bf16.gmra.mrb[92].mxu0 %v11710_v22  ;;  %v11762_v22 = vld [vmem:[%s17720_s2 + $0x184] ss:$8 sps:$4 sm:$0xff]  }
 0x378   :  { %2059 = vmatprep.mubr.bf16.mxu0 %v11711_v24 }
 0x37f   :  { %2060 = vmatmul.mubr.bf16.gmra.mrb[96].mxu0 %v11713_v54 }
 0x380   :  { %2067 = vmatprep.mubr.bf16.mxu0 %v11714_v53 }
 0x387   :  { %2068 = vmatmul.mubr.bf16.gmra.mrb[100].mxu0 %v11716_v52  ;;  %v11768_v52 = vld [vmem:[%s17720_s2 + $0x194] ss:$8 sps:$4 sm:$0xff]  }
 0x388   :  { %2075 = vmatprep.mubr.bf16.mxu0 %v11717_v25 }
 0x38f   :  { %2076 = vmatmul.mubr.bf16.gmra.mrb[104].mxu0 %v11719_v27  ;;  %v11774_v27 = vld [vmem:[%s17720_s2 + $0x1a4] ss:$8 sps:$4 sm:$0xff]  }
 0x390   :  { %2083 = vmatprep.mubr.bf16.mxu0 %v11720_v30 }
 0x397   :  { %2084 = vmatmul.mubr.bf16.gmra.mrb[108].mxu0 %v11722_v37 }
 0x398   :  { %2091 = vmatprep.mubr.bf16.mxu0 %v11723_v50 }
 0x39f   :  { %2092 = vmatmul.mubr.bf16.gmra.mrb[112].mxu0 %v11725_v11 }
 0x3a0   :  { %2099 = vmatprep.mubr.bf16.mxu0 %v11726_v16 }
 0x3a7   :  { %2100 = vmatmul.mubr.bf16.gmra.mrb[116].mxu0 %v11728_v35 }
 0x3a8   :  { %2107 = vmatprep.mubr.bf16.mxu0 %v11729_v4 }
 0x3af   :  { %2108 = vmatmul.mubr.bf16.gmra.mrb[120].mxu0 %v11731_v13 }
 0x3b0   :  { %2115 = vmatprep.mubr.bf16.mxu0 %v11732_v10 }
 0x3b7   :  { %2116 = vmatmul.mubr.bf16.gmra.mrb[124].mxu0 %v11734_v23 }
 0x3b8   :  { %2123 = vmatprep.mubr.bf16.mxu0 %v11735_v19 }
 0x3bf   :  { %2124 = vmatmul.mubr.bf16.gmra.mrb[128].mxu0 %v11737_v28 }
 0x3c0   :  { %2131 = vmatprep.mubr.bf16.mxu0 %v11738_v32  ;;  %v11786_v32 = vld [vmem:[%s17725_s7 + $0x18] sm:$0xff]  }
 0x3c1   :  { %v13452_v40 = vpop.f32.mrb[32].mxu1 }
 0x3c2   :  { %v13454_v44 = vpop.f32.mrb[33].mxu1 }
 0x3c3   :  { %v13456_v41 = vpop.f32.mrb[34].mxu1 }
 0x3c4   :  { %v13458_v38 = vpop.f32.mrb[35].mxu1 }
 0x3c7   :  { %2132 = vmatmul.mubr.bf16.gmra.mrb[132].mxu0 %v11740_v33 }
 0x3c8   :  { %2139 = vmatprep.mubr.bf16.mxu0 %v11741_v46 }
 0x3cb   :  { %v13466_v48 = vpop.f32.mrb[36].mxu1 }
 0x3cc   :  { %v13468_v58 = vpop.f32.mrb[37].mxu1 }
 0x3cd   :  { %v13470_v47 = vpop.f32.mrb[38].mxu1 }
 0x3ce   :  { %v13472_v20 = vpop.f32.mrb[39].mxu1 }
 0x3cf   :  { %2140 = vmatmul.mubr.bf16.gmra.mrb[136].mxu0 %v11743_v60 }
 0x3d0   :  { %2147 = vmatprep.mubr.bf16.mxu0 %v11744_v61 }
 0x3d7   :  { %2148 = vmatmul.mubr.bf16.gmra.mrb[140].mxu0 %v11746_v43 }
 0x3d8   :  { %2155 = vmatprep.mubr.bf16.mxu0 %v11747_v57 }
 0x3d9   :  { %v13486_v63 = vpop.f32.mrb[40].mxu1 }
 0x3da   :  { %v13488_v1 = vpop.f32.mrb[41].mxu1 }
 0x3db   :  { %v13490_v2 = vpop.f32.mrb[42].mxu1 }
 0x3dc   :  { %v13492_v3 = vpop.f32.mrb[43].mxu1 }
 0x3df   :  { %2156 = vmatmul.mubr.bf16.gmra.mrb[144].mxu0 %v11749_v5 }
 0x3e0   :  { %2163 = vmatprep.mubr.bf16.mxu0 %v11750_v6 }
 0x3e3   :  { %v13500_v9 = vpop.f32.mrb[44].mxu1 }
 0x3e4   :  { %v13502_v12 = vpop.f32.mrb[45].mxu1 }
 0x3e5   :  { %v13504_v8 = vpop.f32.mrb[46].mxu1 }
 0x3e6   :  { %v13506_v21 = vpop.f32.mrb[47].mxu1 }
 0x3e7   :  { %2164 = vmatmul.mubr.bf16.gmra.mrb[148].mxu0 %v11752_v51 }
 0x3e8   :  { %2171 = vmatprep.mubr.bf16.mxu0 %v11753_v17 }
 0x3ef   :  { %v13517_v26 = vpop.f32.mrb[48].mxu1  ;;  %2172 = vmatmul.mubr.bf16.gmra.mrb[152].mxu0 %v11755_v14 }
 0x3f0   :  { %v13519_v42 = vpop.f32.mrb[49].mxu1  ;;  %2179 = vmatprep.mubr.bf16.mxu0 %v11756_v15 }
 0x3f1   :  { %v13524_v34 = vpop.f32.mrb[50].mxu1 }
 0x3f2   :  { %v13526_v18 = vpop.f32.mrb[51].mxu1 }
 0x3f7   :  { %2180 = vmatmul.mubr.bf16.gmra.mrb[156].mxu0 %v11761_v56 }
 0x3f8   :  { %2187 = vmatprep.mubr.bf16.mxu0 %v11762_v22 }
 0x3f9   :  { %v13534_v24 = vpop.f32.mrb[52].mxu1 }
 0x3fa   :  { %v13536_v62 = vpop.f32.mrb[53].mxu1 }
 0x3fb   :  { %v13538_v54 = vpop.f32.mrb[54].mxu1 }
 0x3fc   :  { %v13540_v53 = vpop.f32.mrb[55].mxu1 }
 0x3ff   :  { %2188 = vmatmul.mubr.bf16.gmra.mrb[160].mxu0 %v11766_v29 }
 0x400   :  { %2195 = vmatprep.mubr.bf16.mxu0 %v11768_v52 }
 0x403   :  { %v13548_v25 = vpop.f32.mrb[56].mxu1 }
 0x404   :  { %v13553_v45 = vpop.f32.mrb[57].mxu1 }
 0x405   :  { %v13558_v30 = vpop.f32.mrb[58].mxu1 }
 0x406   :  { %v13560_v31 = vpop.f32.mrb[59].mxu1 }
 0x407   :  { %2196 = vmatmul.mubr.bf16.gmra.mrb[164].mxu0 %v11772_v59 }
 0x408   :  { %2203 = vmatprep.mubr.bf16.mxu0 %v11774_v27 }
 0x40f   :  { %v13565_v37 = vpop.f32.mrb[60].mxu1  ;;  %2204 = vmatmul.mubr.bf16.gmra.mrb[168].mxu0 %v11778_v36 }
 0x410   :  { %v13567_v39 = vpop.f32.mrb[61].mxu1 }
 0x411   :  { %v13569_v49 = vpop.f32.mrb[62].mxu1 }
 0x412   :  { %v13571_v50 = vpop.f32.mrb[63].mxu1  ;;  %v1997_v0 = vpop.f32.mrb[64].mxu0 }
 0x413   :  { %v1999_v11 = vpop.f32.mrb[65].mxu0 }
 0x414   :  { %v2000_v16 = vpop.f32.mrb[66].mxu0 }
 0x415   :  { %v2260_v35 = vpack.c.bf16 %v2000_v16, %v1997_v0  ;;  %v2002_v4 = vpop.f32.mrb[67].mxu0 }
 0x417   :  { %11070 = vmatprep.mubr.msk.bf16.mxu1 %vm541_vm0, %v2260_v35 }
 0x41a   :  { %v2005_v13 = vpop.f32.mrb[68].mxu0 }
 0x41b   :  { %v2007_v10 = vpop.f32.mrb[69].mxu0 }
 0x41c   :  { %v2008_v23 = vpop.f32.mrb[70].mxu0 }
 0x41d   :  { %v2261_v19 = vpack.c.bf16 %v2008_v23, %v2005_v13  ;;  %v2010_v28 = vpop.f32.mrb[71].mxu0 }
 0x41f   :  { %11071 = vmatmul.mubr.msk.bf16.vlgmr.msra.gmra.mrb[84].mxu1 %vm541_vm0, %v2261_v19 }
 0x420   :  { %11103 = vmatpush3.bf16.msra.mxu1 %v11785_v55 }
 0x421   :  { %11104 = vmatprep.subr.bf16.mxu1 %v11786_v32 }
 0x422   :  { %v2013_v33 = vpop.f32.mrb[72].mxu0 }
 0x423   :  { %v2015_v46 = vpop.f32.mrb[73].mxu0 }
 0x424   :  { %v2016_v60 = vpop.f32.mrb[74].mxu0  ;;  %11105 = vmatpush3.bf16.msra.mxu1 %v11786_v32 }
 0x425   :  { %v2262_v61 = vpack.c.bf16 %v2016_v60, %v2013_v33  ;;  %v2018_v43 = vpop.f32.mrb[75].mxu0 }
 0x427   :  { %11074 = vmatprep.mubr.msk.bf16.mxu1 %vm541_vm0, %v2262_v61 }
 0x42a   :  { %v2021_v57 = vpop.f32.mrb[76].mxu0 }
 0x42b   :  { %v2023_v5 = vpop.f32.mrb[77].mxu0 }
 0x42c   :  { %v2024_v6 = vpop.f32.mrb[78].mxu0 }
 0x42d   :  { %v2263_v51 = vpack.c.bf16 %v2024_v6, %v2021_v57  ;;  %v2026_v17 = vpop.f32.mrb[79].mxu0 }
 0x42e   :  { %v13588_v17 = vpop.f32.mrb[64].mxu1 }
 0x42f   :  { %11075 = vmatmul.mubr.msk.bf16.gmra.mrb[88].mxu1 %vm541_vm0, %v2263_v51 }
 0x432   :  { %v2029_v14 = vpop.f32.mrb[80].mxu0 }
 0x433   :  { %v2031_v15 = vpop.f32.mrb[81].mxu0 }
 0x434   :  { %v2032_v56 = vpop.f32.mrb[82].mxu0 }
 0x435   :  { %v2264_v22 = vpack.c.bf16 %v2032_v56, %v2029_v14  ;;  %v2034_v29 = vpop.f32.mrb[83].mxu0  ;;  %v2215_v14 = vpop.f32.mrb[65].mxu1 }
 0x436   :  { %v13591_v15 = vpop.f32.mrb[66].mxu1 }
 0x437   :  { %11078 = vmatprep.mubr.msk.bf16.mxu1 %vm541_vm0, %v2264_v22  ;;  %v2668_v56 = vpack.c.bf16 %v13591_v15, %v13588_v17  ;;  %v2218_v22 = vpop.f32.mrb[67].mxu1 }
 0x43a   :  { %v2037_v52 = vpop.f32.mrb[84].mxu0 }
 0x43b   :  { %v2039_v59 = vpop.f32.mrb[85].mxu0 }
 0x43c   :  { %v2040_v27 = vpop.f32.mrb[86].mxu0 }
 0x43d   :  { %v2265_v36 = vpack.c.bf16 %v2040_v27, %v2037_v52  ;;  %v2042_v0 = vpop.f32.mrb[87].mxu0  ;;  %v13595_v52 = vpop.f32.mrb[68].mxu1 }
 0x43e   :  { %v2223_v27 = vpop.f32.mrb[69].mxu1 }
 0x43f   :  { %11079 = vmatmul.mubr.msk.bf16.gmra.mrb[92].mxu1 %vm541_vm0, %v2265_v36 }
 0x442   :  { %v2045_v11 = vpop.f32.mrb[88].mxu0 }
 0x443   :  { %v2047_v55 = vpop.f32.mrb[89].mxu0 }
 0x444   :  { %v2048_v16 = vpop.f32.mrb[90].mxu0  ;;  %v13597_v55 = vpop.f32.mrb[70].mxu1 }
 0x445   :  { %v2266_v35 = vpack.c.bf16 %v2048_v16, %v2045_v11  ;;  %v2050_v4 = vpop.f32.mrb[91].mxu0  ;;  %v2669_v16 = vpack.c.bf16 %v13597_v55, %v13595_v52 }
 0x447   :  { %11082 = vmatprep.mubr.msk.bf16.mxu1 %vm541_vm0, %v2266_v35  ;;  %v2226_v35 = vpop.f32.mrb[71].mxu1 }
 0x448   :  { %v13602_v4 = vpop.f32.mrb[72].mxu1 }
 0x44a   :  { %v2053_v13 = vpop.f32.mrb[92].mxu0 }
 0x44b   :  { %v2055_v10 = vpop.f32.mrb[93].mxu0 }
 0x44c   :  { %v2056_v23 = vpop.f32.mrb[94].mxu0 }
 0x44d   :  { %v2267_v19 = vpack.c.bf16 %v2056_v23, %v2053_v13  ;;  %v2058_v28 = vpop.f32.mrb[95].mxu0  ;;  %v2231_v13 = vpop.f32.mrb[73].mxu1 }
 0x44e   :  { %v13604_v10 = vpop.f32.mrb[74].mxu1 }
 0x44f   :  { %11083 = vmatmul.mubr.msk.bf16.gmra.mrb[96].mxu1 %vm541_vm0, %v2267_v19  ;;  %v2670_v19 = vpack.c.bf16 %v13604_v10, %v13602_v4  ;;  %v2234_v28 = vpop.f32.mrb[75].mxu1 }
 0x452   :  { %v2061_v32 = vpop.f32.mrb[96].mxu0 }
 0x453   :  { %v2063_v33 = vpop.f32.mrb[97].mxu0 }
 0x454   :  { %v2064_v46 = vpop.f32.mrb[98].mxu0  ;;  %v13608_v33 = vpop.f32.mrb[76].mxu1 }
 0x455   :  { %v2268_v60 = vpack.c.bf16 %v2064_v46, %v2061_v32  ;;  %v2066_v61 = vpop.f32.mrb[99].mxu0 }
 0x457   :  { %11086 = vmatprep.mubr.msk.bf16.mxu1 %vm541_vm0, %v2268_v60  ;;  %v2239_v60 = vpop.f32.mrb[77].mxu1 }
 0x45a   :  { %v2069_v43 = vpop.f32.mrb[100].mxu0 }
 0x45b   :  { %v2071_v57 = vpop.f32.mrb[101].mxu0 }
 0x45c   :  { %v2072_v5 = vpop.f32.mrb[102].mxu0  ;;  %v13610_v57 = vpop.f32.mrb[78].mxu1 }
 0x45d   :  { %v2269_v6 = vpack.c.bf16 %v2072_v5, %v2069_v43  ;;  %v2074_v51 = vpop.f32.mrb[103].mxu0  ;;  %v2671_v5 = vpack.c.bf16 %v13610_v57, %v13608_v33 }
 0x45f   :  { %11087 = vmatmul.mubr.msk.bf16.gmra.mrb[100].mxu1 %vm541_vm0, %v2269_v6  ;;  %v2242_v6 = vpop.f32.mrb[79].mxu1 }
 0x460   :  { %v13615_v51 = vpop.f32.mrb[80].mxu1 }
 0x461   :  { %v2247_v14 = vpop.f32.mrb[81].mxu1 }
 0x462   :  { %v2077_v29 = vpop.f32.mrb[104].mxu0  ;;  %v13617_v22 = vpop.f32.mrb[82].mxu1 }
 0x463   :  { %v2079_v59 = vpop.f32.mrb[105].mxu0  ;;  %v2250_v27 = vpop.f32.mrb[83].mxu1 }
 0x464   :  { %v2080_v36 = vpop.f32.mrb[106].mxu0  ;;  %v2672_v59 = vpack.c.bf16 %v13617_v22, %v13615_v51 }
 0x465   :  { %v2270_v0 = vpack.c.bf16 %v2080_v36, %v2077_v29  ;;  %v2082_v11 = vpop.f32.mrb[107].mxu0 }
 0x467   :  { %11090 = vmatprep.mubr.msk.bf16.mxu1 %vm541_vm0, %v2270_v0 }
 0x46a   :  { %v2085_v23 = vpop.f32.mrb[108].mxu0 }
 0x46b   :  { %v2087_v32 = vpop.f32.mrb[109].mxu0 }
 0x46c   :  { %v2088_v46 = vpop.f32.mrb[110].mxu0 }
 0x46d   :  { %v2271_v61 = vpack.c.bf16 %v2088_v46, %v2085_v23  ;;  %v2090_v43 = vpop.f32.mrb[111].mxu0 }
 0x46f   :  { %11091 = vmatmul.mubr.msk.bf16.gmra.mrb[104].mxu1 %vm541_vm0, %v2271_v61 }
 0x472   :  { %v2093_v29 = vpop.f32.mrb[112].mxu0 }
 0x473   :  { %v2095_v36 = vpop.f32.mrb[113].mxu0 }
 0x474   :  { %v2096_v0 = vpop.f32.mrb[114].mxu0 }
 0x475   :  { %v2272_v11 = vpack.c.bf16 %v2096_v0, %v2093_v29  ;;  %v2098_v35 = vpop.f32.mrb[115].mxu0 }
 0x477   :  { %11094 = vmatprep.mubr.msk.bf16.mxu1 %vm541_vm0, %v2272_v11 }
 0x47a   :  { %v2101_v13 = vpop.f32.mrb[116].mxu0 }
 0x47b   :  { %v2103_v23 = vpop.f32.mrb[117].mxu0 }
 0x47c   :  { %v2104_v28 = vpop.f32.mrb[118].mxu0 }
 0x47d   :  { %v2273_v32 = vpack.c.bf16 %v2104_v28, %v2101_v13  ;;  %v2106_v46 = vpop.f32.mrb[119].mxu0 }
 0x47f   :  { %11095 = vmatmul.mubr.msk.bf16.gmra.mrb[108].mxu1 %vm541_vm0, %v2273_v32 }
 0x482   :  { %v2109_v60 = vpop.f32.mrb[120].mxu0 }
 0x483   :  { %v2111_v61 = vpop.f32.mrb[121].mxu0 }
 0x484   :  { %v2112_v43 = vpop.f32.mrb[122].mxu0 }
 0x485   :  { %v2274_v6 = vpack.c.bf16 %v2112_v43, %v2109_v60  ;;  %v2114_v14 = vpop.f32.mrb[123].mxu0 }
 0x487   :  { %11098 = vmatprep.mubr.msk.bf16.mxu1 %vm541_vm0, %v2274_v6 }
 0x48a   :  { %v2117_v27 = vpop.f32.mrb[124].mxu0 }
 0x48b   :  { %v2119_v36 = vpop.f32.mrb[125].mxu0 }
 0x48c   :  { %v2120_v29 = vpop.f32.mrb[126].mxu0 }
 0x48d   :  { %v2275_v0 = vpack.c.bf16 %v2120_v29, %v2117_v27  ;;  %v2122_v35 = vpop.f32.mrb[127].mxu0 }
 0x48f   :  { %11099 = vmatmul.mubr.msk.bf16.gmra.mrb[112].mxu1 %vm541_vm0, %v2275_v0 }
 0x492   :  { %v2125_v11 = vpop.f32.mrb[128].mxu0 }
 0x493   :  { %v2127_v23 = vpop.f32.mrb[129].mxu0 }
 0x494   :  { %v2128_v13 = vpop.f32.mrb[130].mxu0 }
 0x495   :  { %v2657_v28 = vpack.c.bf16 %v2128_v13, %v2125_v11  ;;  %v2130_v46 = vpop.f32.mrb[131].mxu0 }
 0x497   :  { %11106 = vmatprep.mubr.msk.bf16.mxu1 %vm541_vm0, %v2657_v28 }
 0x49a   :  { %v2133_v32 = vpop.f32.mrb[132].mxu0 }
 0x49b   :  { %v2135_v61 = vpop.f32.mrb[133].mxu0 }
 0x49c   :  { %v2136_v60 = vpop.f32.mrb[134].mxu0 }
 0x49d   :  { %v2658_v43 = vpack.c.bf16 %v2136_v60, %v2133_v32  ;;  %v2138_v14 = vpop.f32.mrb[135].mxu0 }
 0x49f   :  { %11107 = vmatmul.mubr.msk.bf16.vlgmr.msra.gmra.mrb[116].mxu1 %vm541_vm0, %v2658_v43 }
 0x4a2   :  { %v2141_v6 = vpop.f32.mrb[136].mxu0 }
 0x4a3   :  { %v2143_v36 = vpop.f32.mrb[137].mxu0 }
 0x4a4   :  { %v2144_v27 = vpop.f32.mrb[138].mxu0 }
 0x4a5   :  { %v2659_v29 = vpack.c.bf16 %v2144_v27, %v2141_v6  ;;  %v2146_v35 = vpop.f32.mrb[139].mxu0 }
 0x4a7   :  { %11110 = vmatprep.mubr.msk.bf16.mxu1 %vm541_vm0, %v2659_v29 }
 0x4aa   :  { %v2149_v0 = vpop.f32.mrb[140].mxu0 }
 0x4ab   :  { %v2151_v23 = vpop.f32.mrb[141].mxu0 }
 0x4ac   :  { %v2152_v11 = vpop.f32.mrb[142].mxu0 }
 0x4ad   :  { %v2660_v13 = vpack.c.bf16 %v2152_v11, %v2149_v0  ;;  %v2154_v46 = vpop.f32.mrb[143].mxu0 }
 0x4af   :  { %11111 = vmatmul.mubr.msk.bf16.gmra.mrb[120].mxu1 %vm541_vm0, %v2660_v13 }
 0x4b2   :  { %v2157_v28 = vpop.f32.mrb[144].mxu0 }
 0x4b3   :  { %v2159_v61 = vpop.f32.mrb[145].mxu0 }
 0x4b4   :  { %v2160_v32 = vpop.f32.mrb[146].mxu0 }
 0x4b5   :  { %v2661_v60 = vpack.c.bf16 %v2160_v32, %v2157_v28  ;;  %v2162_v14 = vpop.f32.mrb[147].mxu0 }
 0x4b7   :  { %11114 = vmatprep.mubr.msk.bf16.mxu1 %vm541_vm0, %v2661_v60 }
 0x4ba   :  { %v2165_v43 = vpop.f32.mrb[148].mxu0 }
 0x4bb   :  { %v2167_v36 = vpop.f32.mrb[149].mxu0 }
 0x4bc   :  { %v2168_v6 = vpop.f32.mrb[150].mxu0 }
 0x4bd   :  { %v2662_v27 = vpack.c.bf16 %v2168_v6, %v2165_v43  ;;  %v2170_v35 = vpop.f32.mrb[151].mxu0 }
 0x4bf   :  { %11115 = vmatmul.mubr.msk.bf16.gmra.mrb[124].mxu1 %vm541_vm0, %v2662_v27 }
 0x4c2   :  { %v2173_v29 = vpop.f32.mrb[152].mxu0 }
 0x4c3   :  { %v2175_v23 = vpop.f32.mrb[153].mxu0 }
 0x4c4   :  { %v2176_v0 = vpop.f32.mrb[154].mxu0 }
 0x4c5   :  { %v2663_v11 = vpack.c.bf16 %v2176_v0, %v2173_v29  ;;  %v2178_v46 = vpop.f32.mrb[155].mxu0 }
 0x4c7   :  { %11118 = vmatprep.mubr.msk.bf16.mxu1 %vm541_vm0, %v2663_v11 }
 0x4ca   :  { %v2181_v13 = vpop.f32.mrb[156].mxu0 }
 0x4cb   :  { %v2183_v61 = vpop.f32.mrb[157].mxu0 }
 0x4cc   :  { %v2184_v28 = vpop.f32.mrb[158].mxu0 }
 0x4cd   :  { %v2664_v32 = vpack.c.bf16 %v2184_v28, %v2181_v13  ;;  %v2186_v14 = vpop.f32.mrb[159].mxu0 }
 0x4cf   :  { %11119 = vmatmul.mubr.msk.bf16.gmra.mrb[128].mxu1 %vm541_vm0, %v2664_v32 }
 0x4d2   :  { %v2189_v60 = vpop.f32.mrb[160].mxu0 }
 0x4d3   :  { %v2191_v36 = vpop.f32.mrb[161].mxu0 }
 0x4d4   :  { %v2192_v43 = vpop.f32.mrb[162].mxu0 }
 0x4d5   :  { %v2665_v6 = vpack.c.bf16 %v2192_v43, %v2189_v60  ;;  %v2194_v35 = vpop.f32.mrb[163].mxu0 }
 0x4d7   :  { %11122 = vmatprep.mubr.msk.bf16.mxu1 %vm541_vm0, %v2665_v6 }
 0x4da   :  { %v2197_v27 = vpop.f32.mrb[164].mxu0 }
 0x4db   :  { %v2199_v23 = vpop.f32.mrb[165].mxu0 }
 0x4dc   :  { %v2200_v29 = vpop.f32.mrb[166].mxu0 }
 0x4dd   :  { %v2666_v0 = vpack.c.bf16 %v2200_v29, %v2197_v27  ;;  %v2202_v46 = vpop.f32.mrb[167].mxu0 }
 0x4df   :  { %11123 = vmatmul.mubr.msk.bf16.gmra.mrb[132].mxu1 %vm541_vm0, %v2666_v0 }
 0x4e2   :  { %v2205_v11 = vpop.f32.mrb[168].mxu0 }
 0x4e3   :  { %v2207_v61 = vpop.f32.mrb[169].mxu0 }
 0x4e4   :  { %v2208_v13 = vpop.f32.mrb[170].mxu0 }
 0x4e5   :  { %v2667_v28 = vpack.c.bf16 %v2208_v13, %v2205_v11  ;;  %v2210_v14 = vpop.f32.mrb[171].mxu0 }
 0x4e7   :  { %11126 = vmatprep.mubr.msk.bf16.mxu1 %vm541_vm0, %v2667_v28 }
 0x4e8   :  { %11127 = vmatmul.mubr.msk.bf16.gmra.mrb[136].mxu1 %vm541_vm0, %v2668_v56 }
 0x4e9   :  { %11130 = vmatprep.mubr.msk.bf16.mxu1 %vm541_vm0, %v2669_v16 }
 0x4f0   :  { %11131 = vmatmul.mubr.msk.bf16.gmra.mrb[140].mxu1 %vm541_vm0, %v2670_v19 }
 0x4f1   :  { %11134 = vmatprep.mubr.msk.bf16.mxu1 %vm541_vm0, %v2671_v5 }
 0x4f2   :  { %v11072_v32 = vpop.f32.mrb[84].mxu1 }
 0x4f3   :  { %2533 = vrot.lane.b32.xlu0 %v11072_v32, %s12695_s18  ;;  %v2370_v17 = vpop.f32.mrb[85].mxu1 }
 0x4f4   :  { %v11073_v15 = vpop.f32.mrb[86].mxu1 }
 0x4f5   :  { %2535 = vrot.lane.b32.xlu1 %v11073_v15, %s12695_s18  ;;  %v2373_v56 = vpop.f32.mrb[87].mxu1 }
 0x4f7   :  { %2529 = vrot.lane.b32.xlu0 %v2370_v17, %s12695_s18 }
 0x4f8   :  { %11135 = vmatmul.mubr.msk.bf16.gmra.mrb[144].mxu1 %vm541_vm0, %v2672_v59 }
 0x4f9   :  { %2531 = vrot.lane.b32.xlu1 %v2373_v56, %s12695_s18 }
 0x502   :  { %v11076_v52 = vpop.f32.mrb[88].mxu1 }
 0x503   :  { %2541 = vrot.lane.b32.xlu1 %v11076_v52, %s12695_s18  ;;  %v2386_v55 = vpop.f32.mrb[89].mxu1 }
 0x504   :  { %v11077_v16 = vpop.f32.mrb[90].mxu1 }
 0x505   :  { %v2389_v4 = vpop.f32.mrb[91].mxu1 }
 0x507   :  { %2537 = vrot.lane.b32.xlu1 %v2386_v55, %s12695_s18 }
 0x50b   :  { %2543 = vrot.lane.b32.xlu1 %v11077_v16, %s12695_s18 }
 0x50f   :  { %2539 = vrot.lane.b32.xlu1 %v2389_v4, %s12695_s18 }
 0x512   :  { %v11080_v10 = vpop.f32.mrb[92].mxu1 }
 0x513   :  { %2549 = vrot.lane.b32.xlu1 %v11080_v10, %s12695_s18  ;;  %v2402_v19 = vpop.f32.mrb[93].mxu1 }
 0x514   :  { %v11081_v33 = vpop.f32.mrb[94].mxu1 }
 0x515   :  { %v2405_v57 = vpop.f32.mrb[95].mxu1 }
 0x517   :  { %2545 = vrot.lane.b32.xlu1 %v2402_v19, %s12695_s18 }
 0x51b   :  { %2551 = vrot.lane.b32.xlu1 %v11081_v33, %s12695_s18 }
 0x51f   :  { %2547 = vrot.lane.b32.xlu1 %v2405_v57, %s12695_s18 }
 0x522   :  { %v11084_v5 = vpop.f32.mrb[96].mxu1 }
 0x523   :  { %2557 = vrot.lane.b32.xlu1 %v11084_v5, %s12695_s18  ;;  %v2418_v51 = vpop.f32.mrb[97].mxu1 }
 0x524   :  { %v11085_v22 = vpop.f32.mrb[98].mxu1 }
 0x525   :  { %v2421_v59 = vpop.f32.mrb[99].mxu1 }
 0x527   :  { %2553 = vrot.lane.b32.xlu1 %v2418_v51, %s12695_s18 }
 0x52b   :  { %2559 = vrot.lane.b32.xlu1 %v11085_v22, %s12695_s18 }
 0x52f   :  { %2555 = vrot.lane.b32.xlu1 %v2421_v59, %s12695_s18 }
 0x532   :  { %v11088_v60 = vpop.f32.mrb[100].mxu1 }
 0x533   :  { %2565 = vrot.lane.b32.xlu1 %v11088_v60, %s12695_s18  ;;  %v2434_v36 = vpop.f32.mrb[101].mxu1 }
 0x534   :  { %v11089_v43 = vpop.f32.mrb[102].mxu1 }
 0x535   :  { %v2437_v6 = vpop.f32.mrb[103].mxu1 }
 0x537   :  { %2561 = vrot.lane.b32.xlu1 %v2434_v36, %s12695_s18 }
 0x53b   :  { %2563 = vrot.lane.b32.xlu1 %v2437_v6, %s12695_s18 }
 0x542   :  { %v11092_v35 = vpop.f32.mrb[104].mxu1 }
 0x543   :  { %v2450_v27 = vpop.f32.mrb[105].mxu1 }
 0x544   :  { %v11093_v23 = vpop.f32.mrb[106].mxu1 }
 0x545   :  { %v2453_v29 = vpop.f32.mrb[107].mxu1 }
 0x552   :  { %v11096_v0 = vpop.f32.mrb[108].mxu1 }
 0x553   :  { %v2466_v46 = vpop.f32.mrb[109].mxu1 }
 0x554   :  { %v11097_v11 = vpop.f32.mrb[110].mxu1 }
 0x555   :  { %v2469_v61 = vpop.f32.mrb[111].mxu1 }
 0x562   :  { %v11100_v13 = vpop.f32.mrb[112].mxu1 }
 0x563   :  { %v2482_v28 = vpop.f32.mrb[113].mxu1 }
 0x564   :  { %v11101_v14 = vpop.f32.mrb[114].mxu1 }
 0x565   :  { %v2485_v32 = vpop.f32.mrb[115].mxu1 }
 0x567   :  { %v13685_v19 = vpop.permute.xlu1 %2535 }
 0x56b   :  { %v13690_v33 = vpop.permute.xlu1 %2531 }
 0x572   :  { %v11108_v17 = vpop.f32.mrb[116].mxu1 }
 0x573   :  { %2930 = vrot.lane.b32.xlu0 %v11108_v17, %s12695_s18  ;;  %v2767_v15 = vpop.f32.mrb[117].mxu1 }
 0x574   :  { %2926 = vrot.lane.b32.xlu1 %v2767_v15, %s12695_s18  ;;  %v11109_v56 = vpop.f32.mrb[118].mxu1 }
 0x575   :  { %v2770_v52 = vpop.f32.mrb[119].mxu1  ;;  %v13694_v57 = vpop.permute.xlu1 %2541 }
 0x577   :  { %2932 = vrot.lane.b32.xlu0 %v11109_v56, %s12695_s18 }
 0x578   :  { %2567 = vrot.lane.b32.xlu1 %v11089_v43, %s12695_s18 }
 0x579   :  { %v13699_v60 = vpop.permute.xlu1 %2537 }
 0x57b   :  { %2928 = vrot.lane.b32.xlu0 %v2770_v52, %s12695_s18 }
 0x57c   :  { %2569 = vrot.lane.b32.xlu1 %v2450_v27, %s12695_s18 }
 0x57d   :  { %v13704_v36 = vpop.permute.xlu1 %2543 }
 0x580   :  { %2571 = vrot.lane.b32.xlu1 %v2453_v29, %s12695_s18 }
 0x582   :  { %v11112_v55 = vpop.f32.mrb[120].mxu1 }
 0x583   :  { %2938 = vrot.lane.b32.xlu0 %v11112_v55, %s12695_s18  ;;  %v2783_v16 = vpop.f32.mrb[121].mxu1 }
 0x584   :  { %2573 = vrot.lane.b32.xlu1 %v11092_v35, %s12695_s18  ;;  %v11113_v4 = vpop.f32.mrb[122].mxu1  ;;  %v13709_v35 = vpop.permute.xlu1 %2539 }
 0x585   :  { %v2786_v10 = vpop.f32.mrb[123].mxu1 }
 0x587   :  { %2934 = vrot.lane.b32.xlu0 %v2783_v16, %s12695_s18 }
 0x588   :  { %2575 = vrot.lane.b32.xlu1 %v11093_v23, %s12695_s18  ;;  %v13714_v29 = vpop.permute.xlu1 %2549 }
 0x58b   :  { %2940 = vrot.lane.b32.xlu0 %v11113_v4, %s12695_s18 }
 0x58c   :  { %2577 = vrot.lane.b32.xlu1 %v2466_v46, %s12695_s18 }
 0x58f   :  { %2936 = vrot.lane.b32.xlu0 %v2786_v10, %s12695_s18 }
 0x590   :  { %2579 = vrot.lane.b32.xlu1 %v2469_v61, %s12695_s18 }
 0x592   :  { %v11116_v5 = vpop.f32.mrb[124].mxu1 }
 0x593   :  { %2946 = vrot.lane.b32.xlu0 %v11116_v5, %s12695_s18  ;;  %v2799_v51 = vpop.f32.mrb[125].mxu1 }
 0x594   :  { %2581 = vrot.lane.b32.xlu1 %v11096_v0, %s12695_s18  ;;  %v11117_v22 = vpop.f32.mrb[126].mxu1  ;;  %v13718_v0 = vpop.permute.xlu1 %2545 }
 0x595   :  { %v2802_v59 = vpop.f32.mrb[127].mxu1 }
 0x597   :  { %2942 = vrot.lane.b32.xlu0 %v2799_v51, %s12695_s18 }
 0x598   :  { %2583 = vrot.lane.b32.xlu1 %v11097_v11, %s12695_s18 }
 0x59b   :  { %2948 = vrot.lane.b32.xlu0 %v11117_v22, %s12695_s18 }
 0x59c   :  { %2585 = vrot.lane.b32.xlu1 %v2482_v28, %s12695_s18  ;;  %v13721_v28 = vpop.permute.xlu1 %2551 }
 0x59f   :  { %2944 = vrot.lane.b32.xlu0 %v2802_v59, %s12695_s18 }
 0x5a0   :  { %2587 = vrot.lane.b32.xlu1 %v2485_v32, %s12695_s18  ;;  %v13725_v32 = vpop.permute.xlu1 %2547 }
 0x5a2   :  { %v11120_v43 = vpop.f32.mrb[128].mxu1 }
 0x5a3   :  { %2954 = vrot.lane.b32.xlu0 %v11120_v43, %s12695_s18  ;;  %v2815_v6 = vpop.f32.mrb[129].mxu1 }
 0x5a4   :  { %2589 = vrot.lane.b32.xlu1 %v11100_v13, %s12695_s18  ;;  %v11121_v27 = vpop.f32.mrb[130].mxu1  ;;  %v13728_v52 = vpop.permute.xlu1 %2557 }
 0x5a5   :  { %v2818_v23 = vpop.f32.mrb[131].mxu1 }
 0x5a7   :  { %2950 = vrot.lane.b32.xlu0 %v2815_v6, %s12695_s18 }
 0x5a8   :  { %2591 = vrot.lane.b32.xlu1 %v11101_v14, %s12695_s18  ;;  %v13732_v5 = vpop.permute.xlu1 %2553 }
 0x5ab   :  { %2956 = vrot.lane.b32.xlu0 %v11121_v27, %s12695_s18 }
 0x5ac   :  { %v13735_v43 = vpop.permute.xlu1 %2559 }
 0x5af   :  { %2952 = vrot.lane.b32.xlu0 %v2818_v23, %s12695_s18 }
 0x5b0   :  { %v13740_v27 = vpop.permute.xlu1 %2555 }
 0x5b2   :  { %v11124_v46 = vpop.f32.mrb[132].mxu1 }
 0x5b3   :  { %2962 = vrot.lane.b32.xlu0 %v11124_v46, %s12695_s18  ;;  %v2831_v11 = vpop.f32.mrb[133].mxu1  ;;  %v2534_v46 = vpop.permute.xlu0 %2533 }
 0x5b4   :  { %v11125_v61 = vpop.f32.mrb[134].mxu1  ;;  %v13743_v23 = vpop.permute.xlu1 %2565 }
 0x5b5   :  { %v2834_v13 = vpop.f32.mrb[135].mxu1 }
 0x5b7   :  { %2958 = vrot.lane.b32.xlu0 %v2831_v11, %s12695_s18 }
 0x5b8   :  { %v13747_v11 = vpop.permute.xlu1 %2561 }
 0x5bb   :  { %2964 = vrot.lane.b32.xlu0 %v11125_v61, %s12695_s18  ;;  %v11128_v14 = vpop.f32.mrb[136].mxu1  ;;  %v2530_v61 = vpop.permute.xlu0 %2529 }
 0x5bc   :  { %v2847_v17 = vpop.f32.mrb[137].mxu1 }
 0x5bd   :  { %v11129_v15 = vpop.f32.mrb[138].mxu1 }
 0x5be   :  { %v2850_v56 = vpop.f32.mrb[139].mxu1 }
 0x5bf   :  { %2960 = vrot.lane.b32.xlu0 %v2834_v13, %s12695_s18 }
 0x5c3   :  { %2970 = vrot.lane.b32.xlu0 %v11128_v14, %s12695_s18  ;;  %v11132_v55 = vpop.f32.mrb[140].mxu1  ;;  %v13753_v14 = vld [vmem:[%s17724_s6] ss:$0 sm:$0xff] }
 0x5c4   :  { %v2863_v16 = vpop.f32.mrb[141].mxu1 }
 0x5c5   :  { %v11133_v4 = vpop.f32.mrb[142].mxu1 }
 0x5c6   :  { %v2866_v10 = vpop.f32.mrb[143].mxu1 }
 0x5c7   :  { %2966 = vrot.lane.b32.xlu0 %v2847_v17, %s12695_s18  ;;  %v13755_v17 = vpop.permute.xlu1 %2563 }
 0x5cb   :  { %2972 = vrot.lane.b32.xlu0 %v11129_v15, %s12695_s18  ;;  %v11136_v51 = vpop.f32.mrb[144].mxu1  ;;  %v13760_v15 = vadd.f32 %v13753_v14, %v13454_v44 }
 0x5cc   :  { %v2879_v22 = vpop.f32.mrb[145].mxu1 }
 0x5cd   :  { %v11137_v59 = vpop.f32.mrb[146].mxu1  ;;  %17852 = vst [vmem:[#allocation8_spill] sm:$0xff] %v13760_v15 }
 0x5ce   :  { %2988 = vrot.lane.b32.xlu1 %v11137_v59, %s12695_s18  ;;  %v2882_v6 = vpop.f32.mrb[147].mxu1  ;;  %v13776_v59 = vadd.f32 %v13456_v41, %v13753_v14  ;;  %v13787_v41 = vadd.f32 %v13753_v14, %v13468_v58 }
 0x5cf   :  { %2968 = vrot.lane.b32.xlu0 %v2850_v56, %s12695_s18 }
 0x5d0   :  { %17855 = vst [vmem:[#allocation11_spill] sm:$0xff] %v13776_v59  ;;  %17856 = vst [vmem:[#allocation12_spill] sm:$0xff] %v13787_v41 }
 0x5d3   :  { %2978 = vrot.lane.b32.xlu0 %v11132_v55, %s12695_s18  ;;  %v13764_v55 = vadd.f32 %v13753_v14, %v13458_v38 }
 0x5d5   :  { %17853 = vst [vmem:[#allocation9_spill] sm:$0xff] %v13764_v55 }
 0x5d7   :  { %2974 = vrot.lane.b32.xlu0 %v2863_v16, %s12695_s18 }
 0x5db   :  { %2980 = vrot.lane.b32.xlu0 %v11133_v4, %s12695_s18  ;;  %v2625_v4 = vadd.f32 %v2530_v61, %v13760_v15 }
 0x5df   :  { %2976 = vrot.lane.b32.xlu0 %v2866_v10, %s12695_s18  ;;  %v2626_v10 = vadd.f32 %v13690_v33, %v13764_v55 }
 0x5e3   :  { %2986 = vrot.lane.b32.xlu0 %v11136_v51, %s12695_s18  ;;  %v13772_v51 = vadd.f32 %v13452_v40, %v13753_v14 }
 0x5e5   :  { %v2931_v13 = vpop.permute.xlu0 %2930  ;;  %17854 = vst [vmem:[#allocation10_spill] sm:$0xff] %v13772_v51  ;;  %v2627_v7 = vadd.f32 %v2534_v46, %v13772_v51  ;;  %v2629_v46 = vadd.f32 %v13699_v60, %v13787_v41  ;;  %v11838_v51 = vld [vmem:[%s17721_s3 + $0x28] sm:$0xff]  }
 0x5e6   :  { %v2927_v16 = vpop.permute.xlu1 %2926 }
 0x5e7   :  { %2982 = vrot.lane.b32.xlu0 %v2879_v22, %s12695_s18  ;;  %v3022_v22 = vadd.f32 %v2927_v16, %v2625_v4  ;;  %v3024_v33 = vadd.f32 %v2931_v13, %v2627_v7 }
 0x5e9   :  { %v2933_v56 = vpop.permute.xlu0 %2932 }
 0x5eb   :  { %2984 = vrot.lane.b32.xlu0 %v2882_v6, %s12695_s18  ;;  %v2628_v6 = vadd.f32 %v13685_v19, %v13776_v59  ;;  %v13793_v19 = vadd.f32 %v13466_v48, %v13753_v14  ;;  %v13807_v48 = vadd.f32 %v13470_v47, %v13753_v14  ;;  %v13821_v47 = vadd.f32 %v13486_v63, %v13753_v14 }
 0x5ec   :  { %v13835_v63 = vadd.f32 %v13490_v2, %v13753_v14 }
 0x5ed   :  { %v2929_v44 = vpop.permute.xlu0 %2928  ;;  %v3025_v61 = vadd.f32 %v2933_v56, %v2628_v6  ;;  %17857 = vst [vmem:[#allocation13_spill] sm:$0xff] %v13793_v19  ;;  %v2631_v7 = vadd.f32 %v13694_v57, %v13793_v19  ;;  %v13800_v56 = vadd.f32 %v13753_v14, %v13472_v20  ;;  %17859 = vst [vmem:[#allocation15_spill] sm:$0xff] %v13807_v48 }
 0x5ee   :  { %v3023_v38 = vadd.f32 %v2929_v44, %v2626_v10  ;;  %v2632_v57 = vadd.f32 %v13704_v36, %v13807_v48  ;;  %v13814_v20 = vadd.f32 %v13753_v14, %v13488_v1  ;;  %17861 = vst [vmem:[#allocation17_spill] sm:$0xff] %v13821_v47  ;;  %v2635_v36 = vadd.f32 %v13714_v29, %v13821_v47  ;;  %v2568_v29 = vpop.permute.xlu1 %2567 }
 0x5ef   :  { %3086 = vrot.lane.b32.xlu0 %v3022_v22, %s12694_s26  ;;  %17858 = vst [vmem:[#allocation14_spill] sm:$0xff] %v13800_v56  ;;  %v2630_v60 = vadd.f32 %v13709_v35, %v13800_v56  ;;  %v13828_v1 = vadd.f32 %v13753_v14, %v13492_v3  ;;  %17863 = vst [vmem:[#allocation19_spill] sm:$0xff] %v13835_v63 }
 0x5f0   :  { %3088 = vrot.lane.b32.xlu1 %v3023_v38, %s12694_s26  ;;  %17860 = vst [vmem:[#allocation16_spill] sm:$0xff] %v13814_v20  ;;  %v2633_v35 = vadd.f32 %v13718_v0, %v13814_v20 }
 0x5f1   :  { %17862 = vst [vmem:[#allocation18_spill] sm:$0xff] %v13828_v1  ;;  %v2634_v0 = vadd.f32 %v13725_v32, %v13828_v1 }
 0x5f2   :  { %v2570_v2 = vpop.permute.xlu1 %2569 }
 0x5f3   :  { %3090 = vrot.lane.b32.xlu0 %v3024_v33, %s12694_s26 }
 0x5f4   :  { %3092 = vrot.lane.b32.xlu1 %v3025_v61, %s12694_s26 }
 0x5f5   :  { %v2939_v40 = vpop.permute.xlu0 %2938 }
 0x5f6   :  { %v3028_v58 = vadd.f32 %v2939_v40, %v2631_v7  ;;  %v13842_v7 = vadd.f32 %v13753_v14, %v13502_v12 }
 0x5f8   :  { %17864 = vst [vmem:[#allocation20_spill] sm:$0xff] %v13842_v7 }
 0x5f9   :  { %v2935_v16 = vpop.permute.xlu0 %2934 }
 0x5fa   :  { %v3026_v4 = vadd.f32 %v2935_v16, %v2629_v46 }
 0x5fc   :  { %3094 = vrot.lane.b32.xlu0 %v3026_v4, %s12694_s26  ;;  %v2636_v4 = vadd.f32 %v13721_v28, %v13835_v63 }
 0x5fd   :  { %v2941_v13 = vpop.permute.xlu0 %2940 }
 0x5fe   :  { %v3029_v38 = vadd.f32 %v2941_v13, %v2632_v57  ;;  %v2637_v13 = vadd.f32 %v13732_v5, %v13842_v7  ;;  %v2572_v57 = vpop.permute.xlu1 %2571 }
 0x600   :  { %3098 = vrot.lane.b32.xlu0 %v3028_v58, %s12694_s26 }
 0x601   :  { %v2937_v10 = vpop.permute.xlu0 %2936 }
 0x602   :  { %v3027_v22 = vadd.f32 %v2937_v10, %v2630_v60  ;;  %v13849_v60 = vadd.f32 %v13500_v9, %v13753_v14 }
 0x604   :  { %3096 = vrot.lane.b32.xlu1 %v3027_v22, %s12694_s26  ;;  %17865 = vst [vmem:[#allocation21_spill] sm:$0xff] %v13849_v60  ;;  %v2639_v10 = vadd.f32 %v13728_v52, %v13849_v60  ;;  %v13856_v22 = vadd.f32 %v13753_v14, %v13506_v21  ;;  %v2574_v21 = vpop.permute.xlu1 %2573 }
 0x605   :  { %v2947_v44 = vpop.permute.xlu0 %2946 }
 0x606   :  { %v3032_v40 = vadd.f32 %v2947_v44, %v2635_v36  ;;  %17866 = vst [vmem:[#allocation22_spill] sm:$0xff] %v13856_v22  ;;  %v2638_v44 = vadd.f32 %v13740_v27, %v13856_v22 }
 0x608   :  { %3100 = vrot.lane.b32.xlu1 %v3029_v38, %s12694_s26  ;;  %v13863_v38 = vadd.f32 %v13504_v8, %v13753_v14 }
 0x609   :  { %v2943_v6 = vpop.permute.xlu0 %2942 }
 0x60a   :  { %v3030_v33 = vadd.f32 %v2943_v6, %v2633_v35  ;;  %17867 = vst [vmem:[#allocation23_spill] sm:$0xff] %v13863_v38  ;;  %v2640_v35 = vadd.f32 %v13735_v43, %v13863_v38 }
 0x60c   :  { %3102 = vrot.lane.b32.xlu0 %v3030_v33, %s12694_s26  ;;  %v13870_v33 = vadd.f32 %v13753_v14, %v13519_v42 }
 0x60d   :  { %v2949_v61 = vpop.permute.xlu0 %2948 }
 0x60e   :  { %v3033_v32 = vadd.f32 %v2949_v61, %v2636_v4  ;;  %17868 = vst [vmem:[#allocation24_spill] sm:$0xff] %v13870_v33  ;;  %v2641_v36 = vadd.f32 %v13747_v11, %v13870_v33  ;;  %v13877_v61 = vadd.f32 %v13517_v26, %v13753_v14 }
 0x610   :  { %3106 = vrot.lane.b32.xlu0 %v3032_v40, %s12694_s26  ;;  %17869 = vst [vmem:[#allocation25_spill] sm:$0xff] %v13877_v61  ;;  %v2576_v40 = vpop.permute.xlu1 %2575 }
 0x611   :  { %v2945_v46 = vpop.permute.xlu0 %2944 }
 0x612   :  { %v3031_v16 = vadd.f32 %v2945_v46, %v2634_v0  ;;  %v2643_v0 = vadd.f32 %v13743_v23, %v13877_v61  ;;  %v13884_v46 = vadd.f32 %v13753_v14, %v13526_v18  ;;  %v13897_v18 = vadd.f32 %v13753_v14, %v13536_v62 }
 0x613   :  { %v13909_v62 = vadd.f32 %v13753_v14, %v13540_v53  ;;  %v13921_v53 = vadd.f32 %v13753_v14, %v13553_v45  ;;  %v13933_v45 = vadd.f32 %v13753_v14, %v13560_v31  ;;  %v13945_v31 = vadd.f32 %v13753_v14, %v13567_v39 }
 0x614   :  { %3104 = vrot.lane.b32.xlu1 %v3031_v16, %s12694_s26  ;;  %17870 = vst [vmem:[#allocation26_spill] sm:$0xff] %v13884_v46  ;;  %v2642_v16 = vadd.f32 %v13755_v17, %v13884_v46  ;;  %v2578_v26 = vpop.permute.xlu1 %2577  ;;  %17872 = vst [vmem:[#allocation28_spill] sm:$0xff] %v13897_v18  ;;  %v12514_v46 = vld [vmem:[%s17718_s0 + $0xe8] sm:$0xff] }
 0x615   :  { %v2955_v3 = vpop.permute.xlu0 %2954  ;;  %17874 = vst [vmem:[#allocation30_spill] sm:$0xff] %v13909_v62  ;;  %17876 = vst [vmem:[#allocation32_spill] sm:$0xff] %v13921_v53 }
 0x616   :  { %v3036_v5 = vadd.f32 %v2955_v3, %v2639_v10  ;;  %v13891_v3 = vadd.f32 %v13524_v34, %v13753_v14  ;;  %v13903_v34 = vadd.f32 %v13534_v24, %v13753_v14  ;;  %v13915_v24 = vadd.f32 %v13538_v54, %v13753_v14  ;;  %17878 = vst [vmem:[#allocation34_spill] sm:$0xff] %v13933_v45 }
 0x617   :  { %v13927_v54 = vadd.f32 %v13548_v25, %v13753_v14  ;;  %v13939_v25 = vadd.f32 %v13558_v30, %v13753_v14  ;;  %17880 = vst [vmem:[#allocation36_spill] sm:$0xff] %v13945_v31  ;;  %v13951_v30 = vadd.f32 %v13565_v37, %v13753_v14 }
 0x618   :  { %3108 = vrot.lane.b32.xlu1 %v3033_v32, %s12694_s26  ;;  %17871 = vst [vmem:[#allocation27_spill] sm:$0xff] %v13891_v3  ;;  %v2644_v32 = vadd.f32 %v2568_v29, %v13891_v3  ;;  %v2580_v17 = vpop.permute.xlu1 %2579  ;;  %17873 = vst [vmem:[#allocation29_spill] sm:$0xff] %v13903_v34  ;;  %v2647_v29 = vadd.f32 %v2574_v21, %v13903_v34 }
 0x619   :  { %v2951_v58 = vpop.permute.xlu0 %2950  ;;  %17875 = vst [vmem:[#allocation31_spill] sm:$0xff] %v13915_v24  ;;  %17877 = vst [vmem:[#allocation33_spill] sm:$0xff] %v13927_v54 }
 0x61a   :  { %v3034_v28 = vadd.f32 %v2951_v58, %v2637_v13  ;;  %17879 = vst [vmem:[#allocation35_spill] sm:$0xff] %v13939_v25  ;;  %17881 = vst [vmem:[#allocation37_spill] sm:$0xff] %v13951_v30 }
 0x61c   :  { %3110 = vrot.lane.b32.xlu0 %v3034_v28, %s12694_s26  ;;  %v2645_v28 = vadd.f32 %v2570_v2, %v13897_v18  ;;  %v2646_v2 = vadd.f32 %v2572_v57, %v13909_v62  ;;  %v2649_v57 = vadd.f32 %v2578_v26, %v13921_v53  ;;  %v2650_v26 = vadd.f32 %v2580_v17, %v13933_v45  ;;  %v12507_v53 = vld [vmem:[%s17718_s0 + $0xb0] sm:$0xff] }
 0x61d   :  { %v2957_v12 = vpop.permute.xlu0 %2956 }
 0x61e   :  { %v3037_v27 = vadd.f32 %v2957_v12, %v2640_v35 }
 0x620   :  { %3114 = vrot.lane.b32.xlu0 %v3036_v5, %s12694_s26  ;;  %v2582_v5 = vpop.permute.xlu1 %2581 }
 0x621   :  { %v2953_v9 = vpop.permute.xlu0 %2952 }
 0x622   :  { %v3035_v52 = vadd.f32 %v2953_v9, %v2638_v44 }
 0x624   :  { %3112 = vrot.lane.b32.xlu1 %v3035_v52, %s12694_s26  ;;  %v2584_v21 = vpop.permute.xlu1 %2583 }
 0x625   :  { %v2963_v6 = vpop.permute.xlu0 %2962 }
 0x626   :  { %v3040_v11 = vadd.f32 %v2963_v6, %v2643_v0  ;;  %v2648_v6 = vadd.f32 %v2576_v40, %v13915_v24  ;;  %v2651_v40 = vadd.f32 %v2582_v5, %v13927_v54 }
 0x628   :  { %3116 = vrot.lane.b32.xlu1 %v3037_v27, %s12694_s26 }
 0x629   :  { %v2959_v8 = vpop.permute.xlu0 %2958 }
 0x62a   :  { %v3038_v43 = vadd.f32 %v2959_v8, %v2641_v36  ;;  %v2586_v8 = vpop.permute.xlu1 %2585 }
 0x62b   :  { %v2653_v17 = vadd.f32 %v2586_v8, %v13945_v31 }
 0x62c   :  { %3118 = vrot.lane.b32.xlu0 %v3038_v43, %s12694_s26 }
 0x62d   :  { %v2965_v42 = vpop.permute.xlu0 %2964 }
 0x62e   :  { %v3041_v58 = vadd.f32 %v2965_v42, %v2644_v32  ;;  %v2652_v32 = vadd.f32 %v2584_v21, %v13939_v25 }
 0x630   :  { %3122 = vrot.lane.b32.xlu0 %v3040_v11, %s12694_s26 }
 0x631   :  { %v2961_v4 = vpop.permute.xlu0 %2960 }
 0x632   :  { %v3039_v23 = vadd.f32 %v2961_v4, %v2642_v16  ;;  %v2588_v16 = vpop.permute.xlu1 %2587 }
 0x634   :  { %3120 = vrot.lane.b32.xlu1 %v3039_v23, %s12694_s26 }
 0x635   :  { %v2971_v13 = vpop.permute.xlu0 %2970 }
 0x636   :  { %v3044_v9 = vadd.f32 %v2971_v13, %v2647_v29  ;;  %v2590_v13 = vpop.permute.xlu1 %2589 }
 0x637   :  { %v2655_v39 = vadd.f32 %v2590_v13, %v13951_v30 }
 0x638   :  { %3124 = vrot.lane.b32.xlu1 %v3041_v58, %s12694_s26 }
 0x639   :  { %v2967_v10 = vpop.permute.xlu0 %2966 }
 0x63a   :  { %v3042_v12 = vadd.f32 %v2967_v10, %v2645_v28  ;;  %v2592_v5 = vpop.permute.xlu1 %2591 }
 0x63c   :  { %3126 = vrot.lane.b32.xlu0 %v3042_v12, %s12694_s26  ;;  %v13955_v12 = vadd.f32 %v13753_v14, %v13571_v50 }
 0x63d   :  { %v2973_v44 = vpop.permute.xlu0 %2972 }
 0x63e   :  { %v3045_v36 = vadd.f32 %v2973_v44, %v2648_v6  ;;  %17882 = vst [vmem:[#allocation38_spill] sm:$0xff] %v13955_v12  ;;  %v2654_v44 = vadd.f32 %v2588_v16, %v13955_v12 }
 0x640   :  { %3130 = vrot.lane.b32.xlu0 %v3044_v9, %s12694_s26 }
 0x641   :  { %v2969_v52 = vpop.permute.xlu0 %2968 }
 0x642   :  { %v3043_v35 = vadd.f32 %v2969_v52, %v2646_v2  ;;  %v13962_v2 = vadd.f32 %v13569_v49, %v13753_v14  ;;  %v12486_v14 = vld [vmem:[%s17718_s0 + $0x8] sm:$0xff] }
 0x644   :  { %3128 = vrot.lane.b32.xlu1 %v3043_v35, %s12694_s26  ;;  %17883 = vst [vmem:[#allocation39_spill] sm:$0xff] %v13962_v2  ;;  %v2989_v35 = vpop.permute.xlu1 %2988  ;;  %v2656_v21 = vadd.f32 %v2592_v5, %v13962_v2  ;;  %v12489_v5 = vld [vmem:[%s17718_s0 + $0x20] sm:$0xff] }
 0x645   :  { %v2979_v27 = vpop.permute.xlu0 %2978 }
 0x646   :  { %v3048_v11 = vadd.f32 %v2979_v27, %v2651_v40  ;;  %v3053_v50 = vadd.f32 %v2989_v35, %v2656_v21  ;;  %v12487_v40 = vld [vmem:[%s17718_s0 + $0x10] sm:$0xff] }
 0x648   :  { %3132 = vrot.lane.b32.xlu1 %v3045_v36, %s12694_s26  ;;  %v12485_v36 = vld [vmem:[%s17718_s0] sm:$0xff] }
 0x649   :  { %v2975_v43 = vpop.permute.xlu0 %2974 }
 0x64a   :  { %v3046_v0 = vadd.f32 %v2975_v43, %v2649_v57 }
 0x64c   :  { %3134 = vrot.lane.b32.xlu0 %v3046_v0, %s12694_s26 }
 0x64d   :  { %v2981_v42 = vpop.permute.xlu0 %2980 }
 0x64e   :  { %v3049_v28 = vadd.f32 %v2981_v42, %v2652_v32 }
 0x650   :  { %3138 = vrot.lane.b32.xlu0 %v3048_v11, %s12694_s26 }
 0x651   :  { %v2977_v4 = vpop.permute.xlu0 %2976 }
 0x652   :  { %v3047_v23 = vadd.f32 %v2977_v4, %v2650_v26 }
 0x654   :  { %3136 = vrot.lane.b32.xlu1 %v3047_v23, %s12694_s26 }
 0x655   :  { %v2987_v58 = vpop.permute.xlu0 %2986 }
 0x656   :  { %v3052_v52 = vadd.f32 %v2987_v58, %v2655_v39  ;;  %v12488_v58 = vld [vmem:[%s17718_s0 + $0x18] sm:$0xff] }
 0x658   :  { %3140 = vrot.lane.b32.xlu1 %v3049_v28, %s12694_s26 }
 0x659   :  { %v2983_v10 = vpop.permute.xlu0 %2982 }
 0x65a   :  { %v3050_v29 = vadd.f32 %v2983_v10, %v2653_v17 }
 0x65c   :  { %3142 = vrot.lane.b32.xlu0 %v3050_v29, %s12694_s26 }
 0x65d   :  { %v2985_v9 = vpop.permute.xlu0 %2984 }
 0x65e   :  { %v3051_v37 = vadd.f32 %v2985_v9, %v2654_v44 }
 0x660   :  { %3146 = vrot.lane.b32.xlu0 %v3052_v52, %s12694_s26  ;;  %3144 = vrot.lane.b32.xlu1 %v3051_v37, %s12694_s26  ;;  %v12490_v37 = vld [vmem:[%s17718_s0 + $0x28] sm:$0xff] }
 0x661   :  { %v3087_v6 = vpop.permute.xlu0 %3086 }
 0x662   :  { %v3089_v27 = vpop.permute.xlu1 %3088  ;;  %v13971_v49 = vadd.f32 %v12485_v36, %v3087_v6 }
 0x663   :  { %v13976_v57 = vadd.f32 %v12486_v14, %v3089_v27 }
 0x664   :  { %3148 = vrot.lane.b32.xlu1 %v3053_v50, %s12694_s26  ;;  %v3285_v43 = vmul.f32 %v13971_v49, %v13971_v49  ;;  %v3214_v16 = vsel %vm541_vm0, %v13971_v49, 0.0 }
 0x665   :  { %v3091_v8 = vpop.permute.xlu0 %3090  ;;  %v3286_v0 = vmul.f32 %v13976_v57, %v13976_v57  ;;  %v3215_v26 = vsel %vm541_vm0, %v13976_v57, 0.0 }
 0x666   :  { %v13985_v42 = vadd.f32 %v12487_v40, %v3091_v8  ;;  %v3093_v11 = vpop.permute.xlu1 %3092  ;;  %v3317_v23 = vsel %vm541_vm0, %v3285_v43, 0.0  ;;  %v3216_v17 = vadd.f32 %v3215_v26, %v3214_v16  ;;  %v12491_v16 = vld [vmem:[%s17718_s0 + $0x30] sm:$0xff] }
 0x667   :  { %v3318_v32 = vsel %vm541_vm0, %v3286_v0, 0.0  ;;  %v13998_v28 = vadd.f32 %v12488_v58, %v3093_v11 }
 0x668   :  { %v3287_v13 = vmul.f32 %v13985_v42, %v13985_v42  ;;  %v3217_v29 = vsel %vm541_vm0, %v13985_v42, 0.0  ;;  %v3319_v39 = vadd.f32 %v3318_v32, %v3317_v23 }
 0x669   :  { %v3288_v52 = vmul.f32 %v13998_v28, %v13998_v28  ;;  %v3218_v21 = vadd.f32 %v3217_v29, %v3216_v17  ;;  %v3219_v50 = vsel %vm541_vm0, %v13998_v28, 0.0  ;;  %v12492_v17 = vld [vmem:[%s17718_s0 + $0x38] sm:$0xff] }
 0x66a   :  { %v3320_v9 = vsel %vm541_vm0, %v3287_v13, 0.0 }
 0x66b   :  { %v3321_v27 = vadd.f32 %v3320_v9, %v3319_v39  ;;  %v3322_v14 = vsel %vm541_vm0, %v3288_v52, 0.0  ;;  %v3220_v0 = vadd.f32 %v3219_v50, %v3218_v21  ;;  %v12493_v52 = vld [vmem:[%s17718_s0 + $0x40] sm:$0xff] }
 0x66d   :  { %v3323_v23 = vadd.f32 %v3322_v14, %v3321_v27  ;;  %v12494_v27 = vld [vmem:[%s17718_s0 + $0x48] sm:$0xff] }
 0x66e   :  { %v3095_v4 = vpop.permute.xlu0 %3094 }
 0x66f   :  { %v14005_v44 = vadd.f32 %v12489_v5, %v3095_v4 }
 0x671   :  { %v3289_v6 = vmul.f32 %v14005_v44, %v14005_v44  ;;  %v3221_v8 = vsel %vm541_vm0, %v14005_v44, 0.0 }
 0x672   :  { %v3099_v36 = vpop.permute.xlu0 %3098  ;;  %v3222_v32 = vadd.f32 %v3221_v8, %v3220_v0 }
 0x673   :  { %v3324_v11 = vsel %vm541_vm0, %v3289_v6, 0.0  ;;  %v14028_v26 = vadd.f32 %v12491_v16, %v3099_v36 }
 0x674   :  { %v3325_v29 = vadd.f32 %v3324_v11, %v3323_v23 }
 0x675   :  { %v3291_v9 = vmul.f32 %v14028_v26, %v14028_v26  ;;  %v3225_v50 = vsel %vm541_vm0, %v14028_v26, 0.0 }
 0x676   :  { %v3097_v10 = vpop.permute.xlu1 %3096 }
 0x677   :  { %v14013_v35 = vadd.f32 %v12490_v37, %v3097_v10  ;;  %v3328_v8 = vsel %vm541_vm0, %v3291_v9, 0.0 }
 0x679   :  { %v3290_v43 = vmul.f32 %v14013_v35, %v14013_v35  ;;  %v3223_v4 = vsel %vm541_vm0, %v14013_v35, 0.0 }
 0x67a   :  { %v3101_v40 = vpop.permute.xlu1 %3100  ;;  %v3224_v5 = vadd.f32 %v3223_v4, %v3222_v32 }
 0x67b   :  { %v3326_v58 = vsel %vm541_vm0, %v3290_v43, 0.0  ;;  %v14036_v10 = vadd.f32 %v12492_v17, %v3101_v40  ;;  %v12495_v17 = vld [vmem:[%s17718_s0 + $0x50] sm:$0xff] }
 0x67c   :  { %v3327_v21 = vadd.f32 %v3326_v58, %v3325_v29  ;;  %v3226_v14 = vadd.f32 %v3225_v50, %v3224_v5  ;;  %v12496_v50 = vld [vmem:[%s17718_s0 + $0x58] sm:$0xff] }
 0x67d   :  { %v3292_v6 = vmul.f32 %v14036_v10, %v14036_v10  ;;  %v3227_v43 = vsel %vm541_vm0, %v14036_v10, 0.0 }
 0x67e   :  { %v3103_v13 = vpop.permute.xlu0 %3102  ;;  %v3329_v40 = vadd.f32 %v3328_v8, %v3327_v21  ;;  %v3228_v32 = vadd.f32 %v3227_v43, %v3226_v14 }
 0x67f   :  { %v14043_v37 = vadd.f32 %v12493_v52, %v3103_v13  ;;  %v3330_v16 = vsel %vm541_vm0, %v3292_v6, 0.0 }
 0x681   :  { %v3293_v0 = vmul.f32 %v14043_v37, %v14043_v37  ;;  %v3229_v4 = vsel %vm541_vm0, %v14043_v37, 0.0 }
 0x682   :  { %v3107_v11 = vpop.permute.xlu0 %3106  ;;  %v3230_v9 = vadd.f32 %v3229_v4, %v3228_v32 }
 0x683   :  { %v3332_v58 = vsel %vm541_vm0, %v3293_v0, 0.0  ;;  %v14068_v29 = vadd.f32 %v12495_v17, %v3107_v11  ;;  %v12497_v0 = vld [vmem:[%s17718_s0 + $0x60] sm:$0xff] }
 0x685   :  { %v3295_v43 = vmul.f32 %v14068_v29, %v14068_v29 }
 0x686   :  { %v3105_v39 = vpop.permute.xlu1 %3104 }
 0x687   :  { %v14052_v36 = vadd.f32 %v12494_v27, %v3105_v39  ;;  %v3331_v39 = vadd.f32 %v3330_v16, %v3329_v40  ;;  %v3233_v16 = vsel %vm541_vm0, %v14068_v29, 0.0 }
 0x689   :  { %v3294_v23 = vmul.f32 %v14052_v36, %v14052_v36  ;;  %v3231_v5 = vsel %vm541_vm0, %v14052_v36, 0.0  ;;  %v3333_v27 = vadd.f32 %v3332_v58, %v3331_v39  ;;  %v3336_v58 = vsel %vm541_vm0, %v3295_v43, 0.0  ;;  %v12499_v43 = vld [vmem:[%s17718_s0 + $0x70] sm:$0xff] }
 0x68a   :  { %v3109_v13 = vpop.permute.xlu1 %3108  ;;  %v3232_v14 = vadd.f32 %v3231_v5, %v3230_v9 }
 0x68b   :  { %v3334_v21 = vsel %vm541_vm0, %v3294_v23, 0.0  ;;  %v14076_v6 = vadd.f32 %v12496_v50, %v3109_v13  ;;  %v12498_v23 = vld [vmem:[%s17718_s0 + $0x68] sm:$0xff] }
 0x68c   :  { %v3335_v11 = vadd.f32 %v3334_v21, %v3333_v27  ;;  %v3234_v13 = vadd.f32 %v3233_v16, %v3232_v14 }
 0x68d   :  { %v3296_v4 = vmul.f32 %v14076_v6, %v14076_v6  ;;  %v3235_v17 = vsel %vm541_vm0, %v14076_v6, 0.0 }
 0x68e   :  { %v3111_v52 = vpop.permute.xlu0 %3110  ;;  %v3337_v39 = vadd.f32 %v3336_v58, %v3335_v11  ;;  %v3236_v27 = vadd.f32 %v3235_v17, %v3234_v13  ;;  %v12500_v13 = vld [vmem:[%s17718_s0 + $0x78] sm:$0xff] }
 0x68f   :  { %v14083_v40 = vadd.f32 %v12497_v0, %v3111_v52  ;;  %v3338_v52 = vsel %vm541_vm0, %v3296_v4, 0.0 }
 0x690   :  { %v3339_v16 = vadd.f32 %v3338_v52, %v3337_v39  ;;  %v12501_v39 = vld [vmem:[%s17718_s0 + $0x80] sm:$0xff] }
 0x691   :  { %v3297_v5 = vmul.f32 %v14083_v40, %v14083_v40  ;;  %v3237_v21 = vsel %vm541_vm0, %v14083_v40, 0.0 }
 0x692   :  { %v3115_v9 = vpop.permute.xlu0 %3114  ;;  %v3238_v4 = vadd.f32 %v3237_v21, %v3236_v27 }
 0x693   :  { %v14108_v0 = vadd.f32 %v12499_v43, %v3115_v9 }
 0x695   :  { %v3299_v9 = vmul.f32 %v14108_v0, %v14108_v0 }
 0x696   :  { %v3113_v8 = vpop.permute.xlu1 %3112 }
 0x697   :  { %v14092_v32 = vadd.f32 %v12498_v23, %v3113_v8  ;;  %v3340_v8 = vsel %vm541_vm0, %v3297_v5, 0.0 }
 0x698   :  { %v3341_v5 = vadd.f32 %v3340_v8, %v3339_v16 }
 0x699   :  { %v3298_v50 = vmul.f32 %v14092_v32, %v14092_v32  ;;  %v3239_v11 = vsel %vm541_vm0, %v14092_v32, 0.0 }
 0x69a   :  { %v3117_v14 = vpop.permute.xlu1 %3116  ;;  %v3240_v12 = vadd.f32 %v3239_v11, %v3238_v4  ;;  %v3344_v11 = vsel %vm541_vm0, %v3299_v9, 0.0 }
 0x69b   :  { %v3342_v58 = vsel %vm541_vm0, %v3298_v50, 0.0  ;;  %v14116_v17 = vadd.f32 %v12500_v13, %v3117_v14  ;;  %v3241_v50 = vsel %vm541_vm0, %v14108_v0, 0.0  ;;  %v12502_v14 = vld [vmem:[%s17718_s0 + $0x88] sm:$0xff] }
 0x69c   :  { %v3343_v21 = vadd.f32 %v3342_v58, %v3341_v5  ;;  %v3242_v43 = vadd.f32 %v3241_v50, %v3240_v12  ;;  %v11789_v13 = vld [vmem:[%s17719_s1 + $0x104] ss:$8 sps:$4 sm:$0xff]  }
 0x69d   :  { %v3300_v27 = vmul.f32 %v14116_v17, %v14116_v17  ;;  %v3243_v16 = vsel %vm541_vm0, %v14116_v17, 0.0  ;;  %3775 = vmatprep.mubr.bf16.mxu1 %v11789_v13 }
 0x69e   :  { %v3119_v23 = vpop.permute.xlu0 %3118  ;;  %v3244_v9 = vadd.f32 %v3243_v16, %v3242_v43  ;;  %v12504_v43 = vld [vmem:[%s17718_s0 + $0x98] sm:$0xff] }
 0x69f   :  { %v14123_v52 = vadd.f32 %v12501_v39, %v3119_v23  ;;  %v3345_v23 = vadd.f32 %v3344_v11, %v3343_v21  ;;  %v3346_v5 = vsel %vm541_vm0, %v3300_v27, 0.0  ;;  %v12503_v21 = vld [vmem:[%s17718_s0 + $0x90] sm:$0xff] }
 0x6a1   :  { %v3301_v4 = vmul.f32 %v14123_v52, %v14123_v52  ;;  %v3347_v11 = vadd.f32 %v3346_v5, %v3345_v23 }
 0x6a2   :  { %v3123_v58 = vpop.permute.xlu0 %3122 }
 0x6a3   :  { %v3348_v50 = vsel %vm541_vm0, %v3301_v4, 0.0 }
 0x6a4   :  { %v3349_v4 = vadd.f32 %v3348_v50, %v3347_v11 }
 0x6a6   :  { %v3121_v2 = vpop.permute.xlu1 %3120 }
 0x6a7   :  { %v14132_v8 = vadd.f32 %v12502_v14, %v3121_v2  ;;  %v3245_v2 = vsel %vm541_vm0, %v14123_v52, 0.0  ;;  %v14151_v14 = vadd.f32 %v12503_v21, %v3123_v58  ;;  %v12505_v21 = vld [vmem:[%s17718_s0 + $0xa0] sm:$0xff] }
 0x6a8   :  { %v3246_v31 = vadd.f32 %v3245_v2, %v3244_v9 }
 0x6a9   :  { %v3302_v12 = vmul.f32 %v14132_v8, %v14132_v8  ;;  %v3247_v27 = vsel %vm541_vm0, %v14132_v8, 0.0  ;;  %v3303_v58 = vmul.f32 %v14151_v14, %v14151_v14  ;;  %v3249_v2 = vsel %vm541_vm0, %v14151_v14, 0.0 }
 0x6aa   :  { %v3125_v39 = vpop.permute.xlu1 %3124  ;;  %v3248_v13 = vadd.f32 %v3247_v27, %v3246_v31 }
 0x6ab   :  { %v3350_v45 = vsel %vm541_vm0, %v3302_v12, 0.0  ;;  %v14159_v16 = vadd.f32 %v12504_v43, %v3125_v39  ;;  %v3352_v31 = vsel %vm541_vm0, %v3303_v58, 0.0 }
 0x6ac   :  { %v3351_v5 = vadd.f32 %v3350_v45, %v3349_v4  ;;  %v3250_v9 = vadd.f32 %v3249_v2, %v3248_v13  ;;  %v12506_v45 = vld [vmem:[%s17718_s0 + $0xa8] sm:$0xff] }
 0x6ad   :  { %v3304_v12 = vmul.f32 %v14159_v16, %v14159_v16  ;;  %v3251_v50 = vsel %vm541_vm0, %v14159_v16, 0.0 }
 0x6ae   :  { %v3127_v30 = vpop.permute.xlu0 %3126  ;;  %v3353_v11 = vadd.f32 %v3352_v31, %v3351_v5 }
 0x6af   :  { %v14166_v23 = vadd.f32 %v12505_v21, %v3127_v30  ;;  %v3354_v4 = vsel %vm541_vm0, %v3304_v12, 0.0  ;;  %v3252_v21 = vadd.f32 %v3251_v50, %v3250_v9  ;;  %v12508_v9 = vld [vmem:[%s17718_s0 + $0xb8] sm:$0xff] }
 0x6b0   :  { %v3355_v12 = vadd.f32 %v3354_v4, %v3353_v11 }
 0x6b1   :  { %v3305_v27 = vmul.f32 %v14166_v23, %v14166_v23  ;;  %v3253_v13 = vsel %vm541_vm0, %v14166_v23, 0.0 }
 0x6b2   :  { %v3131_v43 = vpop.permute.xlu0 %3130  ;;  %v3254_v31 = vadd.f32 %v3253_v13, %v3252_v21 }
 0x6b3   :  { %v3356_v25 = vsel %vm541_vm0, %v3305_v27, 0.0 }
 0x6b4   :  { %v3357_v27 = vadd.f32 %v3356_v25, %v3355_v12 }
 0x6b6   :  { %v3129_v39 = vpop.permute.xlu1 %3128 }
 0x6b7   :  { %v14180_v30 = vadd.f32 %v12506_v45, %v3129_v39  ;;  %v14191_v39 = vadd.f32 %v12507_v53, %v3131_v43  ;;  %v12509_v43 = vld [vmem:[%s17718_s0 + $0xc0] sm:$0xff] }
 0x6b9   :  { %v3306_v58 = vmul.f32 %v14180_v30, %v14180_v30  ;;  %v3255_v5 = vsel %vm541_vm0, %v14180_v30, 0.0  ;;  %v3307_v53 = vmul.f32 %v14191_v39, %v14191_v39  ;;  %v3257_v13 = vsel %vm541_vm0, %v14191_v39, 0.0 }
 0x6ba   :  { %v3133_v2 = vpop.permute.xlu1 %3132  ;;  %v3256_v54 = vadd.f32 %v3255_v5, %v3254_v31 }
 0x6bb   :  { %v3358_v45 = vsel %vm541_vm0, %v3306_v58, 0.0  ;;  %v14199_v50 = vadd.f32 %v12508_v9, %v3133_v2  ;;  %v3360_v25 = vsel %vm541_vm0, %v3307_v53, 0.0 }
 0x6bc   :  { %v3359_v4 = vadd.f32 %v3358_v45, %v3357_v27  ;;  %v3258_v21 = vadd.f32 %v3257_v13, %v3256_v54  ;;  %v12510_v54 = vld [vmem:[%s17718_s0 + $0xd0] sm:$0xff] }
 0x6bd   :  { %v3308_v58 = vmul.f32 %v14199_v50, %v14199_v50  ;;  %v3259_v2 = vsel %vm541_vm0, %v14199_v50, 0.0 }
 0x6be   :  { %v3135_v62 = vpop.permute.xlu0 %3134  ;;  %v3361_v12 = vadd.f32 %v3360_v25, %v3359_v4  ;;  %v3260_v9 = vadd.f32 %v3259_v2, %v3258_v21  ;;  %v12511_v4 = vld [vmem:[%s17718_s0 + $0xc8] sm:$0xff] }
 0x6bf   :  { %v14206_v11 = vadd.f32 %v12509_v43, %v3135_v62  ;;  %v3362_v62 = vsel %vm541_vm0, %v3308_v58, 0.0 }
 0x6c0   :  { %v3363_v58 = vadd.f32 %v3362_v62, %v3361_v12 }
 0x6c1   :  { %v3309_v5 = vmul.f32 %v14206_v11, %v14206_v11  ;;  %v3261_v45 = vsel %vm541_vm0, %v14206_v11, 0.0 }
 0x6c2   :  { %v3139_v31 = vpop.permute.xlu0 %3138  ;;  %v3262_v25 = vadd.f32 %v3261_v45, %v3260_v9 }
 0x6c3   :  { %v3364_v43 = vsel %vm541_vm0, %v3309_v5, 0.0  ;;  %v14224_v53 = vadd.f32 %v12510_v54, %v3139_v31 }
 0x6c4   :  { %v3365_v5 = vadd.f32 %v3364_v43, %v3363_v58 }
 0x6c5   :  { %v3311_v31 = vmul.f32 %v14224_v53, %v14224_v53  ;;  %v3265_v45 = vsel %vm541_vm0, %v14224_v53, 0.0 }
 0x6c6   :  { %v3137_v27 = vpop.permute.xlu1 %3136 }
 0x6c7   :  { %v14229_v13 = vadd.f32 %v12511_v4, %v3137_v27  ;;  %v12512_v27 = vld [vmem:[%s17718_s0 + $0xd8] sm:$0xff]  ;;  %v3368_v58 = vsel %vm541_vm0, %v3311_v31, 0.0 }
 0x6c9   :  { %v3263_v21 = vsel %vm541_vm0, %v14229_v13, 0.0  ;;  %v3310_v2 = vmul.f32 %v14229_v13, %v14229_v13 }
 0x6ca   :  { %v3264_v24 = vadd.f32 %v3263_v21, %v3262_v25  ;;  %v3141_v18 = vpop.permute.xlu1 %3140  ;;  %v12513_v21 = vld [vmem:[%s17718_s0 + $0xe0] sm:$0xff] }
 0x6cb   :  { %v3366_v54 = vsel %vm541_vm0, %v3310_v2, 0.0  ;;  %v14241_v12 = vadd.f32 %v12512_v27, %v3141_v18 }
 0x6cc   :  { %v3367_v62 = vadd.f32 %v3366_v54, %v3365_v5  ;;  %v3266_v43 = vadd.f32 %v3265_v45, %v3264_v24 }
 0x6cd   :  { %v3312_v9 = vmul.f32 %v14241_v12, %v14241_v12  ;;  %v3267_v25 = vsel %vm541_vm0, %v14241_v12, 0.0 }
 0x6ce   :  { %v3143_v4 = vpop.permute.xlu0 %3142  ;;  %v3369_v2 = vadd.f32 %v3368_v58, %v3367_v62  ;;  %v3268_v27 = vadd.f32 %v3267_v25, %v3266_v43  ;;  %v12515_v62 = vld [vmem:[%s17718_s0 + $0xf0] sm:$0xff] }
 0x6cf   :  { %v14253_v18 = vadd.f32 %v12513_v21, %v3143_v4  ;;  %v3370_v5 = vsel %vm541_vm0, %v3312_v9, 0.0 }
 0x6d0   :  { %v3371_v58 = vadd.f32 %v3370_v5, %v3369_v2  ;;  %v12516_v2 = vld [vmem:[%s17718_s0 + $0xf8] sm:$0xff] }
 0x6d1   :  { %v3269_v54 = vsel %vm541_vm0, %v14253_v18, 0.0  ;;  %v3313_v24 = vmul.f32 %v14253_v18, %v14253_v18 }
 0x6d2   :  { %v3145_v31 = vpop.permute.xlu1 %3144  ;;  %v3147_v45 = vpop.permute.xlu0 %3146  ;;  %v3270_v21 = vadd.f32 %v3269_v54, %v3268_v27 }
 0x6d3   :  { %v3372_v34 = vsel %vm541_vm0, %v3313_v24, 0.0  ;;  %v14264_v4 = vadd.f32 %v12514_v46, %v3145_v31  ;;  %v14269_v9 = vadd.f32 %v12515_v62, %v3147_v45 }
 0x6d4   :  { %v3373_v3 = vadd.f32 %v3372_v34, %v3371_v58 }
 0x6d5   :  { %v3271_v43 = vsel %vm541_vm0, %v14264_v4, 0.0  ;;  %v3314_v25 = vmul.f32 %v14264_v4, %v14264_v4  ;;  %v3315_v24 = vmul.f32 %v14269_v9, %v14269_v9  ;;  %v3273_v45 = vsel %vm541_vm0, %v14269_v9, 0.0 }
 0x6d6   :  { %v3272_v46 = vadd.f32 %v3271_v43, %v3270_v21  ;;  %v3149_v31 = vpop.permute.xlu1 %3148 }
 0x6d7   :  { %v3374_v33 = vsel %vm541_vm0, %v3314_v25, 0.0  ;;  %v14283_v5 = vadd.f32 %v12516_v2, %v3149_v31  ;;  %v3376_v62 = vsel %vm541_vm0, %v3315_v24, 0.0 }
 0x6d8   :  { %v3375_v54 = vadd.f32 %v3374_v33, %v3373_v3  ;;  %v3274_v27 = vadd.f32 %v3273_v45, %v3272_v46 }
 0x6d9   :  { %v3275_v34 = vsel %vm541_vm0, %v14283_v5, 0.0  ;;  %v3316_v58 = vmul.f32 %v14283_v5, %v14283_v5 }
 0x6da   :  { %v3377_v21 = vadd.f32 %v3376_v62, %v3375_v54  ;;  %v3276_v43 = vadd.f32 %v3275_v34, %v3274_v27 }
 0x6db   :  { %v3378_v25 = vsel %vm541_vm0, %v3316_v58, 0.0 }
 0x6dc   :  { %v3277_v61 = vrot.slane %v3276_v43, 4  ;;  %v3379_v22 = vadd.f32 %v3378_v25, %v3377_v21 }
 0x6de   :  { %v3278_v38 = vadd.f32 %v3277_v61, %v3276_v43  ;;  %v3380_v7 = vrot.slane %v3379_v22, 4 }
 0x6e0   :  { %v3279_v31 = vrot.slane %v3278_v38, 2  ;;  %v3381_v2 = vadd.f32 %v3380_v7, %v3379_v22 }
 0x6e2   :  { %v3280_v33 = vadd.f32 %v3279_v31, %v3278_v38  ;;  %v3382_v3 = vrot.slane %v3381_v2, 2 }
 0x6e4   :  { %v3281_v46 = vrot.slane %v3280_v33, 1  ;;  %v3383_v24 = vadd.f32 %v3382_v3, %v3381_v2 }
 0x6e6   :  { %v3282_v45 = vadd.f32 %v3281_v46, %v3280_v33  ;;  %v3384_v60 = vrot.slane %v3383_v24, 1 }
 0x6e8   :  { %v14291_v1 = vmul.f32 0.00390625, %v3282_v45  ;;  %v3385_v63 = vadd.f32 %v3384_v60, %v3383_v24 }
 0x6ea   :  { %v3386_v20 = vmul.f32 0.00390625, %v3385_v63  ;;  %v3387_v54 = vmul.f32 %v14291_v1, %v14291_v1  ;;  %v3421_v7 = vsub.f32 %v14283_v5, %v14291_v1  ;;  %v3390_v22 = vsub.f32 %v13971_v49, %v14291_v1 }
 0x6eb   :  { %v3391_v38 = vsub.f32 %v13976_v57, %v14291_v1  ;;  %v3392_v63 = vsub.f32 %v13985_v42, %v14291_v1  ;;  %v3394_v60 = vsub.f32 %v14005_v44, %v14291_v1  ;;  %v3395_v58 = vsub.f32 %v14013_v35, %v14291_v1 }
 0x6ec   :  { %v3388_v27 = vsub.f32 %v3386_v20, %v3387_v54  ;;  %v3393_v20 = vsub.f32 %v13998_v28, %v14291_v1  ;;  %v3396_v21 = vsub.f32 %v14028_v26, %v14291_v1  ;;  %v3397_v49 = vsub.f32 %v14036_v10, %v14291_v1  ;;  %v14328_v26 = vld [vmem:[%s17726_s8] ss:$0 sm:$0xff] }
 0x6ed   :  { %v3398_v57 = vsub.f32 %v14043_v37, %v14291_v1  ;;  %v3399_v42 = vsub.f32 %v14052_v36, %v14291_v1  ;;  %v3400_v28 = vsub.f32 %v14068_v29, %v14291_v1  ;;  %v3401_v44 = vsub.f32 %v14076_v6, %v14291_v1 }
 0x6ee   :  { %v3389_v62 = vmax.f32 %v3388_v27, 0.0  ;;  %v3402_v10 = vsub.f32 %v14083_v40, %v14291_v1  ;;  %v3406_v25 = vsub.f32 %v14123_v52, %v14291_v1  ;;  %v3407_v31 = vsub.f32 %v14132_v8, %v14291_v1 }
 0x6ef   :  { %v3408_v2 = vsub.f32 %v14151_v14, %v14291_v1  ;;  %v3409_v33 = vsub.f32 %v14159_v16, %v14291_v1  ;;  %v3410_v3 = vsub.f32 %v14166_v23, %v14291_v1  ;;  %v3411_v46 = vsub.f32 %v14180_v30, %v14291_v1 }
 0x6f0   :  { %v3422_v34 = vadd.f32 1e-05, %v3389_v62  ;;  %v3412_v24 = vsub.f32 %v14191_v39, %v14291_v1  ;;  %v3413_v52 = vsub.f32 %v14199_v50, %v14291_v1  ;;  %v3414_v8 = vsub.f32 %v14206_v11, %v14291_v1 }
 0x6f1   :  { %v3415_v14 = vsub.f32 %v14229_v13, %v14291_v1  ;;  %v3416_v16 = vsub.f32 %v14224_v53, %v14291_v1  ;;  %v14365_v53 = vld [vmem:[%s17727_s9] ss:$0 sm:$0xff]  ;;  %v3417_v13 = vsub.f32 %v14241_v12, %v14291_v1 }
 0x6f2   :  { %12095 = vrsqrt.f32 %v3422_v34 }
 0x6fc   :  { %v14295_v61 = vpop.eup %12095 }
 0x6fd   :  { %v3424_v35 = vmul.f32 %v14295_v61, %v3390_v22  ;;  %v3425_v43 = vmul.f32 %v14295_v61, %v3391_v38  ;;  %v3440_v23 = vmul.f32 %v14295_v61, %v3406_v25  ;;  %v3441_v45 = vmul.f32 %v14295_v61, %v3407_v31 }
 0x6fe   :  { %v3426_v54 = vmul.f32 %v14295_v61, %v3392_v63  ;;  %v3427_v50 = vmul.f32 %v14295_v61, %v3393_v20  ;;  %v3442_v11 = vmul.f32 %v14295_v61, %v3408_v2  ;;  %v3443_v27 = vmul.f32 %v14295_v61, %v3409_v33 }
 0x6ff   :  { %v3463_v30 = vmul.f32 %v14328_v26, %v3424_v35  ;;  %v3464_v39 = vmul.f32 %v14328_v26, %v3425_v43  ;;  %v3428_v62 = vmul.f32 %v14295_v61, %v3394_v60  ;;  %v3429_v34 = vmul.f32 %v14295_v61, %v3395_v58 }
 0x700   :  { %v3444_v22 = vmul.f32 %v14295_v61, %v3410_v3  ;;  %v3430_v38 = vmul.f32 %v14295_v61, %v3396_v21  ;;  %v3431_v63 = vmul.f32 %v14295_v61, %v3397_v49  ;;  %v3445_v20 = vmul.f32 %v14295_v61, %v3411_v46 }
 0x701   :  { %v3446_v35 = vmul.f32 %v14295_v61, %v3412_v24  ;;  %v3479_v43 = vmul.f32 %v14328_v26, %v3440_v23  ;;  %v3480_v25 = vmul.f32 %v14328_v26, %v3441_v45  ;;  %v14379_v12 = vadd.f32 %v14365_v53, %v3463_v30 }
 0x702   :  { %v14382_v60 = vadd.f32 %v14365_v53, %v3464_v39  ;;  %v3465_v58 = vmul.f32 %v14328_v26, %v3426_v54  ;;  %v3466_v21 = vmul.f32 %v14328_v26, %v3427_v50  ;;  %v3481_v49 = vmul.f32 %v14328_v26, %v3442_v11 }
 0x703   :  { %17884 = vst [vmem:[#allocation40_spill] sm:$0xff] %v14379_v12  ;;  %v3482_v31 = vmul.f32 %v14328_v26, %v3443_v27  ;;  %v3447_v2 = vmul.f32 %v14295_v61, %v3413_v52  ;;  %v14390_v33 = vadd.f32 %v14365_v53, %v3479_v43  ;;  %v14393_v3 = vadd.f32 %v14365_v53, %v3480_v25 }
 0x704   :  { %17885 = vst [vmem:[#allocation41_spill] sm:$0xff] %v14382_v60  ;;  %v3483_v46 = vmul.f32 %v14328_v26, %v3444_v22  ;;  %v14398_v24 = vpack.c.bf16 %v14382_v60, %v14379_v12  ;;  %v14401_v23 = vadd.f32 %v14365_v53, %v3481_v49  ;;  %v3484_v52 = vmul.f32 %v14328_v26, %v3445_v20 }
 0x705   :  { %17886 = vst [vmem:[#allocation42_spill] sm:$0xff] %v14390_v33  ;;  %17887 = vst [vmem:[#allocation43_spill] sm:$0xff] %v14393_v3  ;;  %v14404_v45 = vadd.f32 %v14365_v53, %v3482_v31  ;;  %v3448_v30 = vmul.f32 %v14295_v61, %v3414_v8  ;;  %v3449_v39 = vmul.f32 %v14295_v61, %v3415_v14 }
 0x706   :  { %17888 = vst [vmem:[#allocation44_spill] sm:$0xff] %v14401_v23  ;;  %v3467_v54 = vmul.f32 %v14328_v26, %v3428_v62  ;;  %v14412_v50 = vpack.c.bf16 %v14393_v3, %v14390_v33  ;;  %v3468_v11 = vmul.f32 %v14328_v26, %v3429_v34  ;;  %v14416_v27 = vadd.f32 %v14365_v53, %v3465_v58 }
 0x707   :  { %17889 = vst [vmem:[#allocation45_spill] sm:$0xff] %v14404_v45  ;;  %v14419_v22 = vadd.f32 %v14365_v53, %v3466_v21  ;;  %v14422_v20 = vadd.f32 %v14365_v53, %v3483_v46  ;;  %v14427_v8 = vpack.c.bf16 %v14404_v45, %v14401_v23  ;;  %v14430_v14 = vadd.f32 %v14365_v53, %v3484_v52 }
 0x708   :  { %17890 = vst [vmem:[#allocation46_spill] sm:$0xff] %v14416_v27  ;;  %10554 = vmatprep.subr.bf16.mxu1 %v14412_v50  ;;  %v3485_v62 = vmul.f32 %v14328_v26, %v3446_v35  ;;  %v3486_v34 = vmul.f32 %v14328_v26, %v3447_v2  ;;  %v3418_v43 = vsub.f32 %v14253_v18, %v14291_v1 }
 0x709   :  { %17891 = vst [vmem:[#allocation47_spill] sm:$0xff] %v14419_v22  ;;  %17892 = vst [vmem:[#allocation48_spill] sm:$0xff] %v14422_v20  ;;  %v3419_v25 = vsub.f32 %v14264_v4, %v14291_v1  ;;  %v3432_v58 = vmul.f32 %v14295_v61, %v3398_v57  ;;  %v3433_v21 = vmul.f32 %v14295_v61, %v3399_v42  ;;  %10555 = vmatpush3.bf16.msra.mxu1 %v14398_v24 }
 0x70a   :  { %17893 = vst [vmem:[#allocation49_spill] sm:$0xff] %v14430_v14  ;;  %v3450_v35 = vmul.f32 %v14295_v61, %v3416_v16  ;;  %v3451_v49 = vmul.f32 %v14295_v61, %v3417_v13  ;;  %v3469_v18 = vmul.f32 %v14328_v26, %v3430_v38  ;;  %v3470_v4 = vmul.f32 %v14328_v26, %v3431_v63 }
 0x70b   :  { %10556 = vmatprep.subr.bf16.mxu1 %v14427_v8  ;;  %v14454_v37 = vpack.c.bf16 %v14419_v22, %v14416_v27  ;;  %v14457_v36 = vadd.f32 %v14365_v53, %v3467_v54  ;;  %v14460_v57 = vadd.f32 %v14365_v53, %v3468_v11  ;;  %v3487_v42 = vmul.f32 %v14328_v26, %v3448_v30 }
 0x70c   :  { %v14465_v16 = vpack.c.bf16 %v14430_v14, %v14422_v20  ;;  %v14468_v13 = vadd.f32 %v14365_v53, %v3485_v62  ;;  %v14471_v38 = vadd.f32 %v14365_v53, %v3486_v34  ;;  %v3488_v63 = vmul.f32 %v14328_v26, %v3449_v39 }
 0x70d   :  { %17894 = vst [vmem:[#allocation50_spill] sm:$0xff] %v14457_v36  ;;  %17895 = vst [vmem:[#allocation51_spill] sm:$0xff] %v14460_v57  ;;  %v3403_v31 = vsub.f32 %v14092_v32, %v14291_v1  ;;  %v3420_v2 = vsub.f32 %v14269_v9, %v14291_v1  ;;  %v3434_v46 = vmul.f32 %v14295_v61, %v3400_v28  ;;  %10557 = vmatpush3.bf16.msra.mxu1 %v14454_v37 }
 0x70e   :  { %17896 = vst [vmem:[#allocation52_spill] sm:$0xff] %v14468_v13  ;;  %17897 = vst [vmem:[#allocation53_spill] sm:$0xff] %v14471_v38  ;;  %v3435_v52 = vmul.f32 %v14295_v61, %v3401_v44  ;;  %v3452_v30 = vmul.f32 %v14295_v61, %v3418_v43  ;;  %v3453_v39 = vmul.f32 %v14295_v61, %v3419_v25  ;;  %10558 = vmatprep.subr.bf16.mxu1 %v14465_v16 }
 0x70f   :  { %v3471_v32 = vmul.f32 %v14328_v26, %v3432_v58  ;;  %v3472_v9 = vmul.f32 %v14328_v26, %v3433_v21  ;;  %v14494_v29 = vpack.c.bf16 %v14460_v57, %v14457_v36  ;;  %v14497_v6 = vadd.f32 %v14365_v53, %v3469_v18 }
 0x710   :  { %v14500_v28 = vadd.f32 %v14365_v53, %v3470_v4  ;;  %v14503_v44 = vadd.f32 %v14365_v53, %v3487_v42  ;;  %v14507_v54 = vpack.c.bf16 %v14471_v38, %v14468_v13  ;;  %v14510_v11 = vadd.f32 %v14365_v53, %v3488_v63 }
 0x711   :  { %17898 = vst [vmem:[#allocation54_spill] sm:$0xff] %v14497_v6  ;;  %v3489_v62 = vmul.f32 %v14328_v26, %v3450_v35  ;;  %v3490_v34 = vmul.f32 %v14328_v26, %v3451_v49  ;;  %v3455_v43 = vmul.f32 %v14295_v61, %v3421_v7  ;;  %v3404_v25 = vsub.f32 %v14108_v0, %v14291_v1 }
 0x712   :  { %17899 = vst [vmem:[#allocation55_spill] sm:$0xff] %v14500_v28  ;;  %17900 = vst [vmem:[#allocation56_spill] sm:$0xff] %v14503_v44  ;;  %v3405_v58 = vsub.f32 %v14116_v17, %v14291_v1  ;;  %v3436_v21 = vmul.f32 %v14295_v61, %v3402_v10  ;;  %10559 = vmatpush3.bf16.msra.mxu1 %v14494_v29  ;;  %v3437_v35 = vmul.f32 %v14295_v61, %v3403_v31 }
 0x713   :  { %17901 = vst [vmem:[#allocation57_spill] sm:$0xff] %v14510_v11  ;;  %v3454_v49 = vmul.f32 %v14295_v61, %v3420_v2  ;;  %v3473_v5 = vmul.f32 %v14328_v26, %v3434_v46  ;;  %v3474_v7 = vmul.f32 %v14328_v26, %v3435_v52  ;;  %10560 = vmatprep.subr.bf16.mxu1 %v14507_v54 }
 0x714   :  { %v14534_v0 = vpack.c.bf16 %v14500_v28, %v14497_v6  ;;  %v14537_v1 = vadd.f32 %v14365_v53, %v3471_v32  ;;  %v14540_v40 = vadd.f32 %v14365_v53, %v3472_v9  ;;  %v3491_v17 = vmul.f32 %v14328_v26, %v3452_v30 }
 0x715   :  { %v14545_v10 = vpack.c.bf16 %v14510_v11, %v14503_v44  ;;  %v14548_v18 = vadd.f32 %v14365_v53, %v3489_v62  ;;  %v14551_v4 = vadd.f32 %v14365_v53, %v3490_v34  ;;  %v3492_v42 = vmul.f32 %v14328_v26, %v3453_v39 }
 0x716   :  { %17902 = vst [vmem:[#allocation58_spill] sm:$0xff] %v14537_v1  ;;  %17903 = vst [vmem:[#allocation59_spill] sm:$0xff] %v14540_v40  ;;  %10561 = vmatpush3.bf16.msra.mxu1 %v14534_v0  ;;  %v3438_v63 = vmul.f32 %v14295_v61, %v3404_v25  ;;  %v3439_v31 = vmul.f32 %v14295_v61, %v3405_v58  ;;  %v3475_v2 = vmul.f32 %v14328_v26, %v3436_v21 }
 0x717   :  { %17904 = vst [vmem:[#allocation60_spill] sm:$0xff] %v14548_v18  ;;  %17905 = vst [vmem:[#allocation61_spill] sm:$0xff] %v14551_v4  ;;  %v3476_v46 = vmul.f32 %v14328_v26, %v3437_v35  ;;  %10562 = vmatprep.subr.bf16.mxu1 %v14545_v10  ;;  %v14562_v52 = vpack.c.bf16 %v14540_v40, %v14537_v1  ;;  %v14565_v30 = vadd.f32 %v14365_v53, %v3473_v5 }
 0x718   :  { %v14568_v39 = vadd.f32 %v14365_v53, %v3474_v7  ;;  %v14571_v32 = vadd.f32 %v14365_v53, %v3491_v17  ;;  %v14575_v61 = vpack.c.bf16 %v14551_v4, %v14548_v18  ;;  %v14578_v9 = vadd.f32 %v14365_v53, %v3492_v42 }
 0x719   :  { %17906 = vst [vmem:[#allocation62_spill] sm:$0xff] %v14565_v30  ;;  %v3493_v62 = vmul.f32 %v14328_v26, %v3454_v49  ;;  %v3494_v34 = vmul.f32 %v14328_v26, %v3455_v43  ;;  %v3477_v25 = vmul.f32 %v14328_v26, %v3438_v63  ;;  %v3478_v58 = vmul.f32 %v14328_v26, %v3439_v31  ;;  %v11835_v31 = vld [vmem:[%s17721_s3 + $0x30] sm:$0xff]  }
 0x71a   :  { %17907 = vst [vmem:[#allocation63_spill] sm:$0xff] %v14568_v39  ;;  %17908 = vst [vmem:[#allocation64_spill] sm:$0xff] %v14571_v32  ;;  %10563 = vmatpush3.bf16.msra.mxu1 %v14562_v52  ;;  %v14588_v21 = vpack.c.bf16 %v14568_v39, %v14565_v30  ;;  %v14591_v35 = vadd.f32 %v14365_v53, %v3475_v2  ;;  %v14594_v5 = vadd.f32 %v14365_v53, %v3476_v46  ;;  %v11836_v2 = vld [vmem:[%s17721_s3 + $0x38] sm:$0xff]   ;;  %v11787_v46 = vld [vmem:[%s17719_s1 + $0x100] ss:$8 sps:$4 sm:$0xff]  }
 0x71b   :  { %17909 = vst [vmem:[#allocation65_spill] sm:$0xff] %v14578_v9  ;;  %10564 = vmatprep.subr.bf16.mxu1 %v14575_v61  ;;  %v14598_v43 = vpack.c.bf16 %v14578_v9, %v14571_v32  ;;  %v14601_v49 = vadd.f32 %v14365_v53, %v3493_v62  ;;  %v14604_v7 = vadd.f32 %v14365_v53, %v3494_v34  ;;  %v11790_v62 = vld [vmem:[%s17719_s1 + $0x114] ss:$8 sps:$4 sm:$0xff]   ;;  %v11792_v34 = vld [vmem:[%s17719_s1 + $0x110] ss:$8 sps:$4 sm:$0xff]  }
 0x71c   :  { %17910 = vst [vmem:[#allocation66_spill] sm:$0xff] %v14591_v35  ;;  %17911 = vst [vmem:[#allocation67_spill] sm:$0xff] %v14594_v5  ;;  %v14610_v26 = vpack.c.bf16 %v14594_v5, %v14591_v35  ;;  %v14613_v17 = vadd.f32 %v14365_v53, %v3477_v25  ;;  %v14616_v42 = vadd.f32 %v14365_v53, %v3478_v58  ;;  %11138 = vmatprep.subr.bf16.mxu0 %v11835_v31  ;;  %v11793_v25 = vld [vmem:[%s17719_s1 + $0x124] ss:$8 sps:$4 sm:$0xff]   ;;  %v11795_v58 = vld [vmem:[%s17719_s1 + $0x120] ss:$8 sps:$4 sm:$0xff]  }
 0x71d   :  { %17912 = vst [vmem:[#allocation68_spill] sm:$0xff] %v14601_v49  ;;  %17913 = vst [vmem:[#allocation69_spill] sm:$0xff] %v14604_v7  ;;  %v14620_v63 = vpack.c.bf16 %v14604_v7, %v14601_v49  ;;  %11139 = vmatpush3.bf16.msra.mxu0 %v11835_v31  ;;  %v11796_v31 = vld [vmem:[%s17719_s1 + $0x134] ss:$8 sps:$4 sm:$0xff]  }
 0x71e   :  { %10565 = vmatpush3.bf16.msra.mxu1 %v14588_v21  ;;  %17914 = vst [vmem:[#allocation70_spill] sm:$0xff] %v14613_v17  ;;  %17915 = vst [vmem:[#allocation71_spill] sm:$0xff] %v14616_v42  ;;  %v14632_v53 = vpack.c.bf16 %v14616_v42, %v14613_v17  ;;  %11140 = vmatprep.subr.bf16.mxu0 %v11836_v2 }
 0x71f   :  { %10566 = vmatprep.subr.bf16.mxu1 %v14598_v43 }
 0x721   :  { %11141 = vmatpush3.bf16.msra.mxu0 %v11836_v2  ;;  %v11798_v2 = vld [vmem:[%s17719_s1 + $0x130] ss:$8 sps:$4 sm:$0xff]  }
 0x722   :  { %10567 = vmatpush3.bf16.msra.mxu1 %v14610_v26 }
 0x723   :  { %10568 = vmatprep.subr.bf16.mxu1 %v14620_v63 }
 0x726   :  { %10569 = vmatpush3.bf16.msra.mxu1 %v14632_v53 }
 0x729   :  { %3776 = vmatmul.mubr.bf16.vlgmr.msra.gmra.mrb[148].mxu1 %v11787_v46  ;;  %v11799_v46 = vld [vmem:[%s17719_s1 + $0x144] ss:$8 sps:$4 sm:$0xff]  }
 0x72a   :  { %3783 = vmatprep.mubr.bf16.mxu1 %v11790_v62  ;;  %v11801_v62 = vld [vmem:[%s17719_s1 + $0x140] ss:$8 sps:$4 sm:$0xff]  }
 0x731   :  { %3784 = vmatmul.mubr.bf16.gmra.mrb[152].mxu1 %v11792_v34  ;;  %v11802_v34 = vld [vmem:[%s17719_s1 + $0x154] ss:$8 sps:$4 sm:$0xff]  }
 0x732   :  { %3791 = vmatprep.mubr.bf16.mxu1 %v11793_v25  ;;  %v11804_v25 = vld [vmem:[%s17719_s1 + $0x150] ss:$8 sps:$4 sm:$0xff]  }
 0x739   :  { %3792 = vmatmul.mubr.bf16.gmra.mrb[156].mxu1 %v11795_v58  ;;  %v11805_v58 = vld [vmem:[%s17719_s1 + $0x164] ss:$8 sps:$4 sm:$0xff]  }
 0x73a   :  { %3799 = vmatprep.mubr.bf16.mxu1 %v11796_v31  ;;  %v11807_v31 = vld [vmem:[%s17719_s1 + $0x160] ss:$8 sps:$4 sm:$0xff]  }
 0x741   :  { %3800 = vmatmul.mubr.bf16.gmra.mrb[160].mxu1 %v11798_v2  ;;  %v11808_v2 = vld [vmem:[%s17719_s1 + $0x174] ss:$8 sps:$4 sm:$0xff]  }
 0x742   :  { %3807 = vmatprep.mubr.bf16.mxu1 %v11799_v46  ;;  %v11810_v46 = vld [vmem:[%s17719_s1 + $0x170] ss:$8 sps:$4 sm:$0xff]  }
 0x749   :  { %3808 = vmatmul.mubr.bf16.gmra.mrb[164].mxu1 %v11801_v62  ;;  %v11811_v62 = vld [vmem:[%s17719_s1 + $0x184] ss:$8 sps:$4 sm:$0xff]  }
 0x74a   :  { %3815 = vmatprep.mubr.bf16.mxu1 %v11802_v34  ;;  %v11813_v34 = vld [vmem:[%s17719_s1 + $0x180] ss:$8 sps:$4 sm:$0xff]  }
 0x751   :  { %3816 = vmatmul.mubr.bf16.gmra.mrb[168].mxu1 %v11804_v25  ;;  %v11814_v25 = vld [vmem:[%s17719_s1 + $0x194] ss:$8 sps:$4 sm:$0xff]  }
 0x752   :  { %3823 = vmatprep.mubr.bf16.mxu1 %v11805_v58  ;;  %v11816_v58 = vld [vmem:[%s17719_s1 + $0x190] ss:$8 sps:$4 sm:$0xff]  }
 0x759   :  { %3824 = vmatmul.mubr.bf16.gmra.mrb[172].mxu1 %v11807_v31  ;;  %v11817_v31 = vld [vmem:[%s17719_s1 + $0x1a4] ss:$8 sps:$4 sm:$0xff]  }
 0x75a   :  { %3831 = vmatprep.mubr.bf16.mxu1 %v11808_v2  ;;  %v11819_v2 = vld [vmem:[%s17719_s1 + $0x1a0] ss:$8 sps:$4 sm:$0xff]  }
 0x761   :  { %3832 = vmatmul.mubr.bf16.gmra.mrb[176].mxu1 %v11810_v46  ;;  %v11820_v46 = vld [vmem:[%s17719_s1 + $0x1b4] ss:$8 sps:$4 sm:$0xff]  }
 0x762   :  { %3839 = vmatprep.mubr.bf16.mxu1 %v11811_v62  ;;  %v11822_v62 = vld [vmem:[%s17719_s1 + $0x1b0] ss:$8 sps:$4 sm:$0xff]  }
 0x769   :  { %3840 = vmatmul.mubr.bf16.gmra.mrb[180].mxu1 %v11813_v34  ;;  %v11823_v34 = vld [vmem:[%s17719_s1 + $0x1c4] ss:$8 sps:$4 sm:$0xff]  }
 0x76a   :  { %3847 = vmatprep.mubr.bf16.mxu1 %v11814_v25  ;;  %v11825_v25 = vld [vmem:[%s17719_s1 + $0x1c0] ss:$8 sps:$4 sm:$0xff]  }
 0x771   :  { %3848 = vmatmul.mubr.bf16.gmra.mrb[184].mxu1 %v11816_v58  ;;  %v11826_v58 = vld [vmem:[%s17719_s1 + $0x1d4] ss:$8 sps:$4 sm:$0xff]  }
 0x772   :  { %3855 = vmatprep.mubr.bf16.mxu1 %v11817_v31  ;;  %v11828_v31 = vld [vmem:[%s17719_s1 + $0x1d0] ss:$8 sps:$4 sm:$0xff]  }
 0x779   :  { %3856 = vmatmul.mubr.bf16.gmra.mrb[188].mxu1 %v11819_v2  ;;  %v11829_v2 = vld [vmem:[%s17719_s1 + $0x1e4] ss:$8 sps:$4 sm:$0xff]  }
 0x77a   :  { %3863 = vmatprep.mubr.bf16.mxu1 %v11820_v46  ;;  %v11831_v46 = vld [vmem:[%s17719_s1 + $0x1e0] ss:$8 sps:$4 sm:$0xff]  }
 0x781   :  { %3864 = vmatmul.mubr.bf16.gmra.mrb[192].mxu1 %v11822_v62  ;;  %v11832_v62 = vld [vmem:[%s17719_s1 + $0x1f4] ss:$8 sps:$4 sm:$0xff]  }
 0x782   :  { %3871 = vmatprep.mubr.bf16.mxu1 %v11823_v34  ;;  %v11834_v34 = vld [vmem:[%s17719_s1 + $0x1f0] ss:$8 sps:$4 sm:$0xff]  }
 0x789   :  { %3872 = vmatmul.mubr.bf16.gmra.mrb[196].mxu1 %v11825_v25 }
 0x78a   :  { %3879 = vmatprep.mubr.bf16.mxu1 %v11826_v58  ;;  %v11837_v58 = vld [vmem:[%s17721_s3 + $0x20] sm:$0xff]  }
 0x78b   :  { %11174 = vmatprep.subr.bf16.mxu0 %v11837_v58 }
 0x791   :  { %3880 = vmatmul.mubr.bf16.gmra.mrb[200].mxu1 %v11828_v31 }
 0x792   :  { %3887 = vmatprep.mubr.bf16.mxu1 %v11829_v2 }
 0x799   :  { %3888 = vmatmul.mubr.bf16.gmra.mrb[204].mxu1 %v11831_v46 }
 0x79a   :  { %3895 = vmatprep.mubr.bf16.mxu1 %v11832_v62 }
 0x7a1   :  { %3896 = vmatmul.mubr.bf16.gmra.mrb[208].mxu1 %v11834_v34 }
 0x7fc   :  { %v10570_v25 = vpop.f32.mrb[148].mxu1 }
 0x7fd   :  { %v10571_v31 = vpop.f32.mrb[149].mxu1 }
 0x7fe   :  { %v10572_v2 = vadd.f32 %v10571_v31, %v10570_v25  ;;  %v10573_v47 = vpop.f32.mrb[150].mxu1 }
 0x7ff   :  { %v10574_v56 = vpop.f32.mrb[151].mxu1 }
 0x800   :  { %v10575_v48 = vadd.f32 %v10574_v56, %v10573_v47 }
 0x802   :  { %v3904_v41 = vpack.c.bf16 %v10575_v48, %v10572_v2 }
 0x804   :  { %v10576_v19 = vpop.f32.mrb[152].mxu1  ;;  %11142 = vmatprep.mubr.msk.bf16.mxu0 %vm541_vm0, %v3904_v41 }
 0x805   :  { %v10577_v46 = vpop.f32.mrb[153].mxu1 }
 0x806   :  { %v10578_v62 = vadd.f32 %v10577_v46, %v10576_v19  ;;  %v10579_v55 = vpop.f32.mrb[154].mxu1 }
 0x807   :  { %v10580_v59 = vpop.f32.mrb[155].mxu1 }
 0x808   :  { %v10581_v34 = vadd.f32 %v10580_v59, %v10579_v55 }
 0x80a   :  { %v3905_v15 = vpack.c.bf16 %v10581_v34, %v10578_v62 }
 0x80c   :  { %v10582_v7 = vpop.f32.mrb[156].mxu1  ;;  %11143 = vmatmul.mubr.msk.bf16.vlgmr.msra.gmra.mrb[172].mxu0 %vm541_vm0, %v3905_v15 }
 0x80d   :  { %v10583_v25 = vpop.f32.mrb[157].mxu1  ;;  %11175 = vmatpush3.bf16.msra.mxu0 %v11837_v58 }
 0x80e   :  { %v10584_v56 = vadd.f32 %v10583_v25, %v10582_v7  ;;  %v10585_v48 = vpop.f32.mrb[158].mxu1  ;;  %11176 = vmatprep.subr.bf16.mxu0 %v11838_v51 }
 0x80f   :  { %v10586_v47 = vpop.f32.mrb[159].mxu1 }
 0x810   :  { %v10587_v41 = vadd.f32 %v10586_v47, %v10585_v48 }
 0x811   :  { %11177 = vmatpush3.bf16.msra.mxu0 %v11838_v51 }
 0x812   :  { %v3906_v19 = vpack.c.bf16 %v10587_v41, %v10584_v56 }
 0x814   :  { %v10588_v31 = vpop.f32.mrb[160].mxu1  ;;  %11146 = vmatprep.mubr.msk.bf16.mxu0 %vm541_vm0, %v3906_v19 }
 0x815   :  { %v10589_v55 = vpop.f32.mrb[161].mxu1 }
 0x816   :  { %v10590_v59 = vadd.f32 %v10589_v55, %v10588_v31  ;;  %v10591_v2 = vpop.f32.mrb[162].mxu1 }
 0x817   :  { %v10592_v46 = vpop.f32.mrb[163].mxu1 }
 0x818   :  { %v10593_v62 = vadd.f32 %v10592_v46, %v10591_v2 }
 0x81a   :  { %v3907_v34 = vpack.c.bf16 %v10593_v62, %v10590_v59 }
 0x81c   :  { %v10594_v49 = vpop.f32.mrb[164].mxu1  ;;  %11147 = vmatmul.mubr.msk.bf16.gmra.mrb[176].mxu0 %vm541_vm0, %v3907_v34 }
 0x81d   :  { %v10595_v15 = vpop.f32.mrb[165].mxu1 }
 0x81e   :  { %v10596_v7 = vadd.f32 %v10595_v15, %v10594_v49  ;;  %v10597_v58 = vpop.f32.mrb[166].mxu1 }
 0x81f   :  { %v10598_v25 = vpop.f32.mrb[167].mxu1 }
 0x820   :  { %v10599_v9 = vadd.f32 %v10598_v25, %v10597_v58 }
 0x822   :  { %v3908_v48 = vpack.c.bf16 %v10599_v9, %v10596_v7 }
 0x824   :  { %v10600_v51 = vpop.f32.mrb[168].mxu1  ;;  %11150 = vmatprep.mubr.msk.bf16.mxu0 %vm541_vm0, %v3908_v48 }
 0x825   :  { %v10601_v56 = vpop.f32.mrb[169].mxu1 }
 0x826   :  { %v10602_v47 = vadd.f32 %v10601_v56, %v10600_v51  ;;  %v10603_v41 = vpop.f32.mrb[170].mxu1 }
 0x827   :  { %v10604_v19 = vpop.f32.mrb[171].mxu1 }
 0x828   :  { %v10605_v31 = vadd.f32 %v10604_v19, %v10603_v41 }
 0x82a   :  { %v3909_v55 = vpack.c.bf16 %v10605_v31, %v10602_v47 }
 0x82c   :  { %v10606_v2 = vpop.f32.mrb[172].mxu1  ;;  %11151 = vmatmul.mubr.msk.bf16.gmra.mrb[180].mxu0 %vm541_vm0, %v3909_v55 }
 0x82d   :  { %v10607_v59 = vpop.f32.mrb[173].mxu1 }
 0x82e   :  { %v10608_v46 = vadd.f32 %v10607_v59, %v10606_v2  ;;  %v10609_v62 = vpop.f32.mrb[174].mxu1 }
 0x82f   :  { %v10610_v49 = vpop.f32.mrb[175].mxu1 }
 0x830   :  { %v10611_v34 = vadd.f32 %v10610_v49, %v10609_v62 }
 0x832   :  { %v3910_v15 = vpack.c.bf16 %v10611_v34, %v10608_v46 }
 0x834   :  { %v10612_v58 = vpop.f32.mrb[176].mxu1  ;;  %11154 = vmatprep.mubr.msk.bf16.mxu0 %vm541_vm0, %v3910_v15 }
 0x835   :  { %v10613_v9 = vpop.f32.mrb[177].mxu1 }
 0x836   :  { %v10614_v7 = vadd.f32 %v10613_v9, %v10612_v58  ;;  %v10615_v25 = vpop.f32.mrb[178].mxu1 }
 0x837   :  { %v10616_v48 = vpop.f32.mrb[179].mxu1 }
 0x838   :  { %v10617_v51 = vadd.f32 %v10616_v48, %v10615_v25 }
 0x83a   :  { %v3911_v56 = vpack.c.bf16 %v10617_v51, %v10614_v7 }
 0x83c   :  { %v10618_v41 = vpop.f32.mrb[180].mxu1  ;;  %11155 = vmatmul.mubr.msk.bf16.gmra.mrb[184].mxu0 %vm541_vm0, %v3911_v56 }
 0x83d   :  { %v10619_v47 = vpop.f32.mrb[181].mxu1 }
 0x83e   :  { %v10620_v19 = vadd.f32 %v10619_v47, %v10618_v41  ;;  %v10621_v31 = vpop.f32.mrb[182].mxu1 }
 0x83f   :  { %v10622_v55 = vpop.f32.mrb[183].mxu1 }
 0x840   :  { %v10623_v2 = vadd.f32 %v10622_v55, %v10621_v31 }
 0x842   :  { %v3912_v59 = vpack.c.bf16 %v10623_v2, %v10620_v19 }
 0x844   :  { %v10624_v62 = vpop.f32.mrb[184].mxu1  ;;  %11158 = vmatprep.mubr.msk.bf16.mxu0 %vm541_vm0, %v3912_v59 }
 0x845   :  { %v10625_v46 = vpop.f32.mrb[185].mxu1 }
 0x846   :  { %v10626_v49 = vadd.f32 %v10625_v46, %v10624_v62  ;;  %v10627_v34 = vpop.f32.mrb[186].mxu1 }
 0x847   :  { %v10628_v15 = vpop.f32.mrb[187].mxu1 }
 0x848   :  { %v10629_v58 = vadd.f32 %v10628_v15, %v10627_v34 }
 0x84a   :  { %v3913_v9 = vpack.c.bf16 %v10629_v58, %v10626_v49 }
 0x84c   :  { %v10630_v25 = vpop.f32.mrb[188].mxu1  ;;  %11159 = vmatmul.mubr.msk.bf16.gmra.mrb[188].mxu0 %vm541_vm0, %v3913_v9 }
 0x84d   :  { %v10631_v7 = vpop.f32.mrb[189].mxu1 }
 0x84e   :  { %v10632_v48 = vadd.f32 %v10631_v7, %v10630_v25  ;;  %v10633_v51 = vpop.f32.mrb[190].mxu1 }
 0x84f   :  { %v10634_v56 = vpop.f32.mrb[191].mxu1 }
 0x850   :  { %v10635_v41 = vadd.f32 %v10634_v56, %v10633_v51 }
 0x852   :  { %v3914_v47 = vpack.c.bf16 %v10635_v41, %v10632_v48 }
 0x854   :  { %v10636_v31 = vpop.f32.mrb[192].mxu1  ;;  %11162 = vmatprep.mubr.msk.bf16.mxu0 %vm541_vm0, %v3914_v47 }
 0x855   :  { %v10637_v19 = vpop.f32.mrb[193].mxu1 }
 0x856   :  { %v10638_v55 = vadd.f32 %v10637_v19, %v10636_v31  ;;  %v10639_v2 = vpop.f32.mrb[194].mxu1 }
 0x857   :  { %v10640_v59 = vpop.f32.mrb[195].mxu1 }
 0x858   :  { %v10641_v62 = vadd.f32 %v10640_v59, %v10639_v2 }
 0x85a   :  { %v3915_v46 = vpack.c.bf16 %v10641_v62, %v10638_v55 }
 0x85c   :  { %v10642_v34 = vpop.f32.mrb[196].mxu1  ;;  %11163 = vmatmul.mubr.msk.bf16.gmra.mrb[192].mxu0 %vm541_vm0, %v3915_v46 }
 0x85d   :  { %v10643_v49 = vpop.f32.mrb[197].mxu1 }
 0x85e   :  { %v10644_v15 = vadd.f32 %v10643_v49, %v10642_v34  ;;  %v10645_v58 = vpop.f32.mrb[198].mxu1 }
 0x85f   :  { %v10646_v9 = vpop.f32.mrb[199].mxu1 }
 0x860   :  { %v10647_v25 = vadd.f32 %v10646_v9, %v10645_v58 }
 0x862   :  { %v3916_v7 = vpack.c.bf16 %v10647_v25, %v10644_v15 }
 0x864   :  { %v10648_v51 = vpop.f32.mrb[200].mxu1  ;;  %11166 = vmatprep.mubr.msk.bf16.mxu0 %vm541_vm0, %v3916_v7 }
 0x865   :  { %v10649_v48 = vpop.f32.mrb[201].mxu1 }
 0x866   :  { %v10650_v56 = vadd.f32 %v10649_v48, %v10648_v51  ;;  %v10651_v41 = vpop.f32.mrb[202].mxu1 }
 0x867   :  { %v10652_v47 = vpop.f32.mrb[203].mxu1 }
 0x868   :  { %v10653_v31 = vadd.f32 %v10652_v47, %v10651_v41 }
 0x86a   :  { %v3917_v19 = vpack.c.bf16 %v10653_v31, %v10650_v56 }
 0x86c   :  { %v10654_v2 = vpop.f32.mrb[204].mxu1  ;;  %11167 = vmatmul.mubr.msk.bf16.gmra.mrb[196].mxu0 %vm541_vm0, %v3917_v19 }
 0x86d   :  { %v10655_v55 = vpop.f32.mrb[205].mxu1 }
 0x86e   :  { %v10656_v59 = vadd.f32 %v10655_v55, %v10654_v2  ;;  %v10657_v62 = vpop.f32.mrb[206].mxu1 }
 0x86f   :  { %v10658_v46 = vpop.f32.mrb[207].mxu1 }
 0x870   :  { %v10659_v34 = vadd.f32 %v10658_v46, %v10657_v62 }
 0x872   :  { %v3918_v49 = vpack.c.bf16 %v10659_v34, %v10656_v59 }
 0x874   :  { %v10660_v58 = vpop.f32.mrb[208].mxu1  ;;  %11170 = vmatprep.mubr.msk.bf16.mxu0 %vm541_vm0, %v3918_v49 }
 0x875   :  { %v10661_v15 = vpop.f32.mrb[209].mxu1 }
 0x876   :  { %v10662_v9 = vadd.f32 %v10661_v15, %v10660_v58  ;;  %v10663_v25 = vpop.f32.mrb[210].mxu1 }
 0x877   :  { %v10664_v7 = vpop.f32.mrb[211].mxu1 }
 0x878   :  { %v10665_v51 = vadd.f32 %v10664_v7, %v10663_v25 }
 0x87a   :  { %v3919_v48 = vpack.c.bf16 %v10665_v51, %v10662_v9 }
 0x87c   :  { %11171 = vmatmul.mubr.msk.bf16.gmra.mrb[200].mxu0 %vm541_vm0, %v3919_v48 }
 0x87d   :  { %11178 = vmatprep.mubr.msk.bf16.mxu0 %vm541_vm0, %v14398_v24  ;;  %v11839_v24 = vld [vmem:[%s17723_s5 + $0x10] sm:$0xff]  }
 0x87e   :  { %11210 = vmatprep.subr.bf16.mxu1 %v11839_v24 }
 0x87f   :  { %11211 = vmatpush3.bf16.msra.mxu1 %v11839_v24 }
 0x884   :  { %11179 = vmatmul.mubr.msk.bf16.vlgmr.msra.gmra.mrb[172].mxu0 %vm541_vm0, %v14454_v37 }
 0x885   :  { %11182 = vmatprep.mubr.msk.bf16.mxu0 %vm541_vm0, %v14494_v29 }
 0x88c   :  { %11183 = vmatmul.mubr.msk.bf16.gmra.mrb[176].mxu0 %vm541_vm0, %v14534_v0 }
 0x88d   :  { %11186 = vmatprep.mubr.msk.bf16.mxu0 %vm541_vm0, %v14562_v52 }
 0x894   :  { %11187 = vmatmul.mubr.msk.bf16.gmra.mrb[180].mxu0 %vm541_vm0, %v14588_v21 }
 0x895   :  { %11190 = vmatprep.mubr.msk.bf16.mxu0 %vm541_vm0, %v14610_v26 }
 0x89c   :  { %11191 = vmatmul.mubr.msk.bf16.gmra.mrb[184].mxu0 %vm541_vm0, %v14632_v53 }
 0x89d   :  { %11194 = vmatprep.mubr.msk.bf16.mxu0 %vm541_vm0, %v14412_v50  ;;  %v14788_v50 = vld [vmem:[%s17722_s4 + $0x1] ss:$0 sm:$0xff] }
 0x8a4   :  { %11195 = vmatmul.mubr.msk.bf16.gmra.mrb[188].mxu0 %vm541_vm0, %v14427_v8 }
 0x8a5   :  { %11198 = vmatprep.mubr.msk.bf16.mxu0 %vm541_vm0, %v14465_v16 }
 0x8ac   :  { %11199 = vmatmul.mubr.msk.bf16.gmra.mrb[192].mxu0 %vm541_vm0, %v14507_v54 }
 0x8ad   :  { %11202 = vmatprep.mubr.msk.bf16.mxu0 %vm541_vm0, %v14545_v10 }
 0x8b4   :  { %11203 = vmatmul.mubr.msk.bf16.gmra.mrb[196].mxu0 %vm541_vm0, %v14575_v61 }
 0x8b5   :  { %11206 = vmatprep.mubr.msk.bf16.mxu0 %vm541_vm0, %v14598_v43 }
 0x8bc   :  { %11207 = vmatmul.mubr.msk.bf16.gmra.mrb[200].mxu0 %vm541_vm0, %v14620_v63 }
 0x957   :  { %v11180_v8 = vpop.f32.mrb[172].mxu0 }
 0x958   :  { %v14791_v37 = vadd.f32 %v11180_v8, %v14788_v50  ;;  %v4244_v16 = vpop.f32.mrb[173].mxu0 }
 0x959   :  { %v14794_v29 = vadd.f32 %v14788_v50, %v4244_v16  ;;  %v11181_v54 = vpop.f32.mrb[174].mxu0 }
 0x95a   :  { %v4413_v0 = vsub.f32 0.0, %v14791_v37  ;;  %v14798_v10 = vadd.f32 %v11181_v54, %v14788_v50  ;;  %v4247_v52 = vpop.f32.mrb[175].mxu0 }
 0x95b   :  { %v4411_v61 = vsub.f32 0.0, %v14794_v29  ;;  %v14802_v21 = vadd.f32 %v14788_v50, %v4247_v52 }
 0x95c   :  { %v4447_v43 = vmul.f32 1.442695, %v4413_v0  ;;  %v4414_v26 = vsub.f32 0.0, %v14798_v10 }
 0x95d   :  { %v4443_v63 = vmul.f32 1.442695, %v4411_v61  ;;  %v4412_v53 = vsub.f32 0.0, %v14802_v21 }
 0x95e   :  { %12097 = vpow2.f32 %v4447_v43  ;;  %v4449_v56 = vmul.f32 1.442695, %v4414_v26 }
 0x95f   :  { %12099 = vpow2.f32 %v4443_v63  ;;  %v4445_v41 = vmul.f32 1.442695, %v4412_v53  ;;  %v11184_v47 = vpop.f32.mrb[176].mxu0 }
 0x960   :  { %12101 = vpow2.f32 %v4449_v56  ;;  %v14807_v31 = vadd.f32 %v11184_v47, %v14788_v50  ;;  %v4260_v19 = vpop.f32.mrb[177].mxu0 }
 0x961   :  { %12103 = vpow2.f32 %v4445_v41  ;;  %v14810_v2 = vadd.f32 %v14788_v50, %v4260_v19  ;;  %v11185_v55 = vpop.f32.mrb[178].mxu0 }
 0x962   :  { %v4417_v59 = vsub.f32 0.0, %v14807_v31  ;;  %v14814_v62 = vadd.f32 %v11185_v55, %v14788_v50  ;;  %v4263_v46 = vpop.f32.mrb[179].mxu0 }
 0x963   :  { %v4415_v34 = vsub.f32 0.0, %v14810_v2  ;;  %v14818_v49 = vadd.f32 %v14788_v50, %v4263_v46 }
 0x964   :  { %v4455_v58 = vmul.f32 1.442695, %v4417_v59  ;;  %v4418_v15 = vsub.f32 0.0, %v14814_v62 }
 0x965   :  { %v4451_v9 = vmul.f32 1.442695, %v4415_v34  ;;  %v4416_v25 = vsub.f32 0.0, %v14818_v49 }
 0x966   :  { %12105 = vpow2.f32 %v4455_v58  ;;  %v4457_v7 = vmul.f32 1.442695, %v4418_v15  ;;  %v11840_v15 = vld [vmem:[%s17723_s5 + $0x18] sm:$0xff]  }
 0x967   :  { %12107 = vpow2.f32 %v4451_v9  ;;  %v4453_v51 = vmul.f32 1.442695, %v4416_v25  ;;  %v11188_v48 = vpop.f32.mrb[180].mxu0  ;;  %11212 = vmatprep.subr.bf16.mxu1 %v11840_v15 }
 0x968   :  { %v12098_v24 = vpop.eup %12097  ;;  %12109 = vpow2.f32 %v4457_v7  ;;  %v14823_v8 = vadd.f32 %v11188_v48, %v14788_v50  ;;  %v4276_v16 = vpop.f32.mrb[181].mxu0  ;;  %11213 = vmatpush3.bf16.msra.mxu1 %v11840_v15 }
 0x969   :  { %v12100_v54 = vpop.eup %12099  ;;  %v4509_v0 = vadd.f32 1.0, %v12098_v24  ;;  %12111 = vpow2.f32 %v4453_v51  ;;  %v14826_v52 = vadd.f32 %v14788_v50, %v4276_v16  ;;  %v11189_v61 = vpop.f32.mrb[182].mxu0 }
 0x96a   :  { %v12102_v43 = vpop.eup %12101  ;;  %v4507_v26 = vadd.f32 1.0, %v12100_v54  ;;  %v4421_v63 = vsub.f32 0.0, %v14823_v8  ;;  %v14830_v53 = vadd.f32 %v11189_v61, %v14788_v50  ;;  %v4279_v56 = vpop.f32.mrb[183].mxu0 }
 0x96b   :  { %v12104_v41 = vpop.eup %12103  ;;  %v4419_v47 = vsub.f32 0.0, %v14826_v52  ;;  %v14834_v59 = vadd.f32 %v14788_v50, %v4279_v56  ;;  %v4510_v58 = vadd.f32 1.0, %v12102_v43 }
 0x96c   :  { %12113 = vrcp.f32 %v4507_v26  ;;  %v4508_v19 = vadd.f32 1.0, %v12104_v41  ;;  %v4463_v55 = vmul.f32 1.442695, %v4421_v63  ;;  %v4422_v34 = vsub.f32 0.0, %v14830_v53 }
 0x96d   :  { %12115 = vrcp.f32 %v4509_v0  ;;  %v4459_v46 = vmul.f32 1.442695, %v4419_v47  ;;  %v4420_v7 = vsub.f32 0.0, %v14834_v59  ;;  %v17916_v63 = vmov 0  }
 0x96e   :  { %12117 = vrcp.f32 %v4508_v19  ;;  %v4465_v16 = vmul.f32 1.442695, %v4422_v34  ;;  %5045 = vmatprep.subr.bf16.mxu1 %v17916_v63 }
 0x96f   :  { %12119 = vpow2.f32 %v4463_v55  ;;  %v11192_v9 = vpop.f32.mrb[184].mxu0  ;;  %v4461_v19 = vmul.f32 1.442695, %v4420_v7 }
 0x970   :  { %v12106_v25 = vpop.eup %12105  ;;  %12121 = vpow2.f32 %v4459_v46  ;;  %v14842_v51 = vadd.f32 %v11192_v9, %v14788_v50  ;;  %v4292_v48 = vpop.f32.mrb[185].mxu0 }
 0x971   :  { %v12108_v24 = vpop.eup %12107  ;;  %v11193_v54 = vpop.f32.mrb[186].mxu0  ;;  %12123 = vrcp.f32 %v4510_v58  ;;  %v14845_v43 = vadd.f32 %v14788_v50, %v4292_v48  ;;  %v4513_v41 = vadd.f32 1.0, %v12106_v25 }
 0x972   :  { %v12110_v0 = vpop.eup %12109  ;;  %v4511_v61 = vadd.f32 1.0, %v12108_v24  ;;  %v4295_v26 = vpop.f32.mrb[187].mxu0  ;;  %v4425_v55 = vsub.f32 0.0, %v14842_v51  ;;  %v14851_v15 = vadd.f32 %v11193_v54, %v14788_v50 }
 0x973   :  { %v12112_v56 = vpop.eup %12111  ;;  %v4514_v34 = vadd.f32 1.0, %v12110_v0  ;;  %v4423_v58 = vsub.f32 0.0, %v14845_v43  ;;  %v14854_v48 = vadd.f32 %v14788_v50, %v4295_v26 }
 0x974   :  { %12125 = vrcp.f32 %v4511_v61  ;;  %v4512_v47 = vadd.f32 1.0, %v12112_v56  ;;  %v4471_v24 = vmul.f32 1.442695, %v4425_v55 }
 0x975   :  { %12127 = vpow2.f32 %v4465_v16  ;;  %v4467_v54 = vmul.f32 1.442695, %v4423_v58  ;;  %v4424_v26 = vsub.f32 0.0, %v14854_v48 }
 0x976   :  { %v12114_v46 = vpop.eup %12113  ;;  %12129 = vrcp.f32 %v4512_v47  ;;  %v4426_v47 = vsub.f32 0.0, %v14851_v15 }
 0x977   :  { %v12116_v9 = vpop.eup %12115  ;;  %12131 = vrcp.f32 %v4513_v41  ;;  %4635 = vrot.lane.b32.xlu0 %v12114_v46, %s12694_s26  ;;  %v11196_v25 = vpop.f32.mrb[188].mxu0  ;;  %v4469_v4 = vmul.f32 1.442695, %v4424_v26 }
 0x978   :  { %v12118_v7 = vpop.eup %12117  ;;  %12133 = vpow2.f32 %v4461_v19  ;;  %v4308_v16 = vpop.f32.mrb[189].mxu0  ;;  %v14862_v19 = vadd.f32 %v11196_v25, %v14788_v50  ;;  %v4473_v58 = vmul.f32 1.442695, %v4426_v47 }
 0x979   :  { %v12120_v61 = vpop.eup %12119  ;;  %4637 = vrot.lane.b32.xlu1 %v12118_v7, %s12694_s26  ;;  %v11197_v0 = vpop.f32.mrb[190].mxu0  ;;  %12135 = vrcp.f32 %v4514_v34  ;;  %v14865_v7 = vadd.f32 %v14788_v50, %v4308_v16 }
 0x97a   :  { %v12122_v56 = vpop.eup %12121  ;;  %v4311_v41 = vpop.f32.mrb[191].mxu0  ;;  %12137 = vpow2.f32 %v4471_v24  ;;  %v4517_v55 = vadd.f32 1.0, %v12120_v61  ;;  %v4429_v24 = vsub.f32 0.0, %v14862_v19 }
 0x97b   :  { %v4515_v32 = vadd.f32 1.0, %v12122_v56  ;;  %4639 = vrot.lane.b32.xlu0 %v12116_v9, %s12694_s26  ;;  %v12124_v46 = vpop.eup %12123  ;;  %v14879_v44 = vadd.f32 %v14788_v50, %v4311_v41 }
 0x97d   :  { %12139 = vrcp.f32 %v4515_v32  ;;  %4641 = vrot.lane.b32.xlu1 %v12124_v46, %s12694_s26  ;;  %v4427_v32 = vsub.f32 0.0, %v14865_v7 }
 0x97e   :  { %v12126_v34 = vpop.eup %12125  ;;  %12141 = vpow2.f32 %v4467_v54  ;;  %v14873_v54 = vadd.f32 %v11197_v0, %v14788_v50 }
 0x97f   :  { %v12128_v56 = vpop.eup %12127  ;;  %4643 = vrot.lane.b32.xlu0 %v12126_v34, %s12694_s26  ;;  %v11200_v9 = vpop.f32.mrb[192].mxu0  ;;  %12143 = vrcp.f32 %v4517_v55  ;;  %v4475_v38 = vmul.f32 1.442695, %v4427_v32 }
 0x980   :  { %v12130_v11 = vpop.eup %12129  ;;  %v4324_v25 = vpop.f32.mrb[193].mxu0  ;;  %12145 = vpow2.f32 %v4473_v58  ;;  %v4518_v46 = vadd.f32 1.0, %v12128_v56  ;;  %v4430_v58 = vsub.f32 0.0, %v14873_v54  ;;  %v4428_v56 = vsub.f32 0.0, %v14879_v44 }
 0x981   :  { %v12132_v18 = vpop.eup %12131  ;;  %4645 = vrot.lane.b32.xlu1 %v12130_v11, %s12694_s26  ;;  %v11201_v16 = vpop.f32.mrb[194].mxu0  ;;  %12147 = vpow2.f32 %v4469_v4  ;;  %v4479_v11 = vmul.f32 1.442695, %v4429_v24  ;;  %v14886_v41 = vadd.f32 %v11200_v9, %v14788_v50 }
 0x982   :  { %v12134_v61 = vpop.eup %12133  ;;  %v14876_v47 = vadd.f32 %v11201_v16, %v14788_v50  ;;  %v4327_v26 = vpop.f32.mrb[195].mxu0  ;;  %v4477_v20 = vmul.f32 1.442695, %v4428_v56 }
 0x983   :  { %v4516_v34 = vadd.f32 1.0, %v12134_v61  ;;  %4647 = vrot.lane.b32.xlu0 %v12132_v18, %s12694_s26  ;;  %v12136_v55 = vpop.eup %12135  ;;  %v14889_v18 = vadd.f32 %v14788_v50, %v4324_v25 }
 0x984   :  { %v12138_v0 = vpop.eup %12137 }
 0x985   :  { %12149 = vrcp.f32 %v4516_v34  ;;  %4649 = vrot.lane.b32.xlu1 %v12136_v55, %s12694_s26  ;;  %v4521_v34 = vadd.f32 1.0, %v12138_v0  ;;  %v4433_v0 = vsub.f32 0.0, %v14886_v41 }
 0x986   :  { %12151 = vrcp.f32 %v4518_v46 }
 0x987   :  { %v12140_v16 = vpop.eup %12139  ;;  %v11204_v61 = vpop.f32.mrb[196].mxu0  ;;  %12153 = vpow2.f32 %v4479_v11  ;;  %v4481_v11 = vmul.f32 1.442695, %v4430_v58 }
 0x988   :  { %v12142_v4 = vpop.eup %12141  ;;  %4651 = vrot.lane.b32.xlu0 %v12140_v16, %s12694_s26  ;;  %v14893_v24 = vadd.f32 %v11204_v61, %v14788_v50  ;;  %v4340_v32 = vpop.f32.mrb[197].mxu0  ;;  %12155 = vpow2.f32 %v4475_v38 }
 0x989   :  { %v4519_v55 = vadd.f32 1.0, %v12142_v4  ;;  %v14896_v46 = vadd.f32 %v14788_v50, %v4340_v32  ;;  %v11205_v13 = vpop.f32.mrb[198].mxu0  ;;  %v12144_v25 = vpop.eup %12143  ;;  %v4431_v4 = vsub.f32 0.0, %v14889_v18 }
 0x98a   :  { %v14899_v9 = vadd.f32 %v11205_v13, %v14788_v50  ;;  %v4343_v14 = vpop.f32.mrb[199].mxu0  ;;  %v12146_v61 = vpop.eup %12145 }
 0x98b   :  { %12157 = vrcp.f32 %v4519_v55  ;;  %v14902_v16 = vadd.f32 %v14788_v50, %v4343_v14  ;;  %v12148_v38 = vpop.eup %12147  ;;  %v4522_v32 = vadd.f32 1.0, %v12146_v61  ;;  %v14908_v55 = vadd.f32 %v14788_v50, %v4327_v26 }
 0x98c   :  { %4655 = vrot.lane.b32.xlu0 %v12144_v25, %s12694_s26  ;;  %12159 = vrcp.f32 %v4521_v34  ;;  %v4520_v58 = vadd.f32 1.0, %v12148_v38  ;;  %v4487_v14 = vmul.f32 1.442695, %v4433_v0  ;;  %v4483_v23 = vmul.f32 1.442695, %v4431_v4 }
 0x98d   :  { %12161 = vpow2.f32 %v4481_v11 }
 0x98e   :  { %12163 = vpow2.f32 %v4477_v20  ;;  %v4434_v20 = vsub.f32 0.0, %v14876_v47 }
 0x98f   :  { %v12150_v13 = vpop.eup %12149  ;;  %v11208_v56 = vpop.f32.mrb[200].mxu0  ;;  %12165 = vrcp.f32 %v4520_v58 }
 0x990   :  { %4653 = vrot.lane.b32.xlu1 %v12150_v13, %s12694_s26  ;;  %v14912_v45 = vadd.f32 %v11208_v56, %v14788_v50  ;;  %v4356_v25 = vpop.f32.mrb[201].mxu0  ;;  %v12152_v34 = vpop.eup %12151  ;;  %12167 = vrcp.f32 %v4522_v32  ;;  %v4432_v13 = vsub.f32 0.0, %v14908_v55  ;;  %v4489_v33 = vmul.f32 1.442695, %v4434_v20 }
 0x991   :  { %v14915_v38 = vadd.f32 %v14788_v50, %v4356_v25  ;;  %v11209_v11 = vpop.f32.mrb[202].mxu0  ;;  %v12154_v61 = vpop.eup %12153  ;;  %12169 = vpow2.f32 %v4487_v14  ;;  %v4437_v32 = vsub.f32 0.0, %v14893_v24 }
 0x992   :  { %v14919_v26 = vadd.f32 %v11209_v11, %v14788_v50  ;;  %v4359_v58 = vpop.f32.mrb[203].mxu0  ;;  %v12156_v0 = vpop.eup %12155  ;;  %v4525_v25 = vadd.f32 1.0, %v12154_v61  ;;  %12171 = vpow2.f32 %v4483_v23  ;;  %v4485_v42 = vmul.f32 1.442695, %v4432_v13 }
 0x993   :  { %v14923_v56 = vadd.f32 %v14788_v50, %v4359_v58  ;;  %v4523_v3 = vadd.f32 1.0, %v12156_v0  ;;  %v4435_v50 = vsub.f32 0.0, %v14896_v46  ;;  %v4438_v0 = vsub.f32 0.0, %v14899_v9 }
 0x994   :  { %4657 = vrot.lane.b32.xlu1 %v12152_v34, %s12694_s26 }
 0x995   :  { %v12158_v4 = vpop.eup %12157  ;;  %12173 = vrcp.f32 %v4523_v3  ;;  %v4495_v3 = vmul.f32 1.442695, %v4437_v32  ;;  %v4491_v61 = vmul.f32 1.442695, %v4435_v50  ;;  %v4441_v50 = vsub.f32 0.0, %v14912_v45 }
 0x996   :  { %4659 = vrot.lane.b32.xlu0 %v12158_v4, %s12694_s26  ;;  %v12160_v11 = vpop.eup %12159  ;;  %12175 = vrcp.f32 %v4525_v25  ;;  %v4436_v4 = vsub.f32 0.0, %v14902_v16 }
 0x997   :  { %v12162_v17 = vpop.eup %12161  ;;  %12177 = vpow2.f32 %v4489_v33 }
 0x998   :  { %v12164_v5 = vpop.eup %12163  ;;  %v4526_v34 = vadd.f32 1.0, %v12162_v17  ;;  %12179 = vpow2.f32 %v4485_v42  ;;  %v4497_v42 = vmul.f32 1.442695, %v4438_v0 }
 0x999   :  { %v12166_v58 = vpop.eup %12165  ;;  %v4524_v14 = vadd.f32 1.0, %v12164_v5 }
 0x99a   :  { %4663 = vrot.lane.b32.xlu0 %v12160_v11, %s12694_s26  ;;  %4661 = vrot.lane.b32.xlu1 %v12166_v58, %s12694_s26  ;;  %v12168_v23 = vpop.eup %12167  ;;  %v4493_v11 = vmul.f32 1.442695, %v4436_v4  ;;  %v4442_v4 = vsub.f32 0.0, %v14919_v26 }
 0x99b   :  { %12181 = vrcp.f32 %v4524_v14  ;;  %v12170_v20 = vpop.eup %12169  ;;  %v4439_v14 = vsub.f32 0.0, %v14915_v38 }
 0x99c   :  { %v12172_v13 = vpop.eup %12171  ;;  %12183 = vrcp.f32 %v4526_v34  ;;  %v4529_v17 = vadd.f32 1.0, %v12170_v20 }
 0x99d   :  { %v4527_v5 = vadd.f32 1.0, %v12172_v13  ;;  %12185 = vpow2.f32 %v4495_v3  ;;  %v4499_v0 = vmul.f32 1.442695, %v4439_v14 }
 0x99e   :  { %4665 = vrot.lane.b32.xlu1 %v12168_v23, %s12694_s26  ;;  %12187 = vpow2.f32 %v4491_v61  ;;  %v4503_v61 = vmul.f32 1.442695, %v4441_v50 }
 0x99f   :  { %v12174_v33 = vpop.eup %12173  ;;  %12189 = vrcp.f32 %v4527_v5  ;;  %v4440_v5 = vsub.f32 0.0, %v14923_v56 }
 0x9a0   :  { %4667 = vrot.lane.b32.xlu0 %v12174_v33, %s12694_s26  ;;  %v12176_v25 = vpop.eup %12175  ;;  %12191 = vrcp.f32 %v4529_v17 }
 0x9a1   :  { %v12178_v32 = vpop.eup %12177  ;;  %12193 = vpow2.f32 %v4497_v42  ;;  %v4501_v50 = vmul.f32 1.442695, %v4440_v5 }
 0x9a2   :  { %v12180_v58 = vpop.eup %12179  ;;  %v4530_v3 = vadd.f32 1.0, %v12178_v32  ;;  %12195 = vpow2.f32 %v4493_v11  ;;  %v4505_v11 = vmul.f32 1.442695, %v4442_v4 }
 0x9a3   :  { %v4528_v23 = vadd.f32 1.0, %v12180_v58 }
 0x9a4   :  { %4671 = vrot.lane.b32.xlu0 %v12176_v25, %s12694_s26 }
 0x9a5   :  { %v12182_v34 = vpop.eup %12181  ;;  %12197 = vrcp.f32 %v4528_v23 }
 0x9a6   :  { %4669 = vrot.lane.b32.xlu1 %v12182_v34, %s12694_s26  ;;  %v12184_v20 = vpop.eup %12183  ;;  %12199 = vrcp.f32 %v4530_v3 }
 0x9a7   :  { %v12186_v13 = vpop.eup %12185  ;;  %12201 = vpow2.f32 %v4503_v61 }
 0x9a8   :  { %v12188_v33 = vpop.eup %12187  ;;  %v4533_v42 = vadd.f32 1.0, %v12186_v13  ;;  %12203 = vpow2.f32 %v4499_v0 }
 0x9a9   :  { %v12190_v17 = vpop.eup %12189  ;;  %v4531_v25 = vadd.f32 1.0, %v12188_v33 }
 0x9aa   :  { %4673 = vrot.lane.b32.xlu1 %v12184_v20, %s12694_s26  ;;  %4675 = vrot.lane.b32.xlu0 %v12190_v17, %s12694_s26  ;;  %v12192_v32 = vpop.eup %12191 }
 0x9ab   :  { %12205 = vrcp.f32 %v4531_v25  ;;  %v12194_v58 = vpop.eup %12193 }
 0x9ac   :  { %v12196_v14 = vpop.eup %12195  ;;  %12207 = vrcp.f32 %v4533_v42  ;;  %v4534_v3 = vadd.f32 1.0, %v12194_v58 }
 0x9ad   :  { %v4532_v23 = vadd.f32 1.0, %v12196_v14  ;;  %12209 = vpow2.f32 %v4505_v11 }
 0x9ae   :  { %4679 = vrot.lane.b32.xlu0 %v12192_v32, %s12694_s26  ;;  %12211 = vpow2.f32 %v4501_v50 }
 0x9af   :  { %v12198_v34 = vpop.eup %12197  ;;  %12213 = vrcp.f32 %v4532_v23 }
 0x9b0   :  { %4677 = vrot.lane.b32.xlu1 %v12198_v34, %s12694_s26  ;;  %v12200_v61 = vpop.eup %12199  ;;  %12215 = vrcp.f32 %v4534_v3 }
 0x9b1   :  { %v12202_v20 = vpop.eup %12201 }
 0x9b2   :  { %v12204_v0 = vpop.eup %12203  ;;  %v4537_v33 = vadd.f32 1.0, %v12202_v20 }
 0x9b3   :  { %v4535_v4 = vadd.f32 1.0, %v12204_v0 }
 0x9b4   :  { %4681 = vrot.lane.b32.xlu1 %v12200_v61, %s12694_s26 }
 0x9b5   :  { %v12206_v13 = vpop.eup %12205  ;;  %12217 = vrcp.f32 %v4535_v4 }
 0x9b6   :  { %4683 = vrot.lane.b32.xlu0 %v12206_v13, %s12694_s26  ;;  %v12208_v5 = vpop.eup %12207  ;;  %12219 = vrcp.f32 %v4537_v33 }
 0x9b7   :  { %v12210_v17 = vpop.eup %12209 }
 0x9b8   :  { %v12212_v25 = vpop.eup %12211  ;;  %v4538_v32 = vadd.f32 1.0, %v12210_v17 }
 0x9b9   :  { %v12214_v42 = vpop.eup %12213  ;;  %v4536_v11 = vadd.f32 1.0, %v12212_v25 }
 0x9ba   :  { %4687 = vrot.lane.b32.xlu0 %v12208_v5, %s12694_s26  ;;  %4685 = vrot.lane.b32.xlu1 %v12214_v42, %s12694_s26  ;;  %v12216_v50 = vpop.eup %12215 }
 0x9bb   :  { %12221 = vrcp.f32 %v4536_v11 }
 0x9bc   :  { %12223 = vrcp.f32 %v4538_v32 }
 0x9bd   :  { %12225 = vtanh.f32 %v14794_v29 }
 0x9be   :  { %4689 = vrot.lane.b32.xlu1 %v12216_v50, %s12694_s26  ;;  %12227 = vtanh.f32 %v14802_v21 }
 0x9bf   :  { %v12218_v58 = vpop.eup %12217  ;;  %12229 = vtanh.f32 %v14791_v37 }
 0x9c0   :  { %4691 = vrot.lane.b32.xlu0 %v12218_v58, %s12694_s26  ;;  %v12220_v14 = vpop.eup %12219  ;;  %12231 = vtanh.f32 %v14798_v10 }
 0x9c1   :  { %12233 = vtanh.f32 %v14810_v2 }
 0x9c2   :  { %12235 = vtanh.f32 %v14818_v49 }
 0x9c3   :  { %12237 = vtanh.f32 %v14807_v31 }
 0x9c4   :  { %4695 = vrot.lane.b32.xlu0 %v12220_v14, %s12694_s26  ;;  %12239 = vtanh.f32 %v14814_v62 }
 0x9c5   :  { %v12222_v34 = vpop.eup %12221  ;;  %12241 = vtanh.f32 %v14826_v52 }
 0x9c6   :  { %4693 = vrot.lane.b32.xlu1 %v12222_v34, %s12694_s26  ;;  %v12224_v23 = vpop.eup %12223  ;;  %12243 = vtanh.f32 %v14834_v59 }
 0x9c7   :  { %v12226_v61 = vpop.eup %12225  ;;  %12245 = vtanh.f32 %v14823_v8 }
 0x9c8   :  { %v12228_v20 = vpop.eup %12227  ;;  %12247 = vtanh.f32 %v14830_v53 }
 0x9c9   :  { %v12230_v21 = vpop.eup %12229  ;;  %12249 = vtanh.f32 %v14845_v43 }
 0x9ca   :  { %4697 = vrot.lane.b32.xlu1 %v12224_v23, %s12694_s26  ;;  %v12232_v37 = vpop.eup %12231  ;;  %12251 = vtanh.f32 %v14854_v48 }
 0x9cb   :  { %v12234_v49 = vpop.eup %12233  ;;  %12253 = vtanh.f32 %v14842_v51 }
 0x9cc   :  { %v12236_v42 = vpop.eup %12235  ;;  %12255 = vtanh.f32 %v14851_v15 }
 0x9cd   :  { %v12238_v50 = vpop.eup %12237  ;;  %12257 = vtanh.f32 %v14865_v7 }
 0x9ce   :  { %v12240_v14 = vpop.eup %12239  ;;  %12259 = vtanh.f32 %v14879_v44 }
 0x9cf   :  { %v12242_v52 = vpop.eup %12241  ;;  %12261 = vtanh.f32 %v14862_v19 }
 0x9d0   :  { %v12244_v59 = vpop.eup %12243  ;;  %12263 = vtanh.f32 %v14873_v54 }
 0x9d1   :  { %v12246_v53 = vpop.eup %12245  ;;  %12265 = vtanh.f32 %v14889_v18 }
 0x9d2   :  { %12267 = vtanh.f32 %v14908_v55 }
 0x9d3   :  { %12269 = vtanh.f32 %v14886_v41 }
 0x9d4   :  { %12271 = vtanh.f32 %v14876_v47 }
 0x9d5   :  { %12273 = vtanh.f32 %v14896_v46 }
 0x9d6   :  { %12275 = vtanh.f32 %v14902_v16 }
 0x9d7   :  { %12277 = vtanh.f32 %v14893_v24 }
 0x9e9   :  { %v4636_v3 = vpop.permute.xlu0 %4635 }
 0x9ea   :  { %v4731_v13 = vmul.f32 %v12226_v61, %v4636_v3 }
 0x9eb   :  { %v4638_v0 = vpop.permute.xlu1 %4637 }
 0x9ec   :  { %v4732_v4 = vmul.f32 %v12228_v20, %v4638_v0 }
 0x9ed   :  { %v4640_v29 = vpop.permute.xlu0 %4639 }
 0x9ee   :  { %v4763_v33 = vpack.c.bf16 %v4732_v4, %v4731_v13  ;;  %v4733_v10 = vmul.f32 %v12230_v21, %v4640_v29  ;;  %v12248_v21 = vpop.eup %12247  ;;  %12279 = vtanh.f32 %v14899_v9 }
 0x9ef   :  { %v4642_v5 = vpop.permute.xlu1 %4641 }
 0x9f0   :  { %v4734_v17 = vmul.f32 %v12232_v37, %v4642_v5  ;;  %11214 = vmatprep.mubr.msk.bf16.mxu1 %vm541_vm0, %v4763_v33 }
 0x9f1   :  { %v4644_v2 = vpop.permute.xlu0 %4643 }
 0x9f2   :  { %v4764_v25 = vpack.c.bf16 %v4734_v17, %v4733_v10  ;;  %v4735_v32 = vmul.f32 %v12234_v49, %v4644_v2  ;;  %v12250_v10 = vpop.eup %12249  ;;  %12281 = vtanh.f32 %v14915_v38 }
 0x9f3   :  { %v4646_v11 = vpop.permute.xlu1 %4645  ;;  %v12252_v17 = vpop.eup %12251  ;;  %12283 = vtanh.f32 %v14923_v56 }
 0x9f4   :  { %v4736_v31 = vmul.f32 %v12236_v42, %v4646_v11  ;;  %11215 = vmatmul.mubr.msk.bf16.vlgmr.msra.gmra.mrb[212].mxu1 %vm541_vm0, %v4764_v25 }
 0x9f5   :  { %5046 = vmatpush1.bf16.msra.mxu1 %v4763_v33  ;;  %v4648_v62 = vpop.permute.xlu0 %4647 }
 0x9f6   :  { %v4765_v58 = vpack.c.bf16 %v4736_v31, %v4735_v32  ;;  %5047 = vmatprep.subr.bf16.mxu1 %v17916_v63  ;;  %v4737_v23 = vmul.f32 %v12238_v50, %v4648_v62 }
 0x9f7   :  { %v4650_v34 = vpop.permute.xlu1 %4649 }
 0x9f8   :  { %v4738_v3 = vmul.f32 %v12240_v14, %v4650_v34  ;;  %11218 = vmatprep.mubr.msk.bf16.mxu1 %vm541_vm0, %v4765_v58 }
 0x9f9   :  { %5048 = vmatpush1.bf16.msra.mxu1 %v4764_v25  ;;  %v12254_v25 = vpop.eup %12253  ;;  %12285 = vtanh.f32 %v14912_v45 }
 0x9fa   :  { %v4766_v61 = vpack.c.bf16 %v4738_v3, %v4737_v23  ;;  %5049 = vmatprep.subr.bf16.mxu1 %v17916_v63  ;;  %v4652_v20 = vpop.permute.xlu0 %4651  ;;  %v12256_v11 = vpop.eup %12255  ;;  %12287 = vtanh.f32 %v14919_v26 }
 0x9fb   :  { %v4739_v13 = vmul.f32 %v12242_v52, %v4652_v20  ;;  %v12258_v44 = vpop.eup %12257 }
 0x9fc   :  { %11219 = vmatmul.mubr.msk.bf16.gmra.mrb[216].mxu1 %vm541_vm0, %v4766_v61 }
 0x9fd   :  { %5050 = vmatpush1.bf16.msra.mxu1 %v4765_v58  ;;  %v12260_v58 = vpop.eup %12259 }
 0x9fe   :  { %5051 = vmatprep.subr.bf16.mxu1 %v17916_v63  ;;  %v4656_v4 = vpop.permute.xlu0 %4655  ;;  %v12262_v54 = vpop.eup %12261 }
 0x9ff   :  { %v4741_v37 = vmul.f32 %v12246_v53, %v4656_v4 }
 0xa01   :  { %5052 = vmatpush1.bf16.msra.mxu1 %v4766_v61  ;;  %v12264_v61 = vpop.eup %12263 }
 0xa02   :  { %v4654_v0 = vpop.permute.xlu1 %4653  ;;  %5053 = vmatprep.subr.bf16.mxu1 %v17916_v63  ;;  %v12266_v55 = vpop.eup %12265 }
 0xa03   :  { %v4740_v8 = vmul.f32 %v12244_v59, %v4654_v0 }
 0xa05   :  { %v4767_v29 = vpack.c.bf16 %v4740_v8, %v4739_v13  ;;  %v12268_v13 = vpop.eup %12267 }
 0xa06   :  { %v4658_v33 = vpop.permute.xlu1 %4657  ;;  %v12270_v47 = vpop.eup %12269 }
 0xa07   :  { %v4742_v5 = vmul.f32 %v12248_v21, %v4658_v33  ;;  %11222 = vmatprep.mubr.msk.bf16.mxu1 %vm541_vm0, %v4767_v29  ;;  %5054 = vmatpush1.bf16.msra.mxu1 %v4767_v29  ;;  %v12272_v21 = vpop.eup %12271 }
 0xa08   :  { %5055 = vmatprep.subr.bf16.mxu1 %v17916_v63  ;;  %v4660_v48 = vpop.permute.xlu0 %4659  ;;  %v12274_v16 = vpop.eup %12273 }
 0xa09   :  { %v4768_v43 = vpack.c.bf16 %v4742_v5, %v4741_v37  ;;  %v4743_v51 = vmul.f32 %v12250_v10, %v4660_v48  ;;  %v12276_v48 = vpop.eup %12275 }
 0xa0a   :  { %v12278_v9 = vpop.eup %12277 }
 0xa0b   :  { %11223 = vmatmul.mubr.msk.bf16.gmra.mrb[220].mxu1 %vm541_vm0, %v4768_v43 }
 0xa0c   :  { %5056 = vmatpush1.bf16.msra.mxu1 %v4768_v43  ;;  %v4662_v2 = vpop.permute.xlu1 %4661  ;;  %v4664_v49 = vpop.permute.xlu0 %4663 }
 0xa0d   :  { %5057 = vmatprep.subr.bf16.mxu1 %v17916_v63  ;;  %v4744_v15 = vmul.f32 %v12252_v17, %v4662_v2  ;;  %v4745_v31 = vmul.f32 %v12254_v25, %v4664_v49 }
 0xa0f   :  { %v4769_v42 = vpack.c.bf16 %v4744_v15, %v4743_v51  ;;  %v12280_v15 = vpop.eup %12279 }
 0xa10   :  { %v4666_v32 = vpop.permute.xlu1 %4665  ;;  %v12282_v56 = vpop.eup %12281 }
 0xa11   :  { %v4746_v62 = vmul.f32 %v12256_v11, %v4666_v32  ;;  %11226 = vmatprep.mubr.msk.bf16.mxu1 %vm541_vm0, %v4769_v42  ;;  %5058 = vmatpush1.bf16.msra.mxu1 %v4769_v42  ;;  %v12284_v32 = vpop.eup %12283 }
 0xa12   :  { %5059 = vmatprep.subr.bf16.mxu1 %v17916_v63  ;;  %v4668_v50 = vpop.permute.xlu0 %4667 }
 0xa13   :  { %v4770_v7 = vpack.c.bf16 %v4746_v62, %v4745_v31  ;;  %v4747_v19 = vmul.f32 %v12258_v44, %v4668_v50  ;;  %v12286_v50 = vpop.eup %12285 }
 0xa15   :  { %11227 = vmatmul.mubr.msk.bf16.gmra.mrb[224].mxu1 %vm541_vm0, %v4770_v7 }
 0xa16   :  { %5060 = vmatpush1.bf16.msra.mxu1 %v4770_v7  ;;  %v4672_v23 = vpop.permute.xlu0 %4671 }
 0xa17   :  { %5061 = vmatprep.subr.bf16.mxu1 %v17916_v63  ;;  %v4749_v52 = vmul.f32 %v12262_v54, %v4672_v23  ;;  %v12517_v23 = vld [vmem:[%s17720_s2 + $0x4] ss:$8 sps:$4 sm:$0xff]   ;;  %v12518_v54 = vld [vmem:[%s17720_s2] ss:$8 sps:$4 sm:$0xff]  }
 0xa18   :  { %v4670_v14 = vpop.permute.xlu1 %4669 }
 0xa19   :  { %v4748_v34 = vmul.f32 %v12260_v58, %v4670_v14  ;;  %v12288_v58 = vpop.eup %12287 }
 0xa1b   :  { %v4771_v3 = vpack.c.bf16 %v4748_v34, %v4747_v19 }
 0xa1c   :  { %v4674_v20 = vpop.permute.xlu1 %4673  ;;  %v4676_v0 = vpop.permute.xlu0 %4675 }
 0xa1d   :  { %v4750_v59 = vmul.f32 %v12264_v61, %v4674_v20  ;;  %11230 = vmatprep.mubr.msk.bf16.mxu1 %vm541_vm0, %v4771_v3  ;;  %5062 = vmatpush1.bf16.msra.mxu1 %v4771_v3  ;;  %v4751_v41 = vmul.f32 %v12266_v55, %v4676_v0  ;;  %v12519_v3 = vld [vmem:[%s17720_s2 + $0x14] ss:$8 sps:$4 sm:$0xff]   ;;  %v12520_v61 = vld [vmem:[%s17720_s2 + $0x10] ss:$8 sps:$4 sm:$0xff]   ;;  %v12521_v20 = vld [vmem:[%s17720_s2 + $0x24] ss:$8 sps:$4 sm:$0xff]  }
 0xa1e   :  { %5063 = vmatprep.subr.bf16.mxu1 %v17916_v63  ;;  %v12525_v0 = vld [vmem:[%s17720_s2 + $0x44] ss:$8 sps:$4 sm:$0xff]   ;;  %v12526_v55 = vld [vmem:[%s17720_s2 + $0x40] ss:$8 sps:$4 sm:$0xff]  }
 0xa1f   :  { %v4772_v18 = vpack.c.bf16 %v4750_v59, %v4749_v52  ;;  %v12522_v52 = vld [vmem:[%s17720_s2 + $0x20] ss:$8 sps:$4 sm:$0xff]   ;;  %v12523_v59 = vld [vmem:[%s17720_s2 + $0x34] ss:$8 sps:$4 sm:$0xff]  }
 0xa20   :  { %v4680_v53 = vpop.permute.xlu0 %4679 }
 0xa21   :  { %11231 = vmatmul.mubr.msk.bf16.gmra.mrb[228].mxu1 %vm541_vm0, %v4772_v18  ;;  %v4753_v37 = vmul.f32 %v12270_v47, %v4680_v53  ;;  %v12531_v53 = vld [vmem:[%s17720_s2 + $0x74] ss:$8 sps:$4 sm:$0xff]   ;;  %v12532_v47 = vld [vmem:[%s17720_s2 + $0x70] ss:$8 sps:$4 sm:$0xff]  }
 0xa22   :  { %5064 = vmatpush1.bf16.msra.mxu1 %v4772_v18  ;;  %v4678_v8 = vpop.permute.xlu1 %4677  ;;  %v12524_v18 = vld [vmem:[%s17720_s2 + $0x30] ss:$8 sps:$4 sm:$0xff]  }
 0xa23   :  { %5065 = vmatprep.subr.bf16.mxu1 %v17916_v63  ;;  %v4752_v4 = vmul.f32 %v12268_v13, %v4678_v8  ;;  %v12527_v13 = vld [vmem:[%s17720_s2 + $0x54] ss:$8 sps:$4 sm:$0xff]   ;;  %v12528_v8 = vld [vmem:[%s17720_s2 + $0x50] ss:$8 sps:$4 sm:$0xff]  }
 0xa25   :  { %v4773_v29 = vpack.c.bf16 %v4752_v4, %v4751_v41  ;;  %v12529_v41 = vld [vmem:[%s17720_s2 + $0x64] ss:$8 sps:$4 sm:$0xff]   ;;  %v12530_v4 = vld [vmem:[%s17720_s2 + $0x60] ss:$8 sps:$4 sm:$0xff]  }
 0xa26   :  { %v4682_v33 = vpop.permute.xlu1 %4681 }
 0xa27   :  { %v4754_v5 = vmul.f32 %v12272_v21, %v4682_v33  ;;  %11234 = vmatprep.mubr.msk.bf16.mxu1 %vm541_vm0, %v4773_v29  ;;  %5066 = vmatpush1.bf16.msra.mxu1 %v4773_v29  ;;  %v12533_v29 = vld [vmem:[%s17720_s2 + $0x84] ss:$8 sps:$4 sm:$0xff]   ;;  %v12534_v21 = vld [vmem:[%s17720_s2 + $0x80] ss:$8 sps:$4 sm:$0xff]   ;;  %v12535_v33 = vld [vmem:[%s17720_s2 + $0x94] ss:$8 sps:$4 sm:$0xff]  }
 0xa28   :  { %5067 = vmatprep.subr.bf16.mxu1 %v17916_v63  ;;  %v4684_v43 = vpop.permute.xlu0 %4683 }
 0xa29   :  { %v4774_v46 = vpack.c.bf16 %v4754_v5, %v4753_v37  ;;  %v4755_v24 = vmul.f32 %v12274_v16, %v4684_v43  ;;  %v12536_v37 = vld [vmem:[%s17720_s2 + $0x90] ss:$8 sps:$4 sm:$0xff]   ;;  %v12537_v5 = vld [vmem:[%s17720_s2 + $0xa4] ss:$8 sps:$4 sm:$0xff]   ;;  %v12539_v43 = vld [vmem:[%s17720_s2 + $0xb4] ss:$8 sps:$4 sm:$0xff]  }
 0xa2a   :  { %v12540_v16 = vld [vmem:[%s17720_s2 + $0xb0] ss:$8 sps:$4 sm:$0xff]  }
 0xa2b   :  { %11235 = vmatmul.mubr.msk.bf16.gmra.mrb[232].mxu1 %vm541_vm0, %v4774_v46 }
 0xa2c   :  { %5068 = vmatpush1.bf16.msra.mxu1 %v4774_v46  ;;  %v4686_v10 = vpop.permute.xlu1 %4685  ;;  %v4688_v2 = vpop.permute.xlu0 %4687  ;;  %v12538_v46 = vld [vmem:[%s17720_s2 + $0xa0] ss:$8 sps:$4 sm:$0xff]  }
 0xa2d   :  { %5069 = vmatprep.subr.bf16.mxu1 %v17916_v63  ;;  %v4756_v17 = vmul.f32 %v12276_v48, %v4686_v10  ;;  %v4757_v25 = vmul.f32 %v12278_v9, %v4688_v2  ;;  %v11841_v48 = vld [vmem:[%s17725_s7 + $0x20] sm:$0xff]   ;;  %v12543_v2 = vld [vmem:[%s17720_s2 + $0xd4] ss:$8 sps:$4 sm:$0xff]   ;;  %v12544_v9 = vld [vmem:[%s17720_s2 + $0xd0] ss:$8 sps:$4 sm:$0xff]  }
 0xa2e   :  { %v12541_v10 = vld [vmem:[%s17720_s2 + $0xc4] ss:$8 sps:$4 sm:$0xff]   ;;  %11246 = vmatprep.subr.bf16.mxu0 %v11841_v48 }
 0xa2f   :  { %v4775_v51 = vpack.c.bf16 %v4756_v17, %v4755_v24  ;;  %11247 = vmatpush3.bf16.msra.mxu0 %v11841_v48  ;;  %v11842_v24 = vld [vmem:[%s17725_s7 + $0x28] sm:$0xff]  }
 0xa30   :  { %v4690_v49 = vpop.permute.xlu1 %4689  ;;  %11248 = vmatprep.subr.bf16.mxu0 %v11842_v24  ;;  %v12542_v17 = vld [vmem:[%s17720_s2 + $0xc0] ss:$8 sps:$4 sm:$0xff]   ;;  %v12565_v48 = vld [vmem:[%s17720_s2 + $0x184] ss:$8 sps:$4 sm:$0xff]  }
 0xa31   :  { %v4758_v42 = vmul.f32 %v12280_v15, %v4690_v49  ;;  %11238 = vmatprep.mubr.msk.bf16.mxu1 %vm541_vm0, %v4775_v51  ;;  %5070 = vmatpush1.bf16.msra.mxu1 %v4775_v51  ;;  %v12545_v51 = vld [vmem:[%s17720_s2 + $0xe4] ss:$8 sps:$4 sm:$0xff]   ;;  %v12546_v15 = vld [vmem:[%s17720_s2 + $0xe0] ss:$8 sps:$4 sm:$0xff]   ;;  %v12547_v49 = vld [vmem:[%s17720_s2 + $0xf4] ss:$8 sps:$4 sm:$0xff]  }
 0xa32   :  { %5071 = vmatprep.subr.bf16.mxu1 %v17916_v63  ;;  %v4692_v11 = vpop.permute.xlu0 %4691 }
 0xa33   :  { %v4776_v38 = vpack.c.bf16 %v4758_v42, %v4757_v25  ;;  %v4759_v45 = vmul.f32 %v12282_v56, %v4692_v11  ;;  %11249 = vmatpush3.bf16.msra.mxu0 %v11842_v24  ;;  %v12548_v25 = vld [vmem:[%s17720_s2 + $0xf0] ss:$8 sps:$4 sm:$0xff]   ;;  %v12549_v42 = vld [vmem:[%s17720_s2 + $0x104] ss:$8 sps:$4 sm:$0xff]   ;;  %v12566_v24 = vld [vmem:[%s17720_s2 + $0x180] ss:$8 sps:$4 sm:$0xff]  }
 0xa35   :  { %11239 = vmatmul.mubr.msk.bf16.gmra.mrb[236].mxu1 %vm541_vm0, %v4776_v38 }
 0xa36   :  { %5072 = vmatpush1.bf16.msra.mxu1 %v4776_v38  ;;  %v4696_v7 = vpop.permute.xlu0 %4695 }
 0xa37   :  { %5073 = vmatprep.subr.bf16.mxu1 %v17916_v63  ;;  %v4761_v26 = vmul.f32 %v12286_v50, %v4696_v7 }
 0xa38   :  { %v4694_v31 = vpop.permute.xlu1 %4693 }
 0xa39   :  { %v4760_v62 = vmul.f32 %v12284_v32, %v4694_v31  ;;  %v12550_v31 = vld [vmem:[%s17720_s2 + $0x100] ss:$8 sps:$4 sm:$0xff]  }
 0xa3b   :  { %v4777_v44 = vpack.c.bf16 %v4760_v62, %v4759_v45  ;;  %v12551_v45 = vld [vmem:[%s17720_s2 + $0x114] ss:$8 sps:$4 sm:$0xff]  }
 0xa3c   :  { %v4698_v14 = vpop.permute.xlu1 %4697 }
 0xa3d   :  { %v4762_v19 = vmul.f32 %v12288_v58, %v4698_v14  ;;  %11242 = vmatprep.mubr.msk.bf16.mxu1 %vm541_vm0, %v4777_v44  ;;  %5074 = vmatpush1.bf16.msra.mxu1 %v4777_v44  ;;  %v12552_v58 = vld [vmem:[%s17720_s2 + $0x110] ss:$8 sps:$4 sm:$0xff]   ;;  %v12553_v14 = vld [vmem:[%s17720_s2 + $0x124] ss:$8 sps:$4 sm:$0xff]  }
 0xa3e   :  { %5075 = vmatprep.subr.bf16.mxu1 %v17916_v63 }
 0xa3f   :  { %v4778_v34 = vpack.c.bf16 %v4762_v19, %v4761_v26  ;;  %v12554_v26 = vld [vmem:[%s17720_s2 + $0x120] ss:$8 sps:$4 sm:$0xff]  }
 0xa41   :  { %11243 = vmatmul.mubr.msk.bf16.gmra.mrb[240].mxu1 %vm541_vm0, %v4778_v34 }
 0xa42   :  { %5076 = vmatpush1.bf16.msra.mxu1 %v4778_v34  ;;  %5077 = vmatprep.mubr.bf16.mxu1 %v12517_v23  ;;  %v12555_v34 = vld [vmem:[%s17720_s2 + $0x134] ss:$8 sps:$4 sm:$0xff]  }
 0xa49   :  { %5078 = vmatmul.mubr.bf16.vlgmr.msra.gmra.mrb[244].mxu1 %v12518_v54 }
 0xa4a   :  { %5085 = vmatprep.mubr.bf16.mxu1 %v12519_v3 }
 0xa51   :  { %5086 = vmatmul.mubr.bf16.gmra.mrb[248].mxu1 %v12520_v61  ;;  %v12556_v61 = vld [vmem:[%s17720_s2 + $0x130] ss:$8 sps:$4 sm:$0xff]  }
 0xa52   :  { %5093 = vmatprep.mubr.bf16.mxu1 %v12521_v20  ;;  %v12557_v20 = vld [vmem:[%s17720_s2 + $0x144] ss:$8 sps:$4 sm:$0xff]  }
 0xa59   :  { %5094 = vmatmul.mubr.bf16.gmra.mrb[252].mxu1 %v12522_v52 }
 0xa5a   :  { %5101 = vmatprep.mubr.bf16.mxu1 %v12523_v59 }
 0xa61   :  { %5102 = vmatmul.mubr.bf16.gmra.mrb[0].mxu1 %v12524_v18 }
 0xa62   :  { %5109 = vmatprep.mubr.bf16.mxu1 %v12525_v0 }
 0xa69   :  { %5110 = vmatmul.mubr.bf16.gmra.mrb[4].mxu1 %v12526_v55  ;;  %v12558_v55 = vld [vmem:[%s17720_s2 + $0x140] ss:$8 sps:$4 sm:$0xff]  }
 0xa6a   :  { %5117 = vmatprep.mubr.bf16.mxu1 %v12527_v13  ;;  %v12559_v13 = vld [vmem:[%s17720_s2 + $0x154] ss:$8 sps:$4 sm:$0xff]  }
 0xa71   :  { %5118 = vmatmul.mubr.bf16.gmra.mrb[8].mxu1 %v12528_v8 }
 0xa72   :  { %5125 = vmatprep.mubr.bf16.mxu1 %v12529_v41  ;;  %v12560_v41 = vld [vmem:[%s17720_s2 + $0x150] ss:$8 sps:$4 sm:$0xff]  }
 0xa79   :  { %5126 = vmatmul.mubr.bf16.gmra.mrb[12].mxu1 %v12530_v4 }
 0xa7a   :  { %5133 = vmatprep.mubr.bf16.mxu1 %v12531_v53  ;;  %v12561_v53 = vld [vmem:[%s17720_s2 + $0x164] ss:$8 sps:$4 sm:$0xff]  }
 0xa81   :  { %5134 = vmatmul.mubr.bf16.gmra.mrb[16].mxu1 %v12532_v47 }
 0xa82   :  { %5141 = vmatprep.mubr.bf16.mxu1 %v12533_v29 }
 0xa89   :  { %5142 = vmatmul.mubr.bf16.gmra.mrb[20].mxu1 %v12534_v21  ;;  %v12562_v21 = vld [vmem:[%s17720_s2 + $0x160] ss:$8 sps:$4 sm:$0xff]  }
 0xa8a   :  { %5149 = vmatprep.mubr.bf16.mxu1 %v12535_v33  ;;  %v12563_v33 = vld [vmem:[%s17720_s2 + $0x174] ss:$8 sps:$4 sm:$0xff]  }
 0xa91   :  { %5150 = vmatmul.mubr.bf16.gmra.mrb[24].mxu1 %v12536_v37 }
 0xa92   :  { %5157 = vmatprep.mubr.bf16.mxu1 %v12537_v5 }
 0xa99   :  { %5158 = vmatmul.mubr.bf16.gmra.mrb[28].mxu1 %v12538_v46 }
 0xa9a   :  { %5165 = vmatprep.mubr.bf16.mxu1 %v12539_v43 }
 0xaa1   :  { %5166 = vmatmul.mubr.bf16.gmra.mrb[32].mxu1 %v12540_v16  ;;  %v12564_v16 = vld [vmem:[%s17720_s2 + $0x170] ss:$8 sps:$4 sm:$0xff]  }
 0xaa2   :  { %5173 = vmatprep.mubr.bf16.mxu1 %v12541_v10 }
 0xaa9   :  { %5174 = vmatmul.mubr.bf16.gmra.mrb[36].mxu1 %v12542_v17 }
 0xaaa   :  { %5181 = vmatprep.mubr.bf16.mxu1 %v12543_v2 }
 0xab1   :  { %5182 = vmatmul.mubr.bf16.gmra.mrb[40].mxu1 %v12544_v9  ;;  %v12567_v9 = vld [vmem:[%s17720_s2 + $0x194] ss:$8 sps:$4 sm:$0xff]  }
 0xab2   :  { %5189 = vmatprep.mubr.bf16.mxu1 %v12545_v51 }
 0xab9   :  { %5190 = vmatmul.mubr.bf16.gmra.mrb[44].mxu1 %v12546_v15  ;;  %v12568_v15 = vld [vmem:[%s17720_s2 + $0x190] ss:$8 sps:$4 sm:$0xff]  }
 0xaba   :  { %5197 = vmatprep.mubr.bf16.mxu1 %v12547_v49  ;;  %v12569_v49 = vld [vmem:[%s17720_s2 + $0x1a4] ss:$8 sps:$4 sm:$0xff]  }
 0xac1   :  { %5198 = vmatmul.mubr.bf16.gmra.mrb[48].mxu1 %v12548_v25 }
 0xac2   :  { %5205 = vmatprep.mubr.bf16.mxu1 %v12549_v42 }
 0xac7   :  { %v15122_v38 = vpop.f32.mrb[212].mxu1 }
 0xac8   :  { %v15124_v11 = vpop.f32.mrb[213].mxu1 }
 0xac9   :  { %v15126_v56 = vpop.f32.mrb[214].mxu1  ;;  %5206 = vmatmul.mubr.bf16.gmra.mrb[52].mxu1 %v12550_v31 }
 0xaca   :  { %v15128_v32 = vpop.f32.mrb[215].mxu1  ;;  %5213 = vmatprep.mubr.bf16.mxu1 %v12551_v45 }
 0xacf   :  { %v15136_v62 = vpop.f32.mrb[216].mxu1 }
 0xad0   :  { %v15138_v7 = vpop.f32.mrb[217].mxu1 }
 0xad1   :  { %v15140_v50 = vpop.f32.mrb[218].mxu1  ;;  %5214 = vmatmul.mubr.bf16.gmra.mrb[56].mxu1 %v12552_v58  ;;  %v12570_v58 = vld [vmem:[%s17720_s2 + $0x1a0] ss:$8 sps:$4 sm:$0xff]  }
 0xad2   :  { %v15142_v44 = vpop.f32.mrb[219].mxu1  ;;  %5221 = vmatprep.mubr.bf16.mxu1 %v12553_v14  ;;  %v12571_v14 = vld [vmem:[%s17720_s2 + $0x1b4] ss:$8 sps:$4 sm:$0xff]  }
 0xad9   :  { %5222 = vmatmul.mubr.bf16.gmra.mrb[60].mxu1 %v12554_v26 }
 0xada   :  { %5229 = vmatprep.mubr.bf16.mxu1 %v12555_v34 }
 0xade   :  { %v15153_v19 = vpop.f32.mrb[220].mxu1 }
 0xadf   :  { %v15158_v23 = vpop.f32.mrb[221].mxu1 }
 0xae0   :  { %v15160_v54 = vpop.f32.mrb[222].mxu1 }
 0xae1   :  { %v15162_v3 = vpop.f32.mrb[223].mxu1  ;;  %5230 = vmatmul.mubr.bf16.gmra.mrb[64].mxu1 %v12556_v61  ;;  %v11843_v61 = vld [vmem:[%s17725_s7 + $0x30] sm:$0xff]  }
 0xae2   :  { %5237 = vmatprep.mubr.bf16.mxu1 %v12557_v20  ;;  %11282 = vmatprep.subr.bf16.mxu0 %v11843_v61 }
 0xae8   :  { %v15170_v52 = vpop.f32.mrb[224].mxu1 }
 0xae9   :  { %v15172_v59 = vpop.f32.mrb[225].mxu1  ;;  %5238 = vmatmul.mubr.bf16.gmra.mrb[68].mxu1 %v12558_v55 }
 0xaea   :  { %v15174_v18 = vpop.f32.mrb[226].mxu1  ;;  %5245 = vmatprep.mubr.bf16.mxu1 %v12559_v13 }
 0xaeb   :  { %v15176_v0 = vpop.f32.mrb[227].mxu1 }
 0xaf1   :  { %5246 = vmatmul.mubr.bf16.gmra.mrb[72].mxu1 %v12560_v41  ;;  %v12572_v41 = vld [vmem:[%s17720_s2 + $0x1b0] ss:$8 sps:$4 sm:$0xff]  }
 0xaf2   :  { %5253 = vmatprep.mubr.bf16.mxu1 %v12561_v53  ;;  %v12573_v53 = vld [vmem:[%s17720_s2 + $0x1c4] ss:$8 sps:$4 sm:$0xff]  }
 0xaf4   :  { %v15184_v8 = vpop.f32.mrb[228].mxu1 }
 0xaf5   :  { %v15189_v4 = vpop.f32.mrb[229].mxu1 }
 0xaf6   :  { %v15194_v47 = vpop.f32.mrb[230].mxu1 }
 0xaf7   :  { %v15196_v29 = vpop.f32.mrb[231].mxu1 }
 0xaf9   :  { %5254 = vmatmul.mubr.bf16.gmra.mrb[76].mxu1 %v12562_v21 }
 0xafa   :  { %5261 = vmatprep.mubr.bf16.mxu1 %v12563_v33 }
 0xafe   :  { %v15204_v37 = vpop.f32.mrb[232].mxu1 }
 0xaff   :  { %v15206_v5 = vpop.f32.mrb[233].mxu1 }
 0xb00   :  { %v15208_v46 = vpop.f32.mrb[234].mxu1 }
 0xb01   :  { %v15210_v43 = vpop.f32.mrb[235].mxu1  ;;  %5262 = vmatmul.mubr.bf16.gmra.mrb[80].mxu1 %v12564_v16 }
 0xb02   :  { %5269 = vmatprep.mubr.bf16.mxu1 %v12565_v48 }
 0xb08   :  { %v15218_v10 = vpop.f32.mrb[236].mxu1 }
 0xb09   :  { %5270 = vmatmul.mubr.bf16.gmra.mrb[84].mxu1 %v12566_v24  ;;  %v15223_v17 = vpop.f32.mrb[237].mxu1 }
 0xb0a   :  { %v15225_v2 = vpop.f32.mrb[238].mxu1  ;;  %5277 = vmatprep.mubr.bf16.mxu1 %v12567_v9  ;;  %v11844_v9 = vld [vmem:[%s17725_s7 + $0x38] sm:$0xff]  }
 0xb0b   :  { %v15230_v51 = vpop.f32.mrb[239].mxu1 }
 0xb11   :  { %5278 = vmatmul.mubr.bf16.gmra.mrb[88].mxu1 %v12568_v15  ;;  %v12574_v15 = vld [vmem:[%s17720_s2 + $0x1c0] ss:$8 sps:$4 sm:$0xff]  }
 0xb12   :  { %5285 = vmatprep.mubr.bf16.mxu1 %v12569_v49  ;;  %v12575_v49 = vld [vmem:[%s17720_s2 + $0x1d4] ss:$8 sps:$4 sm:$0xff]  }
 0xb14   :  { %v15238_v25 = vpop.f32.mrb[240].mxu1 }
 0xb15   :  { %v15240_v42 = vpop.f32.mrb[241].mxu1 }
 0xb16   :  { %v15242_v31 = vpop.f32.mrb[242].mxu1 }
 0xb17   :  { %v15244_v45 = vpop.f32.mrb[243].mxu1 }
 0xb19   :  { %5286 = vmatmul.mubr.bf16.gmra.mrb[92].mxu1 %v12570_v58 }
 0xb1a   :  { %5293 = vmatprep.mubr.bf16.mxu1 %v12571_v14 }
 0xb1c   :  { %v5079_v26 = vpop.f32.mrb[244].mxu1 }
 0xb1d   :  { %v5081_v34 = vpop.f32.mrb[245].mxu1 }
 0xb1e   :  { %v5082_v20 = vpop.f32.mrb[246].mxu1 }
 0xb1f   :  { %v5343_v55 = vpack.c.bf16 %v5082_v20, %v5079_v26  ;;  %v5084_v13 = vpop.f32.mrb[247].mxu1 }
 0xb20   :  { %v12577_v13 = vld [vmem:[%s17720_s2 + $0x1e4] ss:$8 sps:$4 sm:$0xff]  }
 0xb21   :  { %5294 = vmatmul.mubr.bf16.gmra.mrb[96].mxu1 %v12572_v41  ;;  %11250 = vmatprep.mubr.msk.bf16.mxu0 %vm541_vm0, %v5343_v55  ;;  %v12576_v55 = vld [vmem:[%s17720_s2 + $0x1d0] ss:$8 sps:$4 sm:$0xff]  }
 0xb22   :  { %5301 = vmatprep.mubr.bf16.mxu1 %v12573_v53 }
 0xb24   :  { %v5087_v21 = vpop.f32.mrb[248].mxu1 }
 0xb25   :  { %v5089_v33 = vpop.f32.mrb[249].mxu1 }
 0xb26   :  { %v5090_v16 = vpop.f32.mrb[250].mxu1 }
 0xb27   :  { %v5344_v48 = vpack.c.bf16 %v5090_v16, %v5087_v21  ;;  %v5092_v24 = vpop.f32.mrb[251].mxu1  ;;  %v12578_v16 = vld [vmem:[%s17720_s2 + $0x1e0] ss:$8 sps:$4 sm:$0xff]  }
 0xb29   :  { %5302 = vmatmul.mubr.bf16.gmra.mrb[100].mxu1 %v12574_v15  ;;  %11251 = vmatmul.mubr.msk.bf16.vlgmr.msra.gmra.mrb[204].mxu0 %vm541_vm0, %v5344_v48  ;;  %v12579_v48 = vld [vmem:[%s17720_s2 + $0x1f4] ss:$8 sps:$4 sm:$0xff]  }
 0xb2a   :  { %5309 = vmatprep.mubr.bf16.mxu1 %v12575_v49  ;;  %11283 = vmatpush3.bf16.msra.mxu0 %v11843_v61 }
 0xb2b   :  { %11284 = vmatprep.subr.bf16.mxu0 %v11844_v9 }
 0xb2c   :  { %v5095_v58 = vpop.f32.mrb[252].mxu1 }
 0xb2d   :  { %v5097_v14 = vpop.f32.mrb[253].mxu1 }
 0xb2e   :  { %v5098_v26 = vpop.f32.mrb[254].mxu1  ;;  %11285 = vmatpush3.bf16.msra.mxu0 %v11844_v9  ;;  %v12580_v14 = vld [vmem:[%s17720_s2 + $0x1f0] ss:$8 sps:$4 sm:$0xff]  }
 0xb2f   :  { %v5345_v34 = vpack.c.bf16 %v5098_v26, %v5095_v58  ;;  %v5100_v20 = vpop.f32.mrb[255].mxu1 }
 0xb31   :  { %5310 = vmatmul.mubr.bf16.gmra.mrb[104].mxu1 %v12576_v55  ;;  %11254 = vmatprep.mubr.msk.bf16.mxu0 %vm541_vm0, %v5345_v34 }
 0xb32   :  { %5317 = vmatprep.mubr.bf16.mxu1 %v12577_v13 }
 0xb34   :  { %v5103_v61 = vpop.f32.mrb[0].mxu1 }
 0xb35   :  { %v5105_v41 = vpop.f32.mrb[1].mxu1 }
 0xb36   :  { %v5106_v53 = vpop.f32.mrb[2].mxu1 }
 0xb37   :  { %v5346_v21 = vpack.c.bf16 %v5106_v53, %v5103_v61  ;;  %v5108_v33 = vpop.f32.mrb[3].mxu1 }
 0xb39   :  { %5318 = vmatmul.mubr.bf16.gmra.mrb[108].mxu1 %v12578_v16  ;;  %11255 = vmatmul.mubr.msk.bf16.gmra.mrb[208].mxu0 %vm541_vm0, %v5346_v21 }
 0xb3a   :  { %5325 = vmatprep.mubr.bf16.mxu1 %v12579_v48 }
 0xb3c   :  { %v5111_v24 = vpop.f32.mrb[4].mxu1 }
 0xb3d   :  { %v5113_v9 = vpop.f32.mrb[5].mxu1 }
 0xb3e   :  { %v5114_v15 = vpop.f32.mrb[6].mxu1 }
 0xb3f   :  { %v5347_v49 = vpack.c.bf16 %v5114_v15, %v5111_v24  ;;  %v5116_v58 = vpop.f32.mrb[7].mxu1 }
 0xb41   :  { %5326 = vmatmul.mubr.bf16.gmra.mrb[112].mxu1 %v12580_v14  ;;  %11258 = vmatprep.mubr.msk.bf16.mxu0 %vm541_vm0, %v5347_v49 }
 0xb44   :  { %v5119_v26 = vpop.f32.mrb[8].mxu1 }
 0xb45   :  { %v5121_v34 = vpop.f32.mrb[9].mxu1 }
 0xb46   :  { %v5122_v20 = vpop.f32.mrb[10].mxu1 }
 0xb47   :  { %v5348_v55 = vpack.c.bf16 %v5122_v20, %v5119_v26  ;;  %v5124_v13 = vpop.f32.mrb[11].mxu1 }
 0xb49   :  { %11259 = vmatmul.mubr.msk.bf16.gmra.mrb[212].mxu0 %vm541_vm0, %v5348_v55 }
 0xb4c   :  { %v5127_v61 = vpop.f32.mrb[12].mxu1 }
 0xb4d   :  { %v5129_v41 = vpop.f32.mrb[13].mxu1 }
 0xb4e   :  { %v5130_v53 = vpop.f32.mrb[14].mxu1 }
 0xb4f   :  { %v5349_v21 = vpack.c.bf16 %v5130_v53, %v5127_v61  ;;  %v5132_v33 = vpop.f32.mrb[15].mxu1 }
 0xb51   :  { %11262 = vmatprep.mubr.msk.bf16.mxu0 %vm541_vm0, %v5349_v21 }
 0xb54   :  { %v5135_v16 = vpop.f32.mrb[16].mxu1 }
 0xb55   :  { %v5137_v48 = vpop.f32.mrb[17].mxu1 }
 0xb56   :  { %v5138_v24 = vpop.f32.mrb[18].mxu1 }
 0xb57   :  { %v5350_v9 = vpack.c.bf16 %v5138_v24, %v5135_v16  ;;  %v5140_v15 = vpop.f32.mrb[19].mxu1 }
 0xb59   :  { %11263 = vmatmul.mubr.msk.bf16.gmra.mrb[216].mxu0 %vm541_vm0, %v5350_v9 }
 0xb5c   :  { %v5143_v49 = vpop.f32.mrb[20].mxu1 }
 0xb5d   :  { %v5145_v58 = vpop.f32.mrb[21].mxu1 }
 0xb5e   :  { %v5146_v14 = vpop.f32.mrb[22].mxu1 }
 0xb5f   :  { %v5351_v26 = vpack.c.bf16 %v5146_v14, %v5143_v49  ;;  %v5148_v34 = vpop.f32.mrb[23].mxu1 }
 0xb61   :  { %11266 = vmatprep.mubr.msk.bf16.mxu0 %vm541_vm0, %v5351_v26 }
 0xb64   :  { %v5151_v20 = vpop.f32.mrb[24].mxu1 }
 0xb65   :  { %v5153_v55 = vpop.f32.mrb[25].mxu1 }
 0xb66   :  { %v5154_v13 = vpop.f32.mrb[26].mxu1 }
 0xb67   :  { %v5352_v61 = vpack.c.bf16 %v5154_v13, %v5151_v20  ;;  %v5156_v41 = vpop.f32.mrb[27].mxu1 }
 0xb69   :  { %11267 = vmatmul.mubr.msk.bf16.gmra.mrb[220].mxu0 %vm541_vm0, %v5352_v61 }
 0xb6c   :  { %v5159_v53 = vpop.f32.mrb[28].mxu1 }
 0xb6d   :  { %v5161_v21 = vpop.f32.mrb[29].mxu1 }
 0xb6e   :  { %v5162_v33 = vpop.f32.mrb[30].mxu1 }
 0xb6f   :  { %v5353_v16 = vpack.c.bf16 %v5162_v33, %v5159_v53  ;;  %v5164_v48 = vpop.f32.mrb[31].mxu1 }
 0xb71   :  { %11270 = vmatprep.mubr.msk.bf16.mxu0 %vm541_vm0, %v5353_v16 }
 0xb74   :  { %v5167_v24 = vpop.f32.mrb[32].mxu1 }
 0xb75   :  { %v5169_v9 = vpop.f32.mrb[33].mxu1 }
 0xb76   :  { %v5170_v15 = vpop.f32.mrb[34].mxu1 }
 0xb77   :  { %v5354_v49 = vpack.c.bf16 %v5170_v15, %v5167_v24  ;;  %v5172_v58 = vpop.f32.mrb[35].mxu1 }
 0xb79   :  { %11271 = vmatmul.mubr.msk.bf16.gmra.mrb[224].mxu0 %vm541_vm0, %v5354_v49 }
 0xb7c   :  { %v5175_v14 = vpop.f32.mrb[36].mxu1 }
 0xb7d   :  { %v5177_v26 = vpop.f32.mrb[37].mxu1 }
 0xb7e   :  { %v5178_v34 = vpop.f32.mrb[38].mxu1 }
 0xb7f   :  { %v5355_v20 = vpack.c.bf16 %v5178_v34, %v5175_v14  ;;  %v5180_v55 = vpop.f32.mrb[39].mxu1 }
 0xb81   :  { %11274 = vmatprep.mubr.msk.bf16.mxu0 %vm541_vm0, %v5355_v20 }
 0xb84   :  { %v5183_v13 = vpop.f32.mrb[40].mxu1 }
 0xb85   :  { %v5185_v61 = vpop.f32.mrb[41].mxu1 }
 0xb86   :  { %v5186_v41 = vpop.f32.mrb[42].mxu1 }
 0xb87   :  { %v5356_v53 = vpack.c.bf16 %v5186_v41, %v5183_v13  ;;  %v5188_v21 = vpop.f32.mrb[43].mxu1 }
 0xb89   :  { %11275 = vmatmul.mubr.msk.bf16.gmra.mrb[228].mxu0 %vm541_vm0, %v5356_v53 }
 0xb8c   :  { %v5191_v33 = vpop.f32.mrb[44].mxu1 }
 0xb8d   :  { %v5193_v16 = vpop.f32.mrb[45].mxu1 }
 0xb8e   :  { %v5194_v48 = vpop.f32.mrb[46].mxu1 }
 0xb8f   :  { %v5357_v24 = vpack.c.bf16 %v5194_v48, %v5191_v33  ;;  %v5196_v9 = vpop.f32.mrb[47].mxu1 }
 0xb91   :  { %11278 = vmatprep.mubr.msk.bf16.mxu0 %vm541_vm0, %v5357_v24 }
 0xb94   :  { %v5199_v15 = vpop.f32.mrb[48].mxu1 }
 0xb95   :  { %v5201_v49 = vpop.f32.mrb[49].mxu1 }
 0xb96   :  { %v5202_v58 = vpop.f32.mrb[50].mxu1 }
 0xb97   :  { %v5358_v14 = vpack.c.bf16 %v5202_v58, %v5199_v15  ;;  %v5204_v26 = vpop.f32.mrb[51].mxu1 }
 0xb99   :  { %11279 = vmatmul.mubr.msk.bf16.gmra.mrb[232].mxu0 %vm541_vm0, %v5358_v14 }
 0xb9c   :  { %v5207_v34 = vpop.f32.mrb[52].mxu1 }
 0xb9d   :  { %v5209_v20 = vpop.f32.mrb[53].mxu1 }
 0xb9e   :  { %v5210_v55 = vpop.f32.mrb[54].mxu1 }
 0xb9f   :  { %v5740_v13 = vpack.c.bf16 %v5210_v55, %v5207_v34  ;;  %v5212_v61 = vpop.f32.mrb[55].mxu1 }
 0xba1   :  { %11286 = vmatprep.mubr.msk.bf16.mxu0 %vm541_vm0, %v5740_v13 }
 0xba4   :  { %v5215_v41 = vpop.f32.mrb[56].mxu1 }
 0xba5   :  { %v5217_v53 = vpop.f32.mrb[57].mxu1 }
 0xba6   :  { %v5218_v21 = vpop.f32.mrb[58].mxu1 }
 0xba7   :  { %v5741_v33 = vpack.c.bf16 %v5218_v21, %v5215_v41  ;;  %v5220_v16 = vpop.f32.mrb[59].mxu1 }
 0xba9   :  { %11287 = vmatmul.mubr.msk.bf16.vlgmr.msra.gmra.mrb[236].mxu0 %vm541_vm0, %v5741_v33 }
 0xbac   :  { %v5223_v48 = vpop.f32.mrb[60].mxu1 }
 0xbad   :  { %v5225_v24 = vpop.f32.mrb[61].mxu1 }
 0xbae   :  { %v5226_v9 = vpop.f32.mrb[62].mxu1 }
 0xbaf   :  { %v5742_v15 = vpack.c.bf16 %v5226_v9, %v5223_v48  ;;  %v5228_v49 = vpop.f32.mrb[63].mxu1 }
 0xbb1   :  { %11290 = vmatprep.mubr.msk.bf16.mxu0 %vm541_vm0, %v5742_v15 }
 0xbb4   :  { %v5231_v58 = vpop.f32.mrb[64].mxu1 }
 0xbb5   :  { %v5233_v14 = vpop.f32.mrb[65].mxu1 }
 0xbb6   :  { %v5234_v26 = vpop.f32.mrb[66].mxu1 }
 0xbb7   :  { %v5743_v34 = vpack.c.bf16 %v5234_v26, %v5231_v58  ;;  %v5236_v20 = vpop.f32.mrb[67].mxu1 }
 0xbb9   :  { %11291 = vmatmul.mubr.msk.bf16.gmra.mrb[240].mxu0 %vm541_vm0, %v5743_v34 }
 0xbbc   :  { %v5239_v55 = vpop.f32.mrb[68].mxu1 }
 0xbbd   :  { %v5241_v13 = vpop.f32.mrb[69].mxu1 }
 0xbbe   :  { %v5242_v61 = vpop.f32.mrb[70].mxu1 }
 0xbbf   :  { %v5744_v41 = vpack.c.bf16 %v5242_v61, %v5239_v55  ;;  %v5244_v53 = vpop.f32.mrb[71].mxu1 }
 0xbc1   :  { %11294 = vmatprep.mubr.msk.bf16.mxu0 %vm541_vm0, %v5744_v41 }
 0xbc4   :  { %v5247_v21 = vpop.f32.mrb[72].mxu1 }
 0xbc5   :  { %v5249_v33 = vpop.f32.mrb[73].mxu1 }
 0xbc6   :  { %v5250_v16 = vpop.f32.mrb[74].mxu1 }
 0xbc7   :  { %v5745_v48 = vpack.c.bf16 %v5250_v16, %v5247_v21  ;;  %v5252_v24 = vpop.f32.mrb[75].mxu1 }
 0xbc9   :  { %11295 = vmatmul.mubr.msk.bf16.gmra.mrb[244].mxu0 %vm541_vm0, %v5745_v48 }
 0xbcc   :  { %v5255_v9 = vpop.f32.mrb[76].mxu1 }
 0xbcd   :  { %v5257_v15 = vpop.f32.mrb[77].mxu1 }
 0xbce   :  { %v5258_v49 = vpop.f32.mrb[78].mxu1 }
 0xbcf   :  { %v5746_v58 = vpack.c.bf16 %v5258_v49, %v5255_v9  ;;  %v5260_v14 = vpop.f32.mrb[79].mxu1 }
 0xbd1   :  { %11298 = vmatprep.mubr.msk.bf16.mxu0 %vm541_vm0, %v5746_v58 }
 0xbd4   :  { %v5263_v26 = vpop.f32.mrb[80].mxu1 }
 0xbd5   :  { %v5265_v34 = vpop.f32.mrb[81].mxu1 }
 0xbd6   :  { %v5266_v20 = vpop.f32.mrb[82].mxu1 }
 0xbd7   :  { %v5747_v55 = vpack.c.bf16 %v5266_v20, %v5263_v26  ;;  %v5268_v13 = vpop.f32.mrb[83].mxu1 }
 0xbd9   :  { %11299 = vmatmul.mubr.msk.bf16.gmra.mrb[248].mxu0 %vm541_vm0, %v5747_v55 }
 0xbdc   :  { %v5271_v61 = vpop.f32.mrb[84].mxu1 }
 0xbdd   :  { %v5273_v41 = vpop.f32.mrb[85].mxu1 }
 0xbde   :  { %v5274_v53 = vpop.f32.mrb[86].mxu1 }
 0xbdf   :  { %v5748_v21 = vpack.c.bf16 %v5274_v53, %v5271_v61  ;;  %v5276_v33 = vpop.f32.mrb[87].mxu1 }
 0xbe1   :  { %11302 = vmatprep.mubr.msk.bf16.mxu0 %vm541_vm0, %v5748_v21 }
 0xbe4   :  { %v5279_v16 = vpop.f32.mrb[88].mxu1 }
 0xbe5   :  { %v5281_v48 = vpop.f32.mrb[89].mxu1 }
 0xbe6   :  { %v5282_v24 = vpop.f32.mrb[90].mxu1 }
 0xbe7   :  { %v5749_v9 = vpack.c.bf16 %v5282_v24, %v5279_v16  ;;  %v5284_v15 = vpop.f32.mrb[91].mxu1 }
 0xbe9   :  { %11303 = vmatmul.mubr.msk.bf16.gmra.mrb[252].mxu0 %vm541_vm0, %v5749_v9 }
 0xbec   :  { %v5287_v49 = vpop.f32.mrb[92].mxu1 }
 0xbed   :  { %v5289_v58 = vpop.f32.mrb[93].mxu1 }
 0xbee   :  { %v5290_v14 = vpop.f32.mrb[94].mxu1 }
 0xbef   :  { %v5750_v26 = vpack.c.bf16 %v5290_v14, %v5287_v49  ;;  %v5292_v34 = vpop.f32.mrb[95].mxu1 }
 0xbf1   :  { %11306 = vmatprep.mubr.msk.bf16.mxu0 %vm541_vm0, %v5750_v26 }
 0xbf4   :  { %v5295_v20 = vpop.f32.mrb[96].mxu1 }
 0xbf5   :  { %v5297_v55 = vpop.f32.mrb[97].mxu1 }
 0xbf6   :  { %v5298_v13 = vpop.f32.mrb[98].mxu1 }
 0xbf7   :  { %v5751_v61 = vpack.c.bf16 %v5298_v13, %v5295_v20  ;;  %v5300_v41 = vpop.f32.mrb[99].mxu1 }
 0xbf9   :  { %11307 = vmatmul.mubr.msk.bf16.gmra.mrb[0].mxu0 %vm541_vm0, %v5751_v61 }
 0xbfc   :  { %v11252_v53 = vpop.f32.mrb[204].mxu0  ;;  %v5303_v21 = vpop.f32.mrb[100].mxu1 }
 0xbfd   :  { %5616 = vrot.lane.b32.xlu0 %v11252_v53, %s12695_s18  ;;  %v5453_v33 = vpop.f32.mrb[205].mxu0  ;;  %v5305_v16 = vpop.f32.mrb[101].mxu1 }
 0xbfe   :  { %v11253_v48 = vpop.f32.mrb[206].mxu0  ;;  %v5306_v24 = vpop.f32.mrb[102].mxu1 }
 0xbff   :  { %5618 = vrot.lane.b32.xlu1 %v11253_v48, %s12695_s18  ;;  %v5752_v9 = vpack.c.bf16 %v5306_v24, %v5303_v21  ;;  %v5456_v15 = vpop.f32.mrb[207].mxu0  ;;  %v5308_v49 = vpop.f32.mrb[103].mxu1 }
 0xc01   :  { %5612 = vrot.lane.b32.xlu0 %v5453_v33, %s12695_s18  ;;  %11310 = vmatprep.mubr.msk.bf16.mxu0 %vm541_vm0, %v5752_v9 }
 0xc03   :  { %5614 = vrot.lane.b32.xlu1 %v5456_v15, %s12695_s18 }
 0xc04   :  { %v5311_v58 = vpop.f32.mrb[104].mxu1 }
 0xc05   :  { %v5313_v14 = vpop.f32.mrb[105].mxu1 }
 0xc06   :  { %v5314_v26 = vpop.f32.mrb[106].mxu1 }
 0xc07   :  { %v5753_v34 = vpack.c.bf16 %v5314_v26, %v5311_v58  ;;  %v5316_v20 = vpop.f32.mrb[107].mxu1 }
 0xc09   :  { %11311 = vmatmul.mubr.msk.bf16.gmra.mrb[4].mxu0 %vm541_vm0, %v5753_v34 }
 0xc0c   :  { %v11256_v55 = vpop.f32.mrb[208].mxu0  ;;  %v5319_v13 = vpop.f32.mrb[108].mxu1 }
 0xc0d   :  { %5624 = vrot.lane.b32.xlu1 %v11256_v55, %s12695_s18  ;;  %v5469_v61 = vpop.f32.mrb[209].mxu0  ;;  %v5321_v41 = vpop.f32.mrb[109].mxu1 }
 0xc0e   :  { %v5322_v53 = vpop.f32.mrb[110].mxu1  ;;  %v11257_v21 = vpop.f32.mrb[210].mxu0 }
 0xc0f   :  { %v5754_v33 = vpack.c.bf16 %v5322_v53, %v5319_v13  ;;  %v5324_v16 = vpop.f32.mrb[111].mxu1  ;;  %v5472_v48 = vpop.f32.mrb[211].mxu0 }
 0xc11   :  { %5620 = vrot.lane.b32.xlu1 %v5469_v61, %s12695_s18  ;;  %11314 = vmatprep.mubr.msk.bf16.mxu0 %vm541_vm0, %v5754_v33 }
 0xc14   :  { %v5327_v24 = vpop.f32.mrb[112].mxu1 }
 0xc15   :  { %5626 = vrot.lane.b32.xlu1 %v11257_v21, %s12695_s18  ;;  %v5329_v9 = vpop.f32.mrb[113].mxu1 }
 0xc16   :  { %v5330_v15 = vpop.f32.mrb[114].mxu1 }
 0xc17   :  { %v5755_v49 = vpack.c.bf16 %v5330_v15, %v5327_v24  ;;  %v5332_v58 = vpop.f32.mrb[115].mxu1 }
 0xc19   :  { %5622 = vrot.lane.b32.xlu1 %v5472_v48, %s12695_s18  ;;  %11315 = vmatmul.mubr.msk.bf16.gmra.mrb[8].mxu0 %vm541_vm0, %v5755_v49 }
 0xc1c   :  { %v11260_v14 = vpop.f32.mrb[212].mxu0 }
 0xc1d   :  { %5632 = vrot.lane.b32.xlu1 %v11260_v14, %s12695_s18  ;;  %v5485_v26 = vpop.f32.mrb[213].mxu0 }
 0xc1e   :  { %v11261_v34 = vpop.f32.mrb[214].mxu0 }
 0xc1f   :  { %v5488_v20 = vpop.f32.mrb[215].mxu0 }
 0xc21   :  { %5628 = vrot.lane.b32.xlu1 %v5485_v26, %s12695_s18 }
 0xc25   :  { %5634 = vrot.lane.b32.xlu1 %v11261_v34, %s12695_s18 }
 0xc29   :  { %5630 = vrot.lane.b32.xlu1 %v5488_v20, %s12695_s18 }
 0xc2c   :  { %v11264_v55 = vpop.f32.mrb[216].mxu0 }
 0xc2d   :  { %5640 = vrot.lane.b32.xlu1 %v11264_v55, %s12695_s18  ;;  %v5501_v13 = vpop.f32.mrb[217].mxu0 }
 0xc2e   :  { %v11265_v61 = vpop.f32.mrb[218].mxu0 }
 0xc2f   :  { %v5504_v41 = vpop.f32.mrb[219].mxu0 }
 0xc31   :  { %5636 = vrot.lane.b32.xlu1 %v5501_v13, %s12695_s18 }
 0xc35   :  { %5642 = vrot.lane.b32.xlu1 %v11265_v61, %s12695_s18 }
 0xc39   :  { %5638 = vrot.lane.b32.xlu1 %v5504_v41, %s12695_s18 }
 0xc3c   :  { %v11268_v53 = vpop.f32.mrb[220].mxu0 }
 0xc3d   :  { %5648 = vrot.lane.b32.xlu1 %v11268_v53, %s12695_s18  ;;  %v5517_v21 = vpop.f32.mrb[221].mxu0 }
 0xc3e   :  { %v11269_v33 = vpop.f32.mrb[222].mxu0 }
 0xc3f   :  { %v5520_v16 = vpop.f32.mrb[223].mxu0 }
 0xc41   :  { %5644 = vrot.lane.b32.xlu1 %v5517_v21, %s12695_s18 }
 0xc45   :  { %5646 = vrot.lane.b32.xlu1 %v5520_v16, %s12695_s18 }
 0xc4c   :  { %v11272_v48 = vpop.f32.mrb[224].mxu0 }
 0xc4d   :  { %v5533_v24 = vpop.f32.mrb[225].mxu0 }
 0xc4e   :  { %v11273_v9 = vpop.f32.mrb[226].mxu0 }
 0xc4f   :  { %v5536_v15 = vpop.f32.mrb[227].mxu0 }
 0xc5c   :  { %v11276_v49 = vpop.f32.mrb[228].mxu0 }
 0xc5d   :  { %v5549_v58 = vpop.f32.mrb[229].mxu0 }
 0xc5e   :  { %v11277_v14 = vpop.f32.mrb[230].mxu0 }
 0xc5f   :  { %v5552_v26 = vpop.f32.mrb[231].mxu0 }
 0xc6c   :  { %v11280_v34 = vpop.f32.mrb[232].mxu0 }
 0xc6d   :  { %v5565_v20 = vpop.f32.mrb[233].mxu0 }
 0xc6e   :  { %v11281_v55 = vpop.f32.mrb[234].mxu0 }
 0xc6f   :  { %v5568_v13 = vpop.f32.mrb[235].mxu0 }
 0xc71   :  { %v15346_v35 = vpop.permute.xlu1 %5618 }
 0xc7c   :  { %v11288_v61 = vpop.f32.mrb[236].mxu0 }
 0xc7d   :  { %6013 = vrot.lane.b32.xlu0 %v11288_v61, %s12695_s18  ;;  %v5850_v41 = vpop.f32.mrb[237].mxu0 }
 0xc7e   :  { %6009 = vrot.lane.b32.xlu1 %v5850_v41, %s12695_s18  ;;  %v11289_v53 = vpop.f32.mrb[238].mxu0 }
 0xc7f   :  { %v5853_v21 = vpop.f32.mrb[239].mxu0 }
 0xc81   :  { %6015 = vrot.lane.b32.xlu0 %v11289_v53, %s12695_s18 }
 0xc82   :  { %5650 = vrot.lane.b32.xlu1 %v11269_v33, %s12695_s18  ;;  %v15351_v33 = vpop.permute.xlu1 %5614 }
 0xc85   :  { %6011 = vrot.lane.b32.xlu0 %v5853_v21, %s12695_s18 }
 0xc86   :  { %5652 = vrot.lane.b32.xlu1 %v5533_v24, %s12695_s18  ;;  %v15355_v24 = vpop.permute.xlu1 %5624 }
 0xc8a   :  { %5654 = vrot.lane.b32.xlu1 %v5536_v15, %s12695_s18  ;;  %v15360_v53 = vpop.permute.xlu1 %5620 }
 0xc8c   :  { %v11292_v16 = vpop.f32.mrb[240].mxu0 }
 0xc8d   :  { %6021 = vrot.lane.b32.xlu0 %v11292_v16, %s12695_s18  ;;  %v5866_v63 = vpop.f32.mrb[241].mxu0 }
 0xc8e   :  { %5656 = vrot.lane.b32.xlu1 %v11272_v48, %s12695_s18  ;;  %v11293_v61 = vpop.f32.mrb[242].mxu0 }
 0xc8f   :  { %v5869_v41 = vpop.f32.mrb[243].mxu0 }
 0xc91   :  { %6017 = vrot.lane.b32.xlu0 %v5866_v63, %s12695_s18 }
 0xc92   :  { %5658 = vrot.lane.b32.xlu1 %v11273_v9, %s12695_s18 }
 0xc95   :  { %6023 = vrot.lane.b32.xlu0 %v11293_v61, %s12695_s18 }
 0xc96   :  { %5660 = vrot.lane.b32.xlu1 %v5549_v58, %s12695_s18  ;;  %v15365_v58 = vpop.permute.xlu1 %5626 }
 0xc99   :  { %6019 = vrot.lane.b32.xlu0 %v5869_v41, %s12695_s18 }
 0xc9a   :  { %5662 = vrot.lane.b32.xlu1 %v5552_v26, %s12695_s18  ;;  %v15370_v21 = vpop.permute.xlu1 %5622 }
 0xc9c   :  { %v11296_v48 = vpop.f32.mrb[244].mxu0 }
 0xc9d   :  { %6029 = vrot.lane.b32.xlu0 %v11296_v48, %s12695_s18  ;;  %v5882_v63 = vpop.f32.mrb[245].mxu0 }
 0xc9e   :  { %5664 = vrot.lane.b32.xlu1 %v11276_v49, %s12695_s18  ;;  %v11297_v15 = vpop.f32.mrb[246].mxu0 }
 0xc9f   :  { %v5885_v9 = vpop.f32.mrb[247].mxu0 }
 0xca1   :  { %6025 = vrot.lane.b32.xlu0 %v5882_v63, %s12695_s18 }
 0xca2   :  { %5666 = vrot.lane.b32.xlu1 %v11277_v14, %s12695_s18 }
 0xca5   :  { %6031 = vrot.lane.b32.xlu0 %v11297_v15, %s12695_s18 }
 0xca6   :  { %5668 = vrot.lane.b32.xlu1 %v5565_v20, %s12695_s18  ;;  %v15375_v20 = vpop.permute.xlu1 %5632 }
 0xca9   :  { %6027 = vrot.lane.b32.xlu0 %v5885_v9, %s12695_s18 }
 0xcaa   :  { %5670 = vrot.lane.b32.xlu1 %v5568_v13, %s12695_s18  ;;  %v15379_v13 = vpop.permute.xlu1 %5628 }
 0xcac   :  { %v11300_v26 = vpop.f32.mrb[248].mxu0 }
 0xcad   :  { %6037 = vrot.lane.b32.xlu0 %v11300_v26, %s12695_s18  ;;  %v5898_v49 = vpop.f32.mrb[249].mxu0 }
 0xcae   :  { %5672 = vrot.lane.b32.xlu1 %v11280_v34, %s12695_s18  ;;  %v11301_v16 = vpop.f32.mrb[250].mxu0  ;;  %v15382_v63 = vpop.permute.xlu1 %5634 }
 0xcaf   :  { %v5901_v14 = vpop.f32.mrb[251].mxu0 }
 0xcb1   :  { %6033 = vrot.lane.b32.xlu0 %v5898_v49, %s12695_s18 }
 0xcb2   :  { %5674 = vrot.lane.b32.xlu1 %v11281_v55, %s12695_s18  ;;  %v15386_v55 = vpop.permute.xlu1 %5630 }
 0xcb5   :  { %6039 = vrot.lane.b32.xlu0 %v11301_v16, %s12695_s18 }
 0xcb6   :  { %v15389_v15 = vpop.permute.xlu1 %5640 }
 0xcb9   :  { %6035 = vrot.lane.b32.xlu0 %v5901_v14, %s12695_s18 }
 0xcba   :  { %v15393_v14 = vpop.permute.xlu1 %5636 }
 0xcbc   :  { %v11304_v61 = vpop.f32.mrb[252].mxu0 }
 0xcbd   :  { %6045 = vrot.lane.b32.xlu0 %v11304_v61, %s12695_s18  ;;  %v5914_v41 = vpop.f32.mrb[253].mxu0 }
 0xcbe   :  { %v11305_v48 = vpop.f32.mrb[254].mxu0  ;;  %v15396_v61 = vpop.permute.xlu1 %5642 }
 0xcbf   :  { %v5917_v34 = vpop.f32.mrb[255].mxu0 }
 0xcc1   :  { %6041 = vrot.lane.b32.xlu0 %v5914_v41, %s12695_s18 }
 0xcc5   :  { %6047 = vrot.lane.b32.xlu0 %v11305_v48, %s12695_s18 }
 0xcc9   :  { %6043 = vrot.lane.b32.xlu0 %v5917_v34, %s12695_s18  ;;  %v15400_v34 = vpop.permute.xlu1 %5638 }
 0xccc   :  { %v11308_v9 = vpop.f32.mrb[0].mxu0 }
 0xccd   :  { %6053 = vrot.lane.b32.xlu0 %v11308_v9, %s12695_s18  ;;  %v5930_v26 = vpop.f32.mrb[1].mxu0  ;;  %v15403_v30 = vpop.permute.xlu1 %5648 }
 0xcce   :  { %v11309_v49 = vpop.f32.mrb[2].mxu0 }
 0xccf   :  { %v5933_v16 = vpop.f32.mrb[3].mxu0 }
 0xcd1   :  { %6049 = vrot.lane.b32.xlu0 %v5930_v26, %s12695_s18  ;;  %v5617_v26 = vpop.permute.xlu0 %5616 }
 0xcd5   :  { %6055 = vrot.lane.b32.xlu0 %v11309_v49, %s12695_s18  ;;  %v15407_v49 = vpop.permute.xlu1 %5644 }
 0xcd9   :  { %6051 = vrot.lane.b32.xlu0 %v5933_v16, %s12695_s18  ;;  %v5613_v16 = vpop.permute.xlu0 %5612 }
 0xcdc   :  { %v11312_v41 = vpop.f32.mrb[4].mxu0 }
 0xcdd   :  { %6061 = vrot.lane.b32.xlu0 %v11312_v41, %s12695_s18  ;;  %v5946_v48 = vpop.f32.mrb[5].mxu0 }
 0xcde   :  { %v11313_v9 = vpop.f32.mrb[6].mxu0 }
 0xcdf   :  { %v5949_v39 = vpop.f32.mrb[7].mxu0 }
 0xce1   :  { %6057 = vrot.lane.b32.xlu0 %v5946_v48, %s12695_s18  ;;  %v15414_v48 = vld [vmem:[%s17724_s6 + $0x1] ss:$0 sm:$0xff] }
 0xce2   :  { %v15425_v57 = vadd.f32 %v15414_v48, %v15128_v32  ;;  %v15437_v60 = vadd.f32 %v15126_v56, %v15414_v48 }
 0xce4   :  { %v5709_v22 = vadd.f32 %v15351_v33, %v15425_v57 }
 0xce5   :  { %6063 = vrot.lane.b32.xlu0 %v11313_v9, %s12695_s18  ;;  %v15416_v9 = vpop.permute.xlu1 %5646 }
 0xce9   :  { %6059 = vrot.lane.b32.xlu0 %v5949_v39, %s12695_s18  ;;  %v15421_v39 = vadd.f32 %v15414_v48, %v15124_v11 }
 0xceb   :  { %v5708_v36 = vadd.f32 %v5613_v16, %v15421_v39 }
 0xcec   :  { %v11316_v40 = vpop.f32.mrb[8].mxu0 }
 0xced   :  { %6069 = vrot.lane.b32.xlu0 %v11316_v40, %s12695_s18  ;;  %v5962_v41 = vpop.f32.mrb[9].mxu0 }
 0xcee   :  { %v11317_v1 = vpop.f32.mrb[10].mxu0 }
 0xcef   :  { %v6014_v28 = vpop.permute.xlu0 %6013  ;;  %6071 = vrot.lane.b32.xlu1 %v11317_v1, %s12695_s18  ;;  %v5965_v6 = vpop.f32.mrb[11].mxu0 }
 0xcf0   :  { %v6010_v1 = vpop.permute.xlu1 %6009 }
 0xcf1   :  { %6065 = vrot.lane.b32.xlu0 %v5962_v41, %s12695_s18  ;;  %v15433_v41 = vadd.f32 %v15122_v38, %v15414_v48  ;;  %v6105_v27 = vadd.f32 %v6010_v1, %v5708_v36  ;;  %v15448_v38 = vadd.f32 %v15414_v48, %v15138_v7 }
 0xcf3   :  { %v6016_v40 = vpop.permute.xlu0 %6015  ;;  %v5710_v12 = vadd.f32 %v5617_v26, %v15433_v41  ;;  %v15461_v26 = vadd.f32 %v15414_v48, %v15142_v44  ;;  %v15475_v44 = vadd.f32 %v15414_v48, %v15158_v23  ;;  %v15489_v23 = vadd.f32 %v15414_v48, %v15162_v3 }
 0xcf5   :  { %6067 = vrot.lane.b32.xlu0 %v5965_v6, %s12695_s18  ;;  %v5711_v6 = vadd.f32 %v15346_v35, %v15437_v60  ;;  %v6107_v33 = vadd.f32 %v6014_v28, %v5710_v12  ;;  %v15454_v35 = vadd.f32 %v15136_v62, %v15414_v48  ;;  %v15468_v62 = vadd.f32 %v15140_v50, %v15414_v48 }
 0xcf6   :  { %17917 = vst [vmem:[#allocation72_spill] sm:$0xff] %v15475_v44  ;;  %v15482_v50 = vadd.f32 %v15153_v19, %v15414_v48  ;;  %17918 = vst [vmem:[#allocation73_spill] sm:$0xff] %v15489_v23  ;;  %v15496_v19 = vadd.f32 %v15160_v54, %v15414_v48 }
 0xcf7   :  { %v6012_v11 = vpop.permute.xlu0 %6011  ;;  %v6108_v16 = vadd.f32 %v6016_v40, %v5711_v6  ;;  %v5714_v12 = vadd.f32 %v15355_v24, %v15454_v35  ;;  %v5715_v24 = vadd.f32 %v15365_v58, %v15468_v62 }
 0xcf8   :  { %v6106_v32 = vadd.f32 %v6012_v11, %v5709_v22  ;;  %v5712_v22 = vadd.f32 %v15360_v53, %v15448_v38  ;;  %v5713_v53 = vadd.f32 %v15370_v21, %v15461_v26  ;;  %v5716_v21 = vadd.f32 %v15379_v13, %v15475_v44  ;;  %17919 = vst [vmem:[#allocation74_spill] sm:$0xff] %v15496_v19 }
 0xcf9   :  { %6169 = vrot.lane.b32.xlu0 %v6105_v27, %s12694_s26  ;;  %v5718_v58 = vadd.f32 %v15375_v20, %v15482_v50  ;;  %v5717_v13 = vadd.f32 %v15386_v55, %v15489_v23  ;;  %v5651_v20 = vpop.permute.xlu1 %5650 }
 0xcfa   :  { %6171 = vrot.lane.b32.xlu1 %v6106_v32, %s12694_s26 }
 0xcfd   :  { %6173 = vrot.lane.b32.xlu0 %v6107_v33, %s12694_s26  ;;  %v5653_v54 = vpop.permute.xlu1 %5652 }
 0xcfe   :  { %6175 = vrot.lane.b32.xlu1 %v6108_v16, %s12694_s26 }
 0xcff   :  { %v6022_v36 = vpop.permute.xlu0 %6021 }
 0xd00   :  { %v6111_v7 = vadd.f32 %v6022_v36, %v5714_v12  ;;  %v15503_v12 = vadd.f32 %v15414_v48, %v15172_v59 }
 0xd02   :  { %17920 = vst [vmem:[#allocation75_spill] sm:$0xff] %v15503_v12 }
 0xd03   :  { %v6018_v27 = vpop.permute.xlu0 %6017 }
 0xd04   :  { %v6109_v56 = vadd.f32 %v6018_v27, %v5712_v22 }
 0xd06   :  { %6177 = vrot.lane.b32.xlu0 %v6109_v56, %s12694_s26  ;;  %v5719_v56 = vadd.f32 %v15382_v63, %v15496_v19 }
 0xd07   :  { %v6024_v28 = vpop.permute.xlu0 %6023 }
 0xd08   :  { %v6112_v32 = vadd.f32 %v6024_v28, %v5715_v24  ;;  %v5720_v28 = vadd.f32 %v15393_v14, %v15503_v12  ;;  %v5655_v24 = vpop.permute.xlu1 %5654 }
 0xd0a   :  { %6181 = vrot.lane.b32.xlu0 %v6111_v7, %s12694_s26 }
 0xd0b   :  { %v6020_v40 = vpop.permute.xlu0 %6019 }
 0xd0c   :  { %v6110_v1 = vadd.f32 %v6020_v40, %v5713_v53  ;;  %v15510_v53 = vadd.f32 %v15170_v52, %v15414_v48 }
 0xd0e   :  { %6179 = vrot.lane.b32.xlu1 %v6110_v1, %s12694_s26  ;;  %17921 = vst [vmem:[#allocation76_spill] sm:$0xff] %v15510_v53  ;;  %v5722_v40 = vadd.f32 %v15389_v15, %v15510_v53  ;;  %v15517_v1 = vadd.f32 %v15414_v48, %v15176_v0  ;;  %v5657_v0 = vpop.permute.xlu1 %5656 }
 0xd0f   :  { %v6030_v11 = vpop.permute.xlu0 %6029 }
 0xd10   :  { %v6115_v36 = vadd.f32 %v6030_v11, %v5718_v58  ;;  %17922 = vst [vmem:[#allocation77_spill] sm:$0xff] %v15517_v1  ;;  %v5721_v11 = vadd.f32 %v15400_v34, %v15517_v1 }
 0xd12   :  { %6183 = vrot.lane.b32.xlu1 %v6112_v32, %s12694_s26  ;;  %v15524_v32 = vadd.f32 %v15174_v18, %v15414_v48 }
 0xd13   :  { %v6026_v6 = vpop.permute.xlu0 %6025 }
 0xd14   :  { %v6113_v33 = vadd.f32 %v6026_v6, %v5716_v21  ;;  %17923 = vst [vmem:[#allocation78_spill] sm:$0xff] %v15524_v32  ;;  %v5723_v21 = vadd.f32 %v15396_v61, %v15524_v32 }
 0xd16   :  { %6185 = vrot.lane.b32.xlu0 %v6113_v33, %s12694_s26  ;;  %v15531_v33 = vadd.f32 %v15414_v48, %v15189_v4 }
 0xd17   :  { %v6032_v16 = vpop.permute.xlu0 %6031 }
 0xd18   :  { %v6116_v55 = vadd.f32 %v6032_v16, %v5719_v56  ;;  %17924 = vst [vmem:[#allocation79_spill] sm:$0xff] %v15531_v33  ;;  %v5724_v58 = vadd.f32 %v15407_v49, %v15531_v33  ;;  %v15538_v16 = vadd.f32 %v15184_v8, %v15414_v48  ;;  %v17970_v33 = vld [vmem:[#allocation68_spill] sm:$0xff] }
 0xd1a   :  { %6189 = vrot.lane.b32.xlu0 %v6115_v36, %s12694_s26  ;;  %17925 = vst [vmem:[#allocation80_spill] sm:$0xff] %v15538_v16  ;;  %v5659_v36 = vpop.permute.xlu1 %5658 }
 0xd1b   :  { %v6028_v22 = vpop.permute.xlu0 %6027 }
 0xd1c   :  { %v6114_v27 = vadd.f32 %v6028_v22, %v5717_v13  ;;  %v5726_v13 = vadd.f32 %v15403_v30, %v15538_v16  ;;  %v15545_v22 = vadd.f32 %v15414_v48, %v15196_v29  ;;  %v15558_v29 = vadd.f32 %v15414_v48, %v15206_v5 }
 0xd1d   :  { %v15570_v5 = vadd.f32 %v15414_v48, %v15210_v43  ;;  %v15582_v43 = vadd.f32 %v15414_v48, %v15223_v17  ;;  %v15594_v17 = vadd.f32 %v15414_v48, %v15230_v51  ;;  %v15606_v51 = vadd.f32 %v15414_v48, %v15240_v42 }
 0xd1e   :  { %6187 = vrot.lane.b32.xlu1 %v6114_v27, %s12694_s26  ;;  %17926 = vst [vmem:[#allocation81_spill] sm:$0xff] %v15545_v22  ;;  %v5725_v27 = vadd.f32 %v15416_v9, %v15545_v22  ;;  %v5661_v8 = vpop.permute.xlu1 %5660  ;;  %17928 = vst [vmem:[#allocation83_spill] sm:$0xff] %v15558_v29 }
 0xd1f   :  { %v6038_v3 = vpop.permute.xlu0 %6037  ;;  %17930 = vst [vmem:[#allocation85_spill] sm:$0xff] %v15570_v5  ;;  %17932 = vst [vmem:[#allocation87_spill] sm:$0xff] %v15582_v43 }
 0xd20   :  { %v6119_v14 = vadd.f32 %v6038_v3, %v5722_v40  ;;  %v15552_v3 = vadd.f32 %v15194_v47, %v15414_v48  ;;  %v15564_v47 = vadd.f32 %v15204_v37, %v15414_v48  ;;  %v15576_v37 = vadd.f32 %v15208_v46, %v15414_v48  ;;  %17934 = vst [vmem:[#allocation89_spill] sm:$0xff] %v15594_v17 }
 0xd21   :  { %v15588_v46 = vadd.f32 %v15218_v10, %v15414_v48  ;;  %v15600_v10 = vadd.f32 %v15225_v2, %v15414_v48  ;;  %17936 = vst [vmem:[#allocation91_spill] sm:$0xff] %v15606_v51  ;;  %v15612_v2 = vadd.f32 %v15238_v25, %v15414_v48 }
 0xd22   :  { %6191 = vrot.lane.b32.xlu1 %v6116_v55, %s12694_s26  ;;  %17927 = vst [vmem:[#allocation82_spill] sm:$0xff] %v15552_v3  ;;  %v5727_v55 = vadd.f32 %v5651_v20, %v15552_v3  ;;  %v5663_v9 = vpop.permute.xlu1 %5662  ;;  %17929 = vst [vmem:[#allocation84_spill] sm:$0xff] %v15564_v47  ;;  %v5730_v20 = vadd.f32 %v5657_v0, %v15564_v47 }
 0xd23   :  { %v6034_v7 = vpop.permute.xlu0 %6033  ;;  %17931 = vst [vmem:[#allocation86_spill] sm:$0xff] %v15576_v37  ;;  %17933 = vst [vmem:[#allocation88_spill] sm:$0xff] %v15588_v46 }
 0xd24   :  { %v6117_v63 = vadd.f32 %v6034_v7, %v5720_v28  ;;  %17935 = vst [vmem:[#allocation90_spill] sm:$0xff] %v15600_v10  ;;  %17937 = vst [vmem:[#allocation92_spill] sm:$0xff] %v15612_v2 }
 0xd26   :  { %6193 = vrot.lane.b32.xlu0 %v6117_v63, %s12694_s26  ;;  %v5728_v63 = vadd.f32 %v5653_v54, %v15558_v29  ;;  %v5729_v54 = vadd.f32 %v5655_v24, %v15570_v5  ;;  %v5732_v24 = vadd.f32 %v5661_v8, %v15582_v43  ;;  %v5733_v8 = vadd.f32 %v5663_v9, %v15594_v17 }
 0xd27   :  { %v6040_v59 = vpop.permute.xlu0 %6039 }
 0xd28   :  { %v6120_v34 = vadd.f32 %v6040_v59, %v5723_v21 }
 0xd2a   :  { %6197 = vrot.lane.b32.xlu0 %v6119_v14, %s12694_s26  ;;  %v5665_v14 = vpop.permute.xlu1 %5664 }
 0xd2b   :  { %v6036_v52 = vpop.permute.xlu0 %6035 }
 0xd2c   :  { %v6118_v15 = vadd.f32 %v6036_v52, %v5721_v11 }
 0xd2e   :  { %6195 = vrot.lane.b32.xlu1 %v6118_v15, %s12694_s26  ;;  %v5667_v0 = vpop.permute.xlu1 %5666 }
 0xd2f   :  { %v6046_v6 = vpop.permute.xlu0 %6045 }
 0xd30   :  { %v6123_v49 = vadd.f32 %v6046_v6, %v5726_v13  ;;  %v5731_v6 = vadd.f32 %v5659_v36, %v15576_v37  ;;  %v5734_v36 = vadd.f32 %v5665_v14, %v15588_v46 }
 0xd32   :  { %6199 = vrot.lane.b32.xlu1 %v6120_v34, %s12694_s26 }
 0xd33   :  { %v6042_v18 = vpop.permute.xlu0 %6041 }
 0xd34   :  { %v6121_v61 = vadd.f32 %v6042_v18, %v5724_v58  ;;  %v5669_v18 = vpop.permute.xlu1 %5668 }
 0xd35   :  { %v5736_v9 = vadd.f32 %v5669_v18, %v15606_v51  ;;  %v17941_v18 = vld [vmem:[#allocation41_spill] sm:$0xff] }
 0xd36   :  { %6201 = vrot.lane.b32.xlu0 %v6121_v61, %s12694_s26 }
 0xd37   :  { %v6048_v4 = vpop.permute.xlu0 %6047 }
 0xd38   :  { %v6124_v7 = vadd.f32 %v6048_v4, %v5727_v55  ;;  %v5735_v55 = vadd.f32 %v5667_v0, %v15600_v10  ;;  %v17959_v10 = vld [vmem:[#allocation45_spill] sm:$0xff] }
 0xd3a   :  { %6205 = vrot.lane.b32.xlu0 %v6123_v49, %s12694_s26 }
 0xd3b   :  { %v6044_v56 = vpop.permute.xlu0 %6043 }
 0xd3c   :  { %v6122_v30 = vadd.f32 %v6044_v56, %v5725_v27  ;;  %v5671_v27 = vpop.permute.xlu1 %5670 }
 0xd3e   :  { %6203 = vrot.lane.b32.xlu1 %v6122_v30, %s12694_s26 }
 0xd3f   :  { %v6054_v28 = vpop.permute.xlu0 %6053 }
 0xd40   :  { %v6127_v52 = vadd.f32 %v6054_v28, %v5730_v20  ;;  %v5673_v28 = vpop.permute.xlu1 %5672 }
 0xd41   :  { %v5738_v42 = vadd.f32 %v5673_v28, %v15612_v2 }
 0xd42   :  { %6207 = vrot.lane.b32.xlu1 %v6124_v7, %s12694_s26 }
 0xd43   :  { %v6050_v40 = vpop.permute.xlu0 %6049 }
 0xd44   :  { %v6125_v59 = vadd.f32 %v6050_v40, %v5728_v63  ;;  %v5675_v14 = vpop.permute.xlu1 %5674 }
 0xd46   :  { %6209 = vrot.lane.b32.xlu0 %v6125_v59, %s12694_s26  ;;  %v15616_v59 = vadd.f32 %v15414_v48, %v15244_v45 }
 0xd47   :  { %v6056_v11 = vpop.permute.xlu0 %6055 }
 0xd48   :  { %v6128_v58 = vadd.f32 %v6056_v11, %v5731_v6  ;;  %17938 = vst [vmem:[#allocation93_spill] sm:$0xff] %v15616_v59  ;;  %v5737_v11 = vadd.f32 %v5671_v27, %v15616_v59  ;;  %v17955_v59 = vld [vmem:[#allocation71_spill] sm:$0xff] }
 0xd4a   :  { %6213 = vrot.lane.b32.xlu0 %v6127_v52, %s12694_s26 }
 0xd4b   :  { %v6052_v15 = vpop.permute.xlu0 %6051 }
 0xd4c   :  { %v6126_v21 = vadd.f32 %v6052_v15, %v5729_v54  ;;  %v15623_v54 = vadd.f32 %v15242_v31, %v15414_v48 }
 0xd4e   :  { %6211 = vrot.lane.b32.xlu1 %v6126_v21, %s12694_s26  ;;  %17939 = vst [vmem:[#allocation94_spill] sm:$0xff] %v15623_v54  ;;  %v5739_v0 = vadd.f32 %v5675_v14, %v15623_v54  ;;  %v17944_v14 = vld [vmem:[#allocation50_spill] sm:$0xff] }
 0xd4f   :  { %v6062_v34 = vpop.permute.xlu0 %6061 }
 0xd50   :  { %v6131_v49 = vadd.f32 %v6062_v34, %v5734_v36  ;;  %v17942_v36 = vld [vmem:[#allocation46_spill] sm:$0xff] }
 0xd52   :  { %6215 = vrot.lane.b32.xlu1 %v6128_v58, %s12694_s26  ;;  %v17940_v58 = vld [vmem:[#allocation40_spill] sm:$0xff] }
 0xd53   :  { %v6058_v61 = vpop.permute.xlu0 %6057 }
 0xd54   :  { %v6129_v13 = vadd.f32 %v6058_v61, %v5732_v24 }
 0xd56   :  { %6217 = vrot.lane.b32.xlu0 %v6129_v13, %s12694_s26 }
 0xd57   :  { %v6064_v4 = vpop.permute.xlu0 %6063 }
 0xd58   :  { %v6132_v63 = vadd.f32 %v6064_v4, %v5735_v55 }
 0xd5a   :  { %6221 = vrot.lane.b32.xlu0 %v6131_v49, %s12694_s26 }
 0xd5b   :  { %v6060_v56 = vpop.permute.xlu0 %6059 }
 0xd5c   :  { %v6130_v30 = vadd.f32 %v6060_v56, %v5733_v8 }
 0xd5e   :  { %6219 = vrot.lane.b32.xlu1 %v6130_v30, %s12694_s26 }
 0xd5f   :  { %v6070_v7 = vpop.permute.xlu0 %6069 }
 0xd60   :  { %v6135_v15 = vadd.f32 %v6070_v7, %v5738_v42  ;;  %v17943_v7 = vld [vmem:[#allocation47_spill] sm:$0xff] }
 0xd61   :  { %v6072_v21 = vpop.permute.xlu1 %6071 }
 0xd62   :  { %6223 = vrot.lane.b32.xlu1 %v6132_v63, %s12694_s26  ;;  %v6136_v45 = vadd.f32 %v6072_v21, %v5739_v0 }
 0xd63   :  { %v6066_v40 = vpop.permute.xlu0 %6065 }
 0xd64   :  { %v6133_v20 = vadd.f32 %v6066_v40, %v5736_v9 }
 0xd66   :  { %6225 = vrot.lane.b32.xlu0 %v6133_v20, %s12694_s26 }
 0xd67   :  { %v6068_v52 = vpop.permute.xlu0 %6067 }
 0xd68   :  { %v6134_v25 = vadd.f32 %v6068_v52, %v5737_v11 }
 0xd6a   :  { %6227 = vrot.lane.b32.xlu1 %v6134_v25, %s12694_s26  ;;  %6229 = vrot.lane.b32.xlu0 %v6135_v15, %s12694_s26  ;;  %v17945_v25 = vld [vmem:[#allocation51_spill] sm:$0xff] }
 0xd6b   :  { %v6170_v6 = vpop.permute.xlu0 %6169 }
 0xd6c   :  { %v6172_v34 = vpop.permute.xlu1 %6171  ;;  %v15630_v24 = vadd.f32 %v6170_v6, %v17940_v58 }
 0xd6d   :  { %v15633_v31 = vadd.f32 %v6172_v34, %v17941_v18 }
 0xd6e   :  { %6231 = vrot.lane.b32.xlu1 %v6136_v45, %s12694_s26  ;;  %v6367_v61 = vmul.f32 %v15630_v24, %v15630_v24  ;;  %v6297_v27 = vsel %vm541_vm0, %v15630_v24, 0.0 }
 0xd6f   :  { %v6174_v48 = vpop.permute.xlu0 %6173  ;;  %v6368_v13 = vmul.f32 %v15633_v31, %v15633_v31  ;;  %v6298_v8 = vsel %vm541_vm0, %v15633_v31, 0.0 }
 0xd70   :  { %v15640_v4 = vadd.f32 %v6174_v48, %v17942_v36  ;;  %v6176_v49 = vpop.permute.xlu1 %6175  ;;  %v6399_v30 = vsel %vm541_vm0, %v6367_v61, 0.0  ;;  %v6299_v9 = vadd.f32 %v6298_v8, %v6297_v27  ;;  %v17946_v27 = vld [vmem:[#allocation54_spill] sm:$0xff] }
 0xd71   :  { %v6400_v55 = vsel %vm541_vm0, %v6368_v13, 0.0  ;;  %v15651_v63 = vadd.f32 %v6176_v49, %v17943_v7 }
 0xd72   :  { %v6369_v28 = vmul.f32 %v15640_v4, %v15640_v4  ;;  %v6300_v20 = vsel %vm541_vm0, %v15640_v4, 0.0  ;;  %v6401_v42 = vadd.f32 %v6400_v55, %v6399_v30 }
 0xd73   :  { %v6370_v15 = vmul.f32 %v15651_v63, %v15651_v63  ;;  %v6301_v0 = vadd.f32 %v6300_v20, %v6299_v9  ;;  %v6302_v45 = vsel %vm541_vm0, %v15651_v63, 0.0  ;;  %v17947_v9 = vld [vmem:[#allocation55_spill] sm:$0xff] }
 0xd74   :  { %v6402_v52 = vsel %vm541_vm0, %v6369_v28, 0.0 }
 0xd75   :  { %v6403_v34 = vadd.f32 %v6402_v52, %v6401_v42  ;;  %v6404_v18 = vsel %vm541_vm0, %v6370_v15, 0.0  ;;  %v6303_v13 = vadd.f32 %v6302_v45, %v6301_v0  ;;  %v17948_v15 = vld [vmem:[#allocation58_spill] sm:$0xff] }
 0xd77   :  { %v6405_v30 = vadd.f32 %v6404_v18, %v6403_v34  ;;  %v17949_v34 = vld [vmem:[#allocation59_spill] sm:$0xff] }
 0xd78   :  { %v6178_v56 = vpop.permute.xlu0 %6177 }
 0xd79   :  { %v15656_v11 = vadd.f32 %v6178_v56, %v17944_v14 }
 0xd7b   :  { %v6371_v6 = vmul.f32 %v15656_v11, %v15656_v11  ;;  %v6304_v48 = vsel %vm541_vm0, %v15656_v11, 0.0 }
 0xd7c   :  { %v6182_v58 = vpop.permute.xlu0 %6181  ;;  %v6305_v55 = vadd.f32 %v6304_v48, %v6303_v13 }
 0xd7d   :  { %v6406_v49 = vsel %vm541_vm0, %v6371_v6, 0.0  ;;  %v15675_v8 = vadd.f32 %v6182_v58, %v17946_v27 }
 0xd7e   :  { %v6407_v20 = vadd.f32 %v6406_v49, %v6405_v30 }
 0xd7f   :  { %v6373_v52 = vmul.f32 %v15675_v8, %v15675_v8  ;;  %v6308_v45 = vsel %vm541_vm0, %v15675_v8, 0.0 }
 0xd80   :  { %v6180_v40 = vpop.permute.xlu1 %6179 }
 0xd81   :  { %v15662_v21 = vadd.f32 %v6180_v40, %v17945_v25  ;;  %v6410_v48 = vsel %vm541_vm0, %v6373_v52, 0.0 }
 0xd83   :  { %v6372_v61 = vmul.f32 %v15662_v21, %v15662_v21  ;;  %v6306_v56 = vsel %vm541_vm0, %v15662_v21, 0.0 }
 0xd84   :  { %v6184_v36 = vpop.permute.xlu1 %6183  ;;  %v6307_v14 = vadd.f32 %v6306_v56, %v6305_v55 }
 0xd85   :  { %v6408_v7 = vsel %vm541_vm0, %v6372_v61, 0.0  ;;  %v15681_v40 = vadd.f32 %v6184_v36, %v17947_v9  ;;  %v17950_v9 = vld [vmem:[#allocation62_spill] sm:$0xff] }
 0xd86   :  { %v6409_v0 = vadd.f32 %v6408_v7, %v6407_v20  ;;  %v6309_v18 = vadd.f32 %v6308_v45, %v6307_v14  ;;  %v17951_v45 = vld [vmem:[#allocation63_spill] sm:$0xff] }
 0xd87   :  { %v6374_v6 = vmul.f32 %v15681_v40, %v15681_v40  ;;  %v6310_v61 = vsel %vm541_vm0, %v15681_v40, 0.0 }
 0xd88   :  { %v6186_v28 = vpop.permute.xlu0 %6185  ;;  %v6411_v36 = vadd.f32 %v6410_v48, %v6409_v0  ;;  %v6311_v55 = vadd.f32 %v6310_v61, %v6309_v18 }
 0xd89   :  { %v15686_v25 = vadd.f32 %v6186_v28, %v17948_v15  ;;  %v6412_v27 = vsel %vm541_vm0, %v6374_v6, 0.0 }
 0xd8b   :  { %v6375_v13 = vmul.f32 %v15686_v25, %v15686_v25  ;;  %v6312_v56 = vsel %vm541_vm0, %v15686_v25, 0.0 }
 0xd8c   :  { %v6190_v49 = vpop.permute.xlu0 %6189  ;;  %v6313_v52 = vadd.f32 %v6312_v56, %v6311_v55  ;;  %v17953_v56 = vld [vmem:[#allocation67_spill] sm:$0xff] }
 0xd8d   :  { %v6414_v7 = vsel %vm541_vm0, %v6375_v13, 0.0  ;;  %v15707_v20 = vadd.f32 %v6190_v49, %v17950_v9  ;;  %v17952_v13 = vld [vmem:[#allocation66_spill] sm:$0xff] }
 0xd8f   :  { %v6377_v61 = vmul.f32 %v15707_v20, %v15707_v20 }
 0xd90   :  { %v6188_v42 = vpop.permute.xlu1 %6187 }
 0xd91   :  { %v15693_v58 = vadd.f32 %v6188_v42, %v17949_v34  ;;  %v6413_v42 = vadd.f32 %v6412_v27, %v6411_v36  ;;  %v6316_v36 = vsel %vm541_vm0, %v15707_v20, 0.0 }
 0xd93   :  { %v6376_v30 = vmul.f32 %v15693_v58, %v15693_v58  ;;  %v6314_v14 = vsel %vm541_vm0, %v15693_v58, 0.0  ;;  %v6415_v34 = vadd.f32 %v6414_v7, %v6413_v42 }
 0xd94   :  { %v6192_v28 = vpop.permute.xlu1 %6191  ;;  %v6315_v48 = vadd.f32 %v6314_v14, %v6313_v52 }
 0xd95   :  { %v6416_v0 = vsel %vm541_vm0, %v6376_v30, 0.0  ;;  %v15713_v6 = vadd.f32 %v6192_v28, %v17951_v45  ;;  %v6418_v28 = vsel %vm541_vm0, %v6377_v61, 0.0  ;;  %v17954_v61 = vld [vmem:[#allocation70_spill] sm:$0xff] }
 0xd96   :  { %v6417_v9 = vadd.f32 %v6416_v0, %v6415_v34  ;;  %v6317_v55 = vadd.f32 %v6316_v36, %v6315_v48 }
 0xd97   :  { %v6378_v27 = vmul.f32 %v15713_v6, %v15713_v6  ;;  %v6318_v7 = vsel %vm541_vm0, %v15713_v6, 0.0 }
 0xd98   :  { %v6194_v15 = vpop.permute.xlu0 %6193  ;;  %v6419_v42 = vadd.f32 %v6418_v28, %v6417_v9  ;;  %v6319_v34 = vadd.f32 %v6318_v7, %v6317_v55 }
 0xd99   :  { %v15718_v49 = vadd.f32 %v6194_v15, %v17952_v13  ;;  %v6420_v15 = vsel %vm541_vm0, %v6378_v27, 0.0 }
 0xd9a   :  { %v6421_v9 = vadd.f32 %v6420_v15, %v6419_v42 }
 0xd9b   :  { %v6379_v14 = vmul.f32 %v15718_v49, %v15718_v49  ;;  %v6320_v0 = vsel %vm541_vm0, %v15718_v49, 0.0 }
 0xd9c   :  { %v6198_v52 = vpop.permute.xlu0 %6197 }
 0xd9d   :  { %v15739_v13 = vadd.f32 %v6198_v52, %v17954_v61 }
 0xd9f   :  { %v6381_v7 = vmul.f32 %v15739_v13, %v15739_v13  ;;  %v6324_v42 = vsel %vm541_vm0, %v15739_v13, 0.0 }
 0xda0   :  { %v6196_v18 = vpop.permute.xlu1 %6195 }
 0xda1   :  { %v15725_v30 = vadd.f32 %v6196_v18, %v17953_v56  ;;  %v6422_v18 = vsel %vm541_vm0, %v6379_v14, 0.0  ;;  %v6321_v56 = vadd.f32 %v6320_v0, %v6319_v34  ;;  %v17956_v14 = vld [vmem:[#allocation42_spill] sm:$0xff]  ;;  %v17957_v0 = vld [vmem:[#allocation43_spill] sm:$0xff]  ;;  %v6426_v34 = vsel %vm541_vm0, %v6381_v7, 0.0 }
 0xda2   :  { %v6423_v51 = vadd.f32 %v6422_v18, %v6421_v9  ;;  %v11847_v9 = vld [vmem:[%s17719_s1 + $0x204] ss:$8 sps:$4 sm:$0xff]  }
 0xda3   :  { %v6380_v45 = vmul.f32 %v15725_v30, %v15725_v30  ;;  %v6322_v36 = vsel %vm541_vm0, %v15725_v30, 0.0  ;;  %6859 = vmatprep.mubr.bf16.mxu0 %v11847_v9 }
 0xda4   :  { %v6200_v48 = vpop.permute.xlu1 %6199  ;;  %v6323_v2 = vadd.f32 %v6322_v36, %v6321_v56 }
 0xda5   :  { %v6424_v27 = vsel %vm541_vm0, %v6380_v45, 0.0  ;;  %v15745_v54 = vadd.f32 %v6200_v48, %v17955_v59 }
 0xda6   :  { %v6425_v61 = vadd.f32 %v6424_v27, %v6423_v51  ;;  %v6325_v59 = vadd.f32 %v6324_v42, %v6323_v2 }
 0xda7   :  { %v6382_v15 = vmul.f32 %v15745_v54, %v15745_v54  ;;  %v6326_v48 = vsel %vm541_vm0, %v15745_v54, 0.0 }
 0xda8   :  { %v6202_v28 = vpop.permute.xlu0 %6201  ;;  %v6427_v36 = vadd.f32 %v6426_v34, %v6425_v61  ;;  %v6327_v27 = vadd.f32 %v6326_v48, %v6325_v59 }
 0xda9   :  { %v15750_v52 = vadd.f32 %v6202_v28, %v17956_v14  ;;  %v6428_v56 = vsel %vm541_vm0, %v6382_v15, 0.0  ;;  %v17958_v14 = vld [vmem:[#allocation44_spill] sm:$0xff] }
 0xdab   :  { %v6383_v18 = vmul.f32 %v15750_v52, %v15750_v52  ;;  %v6328_v28 = vsel %vm541_vm0, %v15750_v52, 0.0 }
 0xdac   :  { %v6206_v51 = vpop.permute.xlu0 %6205  ;;  %v6329_v34 = vadd.f32 %v6328_v28, %v6327_v27 }
 0xdad   :  { %v6430_v7 = vsel %vm541_vm0, %v6383_v18, 0.0  ;;  %v15774_v61 = vadd.f32 %v6206_v51, %v17958_v14  ;;  %v17960_v18 = vld [vmem:[#allocation48_spill] sm:$0xff] }
 0xdaf   :  { %v6385_v48 = vmul.f32 %v15774_v61, %v15774_v61  ;;  %v6332_v14 = vsel %vm541_vm0, %v15774_v61, 0.0 }
 0xdb0   :  { %v6204_v55 = vpop.permute.xlu1 %6203 }
 0xdb1   :  { %v15757_v45 = vadd.f32 %v6204_v55, %v17957_v0  ;;  %v6429_v0 = vadd.f32 %v6428_v56, %v6427_v36 }
 0xdb3   :  { %v6384_v2 = vmul.f32 %v15757_v45, %v15757_v45  ;;  %v6330_v42 = vsel %vm541_vm0, %v15757_v45, 0.0  ;;  %v6431_v46 = vadd.f32 %v6430_v7, %v6429_v0 }
 0xdb4   :  { %v6208_v55 = vpop.permute.xlu1 %6207  ;;  %v6331_v59 = vadd.f32 %v6330_v42, %v6329_v34 }
 0xdb5   :  { %v6432_v17 = vsel %vm541_vm0, %v6384_v2, 0.0  ;;  %v15780_v43 = vadd.f32 %v6208_v55, %v17959_v10  ;;  %v6434_v10 = vsel %vm541_vm0, %v6385_v48, 0.0  ;;  %v17961_v55 = vld [vmem:[#allocation49_spill] sm:$0xff] }
 0xdb6   :  { %v6433_v51 = vadd.f32 %v6432_v17, %v6431_v46  ;;  %v6333_v56 = vadd.f32 %v6332_v14, %v6331_v59 }
 0xdb7   :  { %v6386_v36 = vmul.f32 %v15780_v43, %v15780_v43  ;;  %v6334_v2 = vsel %vm541_vm0, %v15780_v43, 0.0 }
 0xdb8   :  { %v6210_v15 = vpop.permute.xlu0 %6209  ;;  %v6435_v46 = vadd.f32 %v6434_v10, %v6433_v51 }
 0xdb9   :  { %v15785_v9 = vadd.f32 %v6210_v15, %v17960_v18  ;;  %v6436_v42 = vsel %vm541_vm0, %v6386_v36, 0.0  ;;  %v6335_v15 = vadd.f32 %v6334_v2, %v6333_v56  ;;  %v17962_v18 = vld [vmem:[#allocation52_spill] sm:$0xff] }
 0xdba   :  { %v6437_v51 = vadd.f32 %v6436_v42, %v6435_v46  ;;  %v17964_v2 = vld [vmem:[#allocation56_spill] sm:$0xff] }
 0xdbb   :  { %v6387_v27 = vmul.f32 %v15785_v9, %v15785_v9  ;;  %v6336_v0 = vsel %vm541_vm0, %v15785_v9, 0.0 }
 0xdbc   :  { %v6214_v17 = vpop.permute.xlu0 %6213  ;;  %v6337_v10 = vadd.f32 %v6336_v0, %v6335_v15 }
 0xdbd   :  { %v6438_v48 = vsel %vm541_vm0, %v6387_v27, 0.0  ;;  %v15806_v14 = vadd.f32 %v6214_v17, %v17962_v18 }
 0xdbe   :  { %v6439_v37 = vadd.f32 %v6438_v48, %v6437_v51 }
 0xdbf   :  { %v6389_v56 = vmul.f32 %v15806_v14, %v15806_v14  ;;  %v6340_v18 = vsel %vm541_vm0, %v15806_v14, 0.0 }
 0xdc0   :  { %v6212_v28 = vpop.permute.xlu1 %6211 }
 0xdc1   :  { %v15797_v7 = vadd.f32 %v6212_v28, %v17961_v55  ;;  %v17963_v55 = vld [vmem:[#allocation53_spill] sm:$0xff]  ;;  %v6442_v0 = vsel %vm541_vm0, %v6389_v56, 0.0 }
 0xdc3   :  { %v6388_v34 = vmul.f32 %v15797_v7, %v15797_v7  ;;  %v6338_v28 = vsel %vm541_vm0, %v15797_v7, 0.0 }
 0xdc4   :  { %v6216_v59 = vpop.permute.xlu1 %6215  ;;  %v6339_v29 = vadd.f32 %v6338_v28, %v6337_v10 }
 0xdc5   :  { %v6440_v36 = vsel %vm541_vm0, %v6388_v34, 0.0  ;;  %v15812_v5 = vadd.f32 %v6216_v59, %v17963_v55  ;;  %v17966_v55 = vld [vmem:[#allocation57_spill] sm:$0xff] }
 0xdc6   :  { %v6441_v17 = vadd.f32 %v6440_v36, %v6439_v37  ;;  %v6341_v42 = vadd.f32 %v6340_v18, %v6339_v29  ;;  %v17965_v29 = vld [vmem:[#allocation60_spill] sm:$0xff] }
 0xdc7   :  { %v6390_v46 = vmul.f32 %v15812_v5, %v15812_v5  ;;  %v6342_v34 = vsel %vm541_vm0, %v15812_v5, 0.0 }
 0xdc8   :  { %v6218_v47 = vpop.permute.xlu0 %6217  ;;  %v6443_v59 = vadd.f32 %v6442_v0, %v6441_v17  ;;  %v6343_v28 = vadd.f32 %v6342_v34, %v6341_v42 }
 0xdc9   :  { %v15817_v27 = vadd.f32 %v6218_v47, %v17964_v2  ;;  %v6444_v47 = vsel %vm541_vm0, %v6390_v46, 0.0 }
 0xdca   :  { %v6445_v2 = vadd.f32 %v6444_v47, %v6443_v59 }
 0xdcb   :  { %v6391_v15 = vmul.f32 %v15817_v27, %v15817_v27  ;;  %v6344_v37 = vsel %vm541_vm0, %v15817_v27, 0.0 }
 0xdcc   :  { %v6222_v48 = vpop.permute.xlu0 %6221  ;;  %v6345_v18 = vadd.f32 %v6344_v37, %v6343_v28 }
 0xdcd   :  { %v6446_v10 = vsel %vm541_vm0, %v6391_v15, 0.0  ;;  %v15833_v36 = vadd.f32 %v6222_v48, %v17965_v29  ;;  %v17967_v48 = vld [vmem:[#allocation61_spill] sm:$0xff] }
 0xdce   :  { %v6447_v0 = vadd.f32 %v6446_v10, %v6445_v2  ;;  %v17968_v2 = vld [vmem:[#allocation64_spill] sm:$0xff] }
 0xdcf   :  { %v6393_v34 = vmul.f32 %v15833_v36, %v15833_v36  ;;  %v6348_v59 = vsel %vm541_vm0, %v15833_v36, 0.0 }
 0xdd0   :  { %v6220_v51 = vpop.permute.xlu1 %6219 }
 0xdd1   :  { %v15836_v56 = vadd.f32 %v6220_v51, %v17966_v55  ;;  %v6450_v10 = vsel %vm541_vm0, %v6393_v34, 0.0 }
 0xdd3   :  { %v6346_v17 = vsel %vm541_vm0, %v15836_v56, 0.0  ;;  %v6392_v46 = vmul.f32 %v15836_v56, %v15836_v56 }
 0xdd4   :  { %v6347_v22 = vadd.f32 %v6346_v17, %v6345_v18  ;;  %v6224_v42 = vpop.permute.xlu1 %6223 }
 0xdd5   :  { %v6448_v15 = vsel %vm541_vm0, %v6392_v46, 0.0  ;;  %v15846_v29 = vadd.f32 %v6224_v42, %v17967_v48 }
 0xdd6   :  { %v6449_v51 = vadd.f32 %v6448_v15, %v6447_v0  ;;  %v6349_v37 = vadd.f32 %v6348_v59, %v6347_v22  ;;  %v17969_v59 = vld [vmem:[#allocation65_spill] sm:$0xff] }
 0xdd7   :  { %v6394_v47 = vmul.f32 %v15846_v29, %v15846_v29  ;;  %v6350_v55 = vsel %vm541_vm0, %v15846_v29, 0.0 }
 0xdd8   :  { %v6226_v28 = vpop.permute.xlu0 %6225  ;;  %v6451_v17 = vadd.f32 %v6450_v10, %v6449_v51  ;;  %v6351_v15 = vadd.f32 %v6350_v55, %v6349_v37 }
 0xdd9   :  { %v15856_v18 = vadd.f32 %v6226_v28, %v17968_v2  ;;  %v6452_v46 = vsel %vm541_vm0, %v6394_v47, 0.0 }
 0xdda   :  { %v6453_v51 = vadd.f32 %v6452_v46, %v6451_v17 }
 0xddb   :  { %v6352_v0 = vsel %vm541_vm0, %v15856_v18, 0.0  ;;  %v6395_v42 = vmul.f32 %v15856_v18, %v15856_v18 }
 0xddc   :  { %v6228_v22 = vpop.permute.xlu1 %6227  ;;  %v6230_v48 = vpop.permute.xlu0 %6229  ;;  %v6353_v10 = vadd.f32 %v6352_v0, %v6351_v15 }
 0xddd   :  { %v6454_v34 = vsel %vm541_vm0, %v6395_v42, 0.0  ;;  %v15865_v3 = vadd.f32 %v6228_v22, %v17969_v59  ;;  %v15868_v28 = vadd.f32 %v6230_v48, %v17970_v33  ;;  %v17971_v48 = vld [vmem:[#allocation69_spill] sm:$0xff] }
 0xdde   :  { %v6455_v55 = vadd.f32 %v6454_v34, %v6453_v51 }
 0xddf   :  { %v6354_v47 = vsel %vm541_vm0, %v15865_v3, 0.0  ;;  %v6396_v2 = vmul.f32 %v15865_v3, %v15865_v3  ;;  %v6397_v37 = vmul.f32 %v15868_v28, %v15868_v28  ;;  %v6356_v33 = vsel %vm541_vm0, %v15868_v28, 0.0 }
 0xde0   :  { %v6355_v16 = vadd.f32 %v6354_v47, %v6353_v10  ;;  %v6232_v42 = vpop.permute.xlu1 %6231 }
 0xde1   :  { %v6456_v22 = vsel %vm541_vm0, %v6396_v2, 0.0  ;;  %v15880_v17 = vadd.f32 %v6232_v42, %v17971_v48  ;;  %v6458_v15 = vsel %vm541_vm0, %v6397_v37, 0.0 }
 0xde2   :  { %v6457_v46 = vadd.f32 %v6456_v22, %v6455_v55  ;;  %v6357_v0 = vadd.f32 %v6356_v33, %v6355_v16 }
 0xde3   :  { %v6358_v59 = vsel %vm541_vm0, %v15880_v17, 0.0  ;;  %v6398_v34 = vmul.f32 %v15880_v17, %v15880_v17 }
 0xde4   :  { %v6459_v51 = vadd.f32 %v6458_v15, %v6457_v46  ;;  %v6359_v10 = vadd.f32 %v6358_v59, %v6357_v0 }
 0xde5   :  { %v6460_v47 = vsel %vm541_vm0, %v6398_v34, 0.0 }
 0xde6   :  { %v6360_v2 = vrot.slane %v6359_v10, 4  ;;  %v6461_v1 = vadd.f32 %v6460_v47, %v6459_v51 }
 0xde8   :  { %v6361_v32 = vadd.f32 %v6360_v2, %v6359_v10  ;;  %v6462_v12 = vrot.slane %v6461_v1, 4 }
 0xdea   :  { %v6362_v42 = vrot.slane %v6361_v32, 2  ;;  %v6463_v48 = vadd.f32 %v6462_v12, %v6461_v1 }
 0xdec   :  { %v6363_v55 = vadd.f32 %v6362_v42, %v6361_v32  ;;  %v6464_v16 = vrot.slane %v6463_v48, 2 }
 0xdee   :  { %v6364_v22 = vrot.slane %v6363_v55, 1  ;;  %v6465_v37 = vadd.f32 %v6464_v16, %v6463_v48 }
 0xdf0   :  { %v6365_v33 = vadd.f32 %v6364_v22, %v6363_v55  ;;  %v6466_v53 = vrot.slane %v6465_v37, 1 }
 0xdf2   :  { %v15888_v23 = vmul.f32 0.00390625, %v6365_v33  ;;  %v6467_v19 = vadd.f32 %v6466_v53, %v6465_v37 }
 0xdf4   :  { %v6468_v44 = vmul.f32 0.00390625, %v6467_v19  ;;  %v6469_v46 = vmul.f32 %v15888_v23, %v15888_v23  ;;  %v6503_v12 = vsub.f32 %v15880_v17, %v15888_v23  ;;  %v6472_v1 = vsub.f32 %v15630_v24, %v15888_v23 }
 0xdf5   :  { %v6473_v32 = vsub.f32 %v15633_v31, %v15888_v23  ;;  %v6474_v19 = vsub.f32 %v15640_v4, %v15888_v23  ;;  %v6476_v53 = vsub.f32 %v15656_v11, %v15888_v23  ;;  %v6477_v51 = vsub.f32 %v15662_v21, %v15888_v23 }
 0xdf6   :  { %v6470_v0 = vsub.f32 %v6468_v44, %v6469_v46  ;;  %v6475_v44 = vsub.f32 %v15651_v63, %v15888_v23  ;;  %v6478_v10 = vsub.f32 %v15675_v8, %v15888_v23  ;;  %v6479_v24 = vsub.f32 %v15681_v40, %v15888_v23  ;;  %v15925_v8 = vld [vmem:[%s17726_s8 + $0x1] ss:$0 sm:$0xff] }
 0xdf7   :  { %v6480_v31 = vsub.f32 %v15686_v25, %v15888_v23  ;;  %v6481_v4 = vsub.f32 %v15693_v58, %v15888_v23  ;;  %v6482_v63 = vsub.f32 %v15707_v20, %v15888_v23  ;;  %v6483_v11 = vsub.f32 %v15713_v6, %v15888_v23 }
 0xdf8   :  { %v6471_v15 = vmax.f32 %v6470_v0, 0.0  ;;  %v6484_v40 = vsub.f32 %v15718_v49, %v15888_v23  ;;  %v6488_v2 = vsub.f32 %v15750_v52, %v15888_v23  ;;  %v6489_v42 = vsub.f32 %v15757_v45, %v15888_v23 }
 0xdf9   :  { %v6490_v48 = vsub.f32 %v15774_v61, %v15888_v23  ;;  %v6491_v55 = vsub.f32 %v15780_v43, %v15888_v23  ;;  %v6492_v16 = vsub.f32 %v15785_v9, %v15888_v23  ;;  %v6493_v22 = vsub.f32 %v15797_v7, %v15888_v23 }
 0xdfa   :  { %v6504_v59 = vadd.f32 1e-05, %v6471_v15  ;;  %v6494_v37 = vsub.f32 %v15806_v14, %v15888_v23  ;;  %v6495_v52 = vsub.f32 %v15812_v5, %v15888_v23  ;;  %v6496_v45 = vsub.f32 %v15817_v27, %v15888_v23 }
 0xdfb   :  { %v6497_v61 = vsub.f32 %v15836_v56, %v15888_v23  ;;  %v6498_v43 = vsub.f32 %v15833_v36, %v15888_v23  ;;  %v15962_v36 = vld [vmem:[%s17727_s9 + $0x1] ss:$0 sm:$0xff]  ;;  %v6499_v56 = vsub.f32 %v15846_v29, %v15888_v23 }
 0xdfc   :  { %12289 = vrsqrt.f32 %v6504_v59 }
 0xe06   :  { %v15892_v34 = vpop.eup %12289 }
 0xe07   :  { %v6506_v21 = vmul.f32 %v15892_v34, %v6472_v1  ;;  %v6507_v47 = vmul.f32 %v15892_v34, %v6473_v32  ;;  %v6522_v9 = vmul.f32 %v15892_v34, %v6488_v2  ;;  %v6523_v33 = vmul.f32 %v15892_v34, %v6489_v42  ;;  %v11881_v32 = vld [vmem:[%s17721_s3 + $0x50] sm:$0xff]  }
 0xe08   :  { %v6508_v46 = vmul.f32 %v15892_v34, %v6474_v19  ;;  %v6509_v5 = vmul.f32 %v15892_v34, %v6475_v44  ;;  %v6524_v27 = vmul.f32 %v15892_v34, %v6490_v48  ;;  %v6525_v0 = vmul.f32 %v15892_v34, %v6491_v55  ;;  %11318 = vmatprep.subr.bf16.mxu1 %v11881_v32 }
 0xe09   :  { %v6546_v7 = vmul.f32 %v15925_v8, %v6506_v21  ;;  %v6547_v14 = vmul.f32 %v15925_v8, %v6507_v47  ;;  %v6510_v15 = vmul.f32 %v15892_v34, %v6476_v53  ;;  %v6511_v59 = vmul.f32 %v15892_v34, %v6477_v51  ;;  %11319 = vmatpush3.bf16.msra.mxu1 %v11881_v32 }
 0xe0a   :  { %v6526_v1 = vmul.f32 %v15892_v34, %v6492_v16  ;;  %v6512_v19 = vmul.f32 %v15892_v34, %v6478_v10  ;;  %v6513_v44 = vmul.f32 %v15892_v34, %v6479_v24  ;;  %v6527_v21 = vmul.f32 %v15892_v34, %v6493_v22 }
 0xe0b   :  { %v6528_v47 = vmul.f32 %v15892_v34, %v6494_v37  ;;  %v6562_v29 = vmul.f32 %v15925_v8, %v6522_v9  ;;  %v6563_v53 = vmul.f32 %v15925_v8, %v6523_v33  ;;  %v15979_v51 = vadd.f32 %v15962_v36, %v6546_v7 }
 0xe0c   :  { %v15982_v2 = vadd.f32 %v15962_v36, %v6547_v14  ;;  %v6548_v42 = vmul.f32 %v15925_v8, %v6508_v46  ;;  %v6549_v10 = vmul.f32 %v15925_v8, %v6509_v5  ;;  %v6564_v24 = vmul.f32 %v15925_v8, %v6524_v27 }
 0xe0d   :  { %17972 = vst [vmem:[#allocation40_spill] sm:$0xff] %v15979_v51  ;;  %v6565_v48 = vmul.f32 %v15925_v8, %v6525_v0  ;;  %v6529_v55 = vmul.f32 %v15892_v34, %v6495_v52  ;;  %v15990_v16 = vadd.f32 %v15962_v36, %v6562_v29  ;;  %v15993_v22 = vadd.f32 %v15962_v36, %v6563_v53 }
 0xe0e   :  { %17973 = vst [vmem:[#allocation41_spill] sm:$0xff] %v15982_v2  ;;  %v6566_v37 = vmul.f32 %v15925_v8, %v6526_v1  ;;  %v15998_v9 = vpack.c.bf16 %v15982_v2, %v15979_v51  ;;  %v16001_v33 = vadd.f32 %v15962_v36, %v6564_v24  ;;  %v6567_v52 = vmul.f32 %v15925_v8, %v6527_v21 }
 0xe0f   :  { %17974 = vst [vmem:[#allocation46_spill] sm:$0xff] %v15990_v16  ;;  %17975 = vst [vmem:[#allocation47_spill] sm:$0xff] %v15993_v22  ;;  %v16004_v7 = vadd.f32 %v15962_v36, %v6565_v48  ;;  %v6530_v14 = vmul.f32 %v15892_v34, %v6496_v45  ;;  %v6531_v46 = vmul.f32 %v15892_v34, %v6497_v61 }
 0xe10   :  { %17976 = vst [vmem:[#allocation50_spill] sm:$0xff] %v16001_v33  ;;  %v6550_v5 = vmul.f32 %v15925_v8, %v6510_v15  ;;  %v16012_v27 = vpack.c.bf16 %v15993_v22, %v15990_v16  ;;  %v6551_v0 = vmul.f32 %v15925_v8, %v6511_v59  ;;  %v16016_v1 = vadd.f32 %v15962_v36, %v6548_v42 }
 0xe11   :  { %17977 = vst [vmem:[#allocation51_spill] sm:$0xff] %v16004_v7  ;;  %v16019_v32 = vadd.f32 %v15962_v36, %v6549_v10  ;;  %v16022_v21 = vadd.f32 %v15962_v36, %v6566_v37  ;;  %v16027_v45 = vpack.c.bf16 %v16004_v7, %v16001_v33  ;;  %v16030_v61 = vadd.f32 %v15962_v36, %v6567_v52 }
 0xe12   :  { %17978 = vst [vmem:[#allocation54_spill] sm:$0xff] %v16016_v1  ;;  %10756 = vmatprep.subr.bf16.mxu0 %v16012_v27  ;;  %v6568_v15 = vmul.f32 %v15925_v8, %v6528_v47  ;;  %v6569_v59 = vmul.f32 %v15925_v8, %v6529_v55  ;;  %v6500_v29 = vsub.f32 %v15856_v18, %v15888_v23 }
 0xe13   :  { %17979 = vst [vmem:[#allocation55_spill] sm:$0xff] %v16019_v32  ;;  %17980 = vst [vmem:[#allocation58_spill] sm:$0xff] %v16022_v21  ;;  %v6501_v53 = vsub.f32 %v15865_v3, %v15888_v23  ;;  %v6514_v42 = vmul.f32 %v15892_v34, %v6480_v31  ;;  %v6515_v10 = vmul.f32 %v15892_v34, %v6481_v4  ;;  %10757 = vmatpush3.bf16.msra.mxu0 %v15998_v9 }
 0xe14   :  { %17981 = vst [vmem:[#allocation59_spill] sm:$0xff] %v16030_v61  ;;  %v6532_v47 = vmul.f32 %v15892_v34, %v6498_v43  ;;  %v6533_v24 = vmul.f32 %v15892_v34, %v6499_v56  ;;  %v6552_v18 = vmul.f32 %v15925_v8, %v6512_v19  ;;  %v6553_v3 = vmul.f32 %v15925_v8, %v6513_v44 }
 0xe15   :  { %10758 = vmatprep.subr.bf16.mxu0 %v16027_v45  ;;  %v16054_v25 = vpack.c.bf16 %v16019_v32, %v16016_v1  ;;  %v16057_v58 = vadd.f32 %v15962_v36, %v6550_v5  ;;  %v16060_v31 = vadd.f32 %v15962_v36, %v6551_v0  ;;  %v6570_v4 = vmul.f32 %v15925_v8, %v6530_v14 }
 0xe16   :  { %v16065_v43 = vpack.c.bf16 %v16030_v61, %v16022_v21  ;;  %v16068_v56 = vadd.f32 %v15962_v36, %v6568_v15  ;;  %v16071_v19 = vadd.f32 %v15962_v36, %v6569_v59  ;;  %v6571_v44 = vmul.f32 %v15925_v8, %v6531_v46 }
 0xe17   :  { %17982 = vst [vmem:[#allocation62_spill] sm:$0xff] %v16057_v58  ;;  %17983 = vst [vmem:[#allocation63_spill] sm:$0xff] %v16060_v31  ;;  %v6485_v48 = vsub.f32 %v15725_v30, %v15888_v23  ;;  %v6502_v55 = vsub.f32 %v15868_v28, %v15888_v23  ;;  %v6516_v37 = vmul.f32 %v15892_v34, %v6482_v63  ;;  %10759 = vmatpush3.bf16.msra.mxu0 %v16054_v25 }
 0xe18   :  { %17984 = vst [vmem:[#allocation66_spill] sm:$0xff] %v16068_v56  ;;  %17985 = vst [vmem:[#allocation67_spill] sm:$0xff] %v16071_v19  ;;  %v6517_v52 = vmul.f32 %v15892_v34, %v6483_v11  ;;  %v6534_v14 = vmul.f32 %v15892_v34, %v6500_v29  ;;  %v6535_v46 = vmul.f32 %v15892_v34, %v6501_v53  ;;  %10760 = vmatprep.subr.bf16.mxu0 %v16065_v43 }
 0xe19   :  { %v6554_v30 = vmul.f32 %v15925_v8, %v6514_v42  ;;  %v6555_v28 = vmul.f32 %v15925_v8, %v6515_v10  ;;  %v16094_v20 = vpack.c.bf16 %v16060_v31, %v16057_v58  ;;  %v16097_v6 = vadd.f32 %v15962_v36, %v6552_v18 }
 0xe1a   :  { %v16100_v63 = vadd.f32 %v15962_v36, %v6553_v3  ;;  %v16103_v11 = vadd.f32 %v15962_v36, %v6570_v4  ;;  %v16107_v5 = vpack.c.bf16 %v16071_v19, %v16068_v56  ;;  %v16110_v0 = vadd.f32 %v15962_v36, %v6571_v44  ;;  %v11896_v19 = vld [vmem:[%s17721_s3 + $0x48] sm:$0xff]  }
 0xe1b   :  { %17986 = vst [vmem:[#allocation70_spill] sm:$0xff] %v16097_v6  ;;  %v6572_v15 = vmul.f32 %v15925_v8, %v6532_v47  ;;  %v6573_v59 = vmul.f32 %v15925_v8, %v6533_v24  ;;  %v6537_v29 = vmul.f32 %v15892_v34, %v6503_v12  ;;  %v6486_v53 = vsub.f32 %v15739_v13, %v15888_v23 }
 0xe1c   :  { %17987 = vst [vmem:[#allocation71_spill] sm:$0xff] %v16100_v63  ;;  %17988 = vst [vmem:[#allocation42_spill] sm:$0xff] %v16103_v11  ;;  %v6487_v42 = vsub.f32 %v15745_v54, %v15888_v23  ;;  %v6518_v10 = vmul.f32 %v15892_v34, %v6484_v40  ;;  %10761 = vmatpush3.bf16.msra.mxu0 %v16094_v20  ;;  %v6519_v47 = vmul.f32 %v15892_v34, %v6485_v48 }
 0xe1d   :  { %17989 = vst [vmem:[#allocation43_spill] sm:$0xff] %v16110_v0  ;;  %v6536_v24 = vmul.f32 %v15892_v34, %v6502_v55  ;;  %v6556_v17 = vmul.f32 %v15925_v8, %v6516_v37  ;;  %v6557_v12 = vmul.f32 %v15925_v8, %v6517_v52  ;;  %10762 = vmatprep.subr.bf16.mxu0 %v16107_v5 }
 0xe1e   :  { %v16134_v54 = vpack.c.bf16 %v16100_v63, %v16097_v6  ;;  %v16137_v23 = vadd.f32 %v15962_v36, %v6554_v30  ;;  %v16140_v49 = vadd.f32 %v15962_v36, %v6555_v28  ;;  %v6574_v13 = vmul.f32 %v15925_v8, %v6534_v14 }
 0xe1f   :  { %v16145_v40 = vpack.c.bf16 %v16110_v0, %v16103_v11  ;;  %v16148_v18 = vadd.f32 %v15962_v36, %v6572_v15  ;;  %v16151_v3 = vadd.f32 %v15962_v36, %v6573_v59  ;;  %v6575_v4 = vmul.f32 %v15925_v8, %v6535_v46 }
 0xe20   :  { %17990 = vst [vmem:[#allocation44_spill] sm:$0xff] %v16137_v23  ;;  %17991 = vst [vmem:[#allocation45_spill] sm:$0xff] %v16140_v49  ;;  %10763 = vmatpush3.bf16.msra.mxu0 %v16134_v54  ;;  %v6520_v44 = vmul.f32 %v15892_v34, %v6486_v53  ;;  %v6521_v48 = vmul.f32 %v15892_v34, %v6487_v42  ;;  %v6558_v55 = vmul.f32 %v15925_v8, %v6518_v10 }
 0xe21   :  { %17992 = vst [vmem:[#allocation48_spill] sm:$0xff] %v16148_v18  ;;  %17993 = vst [vmem:[#allocation49_spill] sm:$0xff] %v16151_v3  ;;  %v6559_v37 = vmul.f32 %v15925_v8, %v6519_v47  ;;  %10764 = vmatprep.subr.bf16.mxu0 %v16145_v40  ;;  %v16162_v52 = vpack.c.bf16 %v16140_v49, %v16137_v23  ;;  %v16165_v14 = vadd.f32 %v15962_v36, %v6556_v17 }
 0xe22   :  { %v16168_v46 = vadd.f32 %v15962_v36, %v6557_v12  ;;  %v16171_v30 = vadd.f32 %v15962_v36, %v6574_v13  ;;  %v16175_v34 = vpack.c.bf16 %v16151_v3, %v16148_v18  ;;  %v16178_v28 = vadd.f32 %v15962_v36, %v6575_v4 }
 0xe23   :  { %17994 = vst [vmem:[#allocation52_spill] sm:$0xff] %v16165_v14  ;;  %v6576_v15 = vmul.f32 %v15925_v8, %v6536_v24  ;;  %v6577_v59 = vmul.f32 %v15925_v8, %v6537_v29  ;;  %v6560_v53 = vmul.f32 %v15925_v8, %v6520_v44  ;;  %v6561_v42 = vmul.f32 %v15925_v8, %v6521_v48  ;;  %v11894_v48 = vld [vmem:[%s17721_s3 + $0x58] sm:$0xff]  }
 0xe24   :  { %17995 = vst [vmem:[#allocation53_spill] sm:$0xff] %v16168_v46  ;;  %17996 = vst [vmem:[#allocation56_spill] sm:$0xff] %v16171_v30  ;;  %10765 = vmatpush3.bf16.msra.mxu0 %v16162_v52  ;;  %v16188_v10 = vpack.c.bf16 %v16168_v46, %v16165_v14  ;;  %v16191_v47 = vadd.f32 %v15962_v36, %v6558_v55  ;;  %v16194_v17 = vadd.f32 %v15962_v36, %v6559_v37  ;;  %v11850_v37 = vld [vmem:[%s17719_s1 + $0x214] ss:$8 sps:$4 sm:$0xff]  }
 0xe25   :  { %17997 = vst [vmem:[#allocation60_spill] sm:$0xff] %v16178_v28  ;;  %10766 = vmatprep.subr.bf16.mxu0 %v16175_v34  ;;  %v16198_v29 = vpack.c.bf16 %v16178_v28, %v16171_v30  ;;  %v16201_v24 = vadd.f32 %v15962_v36, %v6576_v15  ;;  %v16204_v12 = vadd.f32 %v15962_v36, %v6577_v59  ;;  %v11848_v15 = vld [vmem:[%s17719_s1 + $0x210] ss:$8 sps:$4 sm:$0xff]   ;;  %v11853_v59 = vld [vmem:[%s17719_s1 + $0x224] ss:$8 sps:$4 sm:$0xff]  }
 0xe26   :  { %17998 = vst [vmem:[#allocation57_spill] sm:$0xff] %v16191_v47  ;;  %17999 = vst [vmem:[#allocation61_spill] sm:$0xff] %v16194_v17  ;;  %v16210_v8 = vpack.c.bf16 %v16194_v17, %v16191_v47  ;;  %v16213_v13 = vadd.f32 %v15962_v36, %v6560_v53  ;;  %v16216_v4 = vadd.f32 %v15962_v36, %v6561_v42  ;;  %11320 = vmatprep.subr.bf16.mxu1 %v11894_v48  ;;  %v11845_v36 = vld [vmem:[%s17719_s1 + $0x200] ss:$8 sps:$4 sm:$0xff]   ;;  %v11856_v42 = vld [vmem:[%s17719_s1 + $0x234] ss:$8 sps:$4 sm:$0xff]  }
 0xe27   :  { %18000 = vst [vmem:[#allocation64_spill] sm:$0xff] %v16201_v24  ;;  %18001 = vst [vmem:[#allocation65_spill] sm:$0xff] %v16204_v12  ;;  %v16220_v44 = vpack.c.bf16 %v16204_v12, %v16201_v24  ;;  %11321 = vmatpush3.bf16.msra.mxu1 %v11894_v48  ;;  %v11851_v53 = vld [vmem:[%s17719_s1 + $0x220] ss:$8 sps:$4 sm:$0xff]   ;;  %v11854_v48 = vld [vmem:[%s17719_s1 + $0x230] ss:$8 sps:$4 sm:$0xff]  }
 0xe28   :  { %10767 = vmatpush3.bf16.msra.mxu0 %v16188_v10  ;;  %18002 = vst [vmem:[#allocation68_spill] sm:$0xff] %v16213_v13  ;;  %18003 = vst [vmem:[#allocation69_spill] sm:$0xff] %v16216_v4  ;;  %v16229_v55 = vpack.c.bf16 %v16216_v4, %v16213_v13 }
 0xe29   :  { %10768 = vmatprep.subr.bf16.mxu0 %v16198_v29 }
 0xe2c   :  { %10769 = vmatpush3.bf16.msra.mxu0 %v16210_v8 }
 0xe2d   :  { %10770 = vmatprep.subr.bf16.mxu0 %v16220_v44 }
 0xe30   :  { %10771 = vmatpush3.bf16.msra.mxu0 %v16229_v55 }
 0xe33   :  { %6860 = vmatmul.mubr.bf16.vlgmr.msra.gmra.mrb[12].mxu0 %v11845_v36  ;;  %v11859_v36 = vld [vmem:[%s17719_s1 + $0x244] ss:$8 sps:$4 sm:$0xff]  }
 0xe34   :  { %6867 = vmatprep.mubr.bf16.mxu0 %v11850_v37  ;;  %v11857_v37 = vld [vmem:[%s17719_s1 + $0x240] ss:$8 sps:$4 sm:$0xff]  }
 0xe3b   :  { %6868 = vmatmul.mubr.bf16.gmra.mrb[16].mxu0 %v11848_v15  ;;  %v11862_v15 = vld [vmem:[%s17719_s1 + $0x254] ss:$8 sps:$4 sm:$0xff]  }
 0xe3c   :  { %6875 = vmatprep.mubr.bf16.mxu0 %v11853_v59  ;;  %v11860_v59 = vld [vmem:[%s17719_s1 + $0x250] ss:$8 sps:$4 sm:$0xff]  }
 0xe43   :  { %6876 = vmatmul.mubr.bf16.gmra.mrb[20].mxu0 %v11851_v53  ;;  %v11865_v53 = vld [vmem:[%s17719_s1 + $0x264] ss:$8 sps:$4 sm:$0xff]  }
 0xe44   :  { %6883 = vmatprep.mubr.bf16.mxu0 %v11856_v42  ;;  %v11863_v42 = vld [vmem:[%s17719_s1 + $0x260] ss:$8 sps:$4 sm:$0xff]  }
 0xe4b   :  { %6884 = vmatmul.mubr.bf16.gmra.mrb[24].mxu0 %v11854_v48  ;;  %v11868_v48 = vld [vmem:[%s17719_s1 + $0x274] ss:$8 sps:$4 sm:$0xff]  }
 0xe4c   :  { %6891 = vmatprep.mubr.bf16.mxu0 %v11859_v36  ;;  %v11866_v36 = vld [vmem:[%s17719_s1 + $0x270] ss:$8 sps:$4 sm:$0xff]  }
 0xe53   :  { %6892 = vmatmul.mubr.bf16.gmra.mrb[28].mxu0 %v11857_v37  ;;  %v11871_v37 = vld [vmem:[%s17719_s1 + $0x284] ss:$8 sps:$4 sm:$0xff]  }
 0xe54   :  { %6899 = vmatprep.mubr.bf16.mxu0 %v11862_v15  ;;  %v11869_v15 = vld [vmem:[%s17719_s1 + $0x280] ss:$8 sps:$4 sm:$0xff]  }
 0xe5b   :  { %6900 = vmatmul.mubr.bf16.gmra.mrb[32].mxu0 %v11860_v59  ;;  %v11874_v59 = vld [vmem:[%s17719_s1 + $0x294] ss:$8 sps:$4 sm:$0xff]  }
 0xe5c   :  { %6907 = vmatprep.mubr.bf16.mxu0 %v11865_v53  ;;  %v11872_v53 = vld [vmem:[%s17719_s1 + $0x290] ss:$8 sps:$4 sm:$0xff]  }
 0xe63   :  { %6908 = vmatmul.mubr.bf16.gmra.mrb[36].mxu0 %v11863_v42  ;;  %v11877_v42 = vld [vmem:[%s17719_s1 + $0x2a4] ss:$8 sps:$4 sm:$0xff]  }
 0xe64   :  { %6915 = vmatprep.mubr.bf16.mxu0 %v11868_v48  ;;  %v11875_v48 = vld [vmem:[%s17719_s1 + $0x2a0] ss:$8 sps:$4 sm:$0xff]  }
 0xe6b   :  { %6916 = vmatmul.mubr.bf16.gmra.mrb[40].mxu0 %v11866_v36  ;;  %v11880_v36 = vld [vmem:[%s17719_s1 + $0x2b4] ss:$8 sps:$4 sm:$0xff]  }
 0xe6c   :  { %6923 = vmatprep.mubr.bf16.mxu0 %v11871_v37  ;;  %v11878_v37 = vld [vmem:[%s17719_s1 + $0x2b0] ss:$8 sps:$4 sm:$0xff]  }
 0xe73   :  { %6924 = vmatmul.mubr.bf16.gmra.mrb[44].mxu0 %v11869_v15  ;;  %v11884_v15 = vld [vmem:[%s17719_s1 + $0x2c4] ss:$8 sps:$4 sm:$0xff]  }
 0xe74   :  { %6931 = vmatprep.mubr.bf16.mxu0 %v11874_v59  ;;  %v11882_v59 = vld [vmem:[%s17719_s1 + $0x2c0] ss:$8 sps:$4 sm:$0xff]  }
 0xe7b   :  { %6932 = vmatmul.mubr.bf16.gmra.mrb[48].mxu0 %v11872_v53  ;;  %v11887_v53 = vld [vmem:[%s17719_s1 + $0x2d4] ss:$8 sps:$4 sm:$0xff]  }
 0xe7c   :  { %6939 = vmatprep.mubr.bf16.mxu0 %v11877_v42  ;;  %v11885_v42 = vld [vmem:[%s17719_s1 + $0x2d0] ss:$8 sps:$4 sm:$0xff]  }
 0xe83   :  { %6940 = vmatmul.mubr.bf16.gmra.mrb[52].mxu0 %v11875_v48  ;;  %v11890_v48 = vld [vmem:[%s17719_s1 + $0x2e4] ss:$8 sps:$4 sm:$0xff]  }
 0xe84   :  { %6947 = vmatprep.mubr.bf16.mxu0 %v11880_v36  ;;  %v11888_v36 = vld [vmem:[%s17719_s1 + $0x2e0] ss:$8 sps:$4 sm:$0xff]  }
 0xe8b   :  { %6948 = vmatmul.mubr.bf16.gmra.mrb[56].mxu0 %v11878_v37  ;;  %v11893_v37 = vld [vmem:[%s17719_s1 + $0x2f4] ss:$8 sps:$4 sm:$0xff]  }
 0xe8c   :  { %6955 = vmatprep.mubr.bf16.mxu0 %v11884_v15  ;;  %v11891_v15 = vld [vmem:[%s17719_s1 + $0x2f0] ss:$8 sps:$4 sm:$0xff]  }
 0xe93   :  { %6956 = vmatmul.mubr.bf16.gmra.mrb[60].mxu0 %v11882_v59 }
 0xe94   :  { %6963 = vmatprep.mubr.bf16.mxu0 %v11887_v53  ;;  %v11895_v53 = vld [vmem:[%s17721_s3 + $0x40] sm:$0xff]  }
 0xe95   :  { %11354 = vmatprep.subr.bf16.mxu1 %v11895_v53 }
 0xe9b   :  { %6964 = vmatmul.mubr.bf16.gmra.mrb[64].mxu0 %v11885_v42 }
 0xe9c   :  { %6971 = vmatprep.mubr.bf16.mxu0 %v11890_v48 }
 0xea3   :  { %6972 = vmatmul.mubr.bf16.gmra.mrb[68].mxu0 %v11888_v36 }
 0xea4   :  { %6979 = vmatprep.mubr.bf16.mxu0 %v11893_v37 }
 0xeab   :  { %6980 = vmatmul.mubr.bf16.gmra.mrb[72].mxu0 %v11891_v15 }
 0xf06   :  { %v10772_v59 = vpop.f32.mrb[12].mxu0 }
 0xf07   :  { %v10773_v42 = vpop.f32.mrb[13].mxu0 }
 0xf08   :  { %v10774_v48 = vadd.f32 %v10773_v42, %v10772_v59  ;;  %v10775_v12 = vpop.f32.mrb[14].mxu0 }
 0xf09   :  { %v10776_v24 = vpop.f32.mrb[15].mxu0 }
 0xf0a   :  { %v10777_v28 = vadd.f32 %v10776_v24, %v10775_v12 }
 0xf0c   :  { %v6988_v30 = vpack.c.bf16 %v10777_v28, %v10774_v48 }
 0xf0e   :  { %v10778_v3 = vpop.f32.mrb[16].mxu0  ;;  %11322 = vmatprep.mubr.msk.bf16.mxu1 %vm541_vm0, %v6988_v30 }
 0xf0f   :  { %v10779_v36 = vpop.f32.mrb[17].mxu0 }
 0xf10   :  { %v10780_v37 = vadd.f32 %v10779_v36, %v10778_v3  ;;  %v10781_v0 = vpop.f32.mrb[18].mxu0 }
 0xf11   :  { %v10782_v18 = vpop.f32.mrb[19].mxu0 }
 0xf12   :  { %v10783_v15 = vadd.f32 %v10782_v18, %v10781_v0 }
 0xf14   :  { %v6989_v11 = vpack.c.bf16 %v10783_v15, %v10780_v37 }
 0xf16   :  { %v10784_v56 = vpop.f32.mrb[20].mxu0  ;;  %11323 = vmatmul.mubr.msk.bf16.vlgmr.msra.gmra.mrb[116].mxu1 %vm541_vm0, %v6989_v11 }
 0xf17   :  { %v10785_v59 = vpop.f32.mrb[21].mxu0  ;;  %11355 = vmatpush3.bf16.msra.mxu1 %v11895_v53 }
 0xf18   :  { %v10786_v24 = vadd.f32 %v10785_v59, %v10784_v56  ;;  %v10787_v28 = vpop.f32.mrb[22].mxu0  ;;  %11356 = vmatprep.subr.bf16.mxu1 %v11896_v19 }
 0xf19   :  { %v10788_v12 = vpop.f32.mrb[23].mxu0 }
 0xf1a   :  { %v10789_v30 = vadd.f32 %v10788_v12, %v10787_v28 }
 0xf1b   :  { %11357 = vmatpush3.bf16.msra.mxu1 %v11896_v19 }
 0xf1c   :  { %v6990_v3 = vpack.c.bf16 %v10789_v30, %v10786_v24 }
 0xf1e   :  { %v10790_v42 = vpop.f32.mrb[24].mxu0  ;;  %11326 = vmatprep.mubr.msk.bf16.mxu1 %vm541_vm0, %v6990_v3 }
 0xf1f   :  { %v10791_v0 = vpop.f32.mrb[25].mxu0 }
 0xf20   :  { %v10792_v18 = vadd.f32 %v10791_v0, %v10790_v42  ;;  %v10793_v48 = vpop.f32.mrb[26].mxu0 }
 0xf21   :  { %v10794_v36 = vpop.f32.mrb[27].mxu0 }
 0xf22   :  { %v10795_v37 = vadd.f32 %v10794_v36, %v10793_v48 }
 0xf24   :  { %v6991_v15 = vpack.c.bf16 %v10795_v37, %v10792_v18 }
 0xf26   :  { %v10796_v61 = vpop.f32.mrb[28].mxu0  ;;  %11327 = vmatmul.mubr.msk.bf16.gmra.mrb[120].mxu1 %vm541_vm0, %v6991_v15 }
 0xf27   :  { %v10797_v11 = vpop.f32.mrb[29].mxu0 }
 0xf28   :  { %v10798_v56 = vadd.f32 %v10797_v11, %v10796_v61  ;;  %v10799_v53 = vpop.f32.mrb[30].mxu0 }
 0xf29   :  { %v10800_v59 = vpop.f32.mrb[31].mxu0 }
 0xf2a   :  { %v10801_v21 = vadd.f32 %v10800_v59, %v10799_v53 }
 0xf2c   :  { %v6992_v28 = vpack.c.bf16 %v10801_v21, %v10798_v56 }
 0xf2e   :  { %v10802_v19 = vpop.f32.mrb[32].mxu0  ;;  %11330 = vmatprep.mubr.msk.bf16.mxu1 %vm541_vm0, %v6992_v28 }
 0xf2f   :  { %v10803_v24 = vpop.f32.mrb[33].mxu0 }
 0xf30   :  { %v10804_v12 = vadd.f32 %v10803_v24, %v10802_v19  ;;  %v10805_v30 = vpop.f32.mrb[34].mxu0 }
 0xf31   :  { %v10806_v3 = vpop.f32.mrb[35].mxu0 }
 0xf32   :  { %v10807_v42 = vadd.f32 %v10806_v3, %v10805_v30 }
 0xf34   :  { %v6993_v0 = vpack.c.bf16 %v10807_v42, %v10804_v12 }
 0xf36   :  { %v10808_v48 = vpop.f32.mrb[36].mxu0  ;;  %11331 = vmatmul.mubr.msk.bf16.gmra.mrb[124].mxu1 %vm541_vm0, %v6993_v0 }
 0xf37   :  { %v10809_v18 = vpop.f32.mrb[37].mxu0 }
 0xf38   :  { %v10810_v36 = vadd.f32 %v10809_v18, %v10808_v48  ;;  %v10811_v37 = vpop.f32.mrb[38].mxu0 }
 0xf39   :  { %v10812_v61 = vpop.f32.mrb[39].mxu0 }
 0xf3a   :  { %v10813_v15 = vadd.f32 %v10812_v61, %v10811_v37 }
 0xf3c   :  { %v6994_v11 = vpack.c.bf16 %v10813_v15, %v10810_v36 }
 0xf3e   :  { %v10814_v53 = vpop.f32.mrb[40].mxu0  ;;  %11334 = vmatprep.mubr.msk.bf16.mxu1 %vm541_vm0, %v6994_v11 }
 0xf3f   :  { %v10815_v21 = vpop.f32.mrb[41].mxu0 }
 0xf40   :  { %v10816_v56 = vadd.f32 %v10815_v21, %v10814_v53  ;;  %v10817_v59 = vpop.f32.mrb[42].mxu0 }
 0xf41   :  { %v10818_v28 = vpop.f32.mrb[43].mxu0 }
 0xf42   :  { %v10819_v19 = vadd.f32 %v10818_v28, %v10817_v59 }
 0xf44   :  { %v6995_v24 = vpack.c.bf16 %v10819_v19, %v10816_v56 }
 0xf46   :  { %v10820_v30 = vpop.f32.mrb[44].mxu0  ;;  %11335 = vmatmul.mubr.msk.bf16.gmra.mrb[128].mxu1 %vm541_vm0, %v6995_v24 }
 0xf47   :  { %v10821_v12 = vpop.f32.mrb[45].mxu0 }
 0xf48   :  { %v10822_v3 = vadd.f32 %v10821_v12, %v10820_v30  ;;  %v10823_v42 = vpop.f32.mrb[46].mxu0 }
 0xf49   :  { %v10824_v0 = vpop.f32.mrb[47].mxu0 }
 0xf4a   :  { %v10825_v48 = vadd.f32 %v10824_v0, %v10823_v42 }
 0xf4c   :  { %v6996_v18 = vpack.c.bf16 %v10825_v48, %v10822_v3 }
 0xf4e   :  { %v10826_v37 = vpop.f32.mrb[48].mxu0  ;;  %11338 = vmatprep.mubr.msk.bf16.mxu1 %vm541_vm0, %v6996_v18 }
 0xf4f   :  { %v10827_v36 = vpop.f32.mrb[49].mxu0 }
 0xf50   :  { %v10828_v61 = vadd.f32 %v10827_v36, %v10826_v37  ;;  %v10829_v15 = vpop.f32.mrb[50].mxu0 }
 0xf51   :  { %v10830_v11 = vpop.f32.mrb[51].mxu0 }
 0xf52   :  { %v10831_v53 = vadd.f32 %v10830_v11, %v10829_v15 }
 0xf54   :  { %v6997_v21 = vpack.c.bf16 %v10831_v53, %v10828_v61 }
 0xf56   :  { %v10832_v59 = vpop.f32.mrb[52].mxu0  ;;  %11339 = vmatmul.mubr.msk.bf16.gmra.mrb[132].mxu1 %vm541_vm0, %v6997_v21 }
 0xf57   :  { %v10833_v56 = vpop.f32.mrb[53].mxu0 }
 0xf58   :  { %v10834_v28 = vadd.f32 %v10833_v56, %v10832_v59  ;;  %v10835_v19 = vpop.f32.mrb[54].mxu0 }
 0xf59   :  { %v10836_v24 = vpop.f32.mrb[55].mxu0 }
 0xf5a   :  { %v10837_v30 = vadd.f32 %v10836_v24, %v10835_v19 }
 0xf5c   :  { %v6998_v12 = vpack.c.bf16 %v10837_v30, %v10834_v28 }
 0xf5e   :  { %v10838_v42 = vpop.f32.mrb[56].mxu0  ;;  %11342 = vmatprep.mubr.msk.bf16.mxu1 %vm541_vm0, %v6998_v12 }
 0xf5f   :  { %v10839_v3 = vpop.f32.mrb[57].mxu0 }
 0xf60   :  { %v10840_v0 = vadd.f32 %v10839_v3, %v10838_v42  ;;  %v10841_v48 = vpop.f32.mrb[58].mxu0 }
 0xf61   :  { %v10842_v18 = vpop.f32.mrb[59].mxu0 }
 0xf62   :  { %v10843_v37 = vadd.f32 %v10842_v18, %v10841_v48 }
 0xf64   :  { %v6999_v36 = vpack.c.bf16 %v10843_v37, %v10840_v0 }
 0xf66   :  { %v10844_v15 = vpop.f32.mrb[60].mxu0  ;;  %11343 = vmatmul.mubr.msk.bf16.gmra.mrb[136].mxu1 %vm541_vm0, %v6999_v36 }
 0xf67   :  { %v10845_v61 = vpop.f32.mrb[61].mxu0 }
 0xf68   :  { %v10846_v11 = vadd.f32 %v10845_v61, %v10844_v15  ;;  %v10847_v53 = vpop.f32.mrb[62].mxu0 }
 0xf69   :  { %v10848_v21 = vpop.f32.mrb[63].mxu0 }
 0xf6a   :  { %v10849_v59 = vadd.f32 %v10848_v21, %v10847_v53 }
 0xf6c   :  { %v7000_v56 = vpack.c.bf16 %v10849_v59, %v10846_v11 }
 0xf6e   :  { %v10850_v19 = vpop.f32.mrb[64].mxu0  ;;  %11346 = vmatprep.mubr.msk.bf16.mxu1 %vm541_vm0, %v7000_v56 }
 0xf6f   :  { %v10851_v28 = vpop.f32.mrb[65].mxu0 }
 0xf70   :  { %v10852_v24 = vadd.f32 %v10851_v28, %v10850_v19  ;;  %v10853_v30 = vpop.f32.mrb[66].mxu0 }
 0xf71   :  { %v10854_v12 = vpop.f32.mrb[67].mxu0 }
 0xf72   :  { %v10855_v42 = vadd.f32 %v10854_v12, %v10853_v30 }
 0xf74   :  { %v7001_v3 = vpack.c.bf16 %v10855_v42, %v10852_v24 }
 0xf76   :  { %v10856_v48 = vpop.f32.mrb[68].mxu0  ;;  %11347 = vmatmul.mubr.msk.bf16.gmra.mrb[140].mxu1 %vm541_vm0, %v7001_v3 }
 0xf77   :  { %v10857_v0 = vpop.f32.mrb[69].mxu0 }
 0xf78   :  { %v10858_v18 = vadd.f32 %v10857_v0, %v10856_v48  ;;  %v10859_v37 = vpop.f32.mrb[70].mxu0 }
 0xf79   :  { %v10860_v36 = vpop.f32.mrb[71].mxu0 }
 0xf7a   :  { %v10861_v15 = vadd.f32 %v10860_v36, %v10859_v37 }
 0xf7c   :  { %v7002_v61 = vpack.c.bf16 %v10861_v15, %v10858_v18 }
 0xf7e   :  { %v10862_v53 = vpop.f32.mrb[72].mxu0  ;;  %11350 = vmatprep.mubr.msk.bf16.mxu1 %vm541_vm0, %v7002_v61 }
 0xf7f   :  { %v10863_v11 = vpop.f32.mrb[73].mxu0 }
 0xf80   :  { %v10864_v21 = vadd.f32 %v10863_v11, %v10862_v53  ;;  %v10865_v59 = vpop.f32.mrb[74].mxu0 }
 0xf81   :  { %v10866_v56 = vpop.f32.mrb[75].mxu0 }
 0xf82   :  { %v10867_v19 = vadd.f32 %v10866_v56, %v10865_v59 }
 0xf84   :  { %v7003_v28 = vpack.c.bf16 %v10867_v19, %v10864_v21 }
 0xf86   :  { %11351 = vmatmul.mubr.msk.bf16.gmra.mrb[144].mxu1 %vm541_vm0, %v7003_v28 }
 0xf87   :  { %11358 = vmatprep.mubr.msk.bf16.mxu1 %vm541_vm0, %v15998_v9  ;;  %v11897_v9 = vld [vmem:[%s17723_s5 + $0x20] sm:$0xff]  }
 0xf88   :  { %11390 = vmatprep.subr.bf16.mxu0 %v11897_v9 }
 0xf89   :  { %11391 = vmatpush3.bf16.msra.mxu0 %v11897_v9 }
 0xf8e   :  { %11359 = vmatmul.mubr.msk.bf16.vlgmr.msra.gmra.mrb[116].mxu1 %vm541_vm0, %v16054_v25 }
 0xf8f   :  { %11362 = vmatprep.mubr.msk.bf16.mxu1 %vm541_vm0, %v16094_v20 }
 0xf96   :  { %11363 = vmatmul.mubr.msk.bf16.gmra.mrb[120].mxu1 %vm541_vm0, %v16134_v54 }
 0xf97   :  { %11366 = vmatprep.mubr.msk.bf16.mxu1 %vm541_vm0, %v16162_v52 }
 0xf9e   :  { %11367 = vmatmul.mubr.msk.bf16.gmra.mrb[124].mxu1 %vm541_vm0, %v16188_v10 }
 0xf9f   :  { %11370 = vmatprep.mubr.msk.bf16.mxu1 %vm541_vm0, %v16210_v8 }
 0xfa6   :  { %11371 = vmatmul.mubr.msk.bf16.gmra.mrb[128].mxu1 %vm541_vm0, %v16229_v55 }
 0xfa7   :  { %11374 = vmatprep.mubr.msk.bf16.mxu1 %vm541_vm0, %v16012_v27  ;;  %v16385_v27 = vld [vmem:[%s17722_s4 + $0x2] ss:$0 sm:$0xff] }
 0xfae   :  { %11375 = vmatmul.mubr.msk.bf16.gmra.mrb[132].mxu1 %vm541_vm0, %v16027_v45 }
 0xfaf   :  { %11378 = vmatprep.mubr.msk.bf16.mxu1 %vm541_vm0, %v16065_v43 }
 0xfb6   :  { %11379 = vmatmul.mubr.msk.bf16.gmra.mrb[136].mxu1 %vm541_vm0, %v16107_v5 }
 0xfb7   :  { %11382 = vmatprep.mubr.msk.bf16.mxu1 %vm541_vm0, %v16145_v40 }
 0xfbe   :  { %11383 = vmatmul.mubr.msk.bf16.gmra.mrb[140].mxu1 %vm541_vm0, %v16175_v34 }
 0xfbf   :  { %11386 = vmatprep.mubr.msk.bf16.mxu1 %vm541_vm0, %v16198_v29 }
 0xfc6   :  { %11387 = vmatmul.mubr.msk.bf16.gmra.mrb[144].mxu1 %vm541_vm0, %v16220_v44 }
0x1061   :  { %v11360_v45 = vpop.f32.mrb[116].mxu1 }
0x1062   :  { %v16388_v25 = vadd.f32 %v11360_v45, %v16385_v27  ;;  %v7328_v43 = vpop.f32.mrb[117].mxu1 }
0x1063   :  { %v16391_v20 = vadd.f32 %v16385_v27, %v7328_v43  ;;  %v11361_v5 = vpop.f32.mrb[118].mxu1 }
0x1064   :  { %v7497_v54 = vsub.f32 0.0, %v16388_v25  ;;  %v16395_v40 = vadd.f32 %v11361_v5, %v16385_v27  ;;  %v7331_v52 = vpop.f32.mrb[119].mxu1 }
0x1065   :  { %v7495_v34 = vsub.f32 0.0, %v16391_v20  ;;  %v16399_v10 = vadd.f32 %v16385_v27, %v7331_v52 }
0x1066   :  { %v7531_v29 = vmul.f32 1.442695, %v7497_v54  ;;  %v7498_v8 = vsub.f32 0.0, %v16395_v40 }
0x1067   :  { %v7527_v44 = vmul.f32 1.442695, %v7495_v34  ;;  %v7496_v55 = vsub.f32 0.0, %v16399_v10 }
0x1068   :  { %12291 = vpow2.f32 %v7531_v29  ;;  %v7533_v24 = vmul.f32 1.442695, %v7498_v8 }
0x1069   :  { %12293 = vpow2.f32 %v7527_v44  ;;  %v7529_v30 = vmul.f32 1.442695, %v7496_v55  ;;  %v11364_v12 = vpop.f32.mrb[120].mxu1 }
0x106a   :  { %12295 = vpow2.f32 %v7533_v24  ;;  %v16404_v42 = vadd.f32 %v11364_v12, %v16385_v27  ;;  %v7344_v3 = vpop.f32.mrb[121].mxu1 }
0x106b   :  { %12297 = vpow2.f32 %v7529_v30  ;;  %v16407_v48 = vadd.f32 %v16385_v27, %v7344_v3  ;;  %v11365_v0 = vpop.f32.mrb[122].mxu1 }
0x106c   :  { %v7501_v18 = vsub.f32 0.0, %v16404_v42  ;;  %v16411_v37 = vadd.f32 %v11365_v0, %v16385_v27  ;;  %v7347_v36 = vpop.f32.mrb[123].mxu1 }
0x106d   :  { %v7499_v15 = vsub.f32 0.0, %v16407_v48  ;;  %v16415_v61 = vadd.f32 %v16385_v27, %v7347_v36 }
0x106e   :  { %v7539_v53 = vmul.f32 1.442695, %v7501_v18  ;;  %v7502_v11 = vsub.f32 0.0, %v16411_v37 }
0x106f   :  { %v7535_v21 = vmul.f32 1.442695, %v7499_v15  ;;  %v7500_v59 = vsub.f32 0.0, %v16415_v61 }
0x1070   :  { %12299 = vpow2.f32 %v7539_v53  ;;  %v7541_v56 = vmul.f32 1.442695, %v7502_v11  ;;  %v11898_v11 = vld [vmem:[%s17723_s5 + $0x28] sm:$0xff]  }
0x1071   :  { %12301 = vpow2.f32 %v7535_v21  ;;  %v7537_v19 = vmul.f32 1.442695, %v7500_v59  ;;  %v11368_v28 = vpop.f32.mrb[124].mxu1  ;;  %11392 = vmatprep.subr.bf16.mxu0 %v11898_v11 }
0x1072   :  { %v12292_v9 = vpop.eup %12291  ;;  %12303 = vpow2.f32 %v7541_v56  ;;  %v16420_v45 = vadd.f32 %v11368_v28, %v16385_v27  ;;  %v7360_v43 = vpop.f32.mrb[125].mxu1  ;;  %11393 = vmatpush3.bf16.msra.mxu0 %v11898_v11 }
0x1073   :  { %v12294_v5 = vpop.eup %12293  ;;  %v7593_v54 = vadd.f32 1.0, %v12292_v9  ;;  %12305 = vpow2.f32 %v7537_v19  ;;  %v16423_v52 = vadd.f32 %v16385_v27, %v7360_v43  ;;  %v11369_v34 = vpop.f32.mrb[126].mxu1 }
0x1074   :  { %v12296_v29 = vpop.eup %12295  ;;  %v7591_v8 = vadd.f32 1.0, %v12294_v5  ;;  %v7505_v44 = vsub.f32 0.0, %v16420_v45  ;;  %v16427_v55 = vadd.f32 %v11369_v34, %v16385_v27  ;;  %v7363_v24 = vpop.f32.mrb[127].mxu1 }
0x1075   :  { %v12298_v30 = vpop.eup %12297  ;;  %v7503_v12 = vsub.f32 0.0, %v16423_v52  ;;  %v16431_v18 = vadd.f32 %v16385_v27, %v7363_v24  ;;  %v7594_v53 = vadd.f32 1.0, %v12296_v29 }
0x1076   :  { %12307 = vrcp.f32 %v7591_v8  ;;  %v7592_v3 = vadd.f32 1.0, %v12298_v30  ;;  %v7547_v0 = vmul.f32 1.442695, %v7505_v44  ;;  %v7506_v15 = vsub.f32 0.0, %v16427_v55 }
0x1077   :  { %12309 = vrcp.f32 %v7593_v54  ;;  %v7543_v36 = vmul.f32 1.442695, %v7503_v12  ;;  %v7504_v56 = vsub.f32 0.0, %v16431_v18  ;;  %v18004_v44 = vmov 0  }
0x1078   :  { %12311 = vrcp.f32 %v7592_v3  ;;  %v7549_v43 = vmul.f32 1.442695, %v7506_v15  ;;  %8129 = vmatprep.subr.bf16.mxu0 %v18004_v44 }
0x1079   :  { %12313 = vpow2.f32 %v7547_v0  ;;  %v11372_v21 = vpop.f32.mrb[128].mxu1  ;;  %v7545_v3 = vmul.f32 1.442695, %v7504_v56 }
0x107a   :  { %v12300_v59 = vpop.eup %12299  ;;  %12315 = vpow2.f32 %v7543_v36  ;;  %v16439_v19 = vadd.f32 %v11372_v21, %v16385_v27  ;;  %v7376_v28 = vpop.f32.mrb[129].mxu1 }
0x107b   :  { %v12302_v9 = vpop.eup %12301  ;;  %v11373_v5 = vpop.f32.mrb[130].mxu1  ;;  %12317 = vrcp.f32 %v7594_v53  ;;  %v16442_v29 = vadd.f32 %v16385_v27, %v7376_v28  ;;  %v7597_v30 = vadd.f32 1.0, %v12300_v59 }
0x107c   :  { %v12304_v54 = vpop.eup %12303  ;;  %v7595_v34 = vadd.f32 1.0, %v12302_v9  ;;  %v7379_v8 = vpop.f32.mrb[131].mxu1  ;;  %v7509_v0 = vsub.f32 0.0, %v16439_v19  ;;  %v16448_v11 = vadd.f32 %v11373_v5, %v16385_v27 }
0x107d   :  { %v12306_v24 = vpop.eup %12305  ;;  %v7598_v15 = vadd.f32 1.0, %v12304_v54  ;;  %v7507_v53 = vsub.f32 0.0, %v16442_v29  ;;  %v16451_v28 = vadd.f32 %v16385_v27, %v7379_v8 }
0x107e   :  { %12319 = vrcp.f32 %v7595_v34  ;;  %v7596_v12 = vadd.f32 1.0, %v12306_v24  ;;  %v7555_v9 = vmul.f32 1.442695, %v7509_v0 }
0x107f   :  { %12321 = vpow2.f32 %v7549_v43  ;;  %v7551_v5 = vmul.f32 1.442695, %v7507_v53  ;;  %v7508_v8 = vsub.f32 0.0, %v16451_v28 }
0x1080   :  { %v12308_v36 = vpop.eup %12307  ;;  %12323 = vrcp.f32 %v7596_v12  ;;  %v7510_v12 = vsub.f32 0.0, %v16448_v11 }
0x1081   :  { %v12310_v21 = vpop.eup %12309  ;;  %12325 = vrcp.f32 %v7597_v30  ;;  %7719 = vrot.lane.b32.xlu0 %v12308_v36, %s12694_s26  ;;  %v11376_v59 = vpop.f32.mrb[132].mxu1  ;;  %v7553_v33 = vmul.f32 1.442695, %v7508_v8 }
0x1082   :  { %v12312_v56 = vpop.eup %12311  ;;  %12327 = vpow2.f32 %v7545_v3  ;;  %v7392_v43 = vpop.f32.mrb[133].mxu1  ;;  %v16459_v3 = vadd.f32 %v11376_v59, %v16385_v27  ;;  %v7557_v53 = vmul.f32 1.442695, %v7510_v12 }
0x1083   :  { %v12314_v34 = vpop.eup %12313  ;;  %7721 = vrot.lane.b32.xlu1 %v12312_v56, %s12694_s26  ;;  %v11377_v54 = vpop.f32.mrb[134].mxu1  ;;  %12329 = vrcp.f32 %v7598_v15  ;;  %v16462_v56 = vadd.f32 %v16385_v27, %v7392_v43 }
0x1084   :  { %v12316_v24 = vpop.eup %12315  ;;  %v7395_v30 = vpop.f32.mrb[135].mxu1  ;;  %12331 = vpow2.f32 %v7555_v9  ;;  %v7601_v0 = vadd.f32 1.0, %v12314_v34  ;;  %v7513_v9 = vsub.f32 0.0, %v16459_v3 }
0x1085   :  { %v7599_v7 = vadd.f32 1.0, %v12316_v24  ;;  %7723 = vrot.lane.b32.xlu0 %v12310_v21, %s12694_s26  ;;  %v12318_v36 = vpop.eup %12317  ;;  %v16476_v4 = vadd.f32 %v16385_v27, %v7395_v30 }
0x1087   :  { %12333 = vrcp.f32 %v7599_v7  ;;  %7725 = vrot.lane.b32.xlu1 %v12318_v36, %s12694_s26  ;;  %v7511_v7 = vsub.f32 0.0, %v16462_v56 }
0x1088   :  { %v12320_v15 = vpop.eup %12319  ;;  %12335 = vpow2.f32 %v7551_v5  ;;  %v16470_v5 = vadd.f32 %v11377_v54, %v16385_v27 }
0x1089   :  { %v12322_v24 = vpop.eup %12321  ;;  %7727 = vrot.lane.b32.xlu0 %v12320_v15, %s12694_s26  ;;  %v11380_v21 = vpop.f32.mrb[136].mxu1  ;;  %12337 = vrcp.f32 %v7601_v0  ;;  %v7559_v13 = vmul.f32 1.442695, %v7511_v7 }
0x108a   :  { %v12324_v22 = vpop.eup %12323  ;;  %v7408_v59 = vpop.f32.mrb[137].mxu1  ;;  %12339 = vpow2.f32 %v7557_v53  ;;  %v7602_v36 = vadd.f32 1.0, %v12322_v24  ;;  %v7514_v53 = vsub.f32 0.0, %v16470_v5  ;;  %v7512_v24 = vsub.f32 0.0, %v16476_v4 }
0x108b   :  { %v12326_v16 = vpop.eup %12325  ;;  %7729 = vrot.lane.b32.xlu1 %v12324_v22, %s12694_s26  ;;  %v11381_v43 = vpop.f32.mrb[138].mxu1  ;;  %12341 = vpow2.f32 %v7553_v33  ;;  %v7563_v22 = vmul.f32 1.442695, %v7513_v9  ;;  %v16483_v30 = vadd.f32 %v11380_v21, %v16385_v27 }
0x108c   :  { %v12328_v34 = vpop.eup %12327  ;;  %v16473_v12 = vadd.f32 %v11381_v43, %v16385_v27  ;;  %v7411_v8 = vpop.f32.mrb[139].mxu1  ;;  %v7561_v46 = vmul.f32 1.442695, %v7512_v24 }
0x108d   :  { %v7600_v15 = vadd.f32 1.0, %v12328_v34  ;;  %7731 = vrot.lane.b32.xlu0 %v12326_v16, %s12694_s26  ;;  %v12330_v0 = vpop.eup %12329  ;;  %v16486_v16 = vadd.f32 %v16385_v27, %v7408_v59 }
0x108e   :  { %v12332_v54 = vpop.eup %12331 }
0x108f   :  { %12343 = vrcp.f32 %v7600_v15  ;;  %7733 = vrot.lane.b32.xlu1 %v12330_v0, %s12694_s26  ;;  %v7605_v15 = vadd.f32 1.0, %v12332_v54  ;;  %v7517_v54 = vsub.f32 0.0, %v16483_v30 }
0x1090   :  { %12345 = vrcp.f32 %v7602_v36 }
0x1091   :  { %v12334_v43 = vpop.eup %12333  ;;  %v11384_v34 = vpop.f32.mrb[140].mxu1  ;;  %12347 = vpow2.f32 %v7563_v22  ;;  %v7565_v22 = vmul.f32 1.442695, %v7514_v53 }
0x1092   :  { %v12336_v33 = vpop.eup %12335  ;;  %7735 = vrot.lane.b32.xlu0 %v12334_v43, %s12694_s26  ;;  %v16490_v9 = vadd.f32 %v11384_v34, %v16385_v27  ;;  %v7424_v7 = vpop.f32.mrb[141].mxu1  ;;  %12349 = vpow2.f32 %v7559_v13 }
0x1093   :  { %v7603_v0 = vadd.f32 1.0, %v12336_v33  ;;  %v16493_v36 = vadd.f32 %v16385_v27, %v7424_v7  ;;  %v11385_v17 = vpop.f32.mrb[142].mxu1  ;;  %v12338_v59 = vpop.eup %12337  ;;  %v7515_v33 = vsub.f32 0.0, %v16486_v16 }
0x1094   :  { %v16496_v21 = vadd.f32 %v11385_v17, %v16385_v27  ;;  %v7427_v47 = vpop.f32.mrb[143].mxu1  ;;  %v12340_v34 = vpop.eup %12339 }
0x1095   :  { %12351 = vrcp.f32 %v7603_v0  ;;  %v16499_v43 = vadd.f32 %v16385_v27, %v7427_v47  ;;  %v12342_v13 = vpop.eup %12341  ;;  %v7606_v7 = vadd.f32 1.0, %v12340_v34  ;;  %v16505_v0 = vadd.f32 %v16385_v27, %v7411_v8 }
0x1096   :  { %7739 = vrot.lane.b32.xlu0 %v12338_v59, %s12694_s26  ;;  %12353 = vrcp.f32 %v7605_v15  ;;  %v7604_v53 = vadd.f32 1.0, %v12342_v13  ;;  %v7571_v47 = vmul.f32 1.442695, %v7517_v54  ;;  %v7567_v49 = vmul.f32 1.442695, %v7515_v33 }
0x1097   :  { %12355 = vpow2.f32 %v7565_v22 }
0x1098   :  { %12357 = vpow2.f32 %v7561_v46  ;;  %v7518_v46 = vsub.f32 0.0, %v16473_v12 }
0x1099   :  { %v12344_v17 = vpop.eup %12343  ;;  %v11388_v24 = vpop.f32.mrb[144].mxu1  ;;  %12359 = vrcp.f32 %v7604_v53 }
0x109a   :  { %7737 = vrot.lane.b32.xlu1 %v12344_v17, %s12694_s26  ;;  %v16509_v14 = vadd.f32 %v11388_v24, %v16385_v27  ;;  %v7440_v59 = vpop.f32.mrb[145].mxu1  ;;  %v12346_v15 = vpop.eup %12345  ;;  %12361 = vrcp.f32 %v7606_v7  ;;  %v7516_v17 = vsub.f32 0.0, %v16505_v0  ;;  %v7573_v63 = vmul.f32 1.442695, %v7518_v46 }
0x109b   :  { %v16512_v13 = vadd.f32 %v16385_v27, %v7440_v59  ;;  %v11389_v22 = vpop.f32.mrb[146].mxu1  ;;  %v12348_v34 = vpop.eup %12347  ;;  %12363 = vpow2.f32 %v7571_v47  ;;  %v7521_v7 = vsub.f32 0.0, %v16490_v9 }
0x109c   :  { %v16516_v8 = vadd.f32 %v11389_v22, %v16385_v27  ;;  %v7443_v53 = vpop.f32.mrb[147].mxu1  ;;  %v12350_v54 = vpop.eup %12349  ;;  %v7609_v59 = vadd.f32 1.0, %v12348_v34  ;;  %12365 = vpow2.f32 %v7567_v49  ;;  %v7569_v6 = vmul.f32 1.442695, %v7516_v17 }
0x109d   :  { %v16520_v24 = vadd.f32 %v16385_v27, %v7443_v53  ;;  %v7607_v23 = vadd.f32 1.0, %v12350_v54  ;;  %v7519_v27 = vsub.f32 0.0, %v16493_v36  ;;  %v7522_v54 = vsub.f32 0.0, %v16496_v21 }
0x109e   :  { %7741 = vrot.lane.b32.xlu1 %v12346_v15, %s12694_s26 }
0x109f   :  { %v12352_v33 = vpop.eup %12351  ;;  %12367 = vrcp.f32 %v7607_v23  ;;  %v7579_v23 = vmul.f32 1.442695, %v7521_v7  ;;  %v7575_v34 = vmul.f32 1.442695, %v7519_v27  ;;  %v7525_v27 = vsub.f32 0.0, %v16509_v14 }
0x10a0   :  { %7743 = vrot.lane.b32.xlu0 %v12352_v33, %s12694_s26  ;;  %v12354_v22 = vpop.eup %12353  ;;  %12369 = vrcp.f32 %v7609_v59  ;;  %v7520_v33 = vsub.f32 0.0, %v16499_v43 }
0x10a1   :  { %v12356_v31 = vpop.eup %12355  ;;  %12371 = vpow2.f32 %v7573_v63 }
0x10a2   :  { %v12358_v58 = vpop.eup %12357  ;;  %v7610_v15 = vadd.f32 1.0, %v12356_v31  ;;  %12373 = vpow2.f32 %v7569_v6  ;;  %v7581_v6 = vmul.f32 1.442695, %v7522_v54 }
0x10a3   :  { %v12360_v53 = vpop.eup %12359  ;;  %v7608_v47 = vadd.f32 1.0, %v12358_v58 }
0x10a4   :  { %7747 = vrot.lane.b32.xlu0 %v12354_v22, %s12694_s26  ;;  %7745 = vrot.lane.b32.xlu1 %v12360_v53, %s12694_s26  ;;  %v12362_v49 = vpop.eup %12361  ;;  %v7577_v22 = vmul.f32 1.442695, %v7520_v33  ;;  %v7526_v33 = vsub.f32 0.0, %v16516_v8 }
0x10a5   :  { %12375 = vrcp.f32 %v7608_v47  ;;  %v12364_v46 = vpop.eup %12363  ;;  %v7523_v47 = vsub.f32 0.0, %v16512_v13 }
0x10a6   :  { %v12366_v17 = vpop.eup %12365  ;;  %12377 = vrcp.f32 %v7610_v15  ;;  %v7613_v31 = vadd.f32 1.0, %v12364_v46 }
0x10a7   :  { %v7611_v63 = vadd.f32 1.0, %v12366_v17  ;;  %12379 = vpow2.f32 %v7579_v23  ;;  %v7583_v54 = vmul.f32 1.442695, %v7523_v47 }
0x10a8   :  { %7749 = vrot.lane.b32.xlu1 %v12362_v49, %s12694_s26  ;;  %12381 = vpow2.f32 %v7575_v34  ;;  %v7587_v34 = vmul.f32 1.442695, %v7525_v27 }
0x10a9   :  { %v12368_v58 = vpop.eup %12367  ;;  %12383 = vrcp.f32 %v7611_v63  ;;  %v7524_v63 = vsub.f32 0.0, %v16520_v24 }
0x10aa   :  { %7751 = vrot.lane.b32.xlu0 %v12368_v58, %s12694_s26  ;;  %v12370_v59 = vpop.eup %12369  ;;  %12385 = vrcp.f32 %v7613_v31 }
0x10ab   :  { %v12372_v7 = vpop.eup %12371  ;;  %12387 = vpow2.f32 %v7581_v6  ;;  %v7585_v27 = vmul.f32 1.442695, %v7524_v63 }
0x10ac   :  { %v12374_v53 = vpop.eup %12373  ;;  %v7614_v23 = vadd.f32 1.0, %v12372_v7  ;;  %12389 = vpow2.f32 %v7577_v22  ;;  %v7589_v22 = vmul.f32 1.442695, %v7526_v33 }
0x10ad   :  { %v7612_v49 = vadd.f32 1.0, %v12374_v53 }
0x10ae   :  { %7755 = vrot.lane.b32.xlu0 %v12370_v59, %s12694_s26 }
0x10af   :  { %v12376_v15 = vpop.eup %12375  ;;  %12391 = vrcp.f32 %v7612_v49 }
0x10b0   :  { %7753 = vrot.lane.b32.xlu1 %v12376_v15, %s12694_s26  ;;  %v12378_v46 = vpop.eup %12377  ;;  %12393 = vrcp.f32 %v7614_v23 }
0x10b1   :  { %v12380_v17 = vpop.eup %12379  ;;  %12395 = vpow2.f32 %v7587_v34 }
0x10b2   :  { %v12382_v58 = vpop.eup %12381  ;;  %v7617_v6 = vadd.f32 1.0, %v12380_v17  ;;  %12397 = vpow2.f32 %v7583_v54 }
0x10b3   :  { %v12384_v31 = vpop.eup %12383  ;;  %v7615_v59 = vadd.f32 1.0, %v12382_v58 }
0x10b4   :  { %7757 = vrot.lane.b32.xlu1 %v12378_v46, %s12694_s26  ;;  %7759 = vrot.lane.b32.xlu0 %v12384_v31, %s12694_s26  ;;  %v12386_v7 = vpop.eup %12385 }
0x10b5   :  { %12399 = vrcp.f32 %v7615_v59  ;;  %v12388_v53 = vpop.eup %12387 }
0x10b6   :  { %v12390_v47 = vpop.eup %12389  ;;  %12401 = vrcp.f32 %v7617_v6  ;;  %v7618_v23 = vadd.f32 1.0, %v12388_v53 }
0x10b7   :  { %v7616_v49 = vadd.f32 1.0, %v12390_v47  ;;  %12403 = vpow2.f32 %v7589_v22 }
0x10b8   :  { %7763 = vrot.lane.b32.xlu0 %v12386_v7, %s12694_s26  ;;  %12405 = vpow2.f32 %v7585_v27 }
0x10b9   :  { %v12392_v15 = vpop.eup %12391  ;;  %12407 = vrcp.f32 %v7616_v49 }
0x10ba   :  { %7761 = vrot.lane.b32.xlu1 %v12392_v15, %s12694_s26  ;;  %v12394_v34 = vpop.eup %12393  ;;  %12409 = vrcp.f32 %v7618_v23 }
0x10bb   :  { %v12396_v46 = vpop.eup %12395 }
0x10bc   :  { %v12398_v54 = vpop.eup %12397  ;;  %v7621_v58 = vadd.f32 1.0, %v12396_v46 }
0x10bd   :  { %v7619_v33 = vadd.f32 1.0, %v12398_v54 }
0x10be   :  { %7765 = vrot.lane.b32.xlu1 %v12394_v34, %s12694_s26 }
0x10bf   :  { %v12400_v17 = vpop.eup %12399  ;;  %12411 = vrcp.f32 %v7619_v33 }
0x10c0   :  { %7767 = vrot.lane.b32.xlu0 %v12400_v17, %s12694_s26  ;;  %v12402_v63 = vpop.eup %12401  ;;  %12413 = vrcp.f32 %v7621_v58 }
0x10c1   :  { %v12404_v31 = vpop.eup %12403 }
0x10c2   :  { %v12406_v59 = vpop.eup %12405  ;;  %v7622_v7 = vadd.f32 1.0, %v12404_v31 }
0x10c3   :  { %v12408_v6 = vpop.eup %12407  ;;  %v7620_v22 = vadd.f32 1.0, %v12406_v59 }
0x10c4   :  { %7771 = vrot.lane.b32.xlu0 %v12402_v63, %s12694_s26  ;;  %7769 = vrot.lane.b32.xlu1 %v12408_v6, %s12694_s26  ;;  %v12410_v27 = vpop.eup %12409 }
0x10c5   :  { %12415 = vrcp.f32 %v7620_v22 }
0x10c6   :  { %12417 = vrcp.f32 %v7622_v7 }
0x10c7   :  { %12419 = vtanh.f32 %v16391_v20 }
0x10c8   :  { %7773 = vrot.lane.b32.xlu1 %v12410_v27, %s12694_s26  ;;  %12421 = vtanh.f32 %v16399_v10 }
0x10c9   :  { %v12412_v53 = vpop.eup %12411  ;;  %12423 = vtanh.f32 %v16388_v25 }
0x10ca   :  { %7775 = vrot.lane.b32.xlu0 %v12412_v53, %s12694_s26  ;;  %v12414_v47 = vpop.eup %12413  ;;  %12425 = vtanh.f32 %v16395_v40 }
0x10cb   :  { %12427 = vtanh.f32 %v16407_v48 }
0x10cc   :  { %12429 = vtanh.f32 %v16415_v61 }
0x10cd   :  { %12431 = vtanh.f32 %v16404_v42 }
0x10ce   :  { %7779 = vrot.lane.b32.xlu0 %v12414_v47, %s12694_s26  ;;  %12433 = vtanh.f32 %v16411_v37 }
0x10cf   :  { %v12416_v15 = vpop.eup %12415  ;;  %12435 = vtanh.f32 %v16423_v52 }
0x10d0   :  { %7777 = vrot.lane.b32.xlu1 %v12416_v15, %s12694_s26  ;;  %v12418_v49 = vpop.eup %12417  ;;  %12437 = vtanh.f32 %v16431_v18 }
0x10d1   :  { %v12420_v34 = vpop.eup %12419  ;;  %12439 = vtanh.f32 %v16420_v45 }
0x10d2   :  { %v12422_v46 = vpop.eup %12421  ;;  %12441 = vtanh.f32 %v16427_v55 }
0x10d3   :  { %v12424_v10 = vpop.eup %12423  ;;  %12443 = vtanh.f32 %v16442_v29 }
0x10d4   :  { %7781 = vrot.lane.b32.xlu1 %v12418_v49, %s12694_s26  ;;  %v12426_v25 = vpop.eup %12425  ;;  %12445 = vtanh.f32 %v16451_v28 }
0x10d5   :  { %v12428_v61 = vpop.eup %12427  ;;  %12447 = vtanh.f32 %v16439_v19 }
0x10d6   :  { %v12430_v6 = vpop.eup %12429  ;;  %12449 = vtanh.f32 %v16448_v11 }
0x10d7   :  { %v12432_v27 = vpop.eup %12431  ;;  %12451 = vtanh.f32 %v16462_v56 }
0x10d8   :  { %v12434_v47 = vpop.eup %12433  ;;  %12453 = vtanh.f32 %v16476_v4 }
0x10d9   :  { %v12436_v52 = vpop.eup %12435  ;;  %12455 = vtanh.f32 %v16459_v3 }
0x10da   :  { %v12438_v18 = vpop.eup %12437  ;;  %12457 = vtanh.f32 %v16470_v5 }
0x10db   :  { %v12440_v55 = vpop.eup %12439  ;;  %12459 = vtanh.f32 %v16486_v16 }
0x10dc   :  { %12461 = vtanh.f32 %v16505_v0 }
0x10dd   :  { %12463 = vtanh.f32 %v16483_v30 }
0x10de   :  { %12465 = vtanh.f32 %v16473_v12 }
0x10df   :  { %12467 = vtanh.f32 %v16493_v36 }
0x10e0   :  { %12469 = vtanh.f32 %v16499_v43 }
0x10e1   :  { %12471 = vtanh.f32 %v16490_v9 }
0x10f3   :  { %v7720_v23 = vpop.permute.xlu0 %7719 }
0x10f4   :  { %v7815_v17 = vmul.f32 %v12420_v34, %v7720_v23 }
0x10f5   :  { %v7722_v54 = vpop.permute.xlu1 %7721 }
0x10f6   :  { %v7816_v33 = vmul.f32 %v12422_v46, %v7722_v54 }
0x10f7   :  { %v7724_v20 = vpop.permute.xlu0 %7723 }
0x10f8   :  { %v7847_v58 = vpack.c.bf16 %v7816_v33, %v7815_v17  ;;  %v7817_v40 = vmul.f32 %v12424_v10, %v7724_v20  ;;  %v12442_v10 = vpop.eup %12441  ;;  %12473 = vtanh.f32 %v16496_v21 }
0x10f9   :  { %v7726_v63 = vpop.permute.xlu1 %7725 }
0x10fa   :  { %v7818_v31 = vmul.f32 %v12426_v25, %v7726_v63  ;;  %11394 = vmatprep.mubr.msk.bf16.mxu0 %vm541_vm0, %v7847_v58 }
0x10fb   :  { %v7728_v48 = vpop.permute.xlu0 %7727 }
0x10fc   :  { %v7848_v59 = vpack.c.bf16 %v7818_v31, %v7817_v40  ;;  %v7819_v7 = vmul.f32 %v12428_v61, %v7728_v48  ;;  %v12444_v40 = vpop.eup %12443  ;;  %12475 = vtanh.f32 %v16512_v13 }
0x10fd   :  { %v7730_v22 = vpop.permute.xlu1 %7729  ;;  %v12446_v31 = vpop.eup %12445  ;;  %12477 = vtanh.f32 %v16520_v24 }
0x10fe   :  { %v7820_v42 = vmul.f32 %v12430_v6, %v7730_v22  ;;  %11395 = vmatmul.mubr.msk.bf16.vlgmr.msra.gmra.mrb[76].mxu0 %vm541_vm0, %v7848_v59 }
0x10ff   :  { %8130 = vmatpush1.bf16.msra.mxu0 %v7847_v58  ;;  %v7732_v37 = vpop.permute.xlu0 %7731 }
0x1100   :  { %v7849_v53 = vpack.c.bf16 %v7820_v42, %v7819_v7  ;;  %8131 = vmatprep.subr.bf16.mxu0 %v18004_v44  ;;  %v7821_v49 = vmul.f32 %v12432_v27, %v7732_v37 }
0x1101   :  { %v7734_v15 = vpop.permute.xlu1 %7733 }
0x1102   :  { %v7822_v23 = vmul.f32 %v12434_v47, %v7734_v15  ;;  %11398 = vmatprep.mubr.msk.bf16.mxu0 %vm541_vm0, %v7849_v53 }
0x1103   :  { %8132 = vmatpush1.bf16.msra.mxu0 %v7848_v59  ;;  %v12448_v59 = vpop.eup %12447  ;;  %12479 = vtanh.f32 %v16509_v14 }
0x1104   :  { %v7850_v34 = vpack.c.bf16 %v7822_v23, %v7821_v49  ;;  %8133 = vmatprep.subr.bf16.mxu0 %v18004_v44  ;;  %v7736_v46 = vpop.permute.xlu0 %7735  ;;  %v12450_v22 = vpop.eup %12449  ;;  %12481 = vtanh.f32 %v16516_v8 }
0x1105   :  { %v7823_v17 = vmul.f32 %v12436_v52, %v7736_v46  ;;  %v12452_v4 = vpop.eup %12451 }
0x1106   :  { %11399 = vmatmul.mubr.msk.bf16.gmra.mrb[80].mxu0 %vm541_vm0, %v7850_v34 }
0x1107   :  { %8134 = vmatpush1.bf16.msra.mxu0 %v7849_v53  ;;  %v12454_v53 = vpop.eup %12453 }
0x1108   :  { %8135 = vmatprep.subr.bf16.mxu0 %v18004_v44  ;;  %v7740_v33 = vpop.permute.xlu0 %7739  ;;  %v12456_v5 = vpop.eup %12455 }
0x1109   :  { %v7825_v25 = vmul.f32 %v12440_v55, %v7740_v33 }
0x110b   :  { %8136 = vmatpush1.bf16.msra.mxu0 %v7850_v34  ;;  %v12458_v34 = vpop.eup %12457 }
0x110c   :  { %v7738_v54 = vpop.permute.xlu1 %7737  ;;  %8137 = vmatprep.subr.bf16.mxu0 %v18004_v44  ;;  %v12460_v0 = vpop.eup %12459 }
0x110d   :  { %v7824_v45 = vmul.f32 %v12438_v18, %v7738_v54 }
0x110f   :  { %v7851_v20 = vpack.c.bf16 %v7824_v45, %v7823_v17  ;;  %v12462_v17 = vpop.eup %12461 }
0x1110   :  { %v7742_v58 = vpop.permute.xlu1 %7741  ;;  %v12464_v12 = vpop.eup %12463 }
0x1111   :  { %v7826_v63 = vmul.f32 %v12442_v10, %v7742_v58  ;;  %11402 = vmatprep.mubr.msk.bf16.mxu0 %vm541_vm0, %v7851_v20  ;;  %8138 = vmatpush1.bf16.msra.mxu0 %v7851_v20  ;;  %v12466_v10 = vpop.eup %12465 }
0x1112   :  { %8139 = vmatprep.subr.bf16.mxu0 %v18004_v44  ;;  %v7744_v28 = vpop.permute.xlu0 %7743  ;;  %v12468_v43 = vpop.eup %12467 }
0x1113   :  { %v7852_v29 = vpack.c.bf16 %v7826_v63, %v7825_v25  ;;  %v7827_v19 = vmul.f32 %v12444_v40, %v7744_v28  ;;  %v12470_v28 = vpop.eup %12469 }
0x1114   :  { %v12472_v21 = vpop.eup %12471 }
0x1115   :  { %11403 = vmatmul.mubr.msk.bf16.gmra.mrb[84].mxu0 %vm541_vm0, %v7852_v29 }
0x1116   :  { %8140 = vmatpush1.bf16.msra.mxu0 %v7852_v29  ;;  %v7746_v48 = vpop.permute.xlu1 %7745  ;;  %v7748_v61 = vpop.permute.xlu0 %7747 }
0x1117   :  { %8141 = vmatprep.subr.bf16.mxu0 %v18004_v44  ;;  %v7828_v11 = vmul.f32 %v12446_v31, %v7746_v48  ;;  %v7829_v42 = vmul.f32 %v12448_v59, %v7748_v61 }
0x1119   :  { %v7853_v6 = vpack.c.bf16 %v7828_v11, %v7827_v19  ;;  %v12474_v11 = vpop.eup %12473 }
0x111a   :  { %v7750_v7 = vpop.permute.xlu1 %7749  ;;  %v12476_v24 = vpop.eup %12475 }
0x111b   :  { %v7830_v37 = vmul.f32 %v12450_v22, %v7750_v7  ;;  %11406 = vmatprep.mubr.msk.bf16.mxu0 %vm541_vm0, %v7853_v6  ;;  %8142 = vmatpush1.bf16.msra.mxu0 %v7853_v6  ;;  %v12478_v7 = vpop.eup %12477 }
0x111c   :  { %8143 = vmatprep.subr.bf16.mxu0 %v18004_v44  ;;  %v7752_v27 = vpop.permute.xlu0 %7751 }
0x111d   :  { %v7854_v56 = vpack.c.bf16 %v7830_v37, %v7829_v42  ;;  %v7831_v3 = vmul.f32 %v12452_v4, %v7752_v27  ;;  %v12480_v27 = vpop.eup %12479 }
0x111f   :  { %11407 = vmatmul.mubr.msk.bf16.gmra.mrb[88].mxu0 %vm541_vm0, %v7854_v56 }
0x1120   :  { %8144 = vmatpush1.bf16.msra.mxu0 %v7854_v56  ;;  %v7756_v49 = vpop.permute.xlu0 %7755 }
0x1121   :  { %8145 = vmatprep.subr.bf16.mxu0 %v18004_v44  ;;  %v7833_v52 = vmul.f32 %v12456_v5, %v7756_v49  ;;  %v12581_v49 = vld [vmem:[%s17720_s2 + $0x4] ss:$8 sps:$4 sm:$0xff]   ;;  %v12582_v5 = vld [vmem:[%s17720_s2] ss:$8 sps:$4 sm:$0xff]  }
0x1122   :  { %v7754_v47 = vpop.permute.xlu1 %7753 }
0x1123   :  { %v7832_v15 = vmul.f32 %v12454_v53, %v7754_v47  ;;  %v12482_v53 = vpop.eup %12481 }
0x1125   :  { %v7855_v23 = vpack.c.bf16 %v7832_v15, %v7831_v3 }
0x1126   :  { %v7758_v46 = vpop.permute.xlu1 %7757  ;;  %v7760_v54 = vpop.permute.xlu0 %7759 }
0x1127   :  { %v7834_v18 = vmul.f32 %v12458_v34, %v7758_v46  ;;  %11410 = vmatprep.mubr.msk.bf16.mxu0 %vm541_vm0, %v7855_v23  ;;  %8146 = vmatpush1.bf16.msra.mxu0 %v7855_v23  ;;  %v7835_v30 = vmul.f32 %v12460_v0, %v7760_v54  ;;  %v12583_v23 = vld [vmem:[%s17720_s2 + $0x14] ss:$8 sps:$4 sm:$0xff]   ;;  %v12585_v34 = vld [vmem:[%s17720_s2 + $0x24] ss:$8 sps:$4 sm:$0xff]   ;;  %v12586_v46 = vld [vmem:[%s17720_s2 + $0x20] ss:$8 sps:$4 sm:$0xff]  }
0x1128   :  { %8147 = vmatprep.subr.bf16.mxu0 %v18004_v44  ;;  %v12590_v54 = vld [vmem:[%s17720_s2 + $0x40] ss:$8 sps:$4 sm:$0xff]   ;;  %v12591_v0 = vld [vmem:[%s17720_s2 + $0x54] ss:$8 sps:$4 sm:$0xff]  }
0x1129   :  { %v7856_v16 = vpack.c.bf16 %v7834_v18, %v7833_v52  ;;  %v12587_v52 = vld [vmem:[%s17720_s2 + $0x34] ss:$8 sps:$4 sm:$0xff]   ;;  %v12588_v18 = vld [vmem:[%s17720_s2 + $0x30] ss:$8 sps:$4 sm:$0xff]  }
0x112a   :  { %v7764_v55 = vpop.permute.xlu0 %7763 }
0x112b   :  { %11411 = vmatmul.mubr.msk.bf16.gmra.mrb[92].mxu0 %vm541_vm0, %v7856_v16  ;;  %v7837_v25 = vmul.f32 %v12464_v12, %v7764_v55  ;;  %v12596_v55 = vld [vmem:[%s17720_s2 + $0x70] ss:$8 sps:$4 sm:$0xff]   ;;  %v12597_v12 = vld [vmem:[%s17720_s2 + $0x84] ss:$8 sps:$4 sm:$0xff]  }
0x112c   :  { %8148 = vmatpush1.bf16.msra.mxu0 %v7856_v16  ;;  %v7762_v45 = vpop.permute.xlu1 %7761  ;;  %v12589_v16 = vld [vmem:[%s17720_s2 + $0x44] ss:$8 sps:$4 sm:$0xff]  }
0x112d   :  { %8149 = vmatprep.subr.bf16.mxu0 %v18004_v44  ;;  %v7836_v33 = vmul.f32 %v12462_v17, %v7762_v45  ;;  %v12592_v17 = vld [vmem:[%s17720_s2 + $0x50] ss:$8 sps:$4 sm:$0xff]   ;;  %v12593_v45 = vld [vmem:[%s17720_s2 + $0x64] ss:$8 sps:$4 sm:$0xff]  }
0x112f   :  { %v7857_v20 = vpack.c.bf16 %v7836_v33, %v7835_v30  ;;  %v12594_v30 = vld [vmem:[%s17720_s2 + $0x60] ss:$8 sps:$4 sm:$0xff]   ;;  %v12595_v33 = vld [vmem:[%s17720_s2 + $0x74] ss:$8 sps:$4 sm:$0xff]  }
0x1130   :  { %v7766_v58 = vpop.permute.xlu1 %7765 }
0x1131   :  { %v7838_v63 = vmul.f32 %v12466_v10, %v7766_v58  ;;  %11414 = vmatprep.mubr.msk.bf16.mxu0 %vm541_vm0, %v7857_v20  ;;  %8150 = vmatpush1.bf16.msra.mxu0 %v7857_v20  ;;  %v12598_v20 = vld [vmem:[%s17720_s2 + $0x80] ss:$8 sps:$4 sm:$0xff]   ;;  %v12599_v10 = vld [vmem:[%s17720_s2 + $0x94] ss:$8 sps:$4 sm:$0xff]   ;;  %v12600_v58 = vld [vmem:[%s17720_s2 + $0x90] ss:$8 sps:$4 sm:$0xff]  }
0x1132   :  { %8151 = vmatprep.subr.bf16.mxu0 %v18004_v44  ;;  %v7768_v29 = vpop.permute.xlu0 %7767 }
0x1133   :  { %v7858_v36 = vpack.c.bf16 %v7838_v63, %v7837_v25  ;;  %v7839_v9 = vmul.f32 %v12468_v43, %v7768_v29  ;;  %v12601_v25 = vld [vmem:[%s17720_s2 + $0xa4] ss:$8 sps:$4 sm:$0xff]   ;;  %v12602_v63 = vld [vmem:[%s17720_s2 + $0xa0] ss:$8 sps:$4 sm:$0xff]   ;;  %v12604_v29 = vld [vmem:[%s17720_s2 + $0xb0] ss:$8 sps:$4 sm:$0xff]  }
0x1134   :  { %v11899_v43 = vld [vmem:[%s17725_s7 + $0x40] sm:$0xff]  }
0x1135   :  { %11415 = vmatmul.mubr.msk.bf16.gmra.mrb[96].mxu0 %vm541_vm0, %v7858_v36  ;;  %11426 = vmatprep.subr.bf16.mxu1 %v11899_v43 }
0x1136   :  { %8152 = vmatpush1.bf16.msra.mxu0 %v7858_v36  ;;  %v7770_v40 = vpop.permute.xlu1 %7769  ;;  %v7772_v48 = vpop.permute.xlu0 %7771  ;;  %v12603_v36 = vld [vmem:[%s17720_s2 + $0xb4] ss:$8 sps:$4 sm:$0xff]   ;;  %11427 = vmatpush3.bf16.msra.mxu1 %v11899_v43 }
0x1137   :  { %8153 = vmatprep.subr.bf16.mxu0 %v18004_v44  ;;  %v7840_v31 = vmul.f32 %v12470_v28, %v7770_v40  ;;  %v7841_v59 = vmul.f32 %v12472_v21, %v7772_v48  ;;  %v12605_v28 = vld [vmem:[%s17720_s2 + $0xc4] ss:$8 sps:$4 sm:$0xff]   ;;  %v12608_v48 = vld [vmem:[%s17720_s2 + $0xd0] ss:$8 sps:$4 sm:$0xff]  }
0x1138   :  { %v11900_v40 = vld [vmem:[%s17725_s7 + $0x48] sm:$0xff]  }
0x1139   :  { %v7859_v19 = vpack.c.bf16 %v7840_v31, %v7839_v9  ;;  %11428 = vmatprep.subr.bf16.mxu1 %v11900_v40  ;;  %v12606_v9 = vld [vmem:[%s17720_s2 + $0xc0] ss:$8 sps:$4 sm:$0xff]   ;;  %v12607_v31 = vld [vmem:[%s17720_s2 + $0xd4] ss:$8 sps:$4 sm:$0xff]   ;;  %v12609_v21 = vld [vmem:[%s17720_s2 + $0xe4] ss:$8 sps:$4 sm:$0xff]  }
0x113a   :  { %v7774_v61 = vpop.permute.xlu1 %7773  ;;  %11429 = vmatpush3.bf16.msra.mxu1 %v11900_v40 }
0x113b   :  { %v7842_v6 = vmul.f32 %v12474_v11, %v7774_v61  ;;  %11418 = vmatprep.mubr.msk.bf16.mxu0 %vm541_vm0, %v7859_v19  ;;  %8154 = vmatpush1.bf16.msra.mxu0 %v7859_v19  ;;  %v12610_v19 = vld [vmem:[%s17720_s2 + $0xe0] ss:$8 sps:$4 sm:$0xff]   ;;  %v12611_v11 = vld [vmem:[%s17720_s2 + $0xf4] ss:$8 sps:$4 sm:$0xff]  }
0x113c   :  { %8155 = vmatprep.subr.bf16.mxu0 %v18004_v44  ;;  %v7776_v22 = vpop.permute.xlu0 %7775  ;;  %v16716_v61 = vld [vmem:[%s17724_s6 + $0x2] ss:$0 sm:$0xff] }
0x113d   :  { %v7860_v13 = vpack.c.bf16 %v7842_v6, %v7841_v59  ;;  %v7843_v14 = vmul.f32 %v12476_v24, %v7776_v22  ;;  %v12612_v59 = vld [vmem:[%s17720_s2 + $0xf0] ss:$8 sps:$4 sm:$0xff]   ;;  %v12613_v6 = vld [vmem:[%s17720_s2 + $0x104] ss:$8 sps:$4 sm:$0xff]  }
0x113e   :  { %v18005_v22 = vld [vmem:[#allocation10_spill] sm:$0xff] }
0x113f   :  { %11419 = vmatmul.mubr.msk.bf16.gmra.mrb[100].mxu0 %vm541_vm0, %v7860_v13  ;;  %v5015_v24 = vadd.f32 %v15433_v41, %v18005_v22 }
0x1140   :  { %8156 = vmatpush1.bf16.msra.mxu0 %v7860_v13  ;;  %v7780_v56 = vpop.permute.xlu0 %7779 }
0x1141   :  { %8157 = vmatprep.subr.bf16.mxu0 %v18004_v44  ;;  %v7845_v8 = vmul.f32 %v12480_v27, %v7780_v56 }
0x1142   :  { %v7778_v42 = vpop.permute.xlu1 %7777 }
0x1143   :  { %v7844_v37 = vmul.f32 %v12478_v7, %v7778_v42 }
0x1145   :  { %v7861_v4 = vpack.c.bf16 %v7844_v37, %v7843_v14  ;;  %v18006_v14 = vld [vmem:[#allocation8_spill] sm:$0xff] }
0x1146   :  { %v7782_v47 = vpop.permute.xlu1 %7781  ;;  %v5013_v37 = vadd.f32 %v15421_v39, %v18006_v14  ;;  %v18019_v14 = vld [vmem:[#allocation73_spill] sm:$0xff] }
0x1147   :  { %v7846_v3 = vmul.f32 %v12482_v53, %v7782_v47  ;;  %11422 = vmatprep.mubr.msk.bf16.mxu0 %vm541_vm0, %v7861_v4  ;;  %8158 = vmatpush1.bf16.msra.mxu0 %v7861_v4  ;;  %v18007_v4 = vld [vmem:[#allocation11_spill] sm:$0xff] }
0x1148   :  { %8159 = vmatprep.subr.bf16.mxu0 %v18004_v44  ;;  %v12584_v44 = vld [vmem:[%s17720_s2 + $0x10] ss:$8 sps:$4 sm:$0xff]   ;;  %v5016_v53 = vadd.f32 %v15437_v60, %v18007_v4 }
0x1149   :  { %v7862_v15 = vpack.c.bf16 %v7846_v3, %v7845_v8  ;;  %v18008_v3 = vld [vmem:[#allocation9_spill] sm:$0xff] }
0x114b   :  { %11423 = vmatmul.mubr.msk.bf16.gmra.mrb[104].mxu0 %vm541_vm0, %v7862_v15 }
0x114c   :  { %8160 = vmatpush1.bf16.msra.mxu0 %v7862_v15  ;;  %8161 = vmatprep.mubr.bf16.mxu0 %v12581_v49  ;;  %v5014_v15 = vadd.f32 %v15425_v57, %v18008_v3  ;;  %v12615_v57 = vld [vmem:[%s17720_s2 + $0x114] ss:$8 sps:$4 sm:$0xff]   ;;  %v12621_v3 = vld [vmem:[%s17720_s2 + $0x144] ss:$8 sps:$4 sm:$0xff]  }
0x1153   :  { %8162 = vmatmul.mubr.bf16.vlgmr.msra.gmra.mrb[108].mxu0 %v12582_v5 }
0x1154   :  { %8169 = vmatprep.mubr.bf16.mxu0 %v12583_v23  ;;  %v12614_v23 = vld [vmem:[%s17720_s2 + $0x100] ss:$8 sps:$4 sm:$0xff]  }
0x115b   :  { %8170 = vmatmul.mubr.bf16.gmra.mrb[112].mxu0 %v12584_v44 }
0x115c   :  { %8177 = vmatprep.mubr.bf16.mxu0 %v12585_v34  ;;  %v18009_v34 = vld [vmem:[#allocation13_spill] sm:$0xff] }
0x1163   :  { %8178 = vmatmul.mubr.bf16.gmra.mrb[116].mxu0 %v12586_v46  ;;  %v5019_v46 = vadd.f32 %v15454_v35, %v18009_v34  ;;  %v18023_v34 = vld [vmem:[#allocation75_spill] sm:$0xff] }
0x1164   :  { %8185 = vmatprep.mubr.bf16.mxu0 %v12587_v52 }
0x116b   :  { %8186 = vmatmul.mubr.bf16.gmra.mrb[120].mxu0 %v12588_v18 }
0x116c   :  { %8193 = vmatprep.mubr.bf16.mxu0 %v12589_v16  ;;  %v18010_v16 = vld [vmem:[#allocation12_spill] sm:$0xff] }
0x1173   :  { %8194 = vmatmul.mubr.bf16.gmra.mrb[124].mxu0 %v12590_v54  ;;  %v5017_v54 = vadd.f32 %v15448_v38, %v18010_v16 }
0x1174   :  { %8201 = vmatprep.mubr.bf16.mxu0 %v12591_v0 }
0x117b   :  { %8202 = vmatmul.mubr.bf16.gmra.mrb[128].mxu0 %v12592_v17 }
0x117c   :  { %8209 = vmatprep.mubr.bf16.mxu0 %v12593_v45  ;;  %v18011_v45 = vld [vmem:[#allocation15_spill] sm:$0xff] }
0x1183   :  { %8210 = vmatmul.mubr.bf16.gmra.mrb[132].mxu0 %v12594_v30  ;;  %v5020_v30 = vadd.f32 %v15468_v62, %v18011_v45 }
0x1184   :  { %8217 = vmatprep.mubr.bf16.mxu0 %v12595_v33 }
0x118b   :  { %8218 = vmatmul.mubr.bf16.gmra.mrb[136].mxu0 %v12596_v55 }
0x118c   :  { %8225 = vmatprep.mubr.bf16.mxu0 %v12597_v12  ;;  %v18012_v12 = vld [vmem:[#allocation14_spill] sm:$0xff] }
0x1193   :  { %8226 = vmatmul.mubr.bf16.gmra.mrb[140].mxu0 %v12598_v20  ;;  %v5018_v20 = vadd.f32 %v15461_v26, %v18012_v12  ;;  %v12617_v26 = vld [vmem:[%s17720_s2 + $0x124] ss:$8 sps:$4 sm:$0xff]   ;;  %v18026_v12 = vld [vmem:[#allocation22_spill] sm:$0xff] }
0x1194   :  { %8233 = vmatprep.mubr.bf16.mxu0 %v12599_v10 }
0x119b   :  { %8234 = vmatmul.mubr.bf16.gmra.mrb[144].mxu0 %v12600_v58 }
0x119c   :  { %8241 = vmatprep.mubr.bf16.mxu0 %v12601_v25  ;;  %v12616_v25 = vld [vmem:[%s17720_s2 + $0x110] ss:$8 sps:$4 sm:$0xff]  }
0x11a3   :  { %8242 = vmatmul.mubr.bf16.gmra.mrb[148].mxu0 %v12602_v63  ;;  %v12618_v63 = vld [vmem:[%s17720_s2 + $0x120] ss:$8 sps:$4 sm:$0xff]  }
0x11a4   :  { %8249 = vmatprep.mubr.bf16.mxu0 %v12603_v36 }
0x11ab   :  { %8250 = vmatmul.mubr.bf16.gmra.mrb[152].mxu0 %v12604_v29  ;;  %v18013_v29 = vld [vmem:[#allocation17_spill] sm:$0xff] }
0x11ac   :  { %8257 = vmatprep.mubr.bf16.mxu0 %v12605_v28  ;;  %v5023_v43 = vadd.f32 %v15482_v50, %v18013_v29  ;;  %v12619_v28 = vld [vmem:[%s17720_s2 + $0x134] ss:$8 sps:$4 sm:$0xff]  }
0x11b3   :  { %8258 = vmatmul.mubr.bf16.gmra.mrb[156].mxu0 %v12606_v9 }
0x11b4   :  { %8265 = vmatprep.mubr.bf16.mxu0 %v12607_v31  ;;  %v18014_v31 = vld [vmem:[#allocation16_spill] sm:$0xff] }
0x11bb   :  { %8266 = vmatmul.mubr.bf16.gmra.mrb[160].mxu0 %v12608_v48  ;;  %v18015_v48 = vld [vmem:[#allocation72_spill] sm:$0xff] }
0x11bc   :  { %8273 = vmatprep.mubr.bf16.mxu0 %v12609_v21  ;;  %v5021_v21 = vadd.f32 %v18015_v48, %v18014_v31  ;;  %v12624_v31 = vld [vmem:[%s17720_s2 + $0x150] ss:$8 sps:$4 sm:$0xff]  }
0x11c3   :  { %8274 = vmatmul.mubr.bf16.gmra.mrb[164].mxu0 %v12610_v19 }
0x11c4   :  { %8281 = vmatprep.mubr.bf16.mxu0 %v12611_v11 }
0x11cb   :  { %8282 = vmatmul.mubr.bf16.gmra.mrb[168].mxu0 %v12612_v59  ;;  %v18016_v59 = vld [vmem:[#allocation19_spill] sm:$0xff] }
0x11cc   :  { %8289 = vmatprep.mubr.bf16.mxu0 %v12613_v6  ;;  %v18017_v6 = vld [vmem:[#allocation74_spill] sm:$0xff] }
0x11d1   :  { %v11396_v13 = vpop.f32.mrb[76].mxu0 }
0x11d2   :  { %v16727_v7 = vadd.f32 %v11396_v13, %v16716_v61  ;;  %v7970_v42 = vpop.f32.mrb[77].mxu0  ;;  %v5024_v13 = vadd.f32 %v18017_v6, %v18016_v59  ;;  %v18031_v59 = vld [vmem:[#allocation79_spill] sm:$0xff] }
0x11d3   :  { %v16732_v56 = vadd.f32 %v16716_v61, %v7970_v42  ;;  %v11397_v27 = vpop.f32.mrb[78].mxu0  ;;  %8290 = vmatmul.mubr.bf16.gmra.mrb[172].mxu0 %v12614_v23  ;;  %v18018_v42 = vld [vmem:[#allocation18_spill] sm:$0xff] }
0x11d4   :  { %v8099_v47 = vadd.f32 %v16727_v7, %v5015_v24  ;;  %v16738_v8 = vadd.f32 %v11397_v27, %v16716_v61  ;;  %v7973_v41 = vpop.f32.mrb[79].mxu0  ;;  %8297 = vmatprep.mubr.bf16.mxu0 %v12615_v57 }
0x11d5   :  { %v8097_v49 = vadd.f32 %v16732_v56, %v5013_v37  ;;  %v16744_v39 = vadd.f32 %v16716_v61, %v7973_v41  ;;  %v5022_v37 = vadd.f32 %v18019_v14, %v18018_v42  ;;  %v12620_v41 = vld [vmem:[%s17720_s2 + $0x130] ss:$8 sps:$4 sm:$0xff]  }
0x11d6   :  { %9736 = vst.msk [vmem:[#allocation4 + $0x10] sm:$0xff] %vm541_vm0, %v8099_v47  ;;  %v8100_v5 = vadd.f32 %v16738_v8, %v5016_v53  ;;  %v18032_v42 = vld [vmem:[#allocation27_spill] sm:$0xff]  ;;  %v18033_v14 = vld [vmem:[#allocation82_spill] sm:$0xff] }
0x11d7   :  { %9734 = vst.msk [vmem:[#allocation4] sm:$0xff] %vm541_vm0, %v8097_v49  ;;  %v8098_v60 = vadd.f32 %v16744_v39, %v5014_v15  ;;  %v18020_v49 = vld [vmem:[#allocation21_spill] sm:$0xff] }
0x11d8   :  { %9737 = vst.msk [vmem:[#allocation4 + $0x18] sm:$0xff] %vm541_vm0, %v8100_v5  ;;  %v18021_v5 = vld [vmem:[#allocation76_spill] sm:$0xff] }
0x11d9   :  { %9735 = vst.msk [vmem:[#allocation4 + $0x8] sm:$0xff] %vm541_vm0, %v8098_v60  ;;  %v11400_v44 = vpop.f32.mrb[80].mxu0  ;;  %v5027_v60 = vadd.f32 %v18021_v5, %v18020_v49 }
0x11da   :  { %v16761_v52 = vadd.f32 %v11400_v44, %v16716_v61  ;;  %v7986_v18 = vpop.f32.mrb[81].mxu0  ;;  %v18022_v44 = vld [vmem:[#allocation20_spill] sm:$0xff] }
0x11db   :  { %v16766_v0 = vadd.f32 %v16716_v61, %v7986_v18  ;;  %v11401_v17 = vpop.f32.mrb[82].mxu0  ;;  %8298 = vmatmul.mubr.bf16.gmra.mrb[176].mxu0 %v12616_v25  ;;  %v12622_v25 = vld [vmem:[%s17720_s2 + $0x140] ss:$8 sps:$4 sm:$0xff]  }
0x11dc   :  { %v8103_v33 = vadd.f32 %v16761_v52, %v5019_v46  ;;  %v16772_v55 = vadd.f32 %v11401_v17, %v16716_v61  ;;  %v7989_v35 = vpop.f32.mrb[83].mxu0  ;;  %8305 = vmatprep.mubr.bf16.mxu0 %v12617_v26  ;;  %v5025_v46 = vadd.f32 %v18023_v34, %v18022_v44  ;;  %v18025_v17 = vld [vmem:[#allocation78_spill] sm:$0xff]  ;;  %v12626_v44 = vld [vmem:[%s17720_s2 + $0x160] ss:$8 sps:$4 sm:$0xff]  }
0x11dd   :  { %v8101_v10 = vadd.f32 %v16766_v0, %v5017_v54  ;;  %v16778_v38 = vadd.f32 %v16716_v61, %v7989_v35  ;;  %v18024_v54 = vld [vmem:[#allocation23_spill] sm:$0xff] }
0x11de   :  { %9740 = vst.msk [vmem:[#allocation4 + $0x30] sm:$0xff] %vm541_vm0, %v8103_v33  ;;  %v8104_v58 = vadd.f32 %v16772_v55, %v5020_v30  ;;  %v5028_v45 = vadd.f32 %v18025_v17, %v18024_v54  ;;  %v12627_v34 = vld [vmem:[%s17720_s2 + $0x174] ss:$8 sps:$4 sm:$0xff]   ;;  %v18037_v54 = vld [vmem:[#allocation84_spill] sm:$0xff] }
0x11df   :  { %9738 = vst.msk [vmem:[#allocation4 + $0x20] sm:$0xff] %vm541_vm0, %v8101_v10  ;;  %v8102_v62 = vadd.f32 %v16778_v38, %v5018_v20  ;;  %v18027_v20 = vld [vmem:[#allocation77_spill] sm:$0xff] }
0x11e0   :  { %9741 = vst.msk [vmem:[#allocation4 + $0x38] sm:$0xff] %vm541_vm0, %v8104_v58  ;;  %v5026_v10 = vadd.f32 %v18027_v20, %v18026_v12  ;;  %v18039_v12 = vld [vmem:[#allocation83_spill] sm:$0xff] }
0x11e1   :  { %9739 = vst.msk [vmem:[#allocation4 + $0x28] sm:$0xff] %vm541_vm0, %v8102_v62 }
0x11e3   :  { %8306 = vmatmul.mubr.bf16.gmra.mrb[180].mxu0 %v12618_v63  ;;  %v12623_v63 = vld [vmem:[%s17720_s2 + $0x154] ss:$8 sps:$4 sm:$0xff]  }
0x11e4   :  { %8313 = vmatprep.mubr.bf16.mxu0 %v12619_v28  ;;  %v18029_v28 = vld [vmem:[#allocation80_spill] sm:$0xff] }
0x11e8   :  { %v11404_v36 = vpop.f32.mrb[84].mxu0 }
0x11e9   :  { %v16801_v40 = vadd.f32 %v11404_v36, %v16716_v61  ;;  %v8002_v9 = vpop.f32.mrb[85].mxu0 }
0x11ea   :  { %v16806_v19 = vadd.f32 %v16716_v61, %v8002_v9  ;;  %v11405_v11 = vpop.f32.mrb[86].mxu0 }
0x11eb   :  { %v8107_v50 = vadd.f32 %v16801_v40, %v5023_v43  ;;  %v16812_v22 = vadd.f32 %v11405_v11, %v16716_v61  ;;  %v8005_v24 = vpop.f32.mrb[87].mxu0  ;;  %8314 = vmatmul.mubr.bf16.gmra.mrb[184].mxu0 %v12620_v41  ;;  %v18028_v43 = vld [vmem:[#allocation25_spill] sm:$0xff]  ;;  %v18030_v11 = vld [vmem:[#allocation24_spill] sm:$0xff]  ;;  %v18034_v41 = vld [vmem:[#allocation26_spill] sm:$0xff] }
0x11ec   :  { %v8105_v27 = vadd.f32 %v16806_v19, %v5021_v21  ;;  %v16818_v4 = vadd.f32 %v16716_v61, %v8005_v24  ;;  %8321 = vmatprep.mubr.bf16.mxu0 %v12621_v3  ;;  %v5031_v9 = vadd.f32 %v18029_v28, %v18028_v43  ;;  %v5029_v6 = vadd.f32 %v18031_v59, %v18030_v11  ;;  %v18035_v3 = vld [vmem:[#allocation81_spill] sm:$0xff]  ;;  %v18042_v28 = vld [vmem:[#allocation30_spill] sm:$0xff] }
0x11ed   :  { %9744 = vst.msk [vmem:[#allocation4 + $0x50] sm:$0xff] %vm541_vm0, %v8107_v50  ;;  %v8108_v53 = vadd.f32 %v16812_v22, %v5024_v13  ;;  %v12625_v13 = vld [vmem:[%s17720_s2 + $0x164] ss:$8 sps:$4 sm:$0xff]   ;;  %v12628_v59 = vld [vmem:[%s17720_s2 + $0x170] ss:$8 sps:$4 sm:$0xff]  }
0x11ee   :  { %9742 = vst.msk [vmem:[#allocation4 + $0x40] sm:$0xff] %vm541_vm0, %v8105_v27  ;;  %v8106_v47 = vadd.f32 %v16818_v4, %v5022_v37  ;;  %v5032_v37 = vadd.f32 %v18033_v14, %v18032_v42  ;;  %v18044_v14 = vld [vmem:[#allocation33_spill] sm:$0xff] }
0x11ef   :  { %9745 = vst.msk [vmem:[#allocation4 + $0x58] sm:$0xff] %vm541_vm0, %v8108_v53 }
0x11f0   :  { %9743 = vst.msk [vmem:[#allocation4 + $0x48] sm:$0xff] %vm541_vm0, %v8106_v47 }
0x11f2   :  { %v11408_v15 = vpop.f32.mrb[88].mxu0 }
0x11f3   :  { %v16835_v23 = vadd.f32 %v11408_v15, %v16716_v61  ;;  %v8018_v57 = vpop.f32.mrb[89].mxu0  ;;  %8322 = vmatmul.mubr.bf16.gmra.mrb[188].mxu0 %v12622_v25  ;;  %v5030_v15 = vadd.f32 %v18035_v3, %v18034_v41  ;;  %v18040_v25 = vld [vmem:[#allocation31_spill] sm:$0xff] }
0x11f4   :  { %v16840_v18 = vadd.f32 %v16716_v61, %v8018_v57  ;;  %v11409_v16 = vpop.f32.mrb[90].mxu0  ;;  %8329 = vmatprep.mubr.bf16.mxu0 %v12623_v63 }
0x11f5   :  { %v8111_v30 = vadd.f32 %v16835_v23, %v5027_v60  ;;  %v16846_v33 = vadd.f32 %v11409_v16, %v16716_v61  ;;  %v8021_v35 = vpop.f32.mrb[91].mxu0  ;;  %v18036_v16 = vld [vmem:[#allocation29_spill] sm:$0xff] }
0x11f6   :  { %v8109_v58 = vadd.f32 %v16840_v18, %v5025_v46  ;;  %v16852_v62 = vadd.f32 %v16716_v61, %v8021_v35  ;;  %v5035_v17 = vadd.f32 %v18037_v54, %v18036_v16  ;;  %v18038_v35 = vld [vmem:[#allocation28_spill] sm:$0xff]  ;;  %v18049_v16 = vld [vmem:[#allocation90_spill] sm:$0xff] }
0x11f7   :  { %9748 = vst.msk [vmem:[#allocation4 + $0x70] sm:$0xff] %vm541_vm0, %v8111_v30  ;;  %v8112_v26 = vadd.f32 %v16846_v33, %v5028_v45  ;;  %v5033_v20 = vadd.f32 %v18039_v12, %v18038_v35  ;;  %v18050_v12 = vld [vmem:[#allocation34_spill] sm:$0xff] }
0x11f8   :  { %9746 = vst.msk [vmem:[#allocation4 + $0x60] sm:$0xff] %vm541_vm0, %v8109_v58  ;;  %v8110_v36 = vadd.f32 %v16852_v62, %v5026_v10 }
0x11f9   :  { %9749 = vst.msk [vmem:[#allocation4 + $0x78] sm:$0xff] %vm541_vm0, %v8112_v26  ;;  %v18041_v26 = vld [vmem:[#allocation86_spill] sm:$0xff] }
0x11fa   :  { %9747 = vst.msk [vmem:[#allocation4 + $0x68] sm:$0xff] %vm541_vm0, %v8110_v36  ;;  %v5036_v63 = vadd.f32 %v18041_v26, %v18040_v25 }
0x11fb   :  { %8330 = vmatmul.mubr.bf16.gmra.mrb[192].mxu0 %v12624_v31 }
0x11fc   :  { %8337 = vmatprep.mubr.bf16.mxu0 %v12625_v13 }
0x11fe   :  { %v11412_v29 = vpop.f32.mrb[92].mxu0 }
0x11ff   :  { %v16872_v48 = vadd.f32 %v11412_v29, %v16716_v61  ;;  %v8034_v21 = vpop.f32.mrb[93].mxu0 }
0x1200   :  { %v16880_v50 = vadd.f32 %v16716_v61, %v8034_v21  ;;  %v11413_v24 = vpop.f32.mrb[94].mxu0 }
0x1201   :  { %v8115_v27 = vadd.f32 %v16872_v48, %v5031_v9  ;;  %v16886_v53 = vadd.f32 %v11413_v24, %v16716_v61  ;;  %v8037_v47 = vpop.f32.mrb[95].mxu0  ;;  %v18043_v9 = vld [vmem:[#allocation85_spill] sm:$0xff] }
0x1202   :  { %v8113_v49 = vadd.f32 %v16880_v50, %v5029_v6  ;;  %v16892_v5 = vadd.f32 %v16716_v61, %v8037_v47  ;;  %v5034_v31 = vadd.f32 %v18043_v9, %v18042_v28  ;;  %v12629_v24 = vld [vmem:[%s17720_s2 + $0x184] ss:$8 sps:$4 sm:$0xff]   ;;  %v12630_v47 = vld [vmem:[%s17720_s2 + $0x180] ss:$8 sps:$4 sm:$0xff]  }
0x1203   :  { %9752 = vst.msk [vmem:[#allocation4 + $0x90] sm:$0xff] %vm541_vm0, %v8115_v27  ;;  %v8116_v60 = vadd.f32 %v16886_v53, %v5032_v37  ;;  %8338 = vmatmul.mubr.bf16.gmra.mrb[196].mxu0 %v12626_v44  ;;  %v18045_v37 = vld [vmem:[#allocation88_spill] sm:$0xff] }
0x1204   :  { %9750 = vst.msk [vmem:[#allocation4 + $0x80] sm:$0xff] %vm541_vm0, %v8113_v49  ;;  %v8114_v57 = vadd.f32 %v16892_v5, %v5030_v15  ;;  %8345 = vmatprep.mubr.bf16.mxu0 %v12627_v34  ;;  %v5039_v27 = vadd.f32 %v18045_v37, %v18044_v14  ;;  %v18046_v15 = vld [vmem:[#allocation32_spill] sm:$0xff]  ;;  %v18047_v49 = vld [vmem:[#allocation87_spill] sm:$0xff] }
0x1205   :  { %9753 = vst.msk [vmem:[#allocation4 + $0x98] sm:$0xff] %vm541_vm0, %v8116_v60  ;;  %v5037_v60 = vadd.f32 %v18047_v49, %v18046_v15  ;;  %v12631_v34 = vld [vmem:[%s17720_s2 + $0x194] ss:$8 sps:$4 sm:$0xff]   ;;  %v12633_v28 = vld [vmem:[%s17720_s2 + $0x1a4] ss:$8 sps:$4 sm:$0xff]  }
0x1206   :  { %9751 = vst.msk [vmem:[#allocation4 + $0x88] sm:$0xff] %vm541_vm0, %v8114_v57 }
0x1208   :  { %v11416_v46 = vpop.f32.mrb[96].mxu0 }
0x1209   :  { %v16909_v45 = vadd.f32 %v11416_v46, %v16716_v61  ;;  %v8050_v30 = vpop.f32.mrb[97].mxu0  ;;  %v18048_v46 = vld [vmem:[#allocation35_spill] sm:$0xff] }
0x120a   :  { %v16914_v10 = vadd.f32 %v16716_v61, %v8050_v30  ;;  %v11417_v58 = vpop.f32.mrb[98].mxu0  ;;  %v5040_v54 = vadd.f32 %v18049_v16, %v18048_v46  ;;  %v18059_v46 = vld [vmem:[#allocation93_spill] sm:$0xff] }
0x120b   :  { %v8119_v36 = vadd.f32 %v16909_v45, %v5035_v17  ;;  %v16920_v29 = vadd.f32 %v11417_v58, %v16716_v61  ;;  %v8053_v43 = vpop.f32.mrb[99].mxu0  ;;  %8346 = vmatmul.mubr.bf16.gmra.mrb[200].mxu0 %v12628_v59 }
0x120c   :  { %v8117_v21 = vadd.f32 %v16914_v10, %v5033_v20  ;;  %v16926_v11 = vadd.f32 %v16716_v61, %v8053_v43  ;;  %8353 = vmatprep.mubr.bf16.mxu0 %v12629_v24  ;;  %v18051_v20 = vld [vmem:[#allocation89_spill] sm:$0xff]  ;;  %v12632_v43 = vld [vmem:[%s17720_s2 + $0x190] ss:$8 sps:$4 sm:$0xff]   ;;  %v18054_v24 = vld [vmem:[#allocation36_spill] sm:$0xff] }
0x120d   :  { %9756 = vst.msk [vmem:[#allocation4 + $0xb0] sm:$0xff] %vm541_vm0, %v8119_v36  ;;  %v8120_v6 = vadd.f32 %v16920_v29, %v5036_v63  ;;  %v5038_v58 = vadd.f32 %v18051_v20, %v18050_v12  ;;  %v12634_v12 = vld [vmem:[%s17720_s2 + $0x1a0] ss:$8 sps:$4 sm:$0xff]  }
0x120e   :  { %9754 = vst.msk [vmem:[#allocation4 + $0xa0] sm:$0xff] %vm541_vm0, %v8117_v21  ;;  %v8118_v13 = vadd.f32 %v16926_v11, %v5034_v31  ;;  %v18052_v31 = vld [vmem:[#allocation37_spill] sm:$0xff]  ;;  %v18053_v21 = vld [vmem:[#allocation92_spill] sm:$0xff] }
0x120f   :  { %9757 = vst.msk [vmem:[#allocation4 + $0xb8] sm:$0xff] %vm541_vm0, %v8120_v6  ;;  %v5043_v59 = vadd.f32 %v18053_v21, %v18052_v31  ;;  %v12637_v31 = vld [vmem:[%s17720_s2 + $0x1c4] ss:$8 sps:$4 sm:$0xff]  }
0x1210   :  { %9755 = vst.msk [vmem:[#allocation4 + $0xa8] sm:$0xff] %vm541_vm0, %v8118_v13 }
0x1212   :  { %v11420_v42 = vpop.f32.mrb[100].mxu0 }
0x1213   :  { %8354 = vmatmul.mubr.bf16.gmra.mrb[204].mxu0 %v12630_v47  ;;  %v16946_v41 = vadd.f32 %v11420_v42, %v16716_v61  ;;  %v8066_v3 = vpop.f32.mrb[101].mxu0  ;;  %v18055_v42 = vld [vmem:[#allocation91_spill] sm:$0xff] }
0x1214   :  { %v16951_v57 = vadd.f32 %v16716_v61, %v8066_v3  ;;  %v11421_v44 = vpop.f32.mrb[102].mxu0  ;;  %8361 = vmatprep.mubr.bf16.mxu0 %v12631_v34  ;;  %v5041_v14 = vadd.f32 %v18055_v42, %v18054_v24  ;;  %v18056_v47 = vld [vmem:[#allocation39_spill] sm:$0xff]  ;;  %v18057_v3 = vld [vmem:[#allocation94_spill] sm:$0xff] }
0x1215   :  { %v8123_v17 = vadd.f32 %v16946_v41, %v5039_v27  ;;  %v16960_v30 = vadd.f32 %v11421_v44, %v16716_v61  ;;  %v8069_v35 = vpop.f32.mrb[103].mxu0  ;;  %v5044_v15 = vadd.f32 %v18057_v3, %v18056_v47  ;;  %v18058_v34 = vld [vmem:[#allocation38_spill] sm:$0xff] }
0x1216   :  { %v8121_v25 = vadd.f32 %v16951_v57, %v5037_v60  ;;  %v16966_v26 = vadd.f32 %v16716_v61, %v8069_v35  ;;  %v5042_v16 = vadd.f32 %v18059_v46, %v18058_v34  ;;  %v12639_v47 = vld [vmem:[%s17720_s2 + $0x1d4] ss:$8 sps:$4 sm:$0xff]   ;;  %v12640_v46 = vld [vmem:[%s17720_s2 + $0x1d0] ss:$8 sps:$4 sm:$0xff]  }
0x1217   :  { %9760 = vst.msk [vmem:[#allocation4 + $0xd0] sm:$0xff] %vm541_vm0, %v8123_v17  ;;  %v8124_v63 = vadd.f32 %v16960_v30, %v5040_v54 }
0x1218   :  { %9758 = vst.msk [vmem:[#allocation4 + $0xc0] sm:$0xff] %vm541_vm0, %v8121_v25  ;;  %v8122_v36 = vadd.f32 %v16966_v26, %v5038_v58  ;;  %v12635_v58 = vld [vmem:[%s17720_s2 + $0x1b4] ss:$8 sps:$4 sm:$0xff]  }
0x1219   :  { %9761 = vst.msk [vmem:[#allocation4 + $0xd8] sm:$0xff] %vm541_vm0, %v8124_v63  ;;  %v11901_v63 = vld [vmem:[%s17725_s7 + $0x50] sm:$0xff]  }
0x121a   :  { %9759 = vst.msk [vmem:[#allocation4 + $0xc8] sm:$0xff] %vm541_vm0, %v8122_v36  ;;  %11462 = vmatprep.subr.bf16.mxu1 %v11901_v63 }
0x121b   :  { %8362 = vmatmul.mubr.bf16.gmra.mrb[208].mxu0 %v12632_v43 }
0x121c   :  { %8369 = vmatprep.mubr.bf16.mxu0 %v12633_v28 }
0x121e   :  { %v11424_v9 = vpop.f32.mrb[104].mxu0 }
0x121f   :  { %v16983_v6 = vadd.f32 %v11424_v9, %v16716_v61  ;;  %v8082_v13 = vpop.f32.mrb[105].mxu0  ;;  %v12636_v9 = vld [vmem:[%s17720_s2 + $0x1b0] ss:$8 sps:$4 sm:$0xff]  }
0x1220   :  { %v16988_v37 = vadd.f32 %v16716_v61, %v8082_v13  ;;  %v11425_v27 = vpop.f32.mrb[106].mxu0 }
0x1221   :  { %v8127_v49 = vadd.f32 %v16983_v6, %v5043_v59  ;;  %v16994_v60 = vadd.f32 %v11425_v27, %v16716_v61  ;;  %v8085_v44 = vpop.f32.mrb[107].mxu0  ;;  %v12638_v27 = vld [vmem:[%s17720_s2 + $0x1c0] ss:$8 sps:$4 sm:$0xff]  }
0x1222   :  { %v8125_v54 = vadd.f32 %v16988_v37, %v5041_v14  ;;  %v17000_v17 = vadd.f32 %v16716_v61, %v8085_v44  ;;  %v11902_v14 = vld [vmem:[%s17725_s7 + $0x58] sm:$0xff]  }
0x1223   :  { %9764 = vst.msk [vmem:[#allocation4 + $0xf0] sm:$0xff] %vm541_vm0, %v8127_v49  ;;  %v8128_v35 = vadd.f32 %v16994_v60, %v5044_v15  ;;  %8370 = vmatmul.mubr.bf16.gmra.mrb[212].mxu0 %v12634_v12 }
0x1224   :  { %9762 = vst.msk [vmem:[#allocation4 + $0xe0] sm:$0xff] %vm541_vm0, %v8125_v54  ;;  %v8126_v20 = vadd.f32 %v17000_v17, %v5042_v16  ;;  %8377 = vmatprep.mubr.bf16.mxu0 %v12635_v58  ;;  %v12641_v16 = vld [vmem:[%s17720_s2 + $0x1e4] ss:$8 sps:$4 sm:$0xff]  }
0x1225   :  { %9765 = vst.msk [vmem:[#allocation4 + $0xf8] sm:$0xff] %vm541_vm0, %v8128_v35 }
0x1226   :  { %9763 = vst.msk [vmem:[#allocation4 + $0xe8] sm:$0xff] %vm541_vm0, %v8126_v20  ;;  %v8163_v61 = vpop.f32.mrb[108].mxu0 }
0x1227   :  { %v8165_v25 = vpop.f32.mrb[109].mxu0 }
0x1228   :  { %v8166_v36 = vpop.f32.mrb[110].mxu0  ;;  %v12643_v25 = vld [vmem:[%s17720_s2 + $0x1f4] ss:$8 sps:$4 sm:$0xff]  }
0x1229   :  { %v8427_v43 = vpack.c.bf16 %v8166_v36, %v8163_v61  ;;  %v8168_v28 = vpop.f32.mrb[111].mxu0  ;;  %v12642_v61 = vld [vmem:[%s17720_s2 + $0x1e0] ss:$8 sps:$4 sm:$0xff]  }
0x122b   :  { %8378 = vmatmul.mubr.bf16.gmra.mrb[216].mxu0 %v12636_v9  ;;  %11430 = vmatprep.mubr.msk.bf16.mxu1 %vm541_vm0, %v8427_v43 }
0x122c   :  { %8385 = vmatprep.mubr.bf16.mxu0 %v12637_v31  ;;  %v12644_v31 = vld [vmem:[%s17720_s2 + $0x1f0] ss:$8 sps:$4 sm:$0xff]   ;;  %s12696_s2 = smov [#allocation4]  }
0x122e   :  { %v8171_v21 = vpop.f32.mrb[112].mxu0 }
0x122f   :  { %v8173_v59 = vpop.f32.mrb[113].mxu0 }
0x1230   :  { %v8174_v13 = vpop.f32.mrb[114].mxu0 }
0x1231   :  { %v8428_v24 = vpack.c.bf16 %v8174_v13, %v8171_v21  ;;  %v8176_v42 = vpop.f32.mrb[115].mxu0 }
0x1233   :  { %8386 = vmatmul.mubr.bf16.gmra.mrb[220].mxu0 %v12638_v27  ;;  %11431 = vmatmul.mubr.msk.bf16.vlgmr.msra.gmra.mrb[148].mxu1 %vm541_vm0, %v8428_v24 }
0x1234   :  { %8393 = vmatprep.mubr.bf16.mxu0 %v12639_v47  ;;  %11463 = vmatpush3.bf16.msra.mxu1 %v11901_v63 }
0x1235   :  { %11464 = vmatprep.subr.bf16.mxu1 %v11902_v14 }
0x1236   :  { %v8179_v3 = vpop.f32.mrb[116].mxu0 }
0x1237   :  { %v8181_v15 = vpop.f32.mrb[117].mxu0 }
0x1238   :  { %v8182_v49 = vpop.f32.mrb[118].mxu0  ;;  %11465 = vmatpush3.bf16.msra.mxu1 %v11902_v14 }
0x1239   :  { %v8429_v44 = vpack.c.bf16 %v8182_v49, %v8179_v3  ;;  %v8184_v34 = vpop.f32.mrb[119].mxu0 }
0x123b   :  { %8394 = vmatmul.mubr.bf16.gmra.mrb[224].mxu0 %v12640_v46  ;;  %11434 = vmatprep.mubr.msk.bf16.mxu1 %vm541_vm0, %v8429_v44 }
0x123c   :  { %8401 = vmatprep.mubr.bf16.mxu0 %v12641_v16 }
0x123e   :  { %v8187_v54 = vpop.f32.mrb[120].mxu0 }
0x123f   :  { %v8189_v35 = vpop.f32.mrb[121].mxu0 }
0x1240   :  { %v8190_v12 = vpop.f32.mrb[122].mxu0 }
0x1241   :  { %v8430_v20 = vpack.c.bf16 %v8190_v12, %v8187_v54  ;;  %v8192_v58 = vpop.f32.mrb[123].mxu0 }
0x1243   :  { %8402 = vmatmul.mubr.bf16.gmra.mrb[228].mxu0 %v12642_v61  ;;  %11435 = vmatmul.mubr.msk.bf16.gmra.mrb[152].mxu1 %vm541_vm0, %v8430_v20 }
0x1244   :  { %8409 = vmatprep.mubr.bf16.mxu0 %v12643_v25 }
0x1246   :  { %v8195_v63 = vpop.f32.mrb[124].mxu0 }
0x1247   :  { %v8197_v36 = vpop.f32.mrb[125].mxu0 }
0x1248   :  { %v8198_v43 = vpop.f32.mrb[126].mxu0 }
0x1249   :  { %v8431_v28 = vpack.c.bf16 %v8198_v43, %v8195_v63  ;;  %v8200_v9 = vpop.f32.mrb[127].mxu0 }
0x124b   :  { %8410 = vmatmul.mubr.bf16.gmra.mrb[232].mxu0 %v12644_v31  ;;  %11438 = vmatprep.mubr.msk.bf16.mxu1 %vm541_vm0, %v8431_v28 }
0x124e   :  { %v8203_v21 = vpop.f32.mrb[128].mxu0 }
0x124f   :  { %v8205_v59 = vpop.f32.mrb[129].mxu0 }
0x1250   :  { %v8206_v13 = vpop.f32.mrb[130].mxu0 }
0x1251   :  { %v8432_v24 = vpack.c.bf16 %v8206_v13, %v8203_v21  ;;  %v8208_v42 = vpop.f32.mrb[131].mxu0 }
0x1253   :  { %11439 = vmatmul.mubr.msk.bf16.gmra.mrb[156].mxu1 %vm541_vm0, %v8432_v24 }
0x1256   :  { %v8211_v14 = vpop.f32.mrb[132].mxu0 }
0x1257   :  { %v8213_v27 = vpop.f32.mrb[133].mxu0 }
0x1258   :  { %v8214_v47 = vpop.f32.mrb[134].mxu0 }
0x1259   :  { %v8433_v3 = vpack.c.bf16 %v8214_v47, %v8211_v14  ;;  %v8216_v15 = vpop.f32.mrb[135].mxu0 }
0x125b   :  { %11442 = vmatprep.mubr.msk.bf16.mxu1 %vm541_vm0, %v8433_v3 }
0x125e   :  { %v8219_v49 = vpop.f32.mrb[136].mxu0 }
0x125f   :  { %v8221_v44 = vpop.f32.mrb[137].mxu0 }
0x1260   :  { %v8222_v34 = vpop.f32.mrb[138].mxu0 }
0x1261   :  { %v8434_v46 = vpack.c.bf16 %v8222_v34, %v8219_v49  ;;  %v8224_v16 = vpop.f32.mrb[139].mxu0 }
0x1263   :  { %11443 = vmatmul.mubr.msk.bf16.gmra.mrb[160].mxu1 %vm541_vm0, %v8434_v46 }
0x1266   :  { %v8227_v54 = vpop.f32.mrb[140].mxu0 }
0x1267   :  { %v8229_v35 = vpop.f32.mrb[141].mxu0 }
0x1268   :  { %v8230_v12 = vpop.f32.mrb[142].mxu0 }
0x1269   :  { %v8435_v20 = vpack.c.bf16 %v8230_v12, %v8227_v54  ;;  %v8232_v58 = vpop.f32.mrb[143].mxu0 }
0x126b   :  { %11446 = vmatprep.mubr.msk.bf16.mxu1 %vm541_vm0, %v8435_v20 }
0x126e   :  { %v8235_v61 = vpop.f32.mrb[144].mxu0 }
0x126f   :  { %v8237_v25 = vpop.f32.mrb[145].mxu0 }
0x1270   :  { %v8238_v63 = vpop.f32.mrb[146].mxu0 }
0x1271   :  { %v8436_v36 = vpack.c.bf16 %v8238_v63, %v8235_v61  ;;  %v8240_v43 = vpop.f32.mrb[147].mxu0 }
0x1273   :  { %11447 = vmatmul.mubr.msk.bf16.gmra.mrb[164].mxu1 %vm541_vm0, %v8436_v36 }
0x1276   :  { %v8243_v28 = vpop.f32.mrb[148].mxu0 }
0x1277   :  { %v8245_v9 = vpop.f32.mrb[149].mxu0 }
0x1278   :  { %v8246_v31 = vpop.f32.mrb[150].mxu0 }
0x1279   :  { %v8437_v21 = vpack.c.bf16 %v8246_v31, %v8243_v28  ;;  %v8248_v59 = vpop.f32.mrb[151].mxu0 }
0x127b   :  { %11450 = vmatprep.mubr.msk.bf16.mxu1 %vm541_vm0, %v8437_v21 }
0x127e   :  { %v8251_v13 = vpop.f32.mrb[152].mxu0 }
0x127f   :  { %v8253_v24 = vpop.f32.mrb[153].mxu0 }
0x1280   :  { %v8254_v42 = vpop.f32.mrb[154].mxu0 }
0x1281   :  { %v8438_v14 = vpack.c.bf16 %v8254_v42, %v8251_v13  ;;  %v8256_v27 = vpop.f32.mrb[155].mxu0 }
0x1283   :  { %11451 = vmatmul.mubr.msk.bf16.gmra.mrb[168].mxu1 %vm541_vm0, %v8438_v14 }
0x1286   :  { %v8259_v47 = vpop.f32.mrb[156].mxu0 }
0x1287   :  { %v8261_v3 = vpop.f32.mrb[157].mxu0 }
0x1288   :  { %v8262_v15 = vpop.f32.mrb[158].mxu0 }
0x1289   :  { %v8439_v49 = vpack.c.bf16 %v8262_v15, %v8259_v47  ;;  %v8264_v44 = vpop.f32.mrb[159].mxu0 }
0x128b   :  { %11454 = vmatprep.mubr.msk.bf16.mxu1 %vm541_vm0, %v8439_v49 }
0x128e   :  { %v8267_v34 = vpop.f32.mrb[160].mxu0 }
0x128f   :  { %v8269_v46 = vpop.f32.mrb[161].mxu0 }
0x1290   :  { %v8270_v16 = vpop.f32.mrb[162].mxu0 }
0x1291   :  { %v8440_v54 = vpack.c.bf16 %v8270_v16, %v8267_v34  ;;  %v8272_v35 = vpop.f32.mrb[163].mxu0 }
0x1293   :  { %11455 = vmatmul.mubr.msk.bf16.gmra.mrb[172].mxu1 %vm541_vm0, %v8440_v54 }
0x1296   :  { %v8275_v12 = vpop.f32.mrb[164].mxu0 }
0x1297   :  { %v8277_v20 = vpop.f32.mrb[165].mxu0 }
0x1298   :  { %v8278_v58 = vpop.f32.mrb[166].mxu0 }
0x1299   :  { %v8441_v61 = vpack.c.bf16 %v8278_v58, %v8275_v12  ;;  %v8280_v25 = vpop.f32.mrb[167].mxu0 }
0x129b   :  { %11458 = vmatprep.mubr.msk.bf16.mxu1 %vm541_vm0, %v8441_v61 }
0x129e   :  { %v8283_v63 = vpop.f32.mrb[168].mxu0 }
0x129f   :  { %v8285_v36 = vpop.f32.mrb[169].mxu0 }
0x12a0   :  { %v8286_v43 = vpop.f32.mrb[170].mxu0 }
0x12a1   :  { %v8442_v28 = vpack.c.bf16 %v8286_v43, %v8283_v63  ;;  %v8288_v9 = vpop.f32.mrb[171].mxu0 }
0x12a3   :  { %11459 = vmatmul.mubr.msk.bf16.gmra.mrb[176].mxu1 %vm541_vm0, %v8442_v28 }
0x12a6   :  { %v8291_v31 = vpop.f32.mrb[172].mxu0 }
0x12a7   :  { %v8293_v21 = vpop.f32.mrb[173].mxu0 }
0x12a8   :  { %v8294_v59 = vpop.f32.mrb[174].mxu0 }
0x12a9   :  { %v8824_v13 = vpack.c.bf16 %v8294_v59, %v8291_v31  ;;  %v8296_v24 = vpop.f32.mrb[175].mxu0 }
0x12ab   :  { %11466 = vmatprep.mubr.msk.bf16.mxu1 %vm541_vm0, %v8824_v13 }
0x12ae   :  { %v8299_v42 = vpop.f32.mrb[176].mxu0 }
0x12af   :  { %v8301_v14 = vpop.f32.mrb[177].mxu0 }
0x12b0   :  { %v8302_v27 = vpop.f32.mrb[178].mxu0 }
0x12b1   :  { %v8825_v47 = vpack.c.bf16 %v8302_v27, %v8299_v42  ;;  %v8304_v3 = vpop.f32.mrb[179].mxu0 }
0x12b3   :  { %11467 = vmatmul.mubr.msk.bf16.vlgmr.msra.gmra.mrb[180].mxu1 %vm541_vm0, %v8825_v47 }
0x12b6   :  { %v8307_v15 = vpop.f32.mrb[180].mxu0 }
0x12b7   :  { %v8309_v49 = vpop.f32.mrb[181].mxu0 }
0x12b8   :  { %v8310_v44 = vpop.f32.mrb[182].mxu0 }
0x12b9   :  { %v8826_v34 = vpack.c.bf16 %v8310_v44, %v8307_v15  ;;  %v8312_v46 = vpop.f32.mrb[183].mxu0 }
0x12bb   :  { %11470 = vmatprep.mubr.msk.bf16.mxu1 %vm541_vm0, %v8826_v34 }
0x12be   :  { %v8315_v16 = vpop.f32.mrb[184].mxu0 }
0x12bf   :  { %v8317_v54 = vpop.f32.mrb[185].mxu0 }
0x12c0   :  { %v8318_v35 = vpop.f32.mrb[186].mxu0 }
0x12c1   :  { %v8827_v12 = vpack.c.bf16 %v8318_v35, %v8315_v16  ;;  %v8320_v20 = vpop.f32.mrb[187].mxu0 }
0x12c3   :  { %11471 = vmatmul.mubr.msk.bf16.gmra.mrb[184].mxu1 %vm541_vm0, %v8827_v12 }
0x12c6   :  { %v8323_v58 = vpop.f32.mrb[188].mxu0 }
0x12c7   :  { %v8325_v61 = vpop.f32.mrb[189].mxu0 }
0x12c8   :  { %v8326_v25 = vpop.f32.mrb[190].mxu0 }
0x12c9   :  { %v8828_v63 = vpack.c.bf16 %v8326_v25, %v8323_v58  ;;  %v8328_v36 = vpop.f32.mrb[191].mxu0 }
0x12cb   :  { %11474 = vmatprep.mubr.msk.bf16.mxu1 %vm541_vm0, %v8828_v63 }
0x12ce   :  { %v8331_v43 = vpop.f32.mrb[192].mxu0 }
0x12cf   :  { %v8333_v28 = vpop.f32.mrb[193].mxu0 }
0x12d0   :  { %v8334_v9 = vpop.f32.mrb[194].mxu0 }
0x12d1   :  { %v8829_v31 = vpack.c.bf16 %v8334_v9, %v8331_v43  ;;  %v8336_v21 = vpop.f32.mrb[195].mxu0 }
0x12d3   :  { %11475 = vmatmul.mubr.msk.bf16.gmra.mrb[188].mxu1 %vm541_vm0, %v8829_v31 }
0x12d6   :  { %v8339_v59 = vpop.f32.mrb[196].mxu0 }
0x12d7   :  { %v8341_v13 = vpop.f32.mrb[197].mxu0 }
0x12d8   :  { %v8342_v24 = vpop.f32.mrb[198].mxu0 }
0x12d9   :  { %v8830_v42 = vpack.c.bf16 %v8342_v24, %v8339_v59  ;;  %v8344_v14 = vpop.f32.mrb[199].mxu0 }
0x12db   :  { %11478 = vmatprep.mubr.msk.bf16.mxu1 %vm541_vm0, %v8830_v42 }
0x12de   :  { %v8347_v27 = vpop.f32.mrb[200].mxu0 }
0x12df   :  { %v8349_v47 = vpop.f32.mrb[201].mxu0 }
0x12e0   :  { %v8350_v3 = vpop.f32.mrb[202].mxu0 }
0x12e1   :  { %v8831_v15 = vpack.c.bf16 %v8350_v3, %v8347_v27  ;;  %v8352_v49 = vpop.f32.mrb[203].mxu0 }
0x12e3   :  { %11479 = vmatmul.mubr.msk.bf16.gmra.mrb[192].mxu1 %vm541_vm0, %v8831_v15 }
0x12e6   :  { %v8355_v44 = vpop.f32.mrb[204].mxu0 }
0x12e7   :  { %v8357_v34 = vpop.f32.mrb[205].mxu0 }
0x12e8   :  { %v8358_v46 = vpop.f32.mrb[206].mxu0 }
0x12e9   :  { %v8832_v16 = vpack.c.bf16 %v8358_v46, %v8355_v44  ;;  %v8360_v54 = vpop.f32.mrb[207].mxu0 }
0x12eb   :  { %11482 = vmatprep.mubr.msk.bf16.mxu1 %vm541_vm0, %v8832_v16 }
0x12ee   :  { %v8363_v35 = vpop.f32.mrb[208].mxu0 }
0x12ef   :  { %v8365_v12 = vpop.f32.mrb[209].mxu0 }
0x12f0   :  { %v8366_v20 = vpop.f32.mrb[210].mxu0 }
0x12f1   :  { %v8833_v58 = vpack.c.bf16 %v8366_v20, %v8363_v35  ;;  %v8368_v61 = vpop.f32.mrb[211].mxu0 }
0x12f3   :  { %11483 = vmatmul.mubr.msk.bf16.gmra.mrb[196].mxu1 %vm541_vm0, %v8833_v58 }
0x12f6   :  { %v8371_v25 = vpop.f32.mrb[212].mxu0 }
0x12f7   :  { %v8373_v63 = vpop.f32.mrb[213].mxu0 }
0x12f8   :  { %v8374_v36 = vpop.f32.mrb[214].mxu0 }
0x12f9   :  { %v8834_v43 = vpack.c.bf16 %v8374_v36, %v8371_v25  ;;  %v8376_v28 = vpop.f32.mrb[215].mxu0 }
0x12fb   :  { %11486 = vmatprep.mubr.msk.bf16.mxu1 %vm541_vm0, %v8834_v43 }
0x12fe   :  { %v8379_v9 = vpop.f32.mrb[216].mxu0 }
0x12ff   :  { %v8381_v31 = vpop.f32.mrb[217].mxu0 }
0x1300   :  { %v8382_v21 = vpop.f32.mrb[218].mxu0 }
0x1301   :  { %v8835_v59 = vpack.c.bf16 %v8382_v21, %v8379_v9  ;;  %v8384_v13 = vpop.f32.mrb[219].mxu0 }
0x1303   :  { %11487 = vmatmul.mubr.msk.bf16.gmra.mrb[200].mxu1 %vm541_vm0, %v8835_v59 }
0x1306   :  { %v11432_v24 = vpop.f32.mrb[148].mxu1  ;;  %v8387_v42 = vpop.f32.mrb[220].mxu0 }
0x1307   :  { %8700 = vrot.lane.b32.xlu0 %v11432_v24, %s12695_s18  ;;  %v8537_v14 = vpop.f32.mrb[149].mxu1  ;;  %v8389_v27 = vpop.f32.mrb[221].mxu0 }
0x1308   :  { %v11433_v47 = vpop.f32.mrb[150].mxu1  ;;  %v8390_v3 = vpop.f32.mrb[222].mxu0 }
0x1309   :  { %8702 = vrot.lane.b32.xlu1 %v11433_v47, %s12695_s18  ;;  %v8836_v15 = vpack.c.bf16 %v8390_v3, %v8387_v42  ;;  %v8540_v49 = vpop.f32.mrb[151].mxu1  ;;  %v8392_v44 = vpop.f32.mrb[223].mxu0 }
0x130b   :  { %8696 = vrot.lane.b32.xlu0 %v8537_v14, %s12695_s18  ;;  %11490 = vmatprep.mubr.msk.bf16.mxu1 %vm541_vm0, %v8836_v15 }
0x130d   :  { %8698 = vrot.lane.b32.xlu1 %v8540_v49, %s12695_s18 }
0x130e   :  { %v8395_v34 = vpop.f32.mrb[224].mxu0 }
0x130f   :  { %v8397_v46 = vpop.f32.mrb[225].mxu0 }
0x1310   :  { %v8398_v16 = vpop.f32.mrb[226].mxu0 }
0x1311   :  { %v8837_v54 = vpack.c.bf16 %v8398_v16, %v8395_v34  ;;  %v8400_v35 = vpop.f32.mrb[227].mxu0 }
0x1313   :  { %11491 = vmatmul.mubr.msk.bf16.gmra.mrb[204].mxu1 %vm541_vm0, %v8837_v54 }
0x1316   :  { %v11436_v12 = vpop.f32.mrb[152].mxu1  ;;  %v8403_v20 = vpop.f32.mrb[228].mxu0 }
0x1317   :  { %8708 = vrot.lane.b32.xlu1 %v11436_v12, %s12695_s18  ;;  %v8553_v58 = vpop.f32.mrb[153].mxu1  ;;  %v8405_v61 = vpop.f32.mrb[229].mxu0 }
0x1318   :  { %v8406_v25 = vpop.f32.mrb[230].mxu0  ;;  %v11437_v63 = vpop.f32.mrb[154].mxu1 }
0x1319   :  { %v8838_v36 = vpack.c.bf16 %v8406_v25, %v8403_v20  ;;  %v8408_v43 = vpop.f32.mrb[231].mxu0  ;;  %v8556_v28 = vpop.f32.mrb[155].mxu1 }
0x131b   :  { %8704 = vrot.lane.b32.xlu1 %v8553_v58, %s12695_s18  ;;  %11494 = vmatprep.mubr.msk.bf16.mxu1 %vm541_vm0, %v8838_v36 }
0x131e   :  { %v8411_v9 = vpop.f32.mrb[232].mxu0 }
0x131f   :  { %8710 = vrot.lane.b32.xlu1 %v11437_v63, %s12695_s18  ;;  %v8413_v31 = vpop.f32.mrb[233].mxu0 }
0x1320   :  { %v8414_v21 = vpop.f32.mrb[234].mxu0 }
0x1321   :  { %v8839_v59 = vpack.c.bf16 %v8414_v21, %v8411_v9  ;;  %v8416_v13 = vpop.f32.mrb[235].mxu0 }
0x1323   :  { %8706 = vrot.lane.b32.xlu1 %v8556_v28, %s12695_s18  ;;  %11495 = vmatmul.mubr.msk.bf16.gmra.mrb[208].mxu1 %vm541_vm0, %v8839_v59 }
0x1326   :  { %v11440_v24 = vpop.f32.mrb[156].mxu1 }
0x1327   :  { %8716 = vrot.lane.b32.xlu1 %v11440_v24, %s12695_s18  ;;  %v8569_v42 = vpop.f32.mrb[157].mxu1 }
0x1328   :  { %v11441_v14 = vpop.f32.mrb[158].mxu1 }
0x1329   :  { %v8572_v27 = vpop.f32.mrb[159].mxu1 }
0x132b   :  { %8712 = vrot.lane.b32.xlu1 %v8569_v42, %s12695_s18 }
0x132f   :  { %8718 = vrot.lane.b32.xlu1 %v11441_v14, %s12695_s18 }
0x1333   :  { %8714 = vrot.lane.b32.xlu1 %v8572_v27, %s12695_s18 }
0x1336   :  { %v11444_v47 = vpop.f32.mrb[160].mxu1 }
0x1337   :  { %8724 = vrot.lane.b32.xlu1 %v11444_v47, %s12695_s18  ;;  %v8585_v3 = vpop.f32.mrb[161].mxu1 }
0x1338   :  { %v11445_v15 = vpop.f32.mrb[162].mxu1 }
0x1339   :  { %v8588_v49 = vpop.f32.mrb[163].mxu1 }
0x133b   :  { %8720 = vrot.lane.b32.xlu1 %v8585_v3, %s12695_s18 }
0x133f   :  { %8726 = vrot.lane.b32.xlu1 %v11445_v15, %s12695_s18 }
0x1343   :  { %8722 = vrot.lane.b32.xlu1 %v8588_v49, %s12695_s18 }
0x1346   :  { %v11448_v44 = vpop.f32.mrb[164].mxu1 }
0x1347   :  { %8732 = vrot.lane.b32.xlu1 %v11448_v44, %s12695_s18  ;;  %v8601_v34 = vpop.f32.mrb[165].mxu1 }
0x1348   :  { %v11449_v46 = vpop.f32.mrb[166].mxu1 }
0x1349   :  { %v8604_v16 = vpop.f32.mrb[167].mxu1 }
0x134b   :  { %8728 = vrot.lane.b32.xlu1 %v8601_v34, %s12695_s18 }
0x134f   :  { %8730 = vrot.lane.b32.xlu1 %v8604_v16, %s12695_s18 }
0x1356   :  { %v11452_v54 = vpop.f32.mrb[168].mxu1 }
0x1357   :  { %v8617_v35 = vpop.f32.mrb[169].mxu1 }
0x1358   :  { %v11453_v12 = vpop.f32.mrb[170].mxu1 }
0x1359   :  { %v8620_v20 = vpop.f32.mrb[171].mxu1 }
0x1366   :  { %v11456_v58 = vpop.f32.mrb[172].mxu1 }
0x1367   :  { %v8633_v61 = vpop.f32.mrb[173].mxu1 }
0x1368   :  { %v11457_v25 = vpop.f32.mrb[174].mxu1 }
0x1369   :  { %v8636_v63 = vpop.f32.mrb[175].mxu1 }
0x1376   :  { %v11460_v36 = vpop.f32.mrb[176].mxu1 }
0x1377   :  { %v8649_v43 = vpop.f32.mrb[177].mxu1 }
0x1378   :  { %v11461_v28 = vpop.f32.mrb[178].mxu1 }
0x1379   :  { %v8652_v9 = vpop.f32.mrb[179].mxu1 }
0x137b   :  { %v17108_v47 = vpop.permute.xlu1 %8702 }
0x137f   :  { %v17113_v3 = vpop.permute.xlu1 %8698 }
0x1386   :  { %v11468_v31 = vpop.f32.mrb[180].mxu1 }
0x1387   :  { %9097 = vrot.lane.b32.xlu0 %v11468_v31, %s12695_s18  ;;  %v8934_v21 = vpop.f32.mrb[181].mxu1 }
0x1388   :  { %9093 = vrot.lane.b32.xlu1 %v8934_v21, %s12695_s18  ;;  %v11469_v59 = vpop.f32.mrb[182].mxu1 }
0x1389   :  { %v8937_v13 = vpop.f32.mrb[183].mxu1  ;;  %v17117_v15 = vpop.permute.xlu1 %8708 }
0x138b   :  { %9099 = vrot.lane.b32.xlu0 %v11469_v59, %s12695_s18 }
0x138c   :  { %8734 = vrot.lane.b32.xlu1 %v11449_v46, %s12695_s18 }
0x138d   :  { %v17122_v16 = vpop.permute.xlu1 %8704 }
0x138f   :  { %9095 = vrot.lane.b32.xlu0 %v8937_v13, %s12695_s18 }
0x1390   :  { %8736 = vrot.lane.b32.xlu1 %v8617_v35, %s12695_s18 }
0x1394   :  { %8738 = vrot.lane.b32.xlu1 %v8620_v20, %s12695_s18 }
0x1396   :  { %v11472_v24 = vpop.f32.mrb[184].mxu1 }
0x1397   :  { %9105 = vrot.lane.b32.xlu0 %v11472_v24, %s12695_s18  ;;  %v8950_v42 = vpop.f32.mrb[185].mxu1 }
0x1398   :  { %8740 = vrot.lane.b32.xlu1 %v11452_v54, %s12695_s18  ;;  %v11473_v14 = vpop.f32.mrb[186].mxu1  ;;  %v17127_v54 = vpop.permute.xlu1 %8710 }
0x1399   :  { %v8953_v27 = vpop.f32.mrb[187].mxu1 }
0x139b   :  { %9101 = vrot.lane.b32.xlu0 %v8950_v42, %s12695_s18 }
0x139c   :  { %8742 = vrot.lane.b32.xlu1 %v11453_v12, %s12695_s18  ;;  %v17132_v20 = vpop.permute.xlu1 %8706 }
0x139f   :  { %9107 = vrot.lane.b32.xlu0 %v11473_v14, %s12695_s18 }
0x13a0   :  { %8744 = vrot.lane.b32.xlu1 %v8633_v61, %s12695_s18 }
0x13a3   :  { %9103 = vrot.lane.b32.xlu0 %v8953_v27, %s12695_s18 }
0x13a4   :  { %8746 = vrot.lane.b32.xlu1 %v8636_v63, %s12695_s18 }
0x13a6   :  { %v11476_v49 = vpop.f32.mrb[188].mxu1 }
0x13a7   :  { %9113 = vrot.lane.b32.xlu0 %v11476_v49, %s12695_s18  ;;  %v8966_v44 = vpop.f32.mrb[189].mxu1 }
0x13a8   :  { %8748 = vrot.lane.b32.xlu1 %v11456_v58, %s12695_s18  ;;  %v11477_v34 = vpop.f32.mrb[190].mxu1 }
0x13a9   :  { %v8969_v46 = vpop.f32.mrb[191].mxu1 }
0x13ab   :  { %9109 = vrot.lane.b32.xlu0 %v8966_v44, %s12695_s18 }
0x13ac   :  { %8750 = vrot.lane.b32.xlu1 %v11457_v25, %s12695_s18  ;;  %v17137_v25 = vpop.permute.xlu1 %8716 }
0x13af   :  { %9115 = vrot.lane.b32.xlu0 %v11477_v34, %s12695_s18 }
0x13b0   :  { %8752 = vrot.lane.b32.xlu1 %v8649_v43, %s12695_s18  ;;  %v17141_v63 = vpop.permute.xlu1 %8712 }
0x13b3   :  { %9111 = vrot.lane.b32.xlu0 %v8969_v46, %s12695_s18 }
0x13b4   :  { %8754 = vrot.lane.b32.xlu1 %v8652_v9, %s12695_s18  ;;  %v17144_v21 = vpop.permute.xlu1 %8718 }
0x13b6   :  { %v11480_v35 = vpop.f32.mrb[192].mxu1 }
0x13b7   :  { %9121 = vrot.lane.b32.xlu0 %v11480_v35, %s12695_s18  ;;  %v8982_v12 = vpop.f32.mrb[193].mxu1 }
0x13b8   :  { %8756 = vrot.lane.b32.xlu1 %v11460_v36, %s12695_s18  ;;  %v11481_v58 = vpop.f32.mrb[194].mxu1 }
0x13b9   :  { %v8985_v61 = vpop.f32.mrb[195].mxu1 }
0x13bb   :  { %9117 = vrot.lane.b32.xlu0 %v8982_v12, %s12695_s18 }
0x13bc   :  { %8758 = vrot.lane.b32.xlu1 %v11461_v28, %s12695_s18  ;;  %v17148_v28 = vpop.permute.xlu1 %8714 }
0x13bf   :  { %9123 = vrot.lane.b32.xlu0 %v11481_v58, %s12695_s18 }
0x13c0   :  { %v17151_v59 = vpop.permute.xlu1 %8724 }
0x13c3   :  { %9119 = vrot.lane.b32.xlu0 %v8985_v61, %s12695_s18  ;;  %v8701_v61 = vpop.permute.xlu0 %8700 }
0x13c4   :  { %v17155_v27 = vpop.permute.xlu1 %8720  ;;  %v8794_v2 = vadd.f32 %v8701_v61, %v16727_v7  ;;  %v8798_v7 = vadd.f32 %v17117_v15, %v16761_v52  ;;  %v8799_v61 = vadd.f32 %v17127_v54, %v16772_v55  ;;  %v8800_v52 = vadd.f32 %v17141_v63, %v16806_v19 }
0x13c5   :  { %v8801_v55 = vadd.f32 %v17148_v28, %v16818_v4  ;;  %v8803_v19 = vadd.f32 %v17144_v21, %v16812_v22  ;;  %v8806_v28 = vadd.f32 %v17151_v59, %v16835_v23 }
0x13c6   :  { %v11484_v43 = vpop.f32.mrb[196].mxu1 }
0x13c7   :  { %9129 = vrot.lane.b32.xlu0 %v11484_v43, %s12695_s18  ;;  %v8998_v9 = vpop.f32.mrb[197].mxu1 }
0x13c8   :  { %v11485_v31 = vpop.f32.mrb[198].mxu1  ;;  %v17158_v49 = vpop.permute.xlu1 %8726 }
0x13c9   :  { %v9001_v36 = vpop.f32.mrb[199].mxu1 }
0x13cb   :  { %9125 = vrot.lane.b32.xlu0 %v8998_v9, %s12695_s18  ;;  %v8697_v9 = vpop.permute.xlu0 %8696 }
0x13cc   :  { %v17162_v46 = vpop.permute.xlu1 %8722 }
0x13cd   :  { %v8805_v21 = vadd.f32 %v17162_v46, %v16852_v62 }
0x13cf   :  { %9131 = vrot.lane.b32.xlu0 %v11485_v31, %s12695_s18 }
0x13d0   :  { %v17165_v58 = vpop.permute.xlu1 %8732 }
0x13d1   :  { %v8810_v46 = vadd.f32 %v17165_v58, %v16872_v48 }
0x13d3   :  { %9127 = vrot.lane.b32.xlu0 %v9001_v36, %s12695_s18 }
0x13d4   :  { %v17169_v43 = vpop.permute.xlu1 %8728 }
0x13d5   :  { %v8808_v59 = vadd.f32 %v17169_v43, %v16880_v50 }
0x13d6   :  { %v11488_v13 = vpop.f32.mrb[200].mxu1 }
0x13d7   :  { %9137 = vrot.lane.b32.xlu0 %v11488_v13, %s12695_s18  ;;  %v9014_v24 = vpop.f32.mrb[201].mxu1 }
0x13d8   :  { %v11489_v42 = vpop.f32.mrb[202].mxu1 }
0x13d9   :  { %v9017_v14 = vpop.f32.mrb[203].mxu1 }
0x13db   :  { %9133 = vrot.lane.b32.xlu0 %v9014_v24, %s12695_s18 }
0x13df   :  { %9139 = vrot.lane.b32.xlu0 %v11489_v42, %s12695_s18 }
0x13e3   :  { %9135 = vrot.lane.b32.xlu0 %v9017_v14, %s12695_s18  ;;  %v17173_v14 = vpop.permute.xlu1 %8730 }
0x13e6   :  { %v11492_v44 = vpop.f32.mrb[204].mxu1 }
0x13e7   :  { %9145 = vrot.lane.b32.xlu0 %v11492_v44, %s12695_s18  ;;  %v9030_v34 = vpop.f32.mrb[205].mxu1 }
0x13e8   :  { %v11493_v35 = vpop.f32.mrb[206].mxu1 }
0x13e9   :  { %v9033_v12 = vpop.f32.mrb[207].mxu1 }
0x13eb   :  { %9141 = vrot.lane.b32.xlu0 %v9030_v34, %s12695_s18 }
0x13ef   :  { %9147 = vrot.lane.b32.xlu0 %v11493_v35, %s12695_s18  ;;  %v8792_v35 = vadd.f32 %v8697_v9, %v16732_v56 }
0x13f3   :  { %9143 = vrot.lane.b32.xlu0 %v9033_v12, %s12695_s18  ;;  %v8793_v12 = vadd.f32 %v17113_v3, %v16744_v39  ;;  %v8796_v39 = vadd.f32 %v17122_v16, %v16766_v0 }
0x13f6   :  { %v11496_v31 = vpop.f32.mrb[208].mxu1 }
0x13f7   :  { %9153 = vrot.lane.b32.xlu0 %v11496_v31, %s12695_s18  ;;  %v9046_v36 = vpop.f32.mrb[209].mxu1 }
0x13f8   :  { %v11497_v13 = vpop.f32.mrb[210].mxu1 }
0x13f9   :  { %v9098_v24 = vpop.permute.xlu0 %9097  ;;  %9155 = vrot.lane.b32.xlu1 %v11497_v13, %s12695_s18  ;;  %v9049_v42 = vpop.f32.mrb[211].mxu1  ;;  %v8795_v13 = vadd.f32 %v17108_v47, %v16738_v8 }
0x13fa   :  { %v9094_v34 = vpop.permute.xlu1 %9093 }
0x13fb   :  { %9149 = vrot.lane.b32.xlu0 %v9046_v36, %s12695_s18  ;;  %v9189_v31 = vadd.f32 %v9094_v34, %v8792_v35  ;;  %v9191_v36 = vadd.f32 %v9098_v24, %v8794_v2  ;;  %v8797_v2 = vadd.f32 %v17132_v20, %v16778_v38  ;;  %v8802_v38 = vadd.f32 %v17137_v25, %v16801_v40 }
0x13fc   :  { %v8804_v40 = vadd.f32 %v17155_v27, %v16840_v18  ;;  %v8807_v27 = vadd.f32 %v17158_v49, %v16846_v33  ;;  %v8809_v49 = vadd.f32 %v17173_v14, %v16892_v5 }
0x13fd   :  { %v9100_v44 = vpop.permute.xlu0 %9099 }
0x13fe   :  { %v9192_v51 = vadd.f32 %v9100_v44, %v8795_v13  ;;  %v8735_v44 = vpop.permute.xlu1 %8734 }
0x13ff   :  { %9151 = vrot.lane.b32.xlu0 %v9049_v42, %s12695_s18  ;;  %v8811_v43 = vadd.f32 %v8735_v44, %v16886_v53 }
0x1401   :  { %v9096_v32 = vpop.permute.xlu0 %9095 }
0x1402   :  { %v9190_v1 = vadd.f32 %v9096_v32, %v8793_v12  ;;  %v8737_v25 = vpop.permute.xlu1 %8736 }
0x1403   :  { %9253 = vrot.lane.b32.xlu0 %v9189_v31, %s12694_s26  ;;  %v8812_v48 = vadd.f32 %v8737_v25, %v16914_v10 }
0x1404   :  { %9255 = vrot.lane.b32.xlu1 %v9190_v1, %s12694_s26 }
0x1406   :  { %v8739_v22 = vpop.permute.xlu1 %8738 }
0x1407   :  { %9257 = vrot.lane.b32.xlu0 %v9191_v36, %s12694_s26  ;;  %v8813_v53 = vadd.f32 %v8739_v22, %v16926_v11 }
0x1408   :  { %9259 = vrot.lane.b32.xlu1 %v9192_v51, %s12694_s26 }
0x1409   :  { %v9106_v56 = vpop.permute.xlu0 %9105 }
0x140a   :  { %v9195_v47 = vadd.f32 %v9106_v56, %v8798_v7  ;;  %v8741_v36 = vpop.permute.xlu1 %8740 }
0x140b   :  { %v8814_v5 = vadd.f32 %v8741_v36, %v16909_v45 }
0x140d   :  { %v9102_v32 = vpop.permute.xlu0 %9101 }
0x140e   :  { %v9193_v3 = vadd.f32 %v9102_v32, %v8796_v39  ;;  %v8743_v62 = vpop.permute.xlu1 %8742 }
0x140f   :  { %v8815_v10 = vadd.f32 %v8743_v62, %v16920_v29 }
0x1410   :  { %9261 = vrot.lane.b32.xlu0 %v9193_v3, %s12694_s26 }
0x1411   :  { %v9108_v8 = vpop.permute.xlu0 %9107 }
0x1412   :  { %v9196_v16 = vadd.f32 %v9108_v8, %v8799_v61  ;;  %v8745_v7 = vpop.permute.xlu1 %8744 }
0x1413   :  { %v8816_v45 = vadd.f32 %v8745_v7, %v16951_v57 }
0x1414   :  { %9265 = vrot.lane.b32.xlu0 %v9195_v47, %s12694_s26 }
0x1415   :  { %v9104_v1 = vpop.permute.xlu0 %9103 }
0x1416   :  { %v9194_v51 = vadd.f32 %v9104_v1, %v8797_v2  ;;  %v8747_v1 = vpop.permute.xlu1 %8746 }
0x1417   :  { %v8817_v29 = vadd.f32 %v8747_v1, %v16966_v26 }
0x1418   :  { %9263 = vrot.lane.b32.xlu1 %v9194_v51, %s12694_s26 }
0x1419   :  { %v9114_v0 = vpop.permute.xlu0 %9113 }
0x141a   :  { %v9199_v24 = vadd.f32 %v9114_v0, %v8802_v38  ;;  %v8749_v14 = vpop.permute.xlu1 %8748 }
0x141b   :  { %v8818_v11 = vadd.f32 %v8749_v14, %v16946_v41 }
0x141c   :  { %9267 = vrot.lane.b32.xlu1 %v9196_v16, %s12694_s26 }
0x141d   :  { %v9110_v15 = vpop.permute.xlu0 %9109 }
0x141e   :  { %v9197_v9 = vadd.f32 %v9110_v15, %v8800_v52  ;;  %v8751_v15 = vpop.permute.xlu1 %8750 }
0x141f   :  { %v8819_v57 = vadd.f32 %v8751_v15, %v16960_v30 }
0x1420   :  { %9269 = vrot.lane.b32.xlu0 %v9197_v9, %s12694_s26 }
0x1421   :  { %v9116_v20 = vpop.permute.xlu0 %9115 }
0x1422   :  { %v9200_v34 = vadd.f32 %v9116_v20, %v8803_v19  ;;  %v8753_v20 = vpop.permute.xlu1 %8752 }
0x1423   :  { %v8820_v41 = vadd.f32 %v8753_v20, %v16988_v37 }
0x1424   :  { %9273 = vrot.lane.b32.xlu0 %v9199_v24, %s12694_s26 }
0x1425   :  { %v9112_v54 = vpop.permute.xlu0 %9111 }
0x1426   :  { %v9198_v42 = vadd.f32 %v9112_v54, %v8801_v55  ;;  %v8755_v44 = vpop.permute.xlu1 %8754 }
0x1427   :  { %v8821_v26 = vadd.f32 %v8755_v44, %v17000_v17  ;;  %v18060_v17 = vld [vmem:[#allocation40_spill] sm:$0xff] }
0x1428   :  { %9271 = vrot.lane.b32.xlu1 %v9198_v42, %s12694_s26 }
0x1429   :  { %v9122_v63 = vpop.permute.xlu0 %9121 }
0x142a   :  { %v9203_v31 = vadd.f32 %v9122_v63, %v8806_v28 }
0x142c   :  { %9275 = vrot.lane.b32.xlu1 %v9200_v34, %s12694_s26  ;;  %v8757_v34 = vpop.permute.xlu1 %8756 }
0x142d   :  { %v9118_v35 = vpop.permute.xlu0 %9117 }
0x142e   :  { %v9201_v4 = vadd.f32 %v9118_v35, %v8804_v40 }
0x1430   :  { %9277 = vrot.lane.b32.xlu0 %v9201_v4, %s12694_s26  ;;  %v8759_v28 = vpop.permute.xlu1 %8758 }
0x1431   :  { %v9124_v12 = vpop.permute.xlu0 %9123 }
0x1432   :  { %v9204_v23 = vadd.f32 %v9124_v12, %v8807_v27  ;;  %v8822_v12 = vadd.f32 %v8757_v34, %v16983_v6  ;;  %v18061_v6 = vld [vmem:[#allocation41_spill] sm:$0xff] }
0x1434   :  { %9281 = vrot.lane.b32.xlu0 %v9203_v31, %s12694_s26 }
0x1435   :  { %v9120_v13 = vpop.permute.xlu0 %9119 }
0x1436   :  { %v9202_v18 = vadd.f32 %v9120_v13, %v8805_v21  ;;  %v8823_v13 = vadd.f32 %v8759_v28, %v16994_v60 }
0x1438   :  { %9279 = vrot.lane.b32.xlu1 %v9202_v18, %s12694_s26 }
0x1439   :  { %v9130_v56 = vpop.permute.xlu0 %9129 }
0x143a   :  { %v9207_v33 = vadd.f32 %v9130_v56, %v8810_v46 }
0x143c   :  { %9283 = vrot.lane.b32.xlu1 %v9204_v23, %s12694_s26 }
0x143d   :  { %v9126_v39 = vpop.permute.xlu0 %9125 }
0x143e   :  { %v9205_v32 = vadd.f32 %v9126_v39, %v8808_v59  ;;  %v18062_v39 = vld [vmem:[#allocation54_spill] sm:$0xff] }
0x1440   :  { %9285 = vrot.lane.b32.xlu0 %v9205_v32, %s12694_s26 }
0x1441   :  { %v9132_v3 = vpop.permute.xlu0 %9131 }
0x1442   :  { %v9208_v2 = vadd.f32 %v9132_v3, %v8811_v43 }
0x1444   :  { %9289 = vrot.lane.b32.xlu0 %v9207_v33, %s12694_s26 }
0x1445   :  { %v9128_v8 = vpop.permute.xlu0 %9127 }
0x1446   :  { %v9206_v50 = vadd.f32 %v9128_v8, %v8809_v49 }
0x1448   :  { %9287 = vrot.lane.b32.xlu1 %v9206_v50, %s12694_s26  ;;  %v18063_v50 = vld [vmem:[#allocation55_spill] sm:$0xff] }
0x1449   :  { %v9138_v47 = vpop.permute.xlu0 %9137 }
0x144a   :  { %v9211_v0 = vadd.f32 %v9138_v47, %v8814_v5 }
0x144c   :  { %9291 = vrot.lane.b32.xlu1 %v9208_v2, %s12694_s26 }
0x144d   :  { %v9134_v58 = vpop.permute.xlu0 %9133 }
0x144e   :  { %v9209_v51 = vadd.f32 %v9134_v58, %v8812_v48  ;;  %v18064_v48 = vld [vmem:[#allocation62_spill] sm:$0xff] }
0x1450   :  { %9293 = vrot.lane.b32.xlu0 %v9209_v51, %s12694_s26 }
0x1451   :  { %v9140_v61 = vpop.permute.xlu0 %9139 }
0x1452   :  { %v9212_v38 = vadd.f32 %v9140_v61, %v8815_v10  ;;  %v18065_v61 = vld [vmem:[#allocation63_spill] sm:$0xff] }
0x1454   :  { %9297 = vrot.lane.b32.xlu0 %v9211_v0, %s12694_s26 }
0x1455   :  { %v9136_v16 = vpop.permute.xlu0 %9135 }
0x1456   :  { %v9210_v52 = vadd.f32 %v9136_v16, %v8813_v53 }
0x1458   :  { %9295 = vrot.lane.b32.xlu1 %v9210_v52, %s12694_s26 }
0x1459   :  { %v9146_v9 = vpop.permute.xlu0 %9145 }
0x145a   :  { %v9215_v42 = vadd.f32 %v9146_v9, %v8818_v11  ;;  %v18066_v11 = vld [vmem:[#allocation70_spill] sm:$0xff] }
0x145c   :  { %9299 = vrot.lane.b32.xlu1 %v9212_v38, %s12694_s26 }
0x145d   :  { %v9142_v24 = vpop.permute.xlu0 %9141 }
0x145e   :  { %v9213_v55 = vadd.f32 %v9142_v24, %v8816_v45 }
0x1460   :  { %9301 = vrot.lane.b32.xlu0 %v9213_v55, %s12694_s26 }
0x1461   :  { %v9148_v54 = vpop.permute.xlu0 %9147 }
0x1462   :  { %v9216_v25 = vadd.f32 %v9148_v54, %v8819_v57  ;;  %v18067_v57 = vld [vmem:[#allocation71_spill] sm:$0xff] }
0x1464   :  { %9305 = vrot.lane.b32.xlu0 %v9215_v42, %s12694_s26 }
0x1465   :  { %v9144_v19 = vpop.permute.xlu0 %9143 }
0x1466   :  { %v9214_v63 = vadd.f32 %v9144_v19, %v8817_v29 }
0x1468   :  { %9303 = vrot.lane.b32.xlu1 %v9214_v63, %s12694_s26 }
0x1469   :  { %v9154_v40 = vpop.permute.xlu0 %9153 }
0x146a   :  { %v9219_v30 = vadd.f32 %v9154_v40, %v8822_v12 }
0x146b   :  { %v9156_v21 = vpop.permute.xlu1 %9155 }
0x146c   :  { %9307 = vrot.lane.b32.xlu1 %v9216_v25, %s12694_s26  ;;  %v9220_v37 = vadd.f32 %v9156_v21, %v8823_v13 }
0x146d   :  { %v9150_v35 = vpop.permute.xlu0 %9149 }
0x146e   :  { %v9217_v4 = vadd.f32 %v9150_v35, %v8820_v41 }
0x1470   :  { %9309 = vrot.lane.b32.xlu0 %v9217_v4, %s12694_s26  ;;  %v18068_v4 = vld [vmem:[#allocation44_spill] sm:$0xff] }
0x1471   :  { %v9152_v31 = vpop.permute.xlu0 %9151 }
0x1472   :  { %v9218_v22 = vadd.f32 %v9152_v31, %v8821_v26 }
0x1474   :  { %9311 = vrot.lane.b32.xlu1 %v9218_v22, %s12694_s26  ;;  %9313 = vrot.lane.b32.xlu0 %v9219_v30, %s12694_s26  ;;  %v18069_v30 = vld [vmem:[#allocation45_spill] sm:$0xff] }
0x1475   :  { %v9254_v18 = vpop.permute.xlu0 %9253 }
0x1476   :  { %v9256_v27 = vpop.permute.xlu1 %9255  ;;  %v17259_v36 = vadd.f32 %v9254_v18, %v18060_v17 }
0x1477   :  { %v17262_v56 = vadd.f32 %v9256_v27, %v18061_v6 }
0x1478   :  { %9315 = vrot.lane.b32.xlu1 %v9220_v37, %s12694_s26  ;;  %v9451_v59 = vmul.f32 %v17259_v36, %v17259_v36  ;;  %v9381_v46 = vsel %vm541_vm0, %v17259_v36, 0.0  ;;  %s9783_s26 = sshll.u32 %s12696_s2, 4  ;;  %s9784_s26 = int_to_ptr.vmem [resolvable:$true] %s9783_s26 }
0x1479   :  { %v9258_v23 = vpop.permute.xlu0 %9257  ;;  %v9452_v60 = vmul.f32 %v17262_v56, %v17262_v56  ;;  %v9382_v3 = vsel %vm541_vm0, %v17262_v56, 0.0  ;;  %s12645_s18 = scalar_lea.vmem %s9784_s26, 4096  ;;  %p12650_p1 = scmp.lt.s32.totalorder %s9784_s26, %s9784_s26 }
0x147a   :  { %v17269_v32 = vadd.f32 %v9258_v23, %v18062_v39  ;;  %v9260_v62 = vpop.permute.xlu1 %9259  ;;  %v9483_v49 = vsel %vm541_vm0, %v9451_v59, 0.0  ;;  %v9383_v47 = vadd.f32 %v9382_v3, %v9381_v46  ;;  %v18070_v46 = vld [vmem:[#allocation52_spill] sm:$0xff]  ;;  %p12646_p0 = scmp.ne.s32.totalorder %s9784_s26, %s12645_s18  ;;  %p12651_p2 = scmp.lt.s32.totalorder %s12645_s18, %s12645_s18 }
0x147b   :  { %v9484_v7 = vsel %vm541_vm0, %v9452_v60, 0.0  ;;  %v17280_v43 = vadd.f32 %v9260_v62, %v18063_v50 }
0x147c   :  { %v9453_v8 = vmul.f32 %v17269_v32, %v17269_v32  ;;  %v9384_v1 = vsel %vm541_vm0, %v17269_v32, 0.0  ;;  %v9485_v51 = vadd.f32 %v9484_v7, %v9483_v49  ;;  %p12652_p3 = por %p12651_p2, %p12650_p1 }
0x147d   :  { %v9454_v14 = vmul.f32 %v17280_v43, %v17280_v43  ;;  %v9385_v53 = vadd.f32 %v9384_v1, %v9383_v47  ;;  %v9386_v16 = vsel %vm541_vm0, %v17280_v43, 0.0 }
0x147e   :  { %v9486_v5 = vsel %vm541_vm0, %v9453_v8, 0.0  ;;  %p12653_p4 = pnand %p12652_p3, %p12646_p0 }
0x147f   :  { %v9487_v15 = vadd.f32 %v9486_v5, %v9485_v51  ;;  %v9488_v9 = vsel %vm541_vm0, %v9454_v14, 0.0  ;;  %v9387_v20 = vadd.f32 %v9386_v16, %v9385_v53 }
0x1481   :  { %v9489_v44 = vadd.f32 %v9488_v9, %v9487_v15 }
0x1482   :  { %v9262_v33 = vpop.permute.xlu0 %9261 }
0x1483   :  { %v17285_v58 = vadd.f32 %v9262_v33, %v18064_v48 }
0x1485   :  { %v9455_v52 = vmul.f32 %v17285_v58, %v17285_v58  ;;  %v9388_v38 = vsel %vm541_vm0, %v17285_v58, 0.0 }
0x1486   :  { %v9266_v10 = vpop.permute.xlu0 %9265  ;;  %v9389_v29 = vadd.f32 %v9388_v38, %v9387_v20 }
0x1487   :  { %v9490_v55 = vsel %vm541_vm0, %v9455_v52, 0.0  ;;  %v17304_v54 = vadd.f32 %v9266_v10, %v18066_v11 }
0x1488   :  { %v9491_v40 = vadd.f32 %v9490_v55, %v9489_v44 }
0x1489   :  { %v9457_v35 = vmul.f32 %v17304_v54, %v17304_v54  ;;  %v9392_v12 = vsel %vm541_vm0, %v17304_v54, 0.0 }
0x148a   :  { %v9264_v2 = vpop.permute.xlu1 %9263 }
0x148b   :  { %v17291_v0 = vadd.f32 %v9264_v2, %v18065_v61  ;;  %v9494_v13 = vsel %vm541_vm0, %v9457_v35, 0.0 }
0x148d   :  { %v9456_v45 = vmul.f32 %v17291_v0, %v17291_v0  ;;  %v9390_v42 = vsel %vm541_vm0, %v17291_v0, 0.0 }
0x148e   :  { %v9268_v24 = vpop.permute.xlu1 %9267  ;;  %v9391_v25 = vadd.f32 %v9390_v42, %v9389_v29 }
0x148f   :  { %v9492_v63 = vsel %vm541_vm0, %v9456_v45, 0.0  ;;  %v17310_v34 = vadd.f32 %v9268_v24, %v18067_v57 }
0x1490   :  { %v9493_v26 = vadd.f32 %v9492_v63, %v9491_v40  ;;  %v9393_v21 = vadd.f32 %v9392_v12, %v9391_v25 }
0x1491   :  { %v9458_v31 = vmul.f32 %v17310_v34, %v17310_v34  ;;  %v9394_v37 = vsel %vm541_vm0, %v17310_v34, 0.0 }
0x1492   :  { %v9270_v19 = vpop.permute.xlu0 %9269  ;;  %v9495_v27 = vadd.f32 %v9494_v13, %v9493_v26  ;;  %v9395_v60 = vadd.f32 %v9394_v37, %v9393_v21 }
0x1493   :  { %v17315_v28 = vadd.f32 %v9270_v19, %v18068_v4  ;;  %v9496_v6 = vsel %vm541_vm0, %v9458_v31, 0.0 }
0x1494   :  { %v9497_v49 = vadd.f32 %v9496_v6, %v9495_v27 }
0x1495   :  { %v9459_v18 = vmul.f32 %v17315_v28, %v17315_v28  ;;  %v9396_v23 = vsel %vm541_vm0, %v17315_v28, 0.0 }
0x1496   :  { %v9274_v17 = vpop.permute.xlu0 %9273  ;;  %v9397_v7 = vadd.f32 %v9396_v23, %v9395_v60 }
0x1497   :  { %v9498_v62 = vsel %vm541_vm0, %v9459_v18, 0.0  ;;  %v17336_v3 = vadd.f32 %v9274_v17, %v18070_v46 }
0x149a   :  { %v9272_v41 = vpop.permute.xlu1 %9271 }
0x149b   :  { %v17322_v22 = vadd.f32 %v9272_v41, %v18069_v30 }
0x149d   :  { %v9460_v59 = vmul.f32 %v17322_v22, %v17322_v22  ;;  %v9398_v33 = vsel %vm541_vm0, %v17322_v22, 0.0 }
0x149e   :  { %v9276_v39 = vpop.permute.xlu1 %9275 }
0x14a2   :  { %v9278_v8 = vpop.permute.xlu0 %9277 }
0x14a3   :  { %12656 = shalt.err (!%p12653_p4)
}
0x14a4   :  { %s12657_s12 = scalar_lea.hbm %s17729_s11, 4096 }
0x14a5   :  { %p12658_p5 = scmp.ne.s32.totalorder %s17729_s11, %s12657_s12  ;;  %p12661_p6 = scmp.lt.u32.totalorder %s12657_s12, %s17729_s11 }
0x14a7   :  { %p12663_p7 = pnand %p12661_p6, %p12658_p5 }
0x14a9   :  { %12666 = shalt.err (!%p12663_p7)
}
0x14aa   :  { %s12697_s16 = smov 128   ;;  %s12698_s17 = smov 8   ;;  %v9500_v50 = vsel %vm541_vm0, %v9460_v59, 0.0  ;;  %v18071_v47 = vld [vmem:[#allocation53_spill] sm:$0xff]  ;;  %v9499_v1 = vadd.f32 %v9498_v62, %v9497_v49  ;;  %v9399_v48 = vadd.f32 %v9398_v33, %v9397_v7  ;;  %v9280_v51 = vpop.permute.xlu1 %9279  ;;  %v9461_v5 = vmul.f32 %v17336_v3, %v17336_v3  ;;  %v9282_v55 = vpop.permute.xlu0 %9281  ;;  %v18074_v57 = vld [vmem:[#allocation68_spill] sm:$0xff]  ;;  %v18076_v18 = vld [vmem:[#allocation46_spill] sm:$0xff] }
0x14ab   :  { %9789 = dma.vmem_to_hbm [thread:$0]  %s9784_s26, 4096, %s17729_s11, [#allocation5], %s12697_s16, %s12697_s16, %s12698_s17   ;;  %v17357_v2 = vadd.f32 %v9276_v39, %v18071_v47  ;;  %v18072_v14 = vld [vmem:[#allocation57_spill] sm:$0xff]  ;;  %v9400_v16 = vsel %vm541_vm0, %v17336_v3, 0.0  ;;  %v17383_v40 = vadd.f32 %v9282_v55, %v18074_v57  ;;  %v18077_v59 = vld [vmem:[#allocation47_spill] sm:$0xff] }
0x14ac   :  { %v17362_v61 = vadd.f32 %v9278_v8, %v18072_v14  ;;  %v9501_v53 = vadd.f32 %v9500_v50, %v9499_v1  ;;  %v18073_v15 = vld [vmem:[#allocation61_spill] sm:$0xff]  ;;  %v9401_v9 = vadd.f32 %v9400_v16, %v9399_v48  ;;  %v9502_v38 = vsel %vm541_vm0, %v9461_v5, 0.0  ;;  %v18078_v5 = vld [vmem:[#allocation50_spill] sm:$0xff] }
0x14ad   :  { %v9462_v52 = vmul.f32 %v17357_v2, %v17357_v2  ;;  %v17369_v10 = vadd.f32 %v9280_v51, %v18073_v15  ;;  %v9402_v45 = vsel %vm541_vm0, %v17357_v2, 0.0  ;;  %v18075_v12 = vld [vmem:[#allocation69_spill] sm:$0xff]  ;;  %v9465_v37 = vmul.f32 %v17383_v40, %v17383_v40 }
0x14ae   :  { %v9463_v20 = vmul.f32 %v17362_v61, %v17362_v61  ;;  %v9503_v24 = vadd.f32 %v9502_v38, %v9501_v53  ;;  %v9404_v42 = vsel %vm541_vm0, %v17362_v61, 0.0  ;;  %v9403_v29 = vadd.f32 %v9402_v45, %v9401_v9  ;;  %v9284_v19 = vpop.permute.xlu1 %9283  ;;  %v18079_v38 = vld [vmem:[#allocation51_spill] sm:$0xff] }
0x14af   :  { %v9504_v11 = vsel %vm541_vm0, %v9462_v52, 0.0  ;;  %v9464_v44 = vmul.f32 %v17369_v10, %v17369_v10  ;;  %v9406_v25 = vsel %vm541_vm0, %v17369_v10, 0.0  ;;  %v17389_v31 = vadd.f32 %v9284_v19, %v18075_v12 }
0x14b0   :  { %v9506_v63 = vsel %vm541_vm0, %v9463_v20, 0.0  ;;  %v9505_v41 = vadd.f32 %v9504_v11, %v9503_v24  ;;  %v9405_v35 = vadd.f32 %v9404_v42, %v9403_v29  ;;  %v9408_v6 = vsel %vm541_vm0, %v17383_v40, 0.0  ;;  %v18080_v11 = vld [vmem:[#allocation58_spill] sm:$0xff] }
0x14b1   :  { %v9508_v26 = vsel %vm541_vm0, %v9464_v44, 0.0  ;;  %v9466_v23 = vmul.f32 %v17389_v31, %v17389_v31  ;;  %v9510_v62 = vsel %vm541_vm0, %v9465_v37, 0.0  ;;  %v9410_v46 = vsel %vm541_vm0, %v17389_v31, 0.0 }
0x14b2   :  { %v9286_v4 = vpop.permute.xlu0 %9285  ;;  %v9507_v30 = vadd.f32 %v9506_v63, %v9505_v41  ;;  %v9407_v21 = vadd.f32 %v9406_v25, %v9405_v35 }
0x14b3   :  { %v17394_v27 = vadd.f32 %v9286_v4, %v18076_v18  ;;  %v9512_v8 = vsel %vm541_vm0, %v9466_v23, 0.0  ;;  %v18081_v4 = vld [vmem:[#allocation59_spill] sm:$0xff]  ;;  %v18082_v23 = vld [vmem:[#allocation66_spill] sm:$0xff] }
0x14b4   :  { %v9509_v17 = vadd.f32 %v9508_v26, %v9507_v30  ;;  %v9409_v39 = vadd.f32 %v9408_v6, %v9407_v21 }
0x14b5   :  { %v9467_v33 = vmul.f32 %v17394_v27, %v17394_v27  ;;  %v9412_v50 = vsel %vm541_vm0, %v17394_v27, 0.0 }
0x14b6   :  { %v9511_v49 = vadd.f32 %v9510_v62, %v9509_v17  ;;  %v9290_v7 = vpop.permute.xlu0 %9289  ;;  %v9411_v1 = vadd.f32 %v9410_v46, %v9409_v39 }
0x14b7   :  { %v9514_v51 = vsel %vm541_vm0, %v9467_v33, 0.0  ;;  %v17415_v14 = vadd.f32 %v9290_v7, %v18078_v5 }
0x14b8   :  { %v9513_v16 = vadd.f32 %v9512_v8, %v9511_v49  ;;  %v9413_v52 = vadd.f32 %v9412_v50, %v9411_v1  ;;  %v18083_v49 = vld [vmem:[#allocation67_spill] sm:$0xff] }
0x14b9   :  { %v9469_v55 = vmul.f32 %v17415_v14, %v17415_v14  ;;  %v9416_v29 = vsel %vm541_vm0, %v17415_v14, 0.0 }
0x14ba   :  { %v9288_v13 = vpop.permute.xlu1 %9287  ;;  %v9515_v20 = vadd.f32 %v9514_v51, %v9513_v16 }
0x14bb   :  { %v17401_v60 = vadd.f32 %v9288_v13, %v18077_v59  ;;  %v9518_v25 = vsel %vm541_vm0, %v9469_v55, 0.0 }
0x14bd   :  { %v9468_v47 = vmul.f32 %v17401_v60, %v17401_v60  ;;  %v9414_v53 = vsel %vm541_vm0, %v17401_v60, 0.0 }
0x14be   :  { %v9292_v48 = vpop.permute.xlu1 %9291  ;;  %v9415_v24 = vadd.f32 %v9414_v53, %v9413_v52 }
0x14bf   :  { %v9516_v9 = vsel %vm541_vm0, %v9468_v47, 0.0  ;;  %v17421_v45 = vadd.f32 %v9292_v48, %v18079_v38  ;;  %v18084_v48 = vld [vmem:[#allocation42_spill] sm:$0xff] }
0x14c0   :  { %v9517_v44 = vadd.f32 %v9516_v9, %v9515_v20  ;;  %v9417_v63 = vadd.f32 %v9416_v29, %v9415_v24 }
0x14c1   :  { %v9470_v19 = vmul.f32 %v17421_v45, %v17421_v45  ;;  %v9418_v41 = vsel %vm541_vm0, %v17421_v45, 0.0 }
0x14c2   :  { %v9294_v15 = vpop.permute.xlu0 %9293  ;;  %v9519_v12 = vadd.f32 %v9518_v25, %v9517_v44  ;;  %v9419_v18 = vadd.f32 %v9418_v41, %v9417_v63  ;;  %v18085_v63 = vld [vmem:[#allocation48_spill] sm:$0xff]  ;;  %v18086_v25 = vld [vmem:[#allocation43_spill] sm:$0xff] }
0x14c3   :  { %v17426_v42 = vadd.f32 %v9294_v15, %v18080_v11  ;;  %v9520_v21 = vsel %vm541_vm0, %v9470_v19, 0.0 }
0x14c4   :  { %v9521_v62 = vadd.f32 %v9520_v21, %v9519_v12 }
0x14c5   :  { %v9471_v35 = vmul.f32 %v17426_v42, %v17426_v42  ;;  %v9420_v13 = vsel %vm541_vm0, %v17426_v42, 0.0 }
0x14c6   :  { %v9298_v30 = vpop.permute.xlu0 %9297  ;;  %v9421_v46 = vadd.f32 %v9420_v13, %v9419_v18 }
0x14c7   :  { %v9522_v6 = vsel %vm541_vm0, %v9471_v35, 0.0  ;;  %v17447_v59 = vadd.f32 %v9298_v30, %v18082_v23 }
0x14c8   :  { %v9523_v8 = vadd.f32 %v9522_v6, %v9521_v62  ;;  %v18087_v6 = vld [vmem:[#allocation49_spill] sm:$0xff] }
0x14c9   :  { %v9473_v1 = vmul.f32 %v17447_v59, %v17447_v59  ;;  %v9424_v53 = vsel %vm541_vm0, %v17447_v59, 0.0 }
0x14ca   :  { %v9296_v57 = vpop.permute.xlu1 %9295 }
0x14cb   :  { %v17438_v26 = vadd.f32 %v9296_v57, %v18081_v4  ;;  %v9526_v15 = vsel %vm541_vm0, %v9473_v1, 0.0 }
0x14cd   :  { %v9472_v37 = vmul.f32 %v17438_v26, %v17438_v26  ;;  %v9422_v39 = vsel %vm541_vm0, %v17438_v26, 0.0 }
0x14ce   :  { %v9300_v17 = vpop.permute.xlu1 %9299  ;;  %v9423_v50 = vadd.f32 %v9422_v39, %v9421_v46 }
0x14cf   :  { %v9524_v33 = vsel %vm541_vm0, %v9472_v37, 0.0  ;;  %v17453_v7 = vadd.f32 %v9300_v17, %v18083_v49 }
0x14d0   :  { %v9525_v5 = vadd.f32 %v9524_v33, %v9523_v8  ;;  %v9425_v52 = vadd.f32 %v9424_v53, %v9423_v50 }
0x14d1   :  { %v9474_v16 = vmul.f32 %v17453_v7, %v17453_v7  ;;  %v9426_v9 = vsel %vm541_vm0, %v17453_v7, 0.0 }
0x14d2   :  { %v9302_v47 = vpop.permute.xlu0 %9301  ;;  %v9527_v20 = vadd.f32 %v9526_v15, %v9525_v5  ;;  %v9427_v44 = vadd.f32 %v9426_v9, %v9425_v52 }
0x14d3   :  { %v17458_v51 = vadd.f32 %v9302_v47, %v18084_v48  ;;  %v9528_v55 = vsel %vm541_vm0, %v9474_v16, 0.0  ;;  %v18088_v47 = vld [vmem:[#allocation56_spill] sm:$0xff] }
0x14d4   :  { %v9529_v35 = vadd.f32 %v9528_v55, %v9527_v20  ;;  %v18089_v20 = vld [vmem:[#allocation60_spill] sm:$0xff] }
0x14d5   :  { %v9475_v38 = vmul.f32 %v17458_v51, %v17458_v51  ;;  %v9428_v11 = vsel %vm541_vm0, %v17458_v51, 0.0  ;;  %v18090_v55 = vld [vmem:[#allocation64_spill] sm:$0xff] }
0x14d6   :  { %v9306_v24 = vpop.permute.xlu0 %9305  ;;  %v9429_v4 = vadd.f32 %v9428_v11, %v9427_v44 }
0x14d7   :  { %v9530_v19 = vsel %vm541_vm0, %v9475_v38, 0.0  ;;  %v17474_v57 = vadd.f32 %v9306_v24, %v18085_v63 }
0x14d8   :  { %v9531_v21 = vadd.f32 %v9530_v19, %v9529_v35 }
0x14d9   :  { %v9477_v18 = vmul.f32 %v17474_v57, %v17474_v57  ;;  %v9432_v62 = vsel %vm541_vm0, %v17474_v57, 0.0 }
0x14da   :  { %v9304_v29 = vpop.permute.xlu1 %9303 }
0x14db   :  { %v17477_v41 = vadd.f32 %v9304_v29, %v18086_v25  ;;  %v9534_v8 = vsel %vm541_vm0, %v9477_v18, 0.0 }
0x14dd   :  { %v9430_v12 = vsel %vm541_vm0, %v17477_v41, 0.0  ;;  %v9476_v30 = vmul.f32 %v17477_v41, %v17477_v41 }
0x14de   :  { %v9431_v13 = vadd.f32 %v9430_v12, %v9429_v4  ;;  %v9308_v37 = vpop.permute.xlu1 %9307 }
0x14df   :  { %v9532_v17 = vsel %vm541_vm0, %v9476_v30, 0.0  ;;  %v17487_v23 = vadd.f32 %v9308_v37, %v18087_v6 }
0x14e0   :  { %v9533_v39 = vadd.f32 %v9532_v17, %v9531_v21  ;;  %v9433_v33 = vadd.f32 %v9432_v62, %v9431_v13  ;;  %v18091_v13 = vld [vmem:[#allocation65_spill] sm:$0xff] }
0x14e1   :  { %v9478_v46 = vmul.f32 %v17487_v23, %v17487_v23  ;;  %v9434_v50 = vsel %vm541_vm0, %v17487_v23, 0.0 }
0x14e2   :  { %v9310_v49 = vpop.permute.xlu0 %9309  ;;  %v9535_v48 = vadd.f32 %v9534_v8, %v9533_v39  ;;  %v9435_v52 = vadd.f32 %v9434_v50, %v9433_v33 }
0x14e3   :  { %v17497_v1 = vadd.f32 %v9310_v49, %v18088_v47  ;;  %v9536_v5 = vsel %vm541_vm0, %v9478_v46, 0.0 }
0x14e4   :  { %v9537_v44 = vadd.f32 %v9536_v5, %v9535_v48 }
0x14e5   :  { %v9436_v53 = vsel %vm541_vm0, %v17497_v1, 0.0  ;;  %v9479_v16 = vmul.f32 %v17497_v1, %v17497_v1 }
0x14e6   :  { %v9312_v15 = vpop.permute.xlu1 %9311  ;;  %v9314_v9 = vpop.permute.xlu0 %9313  ;;  %v9437_v29 = vadd.f32 %v9436_v53, %v9435_v52 }
0x14e7   :  { %v9538_v38 = vsel %vm541_vm0, %v9479_v16, 0.0  ;;  %v17506_v24 = vadd.f32 %v9312_v15, %v18089_v20  ;;  %v17509_v11 = vadd.f32 %v9314_v9, %v18090_v55 }
0x14e8   :  { %v9539_v35 = vadd.f32 %v9538_v38, %v9537_v44 }
0x14e9   :  { %v9438_v19 = vsel %vm541_vm0, %v17506_v24, 0.0  ;;  %v9480_v63 = vmul.f32 %v17506_v24, %v17506_v24  ;;  %v9481_v25 = vmul.f32 %v17509_v11, %v17509_v11  ;;  %v9440_v21 = vsel %vm541_vm0, %v17509_v11, 0.0 }
0x14ea   :  { %v9439_v4 = vadd.f32 %v9438_v19, %v9437_v29  ;;  %v9316_v12 = vpop.permute.xlu1 %9315 }
0x14eb   :  { %v9540_v30 = vsel %vm541_vm0, %v9480_v63, 0.0  ;;  %v17521_v37 = vadd.f32 %v9316_v12, %v18091_v13  ;;  %v9542_v6 = vsel %vm541_vm0, %v9481_v25, 0.0 }
0x14ec   :  { %v9541_v18 = vadd.f32 %v9540_v30, %v9539_v35  ;;  %v9441_v17 = vadd.f32 %v9440_v21, %v9439_v4 }
0x14ed   :  { %v9442_v39 = vsel %vm541_vm0, %v17521_v37, 0.0  ;;  %v9482_v62 = vmul.f32 %v17521_v37, %v17521_v37 }
0x14ee   :  { %v9543_v46 = vadd.f32 %v9542_v6, %v9541_v18  ;;  %v9443_v33 = vadd.f32 %v9442_v39, %v9441_v17 }
0x14ef   :  { %v9544_v49 = vsel %vm541_vm0, %v9482_v62, 0.0 }
0x14f0   :  { %v9444_v8 = vrot.slane %v9443_v33, 4  ;;  %v9545_v50 = vadd.f32 %v9544_v49, %v9543_v46  ;;  %v17605_v46 = vld [vmem:[%s17727_s9 + $0x2] ss:$0 sm:$0xff] }
0x14f2   :  { %v9445_v47 = vadd.f32 %v9444_v8, %v9443_v33  ;;  %v9546_v48 = vrot.slane %v9545_v50, 4 }
0x14f4   :  { %v9446_v5 = vrot.slane %v9445_v47, 2  ;;  %v9547_v53 = vadd.f32 %v9546_v48, %v9545_v50 }
0x14f6   :  { %v9447_v16 = vadd.f32 %v9446_v5, %v9445_v47  ;;  %v9548_v52 = vrot.slane %v9547_v53, 2 }
0x14f8   :  { %v9448_v15 = vrot.slane %v9447_v16, 1  ;;  %v9549_v9 = vadd.f32 %v9548_v52, %v9547_v53 }
0x14fa   :  { %v9449_v38 = vadd.f32 %v9448_v15, %v9447_v16  ;;  %v9550_v20 = vrot.slane %v9549_v9, 1 }
0x14fc   :  { %v17529_v55 = vmul.f32 0.00390625, %v9449_v38  ;;  %v9551_v44 = vadd.f32 %v9550_v20, %v9549_v9 }
0x14fe   :  { %v9552_v29 = vmul.f32 0.00390625, %v9551_v44  ;;  %v9553_v19 = vmul.f32 %v17529_v55, %v17529_v55  ;;  %v9587_v4 = vsub.f32 %v17521_v37, %v17529_v55  ;;  %v9556_v12 = vsub.f32 %v17259_v36, %v17529_v55 }
0x14ff   :  { %v9557_v30 = vsub.f32 %v17262_v56, %v17529_v55  ;;  %v9558_v21 = vsub.f32 %v17269_v32, %v17529_v55  ;;  %v9559_v13 = vsub.f32 %v17280_v43, %v17529_v55  ;;  %v9560_v18 = vsub.f32 %v17285_v58, %v17529_v55 }
0x1500   :  { %v9554_v63 = vsub.f32 %v9552_v29, %v9553_v19  ;;  %v9561_v17 = vsub.f32 %v17291_v0, %v17529_v55  ;;  %v9562_v37 = vsub.f32 %v17304_v54, %v17529_v55  ;;  %v9563_v36 = vsub.f32 %v17310_v34, %v17529_v55 }
0x1501   :  { %v9564_v56 = vsub.f32 %v17315_v28, %v17529_v55  ;;  %v9565_v32 = vsub.f32 %v17322_v22, %v17529_v55  ;;  %v9566_v43 = vsub.f32 %v17336_v3, %v17529_v55  ;;  %v9567_v58 = vsub.f32 %v17357_v2, %v17529_v55 }
0x1502   :  { %v9555_v25 = vmax.f32 %v9554_v63, 0.0  ;;  %v9568_v0 = vsub.f32 %v17362_v61, %v17529_v55  ;;  %v9569_v54 = vsub.f32 %v17369_v10, %v17529_v55  ;;  %v9570_v34 = vsub.f32 %v17383_v40, %v17529_v55 }
0x1503   :  { %v9571_v28 = vsub.f32 %v17389_v31, %v17529_v55  ;;  %v9572_v22 = vsub.f32 %v17394_v27, %v17529_v55  ;;  %v9573_v3 = vsub.f32 %v17401_v60, %v17529_v55  ;;  %v9574_v2 = vsub.f32 %v17415_v14, %v17529_v55 }
0x1504   :  { %v9588_v35 = vadd.f32 1e-05, %v9555_v25  ;;  %v9575_v61 = vsub.f32 %v17421_v45, %v17529_v55  ;;  %v9576_v10 = vsub.f32 %v17426_v42, %v17529_v55  ;;  %v9577_v40 = vsub.f32 %v17438_v26, %v17529_v55  ;;  %v17592_v42 = vld [vmem:[%s17726_s8 + $0x2] ss:$0 sm:$0xff]  ;;  %s12699_s8 = smov [#allocation2]  }
0x1505   :  { %v9578_v31 = vsub.f32 %v17447_v59, %v17529_v55  ;;  %v9579_v27 = vsub.f32 %v17453_v7, %v17529_v55  ;;  %v9580_v60 = vsub.f32 %v17458_v51, %v17529_v55  ;;  %v9581_v14 = vsub.f32 %v17477_v41, %v17529_v55  ;;  %s9771_s9 = sshll.u32 %s12699_s8, 4  ;;  %s9772_s9 = int_to_ptr.vmem [resolvable:$true] %s9771_s9 }
0x1506   :  { %12483 = vrsqrt.f32 %v9588_v35  ;;  %v9582_v45 = vsub.f32 %v17474_v57, %v17529_v55  ;;  %v9583_v26 = vsub.f32 %v17487_v23, %v17529_v55  ;;  %v9584_v59 = vsub.f32 %v17497_v1, %v17529_v55  ;;  %s12667_s7 = scalar_lea.vmem %s9772_s9, 4096  ;;  %p12672_p9 = scmp.lt.s32.totalorder %s9772_s9, %s9772_s9 }
0x1507   :  { %v9585_v7 = vsub.f32 %v17506_v24, %v17529_v55  ;;  %v9586_v51 = vsub.f32 %v17509_v11, %v17529_v55  ;;  %p12668_p8 = scmp.ne.s32.totalorder %s9772_s9, %s12667_s7  ;;  %p12673_p10 = scmp.lt.s32.totalorder %s12667_s7, %s12667_s7 }
0x1509   :  { %p12674_p11 = por %p12673_p10, %p12672_p9 }
0x150b   :  { %p12675_p12 = pnand %p12674_p11, %p12668_p8 }
0x1510   :  { %v12484_v6 = vpop.eup %12483 }
0x1511   :  { %v9621_v41 = vmul.f32 %v12484_v6, %v9587_v4  ;;  %v9590_v57 = vmul.f32 %v12484_v6, %v9556_v12  ;;  %v9591_v39 = vmul.f32 %v12484_v6, %v9557_v30  ;;  %v9592_v62 = vmul.f32 %v12484_v6, %v9558_v21 }
0x1512   :  { %v9593_v33 = vmul.f32 %v12484_v6, %v9559_v13  ;;  %v9594_v23 = vmul.f32 %v12484_v6, %v9560_v18  ;;  %v9595_v49 = vmul.f32 %v12484_v6, %v9561_v17  ;;  %v9596_v8 = vmul.f32 %v12484_v6, %v9562_v37 }
0x1513   :  { %v9661_v1 = vmul.f32 %v17592_v42, %v9621_v41  ;;  %v9597_v50 = vmul.f32 %v12484_v6, %v9563_v36  ;;  %v9598_v24 = vmul.f32 %v12484_v6, %v9564_v56  ;;  %v9599_v47 = vmul.f32 %v12484_v6, %v9565_v32 }
0x1514   :  { %v9600_v48 = vmul.f32 %v12484_v6, %v9566_v43  ;;  %v9601_v11 = vmul.f32 %v12484_v6, %v9567_v58  ;;  %v9602_v5 = vmul.f32 %v12484_v6, %v9568_v0  ;;  %v9603_v53 = vmul.f32 %v12484_v6, %v9569_v54 }
0x1515   :  { %v9701_v16 = vadd.f32 %v17605_v46, %v9661_v1  ;;  %v9604_v52 = vmul.f32 %v12484_v6, %v9570_v34  ;;  %v9605_v15 = vmul.f32 %v12484_v6, %v9571_v28  ;;  %v9606_v9 = vmul.f32 %v12484_v6, %v9572_v22 }
0x1516   :  { %v9607_v38 = vmul.f32 %v12484_v6, %v9573_v3  ;;  %v9608_v20 = vmul.f32 %v12484_v6, %v9574_v2  ;;  %v9609_v55 = vmul.f32 %v12484_v6, %v9575_v61  ;;  %v9610_v44 = vmul.f32 %v12484_v6, %v9576_v10 }
0x1517   :  { %9733 = vst.msk [vmem:[#allocation2 + $0xf8] sm:$0xff] %vm541_vm0, %v9701_v16  ;;  %v9611_v29 = vmul.f32 %v12484_v6, %v9577_v40  ;;  %v9612_v19 = vmul.f32 %v12484_v6, %v9578_v31  ;;  %v9613_v63 = vmul.f32 %v12484_v6, %v9579_v27  ;;  %v9614_v25 = vmul.f32 %v12484_v6, %v9580_v60 }
0x1518   :  { %v9615_v35 = vmul.f32 %v12484_v6, %v9581_v14  ;;  %v9616_v4 = vmul.f32 %v12484_v6, %v9582_v45  ;;  %v9617_v12 = vmul.f32 %v12484_v6, %v9583_v26  ;;  %v9618_v30 = vmul.f32 %v12484_v6, %v9584_v59 }
0x1519   :  { %v9619_v21 = vmul.f32 %v12484_v6, %v9585_v7  ;;  %v9620_v13 = vmul.f32 %v12484_v6, %v9586_v51  ;;  %v9630_v18 = vmul.f32 %v17592_v42, %v9590_v57  ;;  %v9631_v17 = vmul.f32 %v17592_v42, %v9591_v39 }
0x151a   :  { %v9632_v37 = vmul.f32 %v17592_v42, %v9592_v62  ;;  %v9633_v36 = vmul.f32 %v17592_v42, %v9593_v33  ;;  %v9634_v56 = vmul.f32 %v17592_v42, %v9594_v23  ;;  %v9635_v32 = vmul.f32 %v17592_v42, %v9595_v49 }
0x151b   :  { %v9636_v43 = vmul.f32 %v17592_v42, %v9596_v8  ;;  %v9637_v58 = vmul.f32 %v17592_v42, %v9597_v50  ;;  %v9638_v0 = vmul.f32 %v17592_v42, %v9598_v24  ;;  %v9639_v54 = vmul.f32 %v17592_v42, %v9599_v47 }
0x151c   :  { %v9640_v34 = vmul.f32 %v17592_v42, %v9600_v48  ;;  %v9641_v28 = vmul.f32 %v17592_v42, %v9601_v11  ;;  %v9642_v22 = vmul.f32 %v17592_v42, %v9602_v5  ;;  %v9643_v3 = vmul.f32 %v17592_v42, %v9603_v53 }
0x151d   :  { %v9644_v2 = vmul.f32 %v17592_v42, %v9604_v52  ;;  %v9645_v61 = vmul.f32 %v17592_v42, %v9605_v15  ;;  %v9646_v10 = vmul.f32 %v17592_v42, %v9606_v9  ;;  %v9647_v40 = vmul.f32 %v17592_v42, %v9607_v38 }
0x151e   :  { %v9648_v31 = vmul.f32 %v17592_v42, %v9608_v20  ;;  %v9649_v27 = vmul.f32 %v17592_v42, %v9609_v55  ;;  %v9650_v60 = vmul.f32 %v17592_v42, %v9610_v44  ;;  %v9651_v14 = vmul.f32 %v17592_v42, %v9611_v29 }
0x151f   :  { %v9652_v45 = vmul.f32 %v17592_v42, %v9612_v19  ;;  %v9653_v6 = vmul.f32 %v17592_v42, %v9613_v63  ;;  %v9654_v26 = vmul.f32 %v17592_v42, %v9614_v25  ;;  %v9655_v59 = vmul.f32 %v17592_v42, %v9615_v35 }
0x1520   :  { %v9656_v7 = vmul.f32 %v17592_v42, %v9616_v4  ;;  %v9657_v51 = vmul.f32 %v17592_v42, %v9617_v12  ;;  %v9658_v41 = vmul.f32 %v17592_v42, %v9618_v30  ;;  %v9659_v57 = vmul.f32 %v17592_v42, %v9619_v21 }
0x1521   :  { %v9660_v39 = vmul.f32 %v17592_v42, %v9620_v13  ;;  %v9670_v62 = vadd.f32 %v17605_v46, %v9630_v18  ;;  %v9671_v33 = vadd.f32 %v17605_v46, %v9631_v17  ;;  %v9672_v23 = vadd.f32 %v17605_v46, %v9632_v37 }
0x1522   :  { %v9673_v49 = vadd.f32 %v17605_v46, %v9633_v36  ;;  %v9674_v8 = vadd.f32 %v17605_v46, %v9634_v56  ;;  %v9675_v1 = vadd.f32 %v17605_v46, %v9635_v32  ;;  %v9676_v50 = vadd.f32 %v17605_v46, %v9636_v43 }
0x1523   :  { %v9677_v24 = vadd.f32 %v17605_v46, %v9637_v58  ;;  %v9678_v47 = vadd.f32 %v17605_v46, %v9638_v0  ;;  %v9679_v42 = vadd.f32 %v17605_v46, %v9639_v54  ;;  %v9680_v48 = vadd.f32 %v17605_v46, %v9640_v34  ;;  %9702 = vst.msk [vmem:[#allocation2] sm:$0xff] %vm541_vm0, %v9670_v62 }
0x1524   :  { %9703 = vst.msk [vmem:[#allocation2 + $0x8] sm:$0xff] %vm541_vm0, %v9671_v33  ;;  %9704 = vst.msk [vmem:[#allocation2 + $0x10] sm:$0xff] %vm541_vm0, %v9672_v23  ;;  %v9681_v11 = vadd.f32 %v17605_v46, %v9641_v28  ;;  %v9682_v5 = vadd.f32 %v17605_v46, %v9642_v22  ;;  %v9683_v53 = vadd.f32 %v17605_v46, %v9643_v3 }
0x1525   :  { %v9684_v16 = vadd.f32 %v17605_v46, %v9644_v2  ;;  %9705 = vst.msk [vmem:[#allocation2 + $0x18] sm:$0xff] %vm541_vm0, %v9673_v49  ;;  %9706 = vst.msk [vmem:[#allocation2 + $0x20] sm:$0xff] %vm541_vm0, %v9674_v8  ;;  %v9685_v52 = vadd.f32 %v17605_v46, %v9645_v61  ;;  %v9686_v15 = vadd.f32 %v17605_v46, %v9646_v10 }
0x1526   :  { %9707 = vst.msk [vmem:[#allocation2 + $0x28] sm:$0xff] %vm541_vm0, %v9675_v1  ;;  %9708 = vst.msk [vmem:[#allocation2 + $0x30] sm:$0xff] %vm541_vm0, %v9676_v50  ;;  %v9687_v9 = vadd.f32 %v17605_v46, %v9647_v40  ;;  %v9688_v38 = vadd.f32 %v17605_v46, %v9648_v31  ;;  %v9689_v20 = vadd.f32 %v17605_v46, %v9649_v27 }
0x1527   :  { %9709 = vst.msk [vmem:[#allocation2 + $0x38] sm:$0xff] %vm541_vm0, %v9677_v24  ;;  %9710 = vst.msk [vmem:[#allocation2 + $0x40] sm:$0xff] %vm541_vm0, %v9678_v47  ;;  %v9690_v55 = vadd.f32 %v17605_v46, %v9650_v60  ;;  %v9691_v44 = vadd.f32 %v17605_v46, %v9651_v14  ;;  %v9692_v29 = vadd.f32 %v17605_v46, %v9652_v45 }
0x1528   :  { %9711 = vst.msk [vmem:[#allocation2 + $0x48] sm:$0xff] %vm541_vm0, %v9679_v42  ;;  %9712 = vst.msk [vmem:[#allocation2 + $0x50] sm:$0xff] %vm541_vm0, %v9680_v48  ;;  %v9693_v19 = vadd.f32 %v17605_v46, %v9653_v6  ;;  %v9694_v63 = vadd.f32 %v17605_v46, %v9654_v26  ;;  %v9695_v25 = vadd.f32 %v17605_v46, %v9655_v59 }
0x1529   :  { %9713 = vst.msk [vmem:[#allocation2 + $0x58] sm:$0xff] %vm541_vm0, %v9681_v11  ;;  %9714 = vst.msk [vmem:[#allocation2 + $0x60] sm:$0xff] %vm541_vm0, %v9682_v5  ;;  %v9696_v35 = vadd.f32 %v17605_v46, %v9656_v7  ;;  %v9697_v4 = vadd.f32 %v17605_v46, %v9657_v51  ;;  %v9698_v12 = vadd.f32 %v17605_v46, %v9658_v41 }
0x152a   :  { %9715 = vst.msk [vmem:[#allocation2 + $0x68] sm:$0xff] %vm541_vm0, %v9683_v53  ;;  %9716 = vst.msk [vmem:[#allocation2 + $0x70] sm:$0xff] %vm541_vm0, %v9684_v16  ;;  %v9699_v30 = vadd.f32 %v17605_v46, %v9659_v57  ;;  %v9700_v21 = vadd.f32 %v17605_v46, %v9660_v39 }
0x152b   :  { %9717 = vst.msk [vmem:[#allocation2 + $0x78] sm:$0xff] %vm541_vm0, %v9685_v52  ;;  %9718 = vst.msk [vmem:[#allocation2 + $0x80] sm:$0xff] %vm541_vm0, %v9686_v15 }
0x152c   :  { %9719 = vst.msk [vmem:[#allocation2 + $0x88] sm:$0xff] %vm541_vm0, %v9687_v9  ;;  %9720 = vst.msk [vmem:[#allocation2 + $0x90] sm:$0xff] %vm541_vm0, %v9688_v38 }
0x152d   :  { %9721 = vst.msk [vmem:[#allocation2 + $0x98] sm:$0xff] %vm541_vm0, %v9689_v20  ;;  %9722 = vst.msk [vmem:[#allocation2 + $0xa0] sm:$0xff] %vm541_vm0, %v9690_v55 }
0x152e   :  { %9723 = vst.msk [vmem:[#allocation2 + $0xa8] sm:$0xff] %vm541_vm0, %v9691_v44  ;;  %9724 = vst.msk [vmem:[#allocation2 + $0xb0] sm:$0xff] %vm541_vm0, %v9692_v29 }
0x152f   :  { %9725 = vst.msk [vmem:[#allocation2 + $0xb8] sm:$0xff] %vm541_vm0, %v9693_v19  ;;  %9726 = vst.msk [vmem:[#allocation2 + $0xc0] sm:$0xff] %vm541_vm0, %v9694_v63 }
0x1530   :  { %9727 = vst.msk [vmem:[#allocation2 + $0xc8] sm:$0xff] %vm541_vm0, %v9695_v25  ;;  %9728 = vst.msk [vmem:[#allocation2 + $0xd0] sm:$0xff] %vm541_vm0, %v9696_v35 }
0x1531   :  { %9729 = vst.msk [vmem:[#allocation2 + $0xd8] sm:$0xff] %vm541_vm0, %v9697_v4  ;;  %9730 = vst.msk [vmem:[#allocation2 + $0xe0] sm:$0xff] %vm541_vm0, %v9698_v12 }
0x1532   :  { %9731 = vst.msk [vmem:[#allocation2 + $0xe8] sm:$0xff] %vm541_vm0, %v9699_v30  ;;  %9732 = vst.msk [vmem:[#allocation2 + $0xf0] sm:$0xff] %vm541_vm0, %v9700_v21 }
0x1533   :  { %12678 = shalt.err (!%p12675_p12)
}
0x1534   :  { %s12679_s23 = scalar_lea.hbm %s17728_s10, 4096 }
0x1535   :  { %p12680_p13 = scmp.ne.s32.totalorder %s17728_s10, %s12679_s23  ;;  %p12683_p0 = scmp.lt.u32.totalorder %s12679_s23, %s17728_s10 }
0x1537   :  { %p12685_p1 = pnand %p12683_p0, %p12680_p13 }
0x1539   :  { %12688 = shalt.err (!%p12685_p1)
}
0x153a   :  { %9777 = dma.vmem_to_hbm [thread:$0]  %s9772_s9, 4096, %s17728_s10, [#allocation3], %s12697_s16, %s12697_s16, %s12698_s17  }
0x153b   :  { %12689 = dma.done.wait [#allocation3], 4096  }
0x153c   :  { %12690 = vsyncadd [#allocation3], 4294963200 }
0x153d   :  { %12691 = dma.done.wait [#allocation5], 4096  }
0x153e   :  { %12692 = vsyncadd [#allocation5], 4294963200 }
0x153f   :  { %9796 = vsyncpa [#allocation3], 1 }
0x1540   :  { %9797 = vsyncpa [#allocation5], 1 }

</bundles_post_ra>
